<compile_context>
chip_gen: v5e
topology: v5e:2x2
jax: 0.10.0
libtpu: 0.0.40
codegen_flags: <defaults>
</compile_context>

<pallas_src>
import functools

import jax
import jax.numpy as jnp
from jax.experimental import pallas as pl
from jax.experimental.pallas import tpu as pltpu

_HI = jax.lax.Precision.HIGHEST   # keep f32 matmul accuracy on both sides


# ----------------------------- Pallas kernels -----------------------------

def _fused_vqk_kernel(x_ref, w_ref, scale_ref, shift_ref, slope_ref,
                      ov_ref, oqk_ref, *, n_v):
    """Fused convV + convQK as one block-diagonal 1x1 conv.

    x_ref:   (1, Cin, TVblk)        NCHW slab for one sample / spatial tile
    w_ref:   (Cout_total, Cin)      block-diagonal grouped weights (V ++ QK)
    scale/shift/slope: (Cout_total, 1)  folded BN / bias / LeakyReLU slope
    ov_ref:  (1, CoutV, TVblk)      convV branch (BN + LeakyReLU(0.1) fused)
    oqk_ref: (1, CoutQK, TVblk)     convQK branch (bias only, slope = 1)
    """
    y = jnp.dot(w_ref[...], x_ref[0], precision=_HI,
                preferred_element_type=jnp.float32)            # (Ctot, TVblk)
    y = y * scale_ref[...] + shift_ref[...]
    y = jnp.where(y >= 0.0, y, slope_ref[...] * y)             # per-channel slope
    ov_ref[0] = y[:n_v]
    oqk_ref[0] = y[n_v:]


def _convw_tanh_kernel(x_ref, w_ref, scale_ref, shift_ref, o_ref):
    """convW on tanh(diff): block-diagonal over all S*Nh groups, alpha folded.

    x_ref: (1, S*Nh*relS, VVblk)   w_ref: (S*Nh*Cp, S*Nh*relS)
    scale/shift: (S*Nh*Cp, 1) = (alpha, alpha*bias)   o_ref: (1, S*Nh*Cp, VVblk)
    """
    x = jnp.tanh(x_ref[0])
    y = jnp.dot(w_ref[...], x, precision=_HI,
                preferred_element_type=jnp.float32)
    o_ref[0] = y * scale_ref[...] + shift_ref[...]


def _graph_bn_kernel(a_ref, w_ref, v_ref, scale_ref, shift_ref, o_ref, *, nh):
    """out[c,t,v] = sum_{h,u} (A[h,v,u] + W[h,c,v,u]) * V[h,c,t,u]; then BN.

    a_ref: (Nh, V, V)   w_ref: (1, 1, Nh*Cp, V, V)   v_ref: (1, 1, Nh*Cp, T, V)
    scale/shift: (1, Cp, 1, V)   o_ref: (1, 1, Cp, T, V)
    """
    hc, vdim = w_ref.shape[2], w_ref.shape[4]
    t = v_ref.shape[3]
    cp = hc // nh
    a = jnp.broadcast_to(a_ref[...][:, None], (nh, cp, vdim, vdim))
    wm = w_ref[0, 0] + a.reshape(hc, vdim, vdim)               # (Nh*Cp, V, V)
    vm = v_ref[0, 0]                                           # (Nh*Cp, T, V)
    acc = jnp.einsum('btu,bvu->btv', vm, wm, precision=_HI,
                     preferred_element_type=jnp.float32)       # (Nh*Cp, T, V)
    acc = acc.reshape(nh, cp, t, vdim).sum(axis=0)             # (Cp, T, V)
    o_ref[0, 0] = acc * scale_ref[0] + shift_ref[0]


# ----------------------------- pallas_call wrappers -----------------------------

def _pick_cols_tile(total, max_tile=2048):
    """Largest 128-multiple divisor of `total` <= max_tile (else full extent)."""
    if total <= max_tile:
        return total
    for t in range(max_tile, 127, -128):
        if total % t == 0:
            return t
    return total


def fused_vqk_conv(x3, w_comb, scale, shift, slope, n_v):
    """x3: (N, Cin, T*V) -> ((N, CoutV, T*V), (N, CoutQK, T*V))."""
    N, C, TV = x3.shape
    c_tot = w_comb.shape[0]
    n_qk = c_tot - n_v
    tv_blk = _pick_cols_tile(TV)
    return pl.pallas_call(
        functools.partial(_fused_vqk_kernel, n_v=n_v),
        out_shape=(jax.ShapeDtypeStruct((N, n_v, TV), jnp.float32),
                   jax.ShapeDtypeStruct((N, n_qk, TV), jnp.float32)),
        grid=(N, TV // tv_blk),
        in_specs=[
            pl.BlockSpec((1, C, tv_blk), lambda n, j: (n, 0, j)),
            pl.BlockSpec((c_tot, C), lambda n, j: (0, 0)),
            pl.BlockSpec((c_tot, 1), lambda n, j: (0, 0)),
            pl.BlockSpec((c_tot, 1), lambda n, j: (0, 0)),
            pl.BlockSpec((c_tot, 1), lambda n, j: (0, 0)),
        ],
        out_specs=(pl.BlockSpec((1, n_v, tv_blk), lambda n, j: (n, 0, j)),
                   pl.BlockSpec((1, n_qk, tv_blk), lambda n, j: (n, 0, j))),
        compiler_params=pltpu.CompilerParams(
            dimension_semantics=("parallel", "parallel")),
    )(x3, w_comb, scale, shift, slope)


def convw_pointwise_tanh(d3, w_bd, scale, shift):
    """d3: (N, S*Nh*relS, V*V) -> (N, S*Nh*Cp, V*V), alpha*(W@tanh(d)+b)."""
    N, K, VV = d3.shape
    co = w_bd.shape[0]
    vv_blk = _pick_cols_tile(VV)
    return pl.pallas_call(
        _convw_tanh_kernel,
        out_shape=jax.ShapeDtypeStruct((N, co, VV), jnp.float32),
        grid=(N, VV // vv_blk),
        in_specs=[
            pl.BlockSpec((1, K, vv_blk), lambda n, j: (n, 0, j)),
            pl.BlockSpec((co, K), lambda n, j: (0, 0)),
            pl.BlockSpec((co, 1), lambda n, j: (0, 0)),
            pl.BlockSpec((co, 1), lambda n, j: (0, 0)),
        ],
        out_specs=pl.BlockSpec((1, co, vv_blk), lambda n, j: (n, 0, j)),
        compiler_params=pltpu.CompilerParams(
            dimension_semantics=("parallel", "parallel")),
    )(d3, w_bd, scale, shift)


def graph_einsum_bn(A, w5, v5, scale, shift, *, Nh):
    """w5: (N,S,Nh*Cp,V,V), v5: (N,S,Nh*Cp,T,V), scale/shift: (S,Cp,1,V)."""
    N, S, hc, V, _ = w5.shape
    T = v5.shape[3]
    Cp = hc // Nh
    return pl.pallas_call(
        functools.partial(_graph_bn_kernel, nh=Nh),
        out_shape=jax.ShapeDtypeStruct((N, S, Cp, T, V), jnp.float32),
        grid=(N, S),
        in_specs=[
            pl.BlockSpec((Nh, V, V), lambda n, s: (0, 0, 0)),
            pl.BlockSpec((1, 1, hc, V, V), lambda n, s: (n, s, 0, 0, 0)),
            pl.BlockSpec((1, 1, hc, T, V), lambda n, s: (n, s, 0, 0, 0)),
            pl.BlockSpec((1, Cp, 1, V), lambda n, s: (s, 0, 0, 0)),
            pl.BlockSpec((1, Cp, 1, V), lambda n, s: (s, 0, 0, 0)),
        ],
        out_specs=pl.BlockSpec((1, 1, Cp, T, V), lambda n, s: (n, s, 0, 0, 0)),
        compiler_params=pltpu.CompilerParams(
            dimension_semantics=("parallel", "parallel")),
    )(A, w5, v5, scale, shift)


# ------------------------------- forward pass -------------------------------

def _block_diag(w_g):
    """(G, Co, Ci) per-group weights -> (G*Co, G*Ci) block-diagonal matrix."""
    G, co, ci = w_g.shape
    eye = jnp.eye(G, dtype=w_g.dtype)
    return jnp.einsum('gij,gh->gihj', w_g, eye).reshape(G * co, G * ci)


def scalewise_graphconv(x, p, *, Nh, num_scale, out_channels, eps=1e-5):
    N, C, T, V = x.shape
    S = num_scale
    Cp = out_channels // S                      # per-(scale, head) value channels
    relS = p['convW_w'].shape[1]                # rel_channels // num_scale
    CoutV = p['convV_w'].shape[0]               # out_channels * Nh
    CoutQK = p['convQK_w'].shape[0]             # 2 * rel * Nh

    # ---- fused convV + convQK: block-diagonal grouped 1x1 conv (NCHW kept) ----
    wV_g = p['convV_w'][:, :, 0, 0].reshape(S, CoutV // S, C // S)
    wQK_g = p['convQK_w'][:, :, 0, 0].reshape(S, CoutQK // S, C // S)
    w_comb = jnp.concatenate([_block_diag(wV_g), _block_diag(wQK_g)], axis=0)

    sV = p['bnV_g'] / jnp.sqrt(p['bnV_v'] + eps)
    shV = p['bnV_b'] + (p['convV_b'] - p['bnV_m']) * sV
    scale = jnp.concatenate([sV, jnp.ones((CoutQK,), jnp.float32)])[:, None]
    shift = jnp.concatenate([shV, p['convQK_b']])[:, None]
    slope = jnp.concatenate([jnp.full((CoutV,), 0.1, jnp.float32),
                             jnp.ones((CoutQK,), jnp.float32)])[:, None]

    x3 = x.reshape(N, C, T * V)
    v_flat, qk_flat = fused_vqk_conv(x3, w_comb, scale, shift, slope, CoutV)
    v5 = v_flat.reshape(N, S, Nh * Cp, T, V)

    # ---- q/k temporal mean + pairwise difference (tiny XLA glue) ----
    qk = qk_flat.reshape(N, S, Nh, 2 * relS, T, V)
    qk_mean = qk.mean(axis=4)                               # (N, S, Nh, 2*relS, V)
    qm = qk_mean[:, :, :, :relS].reshape(N, S * Nh * relS, V)
    km = qk_mean[:, :, :, relS:].reshape(N, S * Nh * relS, V)
    diff = (qm[:, :, :, None] - km[:, :, None, :]).reshape(N, S * Nh * relS, V * V)

    # ---- convW on tanh(diff): block-diag over S*Nh groups; alpha folded ----
    wW_g = p['convW_w'][:, :, 0, 0].reshape(S * Nh, Cp, relS)
    wW_bd = _block_diag(wW_g)                               # (S*Nh*Cp, S*Nh*relS)
    alpha = p['alpha'][0]
    w_scale = alpha * jnp.ones((CoutV, 1), jnp.float32)
    w_shift = (alpha * p['convW_b'])[:, None]
    w_learned = convw_pointwise_tanh(diff, wW_bd, w_scale, w_shift)   # (N, 192, V*V)
    w5 = w_learned.reshape(N, S, Nh * Cp, V, V)

    # ---- graph einsum 'nshcvu,nshctu->nsctv' + adjacency + final BN ----
    s_bn = p['bn_g'] / jnp.sqrt(p['bn_v'] + eps)
    sh_bn = p['bn_b'] - p['bn_m'] * s_bn
    scale_g = jnp.broadcast_to(s_bn.reshape(S, Cp, 1, 1), (S, Cp, 1, V))
    shift_g = jnp.broadcast_to(sh_bn.reshape(S, Cp, 1, 1), (S, Cp, 1, V))
    out = graph_einsum_bn(p['A'], w5, v5, scale_g, shift_g, Nh=Nh)    # (N,S,Cp,T,V)
    return out.reshape(N, out_channels, T, V)


# ------------------------------ reference (pure JAX) ------------------------------

def _conv1x1(x, w, b, groups):
    y = jax.lax.conv_general_dilated(
        x, w, window_strides=(1, 1), padding='VALID',
        dimension_numbers=('NCHW', 'OIHW', 'NCHW'),
        feature_group_count=groups, precision=_HI)
    return y + b.reshape(1, -1, 1, 1)


def _bn(x, g, b, m, v, eps=1e-5):
    r = lambda a: a.reshape(1, -1, 1, 1)
    return r(g) * (x - r(m)) / jnp.sqrt(r(v) + eps) + r(b)


def reference_forward(x, p, *, Nh, num_scale):
    N, C, T, V = x.shape
    S = num_scale
    v = _conv1x1(x, p['convV_w'], p['convV_b'], S)
    v = _bn(v, p['bnV_g'], p['bnV_b'], p['bnV_m'], p['bnV_v'])
    v = jnp.where(v > 0, v, 0.1 * v).reshape(N, S, Nh, -1, T, V)
    qk = _conv1x1(x, p['convQK_w'], p['convQK_b'], S).reshape(N, S, Nh, -1, T, V)
    relS = qk.shape[3] // 2
    q, k = qk[:, :, :, :relS], qk[:, :, :, relS:]
    qm = q.mean(-2).reshape(N, -1, V, 1)
    km = k.mean(-2).reshape(N, -1, 1, V)
    w = _conv1x1(jnp.tanh(qm - km), p['convW_w'], p['convW_b'], S * Nh)
    w = w.reshape(N, S, Nh, -1, V, V)
    w = p['A'].reshape(1, 1, Nh, 1, V, V) + p['alpha'] * w
    out = jnp.einsum('nshcvu,nshctu->nsctv', w, v, precision=_HI).reshape(N, -1, T, V)
    return _bn(out, p['bn_g'], p['bn_b'], p['bn_m'], p['bn_v'])


# ------------------------------------ main ------------------------------------

def init_params(key, in_channels, out_channels, Nh, V, num_scale):
    rel = in_channels // 8 if in_channels != 3 else 8
    S = num_scale
    ks = jax.random.split(key, 16)
    n = lambda k, shape, s=0.1: s * jax.random.normal(k, shape, jnp.float32)
    params = dict(
        convV_w=n(ks[0], (out_channels * Nh, in_channels // S, 1, 1)),
        convV_b=n(ks[1], (out_channels * Nh,)),
        bnV_g=1.0 + n(ks[2], (out_channels * Nh,)),
        bnV_b=n(ks[3], (out_channels * Nh,)),
        bnV_m=n(ks[4], (out_channels * Nh,)),
        bnV_v=0.5 + jnp.abs(n(ks[5], (out_channels * Nh,))),
        convQK_w=n(ks[6], (2 * rel * Nh, in_channels // S, 1, 1)),
        convQK_b=n(ks[7], (2 * rel * Nh,)),
        convW_w=n(ks[8], (out_channels * Nh, rel // S, 1, 1)),
        convW_b=n(ks[9], (out_channels * Nh,)),
        A=n(ks[10], (Nh, V, V), 0.5),
        # module __init__ sets alpha=zeros(1); use a nonzero value so the learned branch is exercised
        alpha=jnp.array([0.5], jnp.float32),
        bn_g=1.0 + n(ks[11], (out_channels,)),
        bn_b=n(ks[12], (out_channels,)),
        bn_m=n(ks[13], (out_channels,)),
        bn_v=0.5 + jnp.abs(n(ks[14], (out_channels,))),
    )
    return params


if __name__ == "__main__":
    N, in_channels, out_channels = 2, 64, 64
    T, V, Nh, num_scale = 8, 16, 3, 4

    key = jax.random.PRNGKey(0)
    kx, kp = jax.random.split(key)
    x = jax.random.normal(kx, (N, in_channels, T, V), jnp.float32)
    params = init_params(kp, in_channels, out_channels, Nh, V, num_scale)

    fwd = jax.jit(functools.partial(scalewise_graphconv, Nh=Nh,
                                    num_scale=num_scale, out_channels=out_channels))
    out = fwd(x, params)
    jax.block_until_ready(out)

    ref = reference_forward(x, params, Nh=Nh, num_scale=num_scale)
    assert out.shape == (N, out_channels, T, V)
    max_err = float(jnp.max(jnp.abs(out - ref)))
    assert jnp.allclose(out, ref, atol=5e-3, rtol=5e-3), max_err
    print("KERNEL_OK")
</pallas_src>

<mosaic_0001>
module attributes {stable_mosaic.version = 11 : i64} {
  func.func @_fused_vqk_kernel(%arg0: i32, %arg1: i32, %arg2: memref<1x64x128xf32, #tpu.memory_space<vmem>>, %arg3: memref<240x64xf32, #tpu.memory_space<vmem>>, %arg4: memref<240x1xf32, #tpu.memory_space<vmem>>, %arg5: memref<240x1xf32, #tpu.memory_space<vmem>>, %arg6: memref<240x1xf32, #tpu.memory_space<vmem>>, %arg7: memref<1x192x128xf32, #tpu.memory_space<vmem>>, %arg8: memref<1x48x128xf32, #tpu.memory_space<vmem>>) attributes {dimension_semantics = [#tpu.dimension_semantics<parallel>, #tpu.dimension_semantics<parallel>], iteration_bounds = array<i64: 2, 1>, scalar_prefetch = 0 : i64, scratch_operands = 0 : i64, tpu.core_type = #tpu.core_type<tc>, window_params = [{transform_indices = @transform_0, window_bounds = array<i64: 1, 64, 128>}, {pipeline_mode = #tpu.pipeline_mode<synchronous>, transform_indices = @transform_1, window_bounds = array<i64: 240, 64>}, {pipeline_mode = #tpu.pipeline_mode<synchronous>, transform_indices = @transform_2, window_bounds = array<i64: 240, 1>}, {pipeline_mode = #tpu.pipeline_mode<synchronous>, transform_indices = @transform_3, window_bounds = array<i64: 240, 1>}, {pipeline_mode = #tpu.pipeline_mode<synchronous>, transform_indices = @transform_4, window_bounds = array<i64: 240, 1>}, {transform_indices = @transform_5, window_bounds = array<i64: 1, 192, 128>}, {transform_indices = @transform_6, window_bounds = array<i64: 1, 48, 128>}]} {
    %c0 = arith.constant 0 : index
    %c0_0 = arith.constant 0 : index
    %0 = vector.load %arg3[%c0, %c0_0] : memref<240x64xf32, #tpu.memory_space<vmem>>, vector<240x64xf32>
    %c0_1 = arith.constant 0 : index
    %c0_2 = arith.constant 0 : index
    %c0_3 = arith.constant 0 : index
    %1 = vector.load %arg2[%c0_1, %c0_2, %c0_3] : memref<1x64x128xf32, #tpu.memory_space<vmem>>, vector<1x64x128xf32>
    %2 = vector.shape_cast %1 : vector<1x64x128xf32> to vector<64x128xf32>
    %cst = arith.constant dense<0.000000e+00> : vector<240x128xf32>
    %3 = tpu.matmul %0, %2, %cst {dimension_numbers = #tpu.dot_dimension_numbers<[1], [0], [0], [1], [0, 0, 1, 1], [], []>, precision = #tpu.contract_precision<fp32>} : vector<240x64xf32>, vector<64x128xf32>, vector<240x128xf32> -> vector<240x128xf32>
    %c0_4 = arith.constant 0 : index
    %c0_5 = arith.constant 0 : index
    %4 = vector.load %arg4[%c0_4, %c0_5] : memref<240x1xf32, #tpu.memory_space<vmem>>, vector<240x1xf32>
    %5 = vector.broadcast %4 : vector<240x1xf32> to vector<240x128xf32>
    %6 = arith.mulf %3, %5 : vector<240x128xf32>
    %c0_6 = arith.constant 0 : index
    %c0_7 = arith.constant 0 : index
    %7 = vector.load %arg5[%c0_6, %c0_7] : memref<240x1xf32, #tpu.memory_space<vmem>>, vector<240x1xf32>
    %8 = vector.broadcast %7 : vector<240x1xf32> to vector<240x128xf32>
    %9 = arith.addf %6, %8 : vector<240x128xf32>
    %cst_8 = arith.constant 0.000000e+00 : f32
    %10 = vector.broadcast %cst_8 : f32 to vector<240x128xf32>
    %11 = arith.cmpf oge, %9, %10 : vector<240x128xf32>
    %c0_9 = arith.constant 0 : index
    %c0_10 = arith.constant 0 : index
    %12 = vector.load %arg6[%c0_9, %c0_10] : memref<240x1xf32, #tpu.memory_space<vmem>>, vector<240x1xf32>
    %13 = vector.broadcast %12 : vector<240x1xf32> to vector<240x128xf32>
    %14 = arith.mulf %13, %9 : vector<240x128xf32>
    %15 = arith.select %11, %9, %14 : vector<240x128xi1>, vector<240x128xf32>
    %16 = vector.extract_strided_slice %15 {offsets = [0, 0], sizes = [192, 128], strides = [1, 1]} : vector<240x128xf32> to vector<192x128xf32>
    %c0_11 = arith.constant 0 : index
    %c0_12 = arith.constant 0 : index
    %c0_13 = arith.constant 0 : index
    %17 = vector.load %arg7[%c0_11, %c0_12, %c0_13] : memref<1x192x128xf32, #tpu.memory_space<vmem>>, vector<1x192x128xf32>
    %18 = vector.shape_cast %17 : vector<1x192x128xf32> to vector<192x128xf32>
    %19 = vector.shape_cast %16 : vector<192x128xf32> to vector<1x192x128xf32>
    tpu.vector_store %arg7[%c0_11, %c0_12, %c0_13], %19 {strides = array<i32>} : memref<1x192x128xf32, #tpu.memory_space<vmem>>, vector<1x192x128xf32>,
    %20 = vector.extract_strided_slice %15 {offsets = [192, 0], sizes = [48, 128], strides = [1, 1]} : vector<240x128xf32> to vector<48x128xf32>
    %c0_14 = arith.constant 0 : index
    %c0_15 = arith.constant 0 : index
    %c0_16 = arith.constant 0 : index
    %21 = vector.load %arg8[%c0_14, %c0_15, %c0_16] : memref<1x48x128xf32, #tpu.memory_space<vmem>>, vector<1x48x128xf32>
    %22 = vector.shape_cast %21 : vector<1x48x128xf32> to vector<48x128xf32>
    %23 = vector.shape_cast %20 : vector<48x128xf32> to vector<1x48x128xf32>
    tpu.vector_store %arg8[%c0_14, %c0_15, %c0_16], %23 {strides = array<i32>} : memref<1x48x128xf32, #tpu.memory_space<vmem>>, vector<1x48x128xf32>,
    return
  }
  func.func @transform_0(%arg0: i32, %arg1: i32) -> (i32, i32, i32) {
    %c0_i32 = arith.constant 0 : i32
    %c0_i32_0 = arith.constant 0 : i32
    return %arg0, %c0_i32, %arg1 : i32, i32, i32
  }
  func.func @transform_1(%arg0: i32, %arg1: i32) -> (i32, i32) {
    %c0_i32 = arith.constant 0 : i32
    %c0_i32_0 = arith.constant 0 : i32
    %c0_i32_1 = arith.constant 0 : i32
    return %c0_i32, %c0_i32_0 : i32, i32
  }
  func.func @transform_2(%arg0: i32, %arg1: i32) -> (i32, i32) {
    %c0_i32 = arith.constant 0 : i32
    %c0_i32_0 = arith.constant 0 : i32
    %c0_i32_1 = arith.constant 0 : i32
    return %c0_i32, %c0_i32_0 : i32, i32
  }
  func.func @transform_3(%arg0: i32, %arg1: i32) -> (i32, i32) {
    %c0_i32 = arith.constant 0 : i32
    %c0_i32_0 = arith.constant 0 : i32
    %c0_i32_1 = arith.constant 0 : i32
    return %c0_i32, %c0_i32_0 : i32, i32
  }
  func.func @transform_4(%arg0: i32, %arg1: i32) -> (i32, i32) {
    %c0_i32 = arith.constant 0 : i32
    %c0_i32_0 = arith.constant 0 : i32
    %c0_i32_1 = arith.constant 0 : i32
    return %c0_i32, %c0_i32_0 : i32, i32
  }
  func.func @transform_5(%arg0: i32, %arg1: i32) -> (i32, i32, i32) {
    %c0_i32 = arith.constant 0 : i32
    %c0_i32_0 = arith.constant 0 : i32
    return %arg0, %c0_i32, %arg1 : i32, i32, i32
  }
  func.func @transform_6(%arg0: i32, %arg1: i32) -> (i32, i32, i32) {
    %c0_i32 = arith.constant 0 : i32
    %c0_i32_0 = arith.constant 0 : i32
    return %arg0, %c0_i32, %arg1 : i32, i32, i32
  }
}

module attributes {stable_mosaic.version = 11 : i64} {
  func.func @_convw_tanh_kernel(%arg0: i32, %arg1: i32, %arg2: memref<1x24x256xf32, #tpu.memory_space<vmem>>, %arg3: memref<192x24xf32, #tpu.memory_space<vmem>>, %arg4: memref<192x1xf32, #tpu.memory_space<vmem>>, %arg5: memref<192x1xf32, #tpu.memory_space<vmem>>, %arg6: memref<1x192x256xf32, #tpu.memory_space<vmem>>) attributes {dimension_semantics = [#tpu.dimension_semantics<parallel>, #tpu.dimension_semantics<parallel>], iteration_bounds = array<i64: 2, 1>, scalar_prefetch = 0 : i64, scratch_operands = 0 : i64, tpu.core_type = #tpu.core_type<tc>, window_params = [{transform_indices = @transform_0, window_bounds = array<i64: 1, 24, 256>}, {pipeline_mode = #tpu.pipeline_mode<synchronous>, transform_indices = @transform_1, window_bounds = array<i64: 192, 24>}, {pipeline_mode = #tpu.pipeline_mode<synchronous>, transform_indices = @transform_2, window_bounds = array<i64: 192, 1>}, {pipeline_mode = #tpu.pipeline_mode<synchronous>, transform_indices = @transform_3, window_bounds = array<i64: 192, 1>}, {transform_indices = @transform_4, window_bounds = array<i64: 1, 192, 256>}]} {
    %c0 = arith.constant 0 : index
    %c0_0 = arith.constant 0 : index
    %c0_1 = arith.constant 0 : index
    %0 = vector.load %arg2[%c0, %c0_0, %c0_1] : memref<1x24x256xf32, #tpu.memory_space<vmem>>, vector<1x24x256xf32>
    %1 = vector.shape_cast %0 : vector<1x24x256xf32> to vector<24x256xf32>
    %2 = math.tanh %1 : vector<24x256xf32>
    %c0_2 = arith.constant 0 : index
    %c0_3 = arith.constant 0 : index
    %3 = vector.load %arg3[%c0_2, %c0_3] : memref<192x24xf32, #tpu.memory_space<vmem>>, vector<192x24xf32>
    %cst = arith.constant dense<0.000000e+00> : vector<192x256xf32>
    %4 = tpu.matmul %3, %2, %cst {dimension_numbers = #tpu.dot_dimension_numbers<[1], [0], [0], [1], [0, 0, 1, 1], [], []>, precision = #tpu.contract_precision<fp32>} : vector<192x24xf32>, vector<24x256xf32>, vector<192x256xf32> -> vector<192x256xf32>
    %c0_4 = arith.constant 0 : index
    %c0_5 = arith.constant 0 : index
    %5 = vector.load %arg4[%c0_4, %c0_5] : memref<192x1xf32, #tpu.memory_space<vmem>>, vector<192x1xf32>
    %6 = vector.broadcast %5 : vector<192x1xf32> to vector<192x256xf32>
    %7 = arith.mulf %4, %6 : vector<192x256xf32>
    %c0_6 = arith.constant 0 : index
    %c0_7 = arith.constant 0 : index
    %8 = vector.load %arg5[%c0_6, %c0_7] : memref<192x1xf32, #tpu.memory_space<vmem>>, vector<192x1xf32>
    %9 = vector.broadcast %8 : vector<192x1xf32> to vector<192x256xf32>
    %10 = arith.addf %7, %9 : vector<192x256xf32>
    %c0_8 = arith.constant 0 : index
    %c0_9 = arith.constant 0 : index
    %c0_10 = arith.constant 0 : index
    %11 = vector.load %arg6[%c0_8, %c0_9, %c0_10] : memref<1x192x256xf32, #tpu.memory_space<vmem>>, vector<1x192x256xf32>
    %12 = vector.shape_cast %11 : vector<1x192x256xf32> to vector<192x256xf32>
    %13 = vector.shape_cast %10 : vector<192x256xf32> to vector<1x192x256xf32>
    tpu.vector_store %arg6[%c0_8, %c0_9, %c0_10], %13 {strides = array<i32>} : memref<1x192x256xf32, #tpu.memory_space<vmem>>, vector<1x192x256xf32>,
    return
  }
  func.func @transform_0(%arg0: i32, %arg1: i32) -> (i32, i32, i32) {
    %c0_i32 = arith.constant 0 : i32
    %c0_i32_0 = arith.constant 0 : i32
    return %arg0, %c0_i32, %arg1 : i32, i32, i32
  }
  func.func @transform_1(%arg0: i32, %arg1: i32) -> (i32, i32) {
    %c0_i32 = arith.constant 0 : i32
    %c0_i32_0 = arith.constant 0 : i32
    %c0_i32_1 = arith.constant 0 : i32
    return %c0_i32, %c0_i32_0 : i32, i32
  }
  func.func @transform_2(%arg0: i32, %arg1: i32) -> (i32, i32) {
    %c0_i32 = arith.constant 0 : i32
    %c0_i32_0 = arith.constant 0 : i32
    %c0_i32_1 = arith.constant 0 : i32
    return %c0_i32, %c0_i32_0 : i32, i32
  }
  func.func @transform_3(%arg0: i32, %arg1: i32) -> (i32, i32) {
    %c0_i32 = arith.constant 0 : i32
    %c0_i32_0 = arith.constant 0 : i32
    %c0_i32_1 = arith.constant 0 : i32
    return %c0_i32, %c0_i32_0 : i32, i32
  }
  func.func @transform_4(%arg0: i32, %arg1: i32) -> (i32, i32, i32) {
    %c0_i32 = arith.constant 0 : i32
    %c0_i32_0 = arith.constant 0 : i32
    return %arg0, %c0_i32, %arg1 : i32, i32, i32
  }
}

module attributes {stable_mosaic.version = 11 : i64} {
  func.func @_graph_bn_kernel(%arg0: i32, %arg1: i32, %arg2: memref<3x16x16xf32, #tpu.memory_space<vmem>>, %arg3: memref<1x1x48x16x16xf32, #tpu.memory_space<vmem>>, %arg4: memref<1x1x48x8x16xf32, #tpu.memory_space<vmem>>, %arg5: memref<1x16x1x16xf32, #tpu.memory_space<vmem>>, %arg6: memref<1x16x1x16xf32, #tpu.memory_space<vmem>>, %arg7: memref<1x1x16x8x16xf32, #tpu.memory_space<vmem>>) attributes {dimension_semantics = [#tpu.dimension_semantics<parallel>, #tpu.dimension_semantics<parallel>], iteration_bounds = array<i64: 2, 4>, scalar_prefetch = 0 : i64, scratch_operands = 0 : i64, tpu.core_type = #tpu.core_type<tc>, window_params = [{pipeline_mode = #tpu.pipeline_mode<synchronous>, transform_indices = @transform_0, window_bounds = array<i64: 3, 16, 16>}, {transform_indices = @transform_1, window_bounds = array<i64: 1, 1, 48, 16, 16>}, {transform_indices = @transform_2, window_bounds = array<i64: 1, 1, 48, 8, 16>}, {transform_indices = @transform_3, window_bounds = array<i64: 1, 16, 1, 16>}, {transform_indices = @transform_4, window_bounds = array<i64: 1, 16, 1, 16>}, {transform_indices = @transform_5, window_bounds = array<i64: 1, 1, 16, 8, 16>}]} {
    %c0 = arith.constant 0 : index
    %c0_0 = arith.constant 0 : index
    %c0_1 = arith.constant 0 : index
    %0 = vector.load %arg2[%c0, %c0_0, %c0_1] : memref<3x16x16xf32, #tpu.memory_space<vmem>>, vector<3x16x16xf32>
    %1 = vector.shape_cast %0 : vector<3x16x16xf32> to vector<3x1x16x16xf32>
    %2 = vector.shape_cast %1 : vector<3x1x16x16xf32> to vector<3x1x16x16xf32>
    %3 = vector.broadcast %2 : vector<3x1x16x16xf32> to vector<3x16x16x16xf32>
    %c0_2 = arith.constant 0 : index
    %c0_3 = arith.constant 0 : index
    %c0_4 = arith.constant 0 : index
    %c0_5 = arith.constant 0 : index
    %c0_6 = arith.constant 0 : index
    %4 = vector.load %arg3[%c0_2, %c0_3, %c0_4, %c0_5, %c0_6] : memref<1x1x48x16x16xf32, #tpu.memory_space<vmem>>, vector<1x1x48x16x16xf32>
    %5 = vector.shape_cast %4 : vector<1x1x48x16x16xf32> to vector<48x16x16xf32>
    %6 = vector.shape_cast %3 : vector<3x16x16x16xf32> to vector<48x16x16xf32>
    %7 = arith.addf %5, %6 : vector<48x16x16xf32>
    %c0_7 = arith.constant 0 : index
    %c0_8 = arith.constant 0 : index
    %c0_9 = arith.constant 0 : index
    %c0_10 = arith.constant 0 : index
    %c0_11 = arith.constant 0 : index
    %8 = vector.load %arg4[%c0_7, %c0_8, %c0_9, %c0_10, %c0_11] : memref<1x1x48x8x16xf32, #tpu.memory_space<vmem>>, vector<1x1x48x8x16xf32>
    %9 = vector.shape_cast %8 : vector<1x1x48x8x16xf32> to vector<48x8x16xf32>
    "tpu.trace_start"() <{level = 10 : i32, message = "btu,bvu->btv"}> : () -> ()
    %cst = arith.constant dense<0.000000e+00> : vector<48x8x16xf32>
    %10 = tpu.matmul %9, %7, %cst {dimension_numbers = #tpu.dot_dimension_numbers<[2], [2], [1], [1], [0, 0, 0, 1, 1, 1], [0], [0]>, precision = #tpu.contract_precision<fp32>} : vector<48x8x16xf32>, vector<48x16x16xf32>, vector<48x8x16xf32> -> vector<48x8x16xf32>
    "tpu.trace_stop"() : () -> ()
    %11 = vector.shape_cast %10 : vector<48x8x16xf32> to vector<3x16x8x16xf32>
    %cst_12 = arith.constant dense<0.000000e+00> : vector<16x8x16xf32>
    %12 = vector.multi_reduction <add>, %11, %cst_12 [0] : vector<3x16x8x16xf32> to vector<16x8x16xf32>
    %c0_13 = arith.constant 0 : index
    %c0_14 = arith.constant 0 : index
    %c0_15 = arith.constant 0 : index
    %c0_16 = arith.constant 0 : index
    %13 = vector.load %arg5[%c0_13, %c0_14, %c0_15, %c0_16] : memref<1x16x1x16xf32, #tpu.memory_space<vmem>>, vector<1x16x1x16xf32>
    %14 = vector.shape_cast %13 : vector<1x16x1x16xf32> to vector<16x1x16xf32>
    %15 = vector.broadcast %14 : vector<16x1x16xf32> to vector<16x8x16xf32>
    %16 = arith.mulf %12, %15 : vector<16x8x16xf32>
    %c0_17 = arith.constant 0 : index
    %c0_18 = arith.constant 0 : index
    %c0_19 = arith.constant 0 : index
    %c0_20 = arith.constant 0 : index
    %17 = vector.load %arg6[%c0_17, %c0_18, %c0_19, %c0_20] : memref<1x16x1x16xf32, #tpu.memory_space<vmem>>, vector<1x16x1x16xf32>
    %18 = vector.shape_cast %17 : vector<1x16x1x16xf32> to vector<16x1x16xf32>
    %19 = vector.broadcast %18 : vector<16x1x16xf32> to vector<16x8x16xf32>
    %20 = arith.addf %16, %19 : vector<16x8x16xf32>
    %c0_21 = arith.constant 0 : index
    %c0_22 = arith.constant 0 : index
    %c0_23 = arith.constant 0 : index
    %c0_24 = arith.constant 0 : index
    %c0_25 = arith.constant 0 : index
    %21 = vector.load %arg7[%c0_21, %c0_22, %c0_23, %c0_24, %c0_25] : memref<1x1x16x8x16xf32, #tpu.memory_space<vmem>>, vector<1x1x16x8x16xf32>
    %22 = vector.shape_cast %21 : vector<1x1x16x8x16xf32> to vector<16x8x16xf32>
    %23 = vector.shape_cast %20 : vector<16x8x16xf32> to vector<1x1x16x8x16xf32>
    tpu.vector_store %arg7[%c0_21, %c0_22, %c0_23, %c0_24, %c0_25], %23 {strides = array<i32>} : memref<1x1x16x8x16xf32, #tpu.memory_space<vmem>>, vector<1x1x16x8x16xf32>,
    return
  }
  func.func @transform_0(%arg0: i32, %arg1: i32) -> (i32, i32, i32) {
    %c0_i32 = arith.constant 0 : i32
    %c0_i32_0 = arith.constant 0 : i32
    %c0_i32_1 = arith.constant 0 : i32
    %c0_i32_2 = arith.constant 0 : i32
    return %c0_i32, %c0_i32_0, %c0_i32_1 : i32, i32, i32
  }
  func.func @transform_1(%arg0: i32, %arg1: i32) -> (i32, i32, i32, i32, i32) {
    %c0_i32 = arith.constant 0 : i32
    %c0_i32_0 = arith.constant 0 : i32
    %c0_i32_1 = arith.constant 0 : i32
    %c0_i32_2 = arith.constant 0 : i32
    return %arg0, %arg1, %c0_i32, %c0_i32_0, %c0_i32_1 : i32, i32, i32, i32, i32
  }
  func.func @transform_2(%arg0: i32, %arg1: i32) -> (i32, i32, i32, i32, i32) {
    %c0_i32 = arith.constant 0 : i32
    %c0_i32_0 = arith.constant 0 : i32
    %c0_i32_1 = arith.constant 0 : i32
    %c0_i32_2 = arith.constant 0 : i32
    return %arg0, %arg1, %c0_i32, %c0_i32_0, %c0_i32_1 : i32, i32, i32, i32, i32
  }
  func.func @transform_3(%arg0: i32, %arg1: i32) -> (i32, i32, i32, i32) {
    %c0_i32 = arith.constant 0 : i32
    %c0_i32_0 = arith.constant 0 : i32
    %c0_i32_1 = arith.constant 0 : i32
    %c0_i32_2 = arith.constant 0 : i32
    return %arg1, %c0_i32, %c0_i32_0, %c0_i32_1 : i32, i32, i32, i32
  }
  func.func @transform_4(%arg0: i32, %arg1: i32) -> (i32, i32, i32, i32) {
    %c0_i32 = arith.constant 0 : i32
    %c0_i32_0 = arith.constant 0 : i32
    %c0_i32_1 = arith.constant 0 : i32
    %c0_i32_2 = arith.constant 0 : i32
    return %arg1, %c0_i32, %c0_i32_0, %c0_i32_1 : i32, i32, i32, i32
  }
  func.func @transform_5(%arg0: i32, %arg1: i32) -> (i32, i32, i32, i32, i32) {
    %c0_i32 = arith.constant 0 : i32
    %c0_i32_0 = arith.constant 0 : i32
    %c0_i32_1 = arith.constant 0 : i32
    %c0_i32_2 = arith.constant 0 : i32
    return %arg0, %arg1, %c0_i32, %c0_i32_0, %c0_i32_1 : i32, i32, i32, i32, i32
  }
}

</mosaic_0001>

<bundles_post_ra>
// kernel: squeeze.6
= control target key start
LH: loop header
LB: loop body
LE: loop exit
PB: predicated region body
PF: predicated region fallthrough
CT: control target
= control target key end

     0   :  { %vm11_vm0 = vcmask 130048   ;;  %s76_s11 = smov 112   ;;  %s77_s12 = smov 80   ;;  %s135_s0 = inlined_call_operand.vmem [shape: f32[192,2], index: 0, kind: input, shape index: {}]   ;;  %s136_s1 = inlined_call_operand.vmem [shape: f32[12,16,2], index: 1, kind: output, shape index: {}]  }
   0x1   :  { %v60_v0 = vld [vmem:[%s135_s0 + $0x2] sm:$0x3]  ;;  %v8_v1 = vld [vmem:[%s135_s0] sm:$0x3]  ;;  %s78_s13 = smov 48   ;;  %s79_s16 = smov 96  }
   0x2   :  { %7 = vst [vmem:[#allocation0 + $0x8] sm:$0x3] %v60_v0  ;;  %s80_s17 = smov 64   ;;  %s81_s18 = smov 32  }
   0x3   :  { %9 = vst [vmem:[#allocation0] sm:$0x3] %v8_v1  ;;  %s82_s19 = smov 16  }
   0x9   :  { %v14_v2 = vld [vmem:[#allocation0 + $0x8] sm:$0x3]  }
   0xa   :  { %v18_v3 = vld.sshfl [vmem:[#allocation0] sm:$0xff pattern:$0x99999180]   ;;  %61 = vst.msk [vmem:[%s136_s1 + $0x8] ss:$16 sm:$0x3] %vm11_vm0, %v14_v2  }
   0xb   :  { %19 = vrot.lane.b32.xlu0 %v18_v3, %s76_s11  ;;  %31 = vrot.lane.b32.xlu1 %v18_v3, %s77_s12  ;;  %v42_v4 = vld [vmem:[#allocation0] sm:$0x3]  }
   0xc   :  { %43 = vrot.lane.b32.xlu2 %v42_v4, %s78_s13  ;;  %v10_v5 = vld [vmem:[#allocation0] sm:$0x3]  }
   0xd   :  { %12 = vst.msk [vmem:[%s136_s1] ss:$16 sm:$0x3] %vm11_vm0, %v10_v5   ;;  %v36_v6 = vld [vmem:[#allocation0] sm:$0x3]  }
   0xe   :  { %v48_v7 = vld [vmem:[#allocation0] sm:$0x3]  }
   0xf   :  { %v54_v8 = vld [vmem:[#allocation0] sm:$0x3]  }
  0x13   :  { %25 = vrot.lane.b32.xlu0 %v18_v3, %s79_s16  ;;  %37 = vrot.lane.b32.xlu1 %v36_v6, %s80_s17 }
  0x14   :  { %49 = vrot.lane.b32.xlu2 %v48_v7, %s81_s18 }
  0x1b   :  { %55 = vrot.lane.b32.xlu0 %v54_v8, %s82_s19 }
  0x66   :  { %v44_v9 = vpop.permute.xlu2 %43  }
  0x67   :  { %66 = vst.msk [vmem:[%s136_s1 + $0x5] ss:$16 sm:$0x3] %vm11_vm0, %v44_v9  }
  0x6e   :  { %v50_v10 = vpop.permute.xlu2 %49  }
  0x6f   :  { %67 = vst.msk [vmem:[%s136_s1 + $0x6] ss:$16 sm:$0x3] %vm11_vm0, %v50_v10  }
  0x7d   :  { %v20_v11 = vpop.permute.xlu0 %19   ;;  %v32_v12 = vpop.permute.xlu1 %31  }
  0x7e   :  { %62 = vst.msk [vmem:[%s136_s1 + $0x1] ss:$8 sm:$0xf] %vm11_vm0, %v20_v11  }
  0x7f   :  { %64 = vst.msk [vmem:[%s136_s1 + $0x3] ss:$8 sm:$0xf] %vm11_vm0, %v32_v12  }
  0x85   :  { %v26_v13 = vpop.permute.xlu0 %25   ;;  %v38_v14 = vpop.permute.xlu1 %37  }
  0x86   :  { %63 = vst.msk [vmem:[%s136_s1 + $0x2] ss:$8 sm:$0xf] %vm11_vm0, %v26_v13  }
  0x87   :  { %65 = vst.msk [vmem:[%s136_s1 + $0x4] ss:$16 sm:$0x3] %vm11_vm0, %v38_v14  }
  0x8d   :  { %v56_v15 = vpop.permute.xlu0 %55  }
  0x8e   :  { %68 = vst.msk [vmem:[%s136_s1 + $0x7] ss:$16 sm:$0x3] %vm11_vm0, %v56_v15  }

// kernel: squeeze.4
= control target key start
LH: loop header
LB: loop body
LE: loop exit
PB: predicated region body
PF: predicated region fallthrough
CT: control target
= control target key end

     0   :  { %vm51_vm0 = vcmask 785408   ;;  %s204_s10 = smov 112   ;;  %s205_s11 = smov 32   ;;  %vm3_vm1 = vcmask 392192   ;;  %vm55_vm2 = vcmask 261120   ;;  %vm60_vm3 = vcmask 392448   ;;  %s297_s0 = inlined_call_operand.vmem [shape: f32[192,16], index: 0, kind: input, shape index: {}]   ;;  %s298_s1 = inlined_call_operand.vmem [shape: f32[4,48,16], index: 1, kind: output, shape index: {}]  }
   0x1   :  { %v48_v0 = vld [vmem:[%s297_s0] sm:$0xff]   ;;  %v183_v1 = vld [vmem:[%s297_s0 + $0x8] sm:$0xff]   ;;  %s206_s12 = smov 80   ;;  %v184_v3 = vld [vmem:[%s297_s0 + $0x10] sm:$0xff]  }
   0x2   :  { %v52_v2 = vsel %vm51_vm0, %v183_v1, %v48_v0  ;;  %15 = vrot.lane.b32.xlu1 %v183_v1, %s204_s10  ;;  %32 = vrot.lane.b32.xlu2 %v48_v0, %s206_s12  ;;  %v185_v4 = vld [vmem:[%s297_s0 + $0x18] sm:$0xff]   ;;  %4 = vst.msk [vmem:[#allocation0] ss:$8 sm:$0xf] %vm3_vm1, %v48_v0  }
   0x3   :  { %53 = vrot.lane.b32.xlu0 %v52_v2, %s205_s11  ;;  %v70_v5 = vsel %vm51_vm0, %v185_v4, %v184_v3  ;;  %5 = vst.msk [vmem:[#allocation0] ss:$8 sm:$0xf0] %vm3_vm1, %v48_v0  }
   0x4   :  { %10 = vst.msk [vmem:[#allocation0 + $0x40] ss:$8 sm:$0xf] %vm3_vm1, %v184_v3  }
   0x5   :  { %12 = vst.msk [vmem:[#allocation0 + $0x40] ss:$8 sm:$0xf0] %vm3_vm1, %v184_v3  }
   0xa   :  { %24 = vrot.lane.b32.xlu1 %v185_v4, %s204_s10  ;;  %41 = vrot.lane.b32.xlu2 %v184_v3, %s206_s12 }
   0xb   :  { %71 = vrot.lane.b32.xlu0 %v70_v5, %s205_s11 }
  0x5c   :  { %v33_v6 = vpop.permute.xlu2 %32  }
  0x5d   :  { %36 = vst.msk [vmem:[#allocation0 + $0x1] ss:$8 sm:$0xf] %vm3_vm1, %v33_v6  }
  0x5e   :  { %38 = vst.msk [vmem:[#allocation0 + $0x1] ss:$8 sm:$0xf0] %vm3_vm1, %v33_v6  }
  0x64   :  { %v42_v7 = vpop.permute.xlu2 %41  }
  0x65   :  { %45 = vst.msk [vmem:[#allocation0 + $0x41] ss:$8 sm:$0xf] %vm3_vm1, %v42_v7  }
  0x66   :  { %47 = vst.msk [vmem:[#allocation0 + $0x41] ss:$8 sm:$0xf0] %vm3_vm1, %v42_v7  }
  0x74   :  { %v16_v8 = vpop.permute.xlu1 %15  }
  0x75   :  { %v54_v9 = vpop.permute.xlu0 %53   ;;  %19 = vst.msk [vmem:[#allocation0 + $0x3] ss:$8 sm:$0xf] %vm3_vm1, %v16_v8  }
  0x76   :  { %57 = vst.msk [vmem:[#allocation0 + $0x2] ss:$8 sm:$0xf] %vm55_vm2, %v54_v9  }
  0x77   :  { %59 = vst.msk [vmem:[#allocation0 + $0x2] ss:$8 sm:$0xf0] %vm55_vm2, %v54_v9  }
  0x78   :  { %62 = vst.msk [vmem:[#allocation0 + $0x2] ss:$8 sm:$0xf] %vm60_vm3, %v54_v9  }
  0x79   :  { %64 = vst.msk [vmem:[#allocation0 + $0x2] ss:$8 sm:$0xf0] %vm60_vm3, %v54_v9  }
  0x7a   :  { %21 = vst.msk [vmem:[#allocation0 + $0x3] ss:$8 sm:$0xf0] %vm3_vm1, %v16_v8  }
  0x7c   :  { %v25_v10 = vpop.permute.xlu1 %24  }
  0x7d   :  { %v72_v11 = vpop.permute.xlu0 %71   ;;  %28 = vst.msk [vmem:[#allocation0 + $0x43] ss:$8 sm:$0xf] %vm3_vm1, %v25_v10  }
  0x7e   :  { %75 = vst.msk [vmem:[#allocation0 + $0x42] ss:$8 sm:$0xf] %vm55_vm2, %v72_v11  }
  0x7f   :  { %v85_v12 = vld [vmem:[#allocation0] sm:$0xf]  ;;  %v90_v13 = vld [vmem:[#allocation0 + $0x8] sm:$0xf]  ;;  %v96_v14 = vld [vmem:[#allocation0 + $0x10] sm:$0xf] }
  0x80   :  { %88 = vst [vmem:[%s298_s1] sm:$0xf] %v85_v12  ;;  %v102_v15 = vld [vmem:[#allocation0 + $0x18] sm:$0xf] }
  0x81   :  { %186 = vst [vmem:[%s298_s1 + $0x4] sm:$0xf] %v90_v13  ;;  %v108_v16 = vld [vmem:[#allocation0 + $0x20] sm:$0xf]  ;;  %v114_v17 = vld [vmem:[#allocation0 + $0x28] sm:$0xf] }
  0x82   :  { %187 = vst [vmem:[%s298_s1 + $0x8] sm:$0xf] %v96_v14  ;;  %v120_v18 = vld [vmem:[#allocation0 + $0x30] sm:$0xf]  ;;  %v126_v19 = vld [vmem:[#allocation0 + $0x38] sm:$0xf] }
  0x83   :  { %188 = vst [vmem:[%s298_s1 + $0xc] sm:$0xf] %v102_v15 }
  0x84   :  { %189 = vst [vmem:[%s298_s1 + $0x10] sm:$0xf] %v108_v16 }
  0x85   :  { %190 = vst [vmem:[%s298_s1 + $0x14] sm:$0xf] %v114_v17 }
  0x86   :  { %191 = vst [vmem:[%s298_s1 + $0x18] sm:$0xf] %v120_v18 }
  0x87   :  { %192 = vst [vmem:[%s298_s1 + $0x1c] sm:$0xf] %v126_v19 }
  0x88   :  { %77 = vst.msk [vmem:[#allocation0 + $0x42] ss:$8 sm:$0xf0] %vm55_vm2, %v72_v11  }
  0x89   :  { %80 = vst.msk [vmem:[#allocation0 + $0x42] ss:$8 sm:$0xf] %vm60_vm3, %v72_v11  }
  0x8a   :  { %82 = vst.msk [vmem:[#allocation0 + $0x42] ss:$8 sm:$0xf0] %vm60_vm3, %v72_v11  }
  0x8b   :  { %30 = vst.msk [vmem:[#allocation0 + $0x43] ss:$8 sm:$0xf0] %vm3_vm1, %v25_v10  }
  0x90   :  { %v132_v20 = vld [vmem:[#allocation0 + $0x40] sm:$0xf]  ;;  %v138_v21 = vld [vmem:[#allocation0 + $0x48] sm:$0xf]  ;;  %v144_v22 = vld [vmem:[#allocation0 + $0x50] sm:$0xf] }
  0x91   :  { %193 = vst [vmem:[%s298_s1 + $0x20] sm:$0xf] %v132_v20  ;;  %v150_v23 = vld [vmem:[#allocation0 + $0x58] sm:$0xf] }
  0x92   :  { %194 = vst [vmem:[%s298_s1 + $0x24] sm:$0xf] %v138_v21  ;;  %v156_v24 = vld [vmem:[#allocation0 + $0x60] sm:$0xf]  ;;  %v162_v25 = vld [vmem:[#allocation0 + $0x68] sm:$0xf] }
  0x93   :  { %195 = vst [vmem:[%s298_s1 + $0x28] sm:$0xf] %v144_v22  ;;  %v168_v26 = vld [vmem:[#allocation0 + $0x70] sm:$0xf]  ;;  %v174_v27 = vld [vmem:[#allocation0 + $0x78] sm:$0xf] }
  0x94   :  { %196 = vst [vmem:[%s298_s1 + $0x2c] sm:$0xf] %v150_v23 }
  0x95   :  { %197 = vst [vmem:[%s298_s1 + $0x30] sm:$0xf] %v156_v24 }
  0x96   :  { %198 = vst [vmem:[%s298_s1 + $0x34] sm:$0xf] %v162_v25 }
  0x97   :  { %199 = vst [vmem:[%s298_s1 + $0x38] sm:$0xf] %v168_v26 }
  0x98   :  { %200 = vst [vmem:[%s298_s1 + $0x3c] sm:$0xf] %v174_v27 }

// kernel: squeeze.5
= control target key start
LH: loop header
LB: loop body
LE: loop exit
PB: predicated region body
PF: predicated region fallthrough
CT: control target
= control target key end

     0   :  { %s182_s8 = smov 104   ;;  %s183_s9 = smov 116   ;;  %vm3_vm0 = vcmask 97280   ;;  %s265_s0 = inlined_call_operand.vmem [shape: f32[48,16], index: 0, kind: input, shape index: {}]   ;;  %s266_s1 = inlined_call_operand.vmem [shape: f32[4,12,16], index: 1, kind: output, shape index: {}]  }
   0x1   :  { %v30_v0 = vld [vmem:[%s265_s0] sm:$0xff]   ;;  %s184_s10 = smov 92   ;;  %v162_v1 = vld [vmem:[%s265_s0 + $0x8] sm:$0xff]  }
   0x2   :  { %31 = vrot.lane.b32.xlu1 %v30_v0, %s182_s8  ;;  %14 = vrot.lane.b32.xlu0 %v30_v0, %s183_s9  ;;  %5 = vst.msk [vmem:[#allocation0] ss:$8 sm:$0xf0] %vm3_vm0, %v30_v0  }
   0x3   :  { %48 = vrot.lane.b32.xlu2 %v30_v0, %s184_s10  ;;  %4 = vst.msk [vmem:[#allocation0] ss:$8 sm:$0xf] %vm3_vm0, %v30_v0  }
   0x4   :  { %10 = vst.msk [vmem:[#allocation0 + $0x40] ss:$8 sm:$0xf] %vm3_vm0, %v162_v1  }
   0x5   :  { %12 = vst.msk [vmem:[#allocation0 + $0x40] ss:$8 sm:$0xf0] %vm3_vm0, %v162_v1  }
   0xa   :  { %40 = vrot.lane.b32.xlu1 %v162_v1, %s182_s8  ;;  %23 = vrot.lane.b32.xlu0 %v162_v1, %s183_s9 }
   0xb   :  { %57 = vrot.lane.b32.xlu2 %v162_v1, %s184_s10 }
  0x5d   :  { %v49_v2 = vpop.permute.xlu2 %48  }
  0x5e   :  { %52 = vst.msk [vmem:[#allocation0 + $0x3] ss:$8 sm:$0xf] %vm3_vm0, %v49_v2  }
  0x5f   :  { %54 = vst.msk [vmem:[#allocation0 + $0x3] ss:$8 sm:$0xf0] %vm3_vm0, %v49_v2  }
  0x65   :  { %v58_v3 = vpop.permute.xlu2 %57  }
  0x66   :  { %61 = vst.msk [vmem:[#allocation0 + $0x43] ss:$8 sm:$0xf] %vm3_vm0, %v58_v3  }
  0x67   :  { %63 = vst.msk [vmem:[#allocation0 + $0x43] ss:$8 sm:$0xf0] %vm3_vm0, %v58_v3  }
  0x74   :  { %v32_v4 = vpop.permute.xlu1 %31   ;;  %v15_v5 = vpop.permute.xlu0 %14  }
  0x75   :  { %35 = vst.msk [vmem:[#allocation0 + $0x2] ss:$8 sm:$0xf] %vm3_vm0, %v32_v4  }
  0x76   :  { %37 = vst.msk [vmem:[#allocation0 + $0x2] ss:$8 sm:$0xf0] %vm3_vm0, %v32_v4  }
  0x77   :  { %18 = vst.msk [vmem:[#allocation0 + $0x1] ss:$8 sm:$0xf] %vm3_vm0, %v15_v5  }
  0x78   :  { %20 = vst.msk [vmem:[#allocation0 + $0x1] ss:$8 sm:$0xf0] %vm3_vm0, %v15_v5  }
  0x7c   :  { %v41_v6 = vpop.permute.xlu1 %40   ;;  %v24_v7 = vpop.permute.xlu0 %23  }
  0x7d   :  { %44 = vst.msk [vmem:[#allocation0 + $0x42] ss:$8 sm:$0xf] %vm3_vm0, %v41_v6  }
  0x7e   :  { %v66_v8 = vld [vmem:[#allocation0] sm:$0xf]  ;;  %v71_v9 = vld [vmem:[#allocation0 + $0x8] sm:$0xf]  ;;  %v77_v10 = vld [vmem:[#allocation0 + $0x10] sm:$0xf] }
  0x7f   :  { %69 = vst [vmem:[%s266_s1] sm:$0xf] %v66_v8  ;;  %v83_v11 = vld [vmem:[#allocation0 + $0x18] sm:$0xf]  ;;  %v89_v12 = vld [vmem:[#allocation0 + $0x20] sm:$0xf] }
  0x80   :  { %164 = vst [vmem:[%s266_s1 + $0x4] sm:$0xf] %v71_v9  ;;  %v95_v13 = vld [vmem:[#allocation0 + $0x28] sm:$0xf]  ;;  %v101_v14 = vld [vmem:[#allocation0 + $0x30] sm:$0xf] }
  0x81   :  { %165 = vst [vmem:[%s266_s1 + $0x8] sm:$0xf] %v77_v10  ;;  %v107_v15 = vld [vmem:[#allocation0 + $0x38] sm:$0xf] }
  0x82   :  { %166 = vst [vmem:[%s266_s1 + $0xc] sm:$0xf] %v83_v11 }
  0x83   :  { %167 = vst [vmem:[%s266_s1 + $0x10] sm:$0xf] %v89_v12 }
  0x84   :  { %168 = vst [vmem:[%s266_s1 + $0x14] sm:$0xf] %v95_v13 }
  0x85   :  { %169 = vst [vmem:[%s266_s1 + $0x18] sm:$0xf] %v101_v14 }
  0x86   :  { %170 = vst [vmem:[%s266_s1 + $0x1c] sm:$0xf] %v107_v15 }
  0x87   :  { %46 = vst.msk [vmem:[#allocation0 + $0x42] ss:$8 sm:$0xf0] %vm3_vm0, %v41_v6  }
  0x88   :  { %27 = vst.msk [vmem:[#allocation0 + $0x41] ss:$8 sm:$0xf] %vm3_vm0, %v24_v7  }
  0x89   :  { %29 = vst.msk [vmem:[#allocation0 + $0x41] ss:$8 sm:$0xf0] %vm3_vm0, %v24_v7  }
  0x8f   :  { %v113_v16 = vld [vmem:[#allocation0 + $0x40] sm:$0xf]  ;;  %v119_v17 = vld [vmem:[#allocation0 + $0x48] sm:$0xf]  ;;  %v125_v18 = vld [vmem:[#allocation0 + $0x50] sm:$0xf] }
  0x90   :  { %171 = vst [vmem:[%s266_s1 + $0x20] sm:$0xf] %v113_v16  ;;  %v131_v19 = vld [vmem:[#allocation0 + $0x58] sm:$0xf]  ;;  %v137_v20 = vld [vmem:[#allocation0 + $0x60] sm:$0xf] }
  0x91   :  { %172 = vst [vmem:[%s266_s1 + $0x24] sm:$0xf] %v119_v17  ;;  %v143_v21 = vld [vmem:[#allocation0 + $0x68] sm:$0xf]  ;;  %v149_v22 = vld [vmem:[#allocation0 + $0x70] sm:$0xf] }
  0x92   :  { %173 = vst [vmem:[%s266_s1 + $0x28] sm:$0xf] %v125_v18  ;;  %v155_v23 = vld [vmem:[#allocation0 + $0x78] sm:$0xf] }
  0x93   :  { %174 = vst [vmem:[%s266_s1 + $0x2c] sm:$0xf] %v131_v19 }
  0x94   :  { %175 = vst [vmem:[%s266_s1 + $0x30] sm:$0xf] %v137_v20 }
  0x95   :  { %176 = vst [vmem:[%s266_s1 + $0x34] sm:$0xf] %v143_v21 }
  0x96   :  { %177 = vst [vmem:[%s266_s1 + $0x38] sm:$0xf] %v149_v22 }
  0x97   :  { %178 = vst [vmem:[%s266_s1 + $0x3c] sm:$0xf] %v155_v23 }

// kernel: mul.6
= control target key start
LH: loop header
LB: loop body
LE: loop exit
PB: predicated region body
PF: predicated region fallthrough
CT: control target
= control target key end

     0   :  { %s158_s0 = inlined_call_operand.<no memory space> [shape: f32[], index: 0, kind: input, shape index: {}]   ;;  %s159_s1 = inlined_call_operand.vmem [shape: f32[192,1], index: 1, kind: output, shape index: {}]  }
   0x1   :  { %v2_v0 = vstv %s158_s0 }
   0x2   :  { %3 = vst [vmem:[%s159_s1] sm:$0xff] %v2_v0 }
   0x3   :  { %50 = vst [vmem:[%s159_s1 + $0x8] sm:$0xff] %v2_v0 }
   0x4   :  { %51 = vst [vmem:[%s159_s1 + $0x10] sm:$0xff] %v2_v0 }
   0x5   :  { %52 = vst [vmem:[%s159_s1 + $0x18] sm:$0xff] %v2_v0 }
   0x6   :  { %53 = vst [vmem:[%s159_s1 + $0x20] sm:$0xff] %v2_v0 }
   0x7   :  { %54 = vst [vmem:[%s159_s1 + $0x28] sm:$0xff] %v2_v0 }
   0x8   :  { %55 = vst [vmem:[%s159_s1 + $0x30] sm:$0xff] %v2_v0 }
   0x9   :  { %56 = vst [vmem:[%s159_s1 + $0x38] sm:$0xff] %v2_v0 }
   0xa   :  { %57 = vst [vmem:[%s159_s1 + $0x40] sm:$0xff] %v2_v0 }
   0xb   :  { %58 = vst [vmem:[%s159_s1 + $0x48] sm:$0xff] %v2_v0 }
   0xc   :  { %59 = vst [vmem:[%s159_s1 + $0x50] sm:$0xff] %v2_v0 }
   0xd   :  { %60 = vst [vmem:[%s159_s1 + $0x58] sm:$0xff] %v2_v0 }
   0xe   :  { %61 = vst [vmem:[%s159_s1 + $0x60] sm:$0xff] %v2_v0 }
   0xf   :  { %62 = vst [vmem:[%s159_s1 + $0x68] sm:$0xff] %v2_v0 }
  0x10   :  { %63 = vst [vmem:[%s159_s1 + $0x70] sm:$0xff] %v2_v0 }
  0x11   :  { %64 = vst [vmem:[%s159_s1 + $0x78] sm:$0xff] %v2_v0 }
  0x12   :  { %65 = vst [vmem:[%s159_s1 + $0x80] sm:$0xff] %v2_v0 }
  0x13   :  { %66 = vst [vmem:[%s159_s1 + $0x88] sm:$0xff] %v2_v0 }
  0x14   :  { %67 = vst [vmem:[%s159_s1 + $0x90] sm:$0xff] %v2_v0 }
  0x15   :  { %68 = vst [vmem:[%s159_s1 + $0x98] sm:$0xff] %v2_v0 }
  0x16   :  { %69 = vst [vmem:[%s159_s1 + $0xa0] sm:$0xff] %v2_v0 }
  0x17   :  { %70 = vst [vmem:[%s159_s1 + $0xa8] sm:$0xff] %v2_v0 }
  0x18   :  { %71 = vst [vmem:[%s159_s1 + $0xb0] sm:$0xff] %v2_v0 }
  0x19   :  { %72 = vst [vmem:[%s159_s1 + $0xb8] sm:$0xff] %v2_v0 }

// kernel: scalewise_graphconv.3
= control target key start
LH: loop header
LB: loop body
LE: loop exit
PB: predicated region body
PF: predicated region fallthrough
CT: control target
= control target key end

     0   :  { %12 = vsyncpa [#allocation3], 0  ;;  %s2619_s21 = smov 0   ;;  %s2621_s22 = smov 0   ;;  %s3897_s0 = inlined_call_operand.vmem [shape: f32[2,64,128], index: 0, kind: input, shape index: {}]   ;;  %s3898_s1 = inlined_call_operand.vmem [shape: f32[240,64], index: 1, kind: input, shape index: {}]   ;;  %s3899_s2 = inlined_call_operand.vmem [shape: f32[240,1], index: 2, kind: input, shape index: {}]   ;;  %s3900_s3 = inlined_call_operand.vmem [shape: f32[240,1], index: 3, kind: input, shape index: {}]   ;;  %s3901_s4 = inlined_call_operand.hbm [shape: f32[240,1], index: 4, kind: input, shape index: {}]   ;;  %s3902_s5 = inlined_call_operand.vmem [shape: f32[2,192,128], index: 5, kind: output, shape index: {0}]   ;;  %s3903_s6 = inlined_call_operand.vmem [shape: f32[2,48,128], index: 6, kind: output, shape index: {1}]  }
   0x1   :  { %s2623_s23 = smov 0  }
   0x2 LB: > { %s2449_s24 = sadd.s32 4294967295, %s2578_s23   ;;  %s30_s25 = sadd.s32 1, %s2574_s22  ;;  %s2578_s23 = sphi %s2623_s23, %s18_s23   ;;  %s2574_s22 = sphi %s2621_s22, %s4149_s22   ;;  %s2570_s21 = sphi %s2619_s21, %s4148_s21  }
   0x3   : > { %p32_p0 = scmp.ge.s32.totalorder %s30_s25, 2  ;;  %p2451_p1 = scmp.ge.s32.totalorder %s2578_s23, 1 }
   0x4   : > { %p203_p2 = scmp.lt.s32.totalorder %s2578_s23, 3  ;;  %p2489_p4 = scmp.eq.s32.totalorder %s2449_s24, 0 }
   0x5   : > { %s4151_s25 = smov (%p32_p0, %s30_s25), 0  ;;  %s223_s28 = sshll.u32 %s3901_s4, 4  ;;  %s224_s28 = int_to_ptr.hbm [resolvable:$true] %s223_s28 }
   0x6   : > { %p204_p3 = pnand %p2451_p1, %p203_p2  ;;  %s2580_s29 = smov [#allocation2]  }
   0x7   : > { %s225_s30 = sshll.u32 %s2580_s29, 4  ;;  %s2581_s7 = smov 128   ;;  %s226_s30 = int_to_ptr.vmem [resolvable:$true] %s225_s30 }
   0x8   : > { %p2485_p5 = pneg %p204_p3  ;;  %s2582_s8 = smov 8  }
   0x9   : > { %252 = sbr.rel (%p204_p3) target bundleno = 546 (0x222), region = 40 }
   0xa   : > { %p2486_p6 = pnand %p2489_p4, %p2485_p5 }
   0xc   : > { %2488 = dma.hbm_to_vmem [thread:$0]  (!%p2486_p6), %s224_s28, 3840, %s226_s30, [#allocation3], %s2581_s7, %s2581_s7, %s2582_s8  }
   0xe   : > { %2565 = dma.done.wait (%p2489_p4), [#allocation3], 3840  }
   0xf   : > { %2567 = vsyncadd (%p2489_p4), [#allocation3], 4294963456  ;;  %p297_p7 = scmp.lt.s32.totalorder %s2570_s21, 1  ;;  %v2583_v0 = vmov 0   ;;  %v1590_v1 = vld [vmem:[%s3899_s2 + $0x20] sm:$0xff]  ;;  %v1588_v2 = vld [vmem:[%s3899_s2 + $0x10] sm:$0xff] }
  0x10   : > { %2521 = vset.pattern.permute.xlu2 %v2583_v0  ;;  %2520 = vset.pattern.permute.xlu1 %v2583_v0  ;;  %v1586_v3 = vld [vmem:[%s3899_s2] sm:$0xff]  ;;  %vm359_vm0 = vcmask 523264   ;;  %v336_v22 = vld [vmem:[%s3898_s1 + $0x78] sm:$0xff]  ;;  %v1591_v23 = vld [vmem:[%s3899_s2 + $0x28] sm:$0xff] }
  0x11   : > { %2519 = vset.pattern.permute.xlu0 %v2583_v0  ;;  %s4153_s21 = smov (!%p297_p7, %s2570_s21), 1  ;;  %1638 = vperm.xlu2 %2521, %v1590_v1   ;;  %v1589_v24 = vld [vmem:[%s3899_s2 + $0x18] sm:$0xff]  ;;  %v406_v28 = vsel %vm359_vm0, %v336_v22, 0  ;;  %v1587_v29 = vld [vmem:[%s3899_s2 + $0x8] sm:$0xff]  ;;  %v337_v45 = vld [vmem:[%s3898_s1 + $0x80] sm:$0xff] }
  0x12   : > { %s2462_s9 = sshll.u32 %s4153_s21, 6  ;;  %1628 = vperm.xlu1 %2520, %v1588_v2   ;;  %1618 = vperm.xlu0 %2519, %v1586_v3   ;;  %v2704_v32 = vand.u32 4294901760, %v406_v28  ;;  %v321_v46 = vld [vmem:[%s3898_s1] sm:$0xff]  ;;  %v338_v52 = vld [vmem:[%s3898_s1 + $0x88] sm:$0xff]  ;;  %v409_v56 = vsel %vm359_vm0, %v337_v45, 0  ;;  %v1593_v59 = vld [vmem:[%s3899_s2 + $0x38] sm:$0xff] }
  0x13   : > { %s304_s12 = scalar_lea.vmem %s3897_s0, %s2462_s9  ;;  %v322_v53 = vld [vmem:[%s3898_s1 + $0x8] sm:$0xff]  ;;  %v361_v57 = vsel %vm359_vm0, %v321_v46, 0  ;;  %v1594_v58 = vld [vmem:[%s3899_s2 + $0x40] sm:$0xff]  ;;  %v2780_v63 = vand.u32 4294901760, %v409_v56  ;;  %v1592_v0 = vld [vmem:[%s3899_s2 + $0x30] sm:$0xff]  ;;  %v412_v3 = vsel %vm359_vm0, %v338_v52, 0 }
  0x14   : > { %v358_v4 = vld [vmem:[%s304_s12 + $0x38] sm:$0xff]  ;;  %v357_v5 = vld [vmem:[%s304_s12 + $0x30] sm:$0xff]  ;;  %v356_v6 = vld [vmem:[%s304_s12 + $0x28] sm:$0xff]  ;;  %v2728_v40 = vsub.f32 %v406_v28, %v2704_v32  ;;  %v2786_v2 = vand.u32 4294901760, %v361_v57  ;;  %s2479_s13 = smul.u32 192, %s4153_s21 }
  0x15   : > { %v2656_v7 = vand.u32 4294901760, %v358_v4  ;;  %v2658_v8 = vand.u32 4294901760, %v357_v5  ;;  %v2660_v9 = vand.u32 4294901760, %v356_v6  ;;  %v355_v10 = vld [vmem:[%s304_s12 + $0x20] sm:$0xff]  ;;  %v354_v11 = vld [vmem:[%s304_s12 + $0x18] sm:$0xff]  ;;  %v353_v12 = vld [vmem:[%s304_s12 + $0x10] sm:$0xff] }
  0x16   : > { %v2663_v13 = vand.u32 4294901760, %v355_v10  ;;  %v2665_v14 = vand.u32 4294901760, %v354_v11  ;;  %v2670_v16 = vand.u32 4294901760, %v353_v12  ;;  %v352_v17 = vld [vmem:[%s304_s12 + $0x8] sm:$0xff]  ;;  %v351_v21 = vld [vmem:[%s304_s12] sm:$0xff]  ;;  %v3913_v48 = vand.u32 4294901760, %v2728_v40  ;;  %s3690_s16 = scalar_lea.vmem %s3902_s5, %s2479_s13 }
  0x17   : > { %2463 = vmatpush.msra.mxu2 %v2656_v7  ;;  %v2668_v15 = vsub.f32 %v358_v4, %v2656_v7  ;;  %459 = vmatpush.msra.mxu0 %v2656_v7  ;;  %v2674_v18 = vsub.f32 %v357_v5, %v2658_v8  ;;  %v2676_v19 = vand.u32 4294901760, %v352_v17  ;;  %v2679_v20 = vsub.f32 %v356_v6, %v2660_v9  ;;  %v1597_v46 = vld [vmem:[%s3899_s2 + $0x58] sm:$0xff]  ;;  %v1595_v52 = vld [vmem:[%s3899_s2 + $0x48] sm:$0xff]  ;;  %s2480_s17 = smul.u32 48, %s4153_s21 }
  0x18   : > { %v2692_v26 = vand.u32 4294901760, %v351_v21  ;;  %v2695_v27 = vsub.f32 %v355_v10, %v2663_v13  ;;  %v2707_v33 = vsub.f32 %v354_v11, %v2665_v14  ;;  %v2715_v36 = vsub.f32 %v353_v12, %v2670_v16 }
  0x19   : > { %2464 = vmatpush.msra.mxu2 %v2658_v8  ;;  %v725_v25 = vand.u32 4294901760, %v2668_v15  ;;  %461 = vmatpush.msra.mxu0 %v2658_v8  ;;  %v731_v30 = vand.u32 4294901760, %v2674_v18  ;;  %v737_v31 = vand.u32 4294901760, %v2679_v20  ;;  %v2719_v37 = vsub.f32 %v352_v17, %v2676_v19  ;;  %s3866_s20 = scalar_lea.vmem %s3903_s6, %s2480_s17 }
  0x1a   : > { %v743_v35 = vand.u32 4294901760, %v2695_v27  ;;  %1643 = vperm.xlu2 %2521, %v1591_v23   ;;  %1633 = vperm.xlu1 %2520, %v1589_v24   ;;  %v749_v41 = vand.u32 4294901760, %v2707_v33  ;;  %v755_v44 = vand.u32 4294901760, %v2715_v36  ;;  %v2749_v51 = vsub.f32 %v351_v21, %v2692_v26  ;;  %v339_v21 = vld [vmem:[%s3898_s1 + $0x90] sm:$0xff] }
  0x1b   : > { %2465 = vmatpush.msra.mxu2 %v2660_v9  ;;  %v726_v34 = vsub.f32 %v2668_v15, %v725_v25  ;;  %463 = vmatpush.msra.mxu0 %v2660_v9  ;;  %v732_v38 = vsub.f32 %v2674_v18, %v731_v30  ;;  %v738_v39 = vsub.f32 %v2679_v20, %v737_v31  ;;  %v761_v50 = vand.u32 4294901760, %v2719_v37 }
  0x1c   : > { %1623 = vperm.xlu0 %2519, %v1587_v29   ;;  %v2735_v43 = vsub.f32 %v2695_v27, %v743_v35  ;;  %v597_v54 = vsub.f32 %v2728_v40, %v3913_v48  ;;  %v750_v55 = vsub.f32 %v2707_v33, %v749_v41  ;;  %v2777_v61 = vsub.f32 %v2715_v36, %v755_v44 }
  0x1d   : > { %2466 = vmatpush.msra.mxu2 %v2663_v13  ;;  %v727_v42 = vand.u32 4294901760, %v726_v34  ;;  %v733_v47 = vand.u32 4294901760, %v732_v38  ;;  %465 = vmatpush.msra.mxu0 %v2663_v13  ;;  %v739_v49 = vand.u32 4294901760, %v738_v39  ;;  %v767_v62 = vand.u32 4294901760, %v2749_v51  ;;  %v323_v34 = vld [vmem:[%s3898_s1 + $0x10] sm:$0xff] }
  0x1e   : > { %v745_v60 = vand.u32 4294901760, %v2735_v43  ;;  %v598_v1 = vand.u32 4294901760, %v597_v54  ;;  %v364_v4 = vsel %vm359_vm0, %v322_v53, 0  ;;  %v2792_v5 = vsub.f32 %v409_v56, %v2780_v63 }
  0x1f   : > { %2467 = vmatpush.msra.mxu2 %v2665_v14  ;;  %2471 = vmatpush.msra.mxu3 %v727_v42  ;;  %v2794_v6 = vand.u32 4294901760, %v412_v3  ;;  %v751_v10 = vand.u32 4294901760, %v750_v55  ;;  %v762_v11 = vsub.f32 %v2719_v37, %v761_v50  ;;  %v2800_v12 = vsub.f32 %v361_v57, %v2786_v2 }
  0x20   : > { %728 = vmatpush.msra.mxu1 %v727_v42  ;;  %467 = vmatpush.msra.mxu0 %v2665_v14  ;;  %v2802_v17 = vand.u32 4294901760, %v364_v4  ;;  %v3912_v22 = vand.u32 4294901760, %v2792_v5  ;;  %v757_v23 = vand.u32 4294901760, %v2777_v61  ;;  %v768_v24 = vsub.f32 %v2749_v51, %v767_v62  ;;  %v324_v61 = vld [vmem:[%s3898_s1 + $0x18] sm:$0xff] }
  0x21   : > { %2468 = vmatpush.msra.mxu2 %v2670_v16  ;;  %2472 = vmatpush.msra.mxu3 %v733_v47  ;;  %v3926_v28 = vand.u32 4294901760, %v2800_v12  ;;  %v2815_v29 = vsub.f32 %v412_v3, %v2794_v6  ;;  %v415_v39 = vsel %vm359_vm0, %v339_v21, 0  ;;  %v763_v42 = vand.u32 4294901760, %v762_v11  ;;  %v1599_v11 = vld [vmem:[%s3899_s2 + $0x68] sm:$0xff]  ;;  %v1598_v21 = vld [vmem:[%s3899_s2 + $0x60] sm:$0xff] }
  0x22   : > { %734 = vmatpush.msra.mxu1 %v733_v47  ;;  %469 = vmatpush.msra.mxu0 %v2670_v16  ;;  %v605_v38 = vsub.f32 %v2792_v5, %v3912_v22  ;;  %v2830_v45 = vsub.f32 %v364_v4, %v2802_v17  ;;  %v367_v47 = vsel %vm359_vm0, %v323_v34, 0  ;;  %v769_v53 = vand.u32 4294901760, %v768_v24  ;;  %v1600_v4 = vld [vmem:[%s3899_s2 + $0x70] sm:$0xff] }
  0x23   : > { %2469 = vmatpush.msra.mxu2 %v2676_v19  ;;  %2473 = vmatpush.msra.mxu3 %v739_v49  ;;  %v477_v43 = vsub.f32 %v2800_v12, %v3926_v28  ;;  %v3911_v55 = vand.u32 4294901760, %v2815_v29  ;;  %v2845_v56 = vand.u32 4294901760, %v415_v39 }
  0x24   : > { %1658 = vperm.xlu2 %2521, %v1594_v58   ;;  %1653 = vperm.xlu1 %2520, %v1593_v59   ;;  %v606_v54 = vand.u32 4294901760, %v605_v38  ;;  %v3925_v58 = vand.u32 4294901760, %v2830_v45  ;;  %v2850_v59 = vand.u32 4294901760, %v367_v47 }
  0x25   : > { %1648 = vperm.xlu0 %2519, %v1592_v0   ;;  %2470 = vmatpush.msra.mxu2 %v2692_v26  ;;  %v478_v57 = vand.u32 4294901760, %v477_v43 }
  0x26   : > { %2474 = vmatpush.msra.mxu3 %v745_v60  ;;  %599 = vmatmul.f32.vlgmr.msra.gmra.mxu2 %v598_v1  ;;  %v485_v1 = vsub.f32 %v2830_v45, %v3925_v58  ;;  %v2871_v3 = vsub.f32 %v367_v47, %v2850_v59  ;;  %v1603_v47 = vld [vmem:[%s3899_s2 + $0x88] sm:$0xff] }
  0x27   : > { %740 = vmatpush.msra.mxu1 %v739_v49  ;;  %902 = vmatpush.msrb.mxu2 %v2668_v15  ;;  %v1596_v49 = vld [vmem:[%s3899_s2 + $0x50] sm:$0xff]  ;;  %v613_v15 = vsub.f32 %v2815_v29, %v3911_v55 }
  0x28   : > { %2475 = vmatpush.msra.mxu3 %v751_v10  ;;  %471 = vmatpush.msra.mxu0 %v2676_v19 }
  0x29   : > { %746 = vmatpush.msra.mxu1 %v745_v60  ;;  %905 = vmatpush.msrb.mxu2 %v2674_v18  ;;  %v340_v60 = vld [vmem:[%s3898_s1 + $0x98] sm:$0xff]  ;;  %v486_v18 = vand.u32 4294901760, %v485_v1 }
  0x2a   : > { %2476 = vmatpush.msra.mxu3 %v757_v23  ;;  %473 = vmatpush.msra.mxu0 %v2692_v26  ;;  %v418_v0 = vsel %vm359_vm0, %v340_v60, 0 }
  0x2b   : > { %752 = vmatpush.msra.mxu1 %v751_v10  ;;  %479 = vmatmul.f32.vlgmr.msra.gmra.mxu0 %v478_v57  ;;  %v370_v10 = vsel %vm359_vm0, %v324_v61, 0  ;;  %v2887_v34 = vand.u32 4294901760, %v418_v0 }
  0x2c   : > { %1291 = vmatpush.msrb.mxu0 %v725_v25  ;;  %2477 = vmatpush.msra.mxu3 %v763_v42  ;;  %v2859_v25 = vsub.f32 %v415_v39, %v2845_v56  ;;  %v2894_v38 = vand.u32 4294901760, %v370_v10  ;;  %v341_v39 = vld [vmem:[%s3898_s1 + $0xa0] sm:$0xff] }
  0x2d   : > { %1673 = vperm.xlu2 %2521, %v1597_v46   ;;  %1668 = vperm.xlu1 %2520, %v1596_v49   ;;  %v421_v43 = vsel %vm359_vm0, %v341_v39, 0  ;;  %v343_v39 = vld [vmem:[%s3898_s1 + $0xb0] sm:$0xff] }
  0x2e   : > { %1663 = vperm.xlu0 %2519, %v1595_v52   ;;  %2478 = vmatpush.msra.mxu3 %v769_v53  ;;  %v3909_v24 = vand.u32 4294901760, %v2859_v25  ;;  %v2917_v46 = vsub.f32 %v370_v10, %v2894_v38  ;;  %v1602_v52 = vld [vmem:[%s3899_s2 + $0x80] sm:$0xff]  ;;  %v2933_v57 = vand.u32 4294901760, %v421_v43  ;;  %v1605_v10 = vld [vmem:[%s3899_s2 + $0x98] sm:$0xff] }
  0x2f   : > { %607 = vmatmul.f32.gmra.mxu2 %v606_v54  ;;  %832 = vmatmul.f32.vlgmr.msra.gmra.mxu3 %v2704_v32 }
  0x30   : > { %758 = vmatpush.msra.mxu1 %v757_v23  ;;  %1084 = vmatpush.msrb.mxu3 %v2656_v7  ;;  %v614_v23 = vand.u32 4294901760, %v613_v15  ;;  %v342_v15 = vld [vmem:[%s3898_s1 + $0xa8] sm:$0xff] }
  0x31   : > { %1295 = vmatpush.msrb.mxu0 %v731_v30  ;;  %908 = vmatpush.msrb.mxu2 %v2679_v20  ;;  %v3924_v30 = vand.u32 4294901760, %v2871_v3  ;;  %v621_v20 = vsub.f32 %v2859_v25, %v3909_v24  ;;  %v424_v61 = vsel %vm359_vm0, %v342_v15, 0  ;;  %v344_v15 = vld [vmem:[%s3898_s1 + $0xb8] sm:$0xff] }
  0x32   : > { %764 = vmatpush.msra.mxu1 %v763_v42  ;;  %1086 = vmatpush.msrb.mxu3 %v2658_v8  ;;  %v325_v42 = vld [vmem:[%s3898_s1 + $0x20] sm:$0xff] }
  0x33   : > { %1299 = vmatpush.msrb.mxu0 %v737_v31  ;;  %v2904_v31 = vsub.f32 %v418_v0, %v2887_v34  ;;  %911 = vmatpush.msrb.mxu2 %v2695_v27  ;;  %v373_v49 = vsel %vm359_vm0, %v325_v42, 0 }
  0x34   : > { %770 = vmatpush.msra.mxu1 %v769_v53  ;;  %487 = vmatmul.f32.gmra.mxu0 %v486_v18  ;;  %v622_v53 = vand.u32 4294901760, %v621_v20  ;;  %v2942_v60 = vand.u32 4294901760, %v373_v49  ;;  %v2981_v18 = vand.u32 4294901760, %v424_v61  ;;  %v427_v20 = vsel %vm359_vm0, %v343_v39, 0 }
  0x35   : > { %1688 = vperm.xlu2 %2521, %v1600_v4   ;;  %772 = vmatmul.f32.vlgmr.msra.gmra.mxu1 %v2786_v2  ;;  %v3908_v54 = vand.u32 4294901760, %v2904_v31 }
  0x36   : > { %1683 = vperm.xlu1 %2520, %v1599_v11   ;;  %1678 = vperm.xlu0 %2519, %v1598_v21   ;;  %v2964_v1 = vsub.f32 %v373_v49, %v2942_v60  ;;  %v1604_v11 = vld [vmem:[%s3899_s2 + $0x90] sm:$0xff]  ;;  %v1607_v49 = vld [vmem:[%s3899_s2 + $0xa8] sm:$0xff] }
  0x37   : > { %615 = vmatmul.f32.gmra.mxu2 %v614_v23  ;;  %1450 = vmatpush.msrb.mxu1 %v2656_v7  ;;  %v493_v7 = vsub.f32 %v2871_v3, %v3924_v30 }
  0x38   : > { %836 = vmatmul.f32.gmra.mxu3 %v2780_v63  ;;  %1303 = vmatpush.msrb.mxu0 %v743_v35  ;;  %v3921_v35 = vand.u32 4294901760, %v2917_v46 }
  0x39   : > { %1452 = vmatpush.msrb.mxu1 %v2658_v8  ;;  %1088 = vmatpush.msrb.mxu3 %v2660_v9  ;;  %v1601_v8 = vld [vmem:[%s3899_s2 + $0x78] sm:$0xff]  ;;  %v494_v27 = vand.u32 4294901760, %v493_v7 }
  0x3a   : > { %914 = vmatpush.msrb.mxu2 %v2707_v33  ;;  %1307 = vmatpush.msrb.mxu0 %v749_v41  ;;  %v2951_v33 = vsub.f32 %v421_v43, %v2933_v57  ;;  %v326_v41 = vld [vmem:[%s3898_s1 + $0x28] sm:$0xff]  ;;  %v501_v0 = vsub.f32 %v2917_v46, %v3921_v35  ;;  %v1609_v7 = vld [vmem:[%s3899_s2 + $0xb8] sm:$0xff] }
  0x3b   : > { %1454 = vmatpush.msrb.mxu1 %v2660_v9  ;;  %1090 = vmatpush.msrb.mxu3 %v2663_v13  ;;  %v629_v9 = vsub.f32 %v2904_v31, %v3908_v54  ;;  %v376_v4 = vsel %vm359_vm0, %v326_v41, 0  ;;  %v328_v41 = vld [vmem:[%s3898_s1 + $0x38] sm:$0xff]  ;;  %v347_v54 = vld [vmem:[%s3898_s1 + $0xd0] sm:$0xff] }
  0x3c   : > { %917 = vmatpush.msrb.mxu2 %v2715_v36  ;;  %495 = vmatmul.f32.gmra.mxu0 %v494_v27  ;;  %v3907_v23 = vand.u32 4294901760, %v2951_v33  ;;  %v3920_v36 = vand.u32 4294901760, %v2964_v1  ;;  %v439_v24 = vsel %vm359_vm0, %v347_v54, 0  ;;  %v1799_v54 = vld [vmem:[%s3900_s3 + $0x18] sm:$0xff] }
  0x3d   : > { %1703 = vperm.xlu2 %2521, %v1603_v47   ;;  %776 = vmatmul.f32.gmra.mxu1 %v2802_v17  ;;  %v630_v21 = vand.u32 4294901760, %v629_v9  ;;  %v3178_v22 = vand.u32 4294901760, %v439_v24 }
  0x3e   : > { %1698 = vperm.xlu1 %2520, %v1602_v52   ;;  %1693 = vperm.xlu0 %2519, %v1601_v8   ;;  %v509_v42 = vsub.f32 %v2964_v1, %v3920_v36  ;;  %v349_v36 = vld [vmem:[%s3898_s1 + $0xe0] sm:$0xff] }
  0x3f   : > { %623 = vmatmul.f32.gmra.mxu2 %v622_v53  ;;  %1456 = vmatpush.msrb.mxu1 %v2663_v13  ;;  %v1606_v13 = vld [vmem:[%s3899_s2 + $0xa0] sm:$0xff]  ;;  %v3029_v53 = vand.u32 4294901760, %v427_v20  ;;  %3970 = vst [vmem:[#allocation12_spill] sm:$0xff] %v3178_v22  ;;  %v445_v35 = vsel %vm359_vm0, %v349_v36, 0  ;;  %v1805_v36 = vld [vmem:[%s3900_s3 + $0x48] sm:$0xff] }
  0x40   : > { %840 = vmatmul.f32.gmra.mxu3 %v2794_v6  ;;  %1311 = vmatpush.msrb.mxu0 %v755_v44  ;;  %v2990_v44 = vand.u32 4294901760, %v376_v4  ;;  %v3252_v30 = vand.u32 4294901760, %v445_v35 }
  0x41   : > { %1092 = vmatpush.msrb.mxu3 %v2665_v14  ;;  %1458 = vmatpush.msrb.mxu1 %v2665_v14  ;;  %v502_v14 = vand.u32 4294901760, %v501_v0  ;;  %3963 = vst [vmem:[#allocation5_spill] sm:$0xff] %v3029_v53 }
  0x42   : > { %920 = vmatpush.msrb.mxu2 %v2719_v37  ;;  %1315 = vmatpush.msrb.mxu0 %v761_v50  ;;  %v2999_v37 = vsub.f32 %v424_v61, %v2981_v18  ;;  %v327_v50 = vld [vmem:[%s3898_s1 + $0x30] sm:$0xff]  ;;  %v3012_v43 = vsub.f32 %v376_v4, %v2990_v44  ;;  %v430_v61 = vsel %vm359_vm0, %v344_v15, 0  ;;  %3974 = vst [vmem:[#allocation16_spill] sm:$0xff] %v3252_v30 }
  0x43   : > { %1094 = vmatpush.msrb.mxu3 %v2670_v16  ;;  %1460 = vmatpush.msrb.mxu1 %v2670_v16  ;;  %v637_v16 = vsub.f32 %v2951_v33, %v3907_v23  ;;  %v379_v47 = vsel %vm359_vm0, %v327_v50, 0  ;;  %v1612_v4 = vld [vmem:[%s3899_s2 + $0xd0] sm:$0xff] }
  0x44   : > { %503 = vmatmul.f32.gmra.mxu0 %v502_v14  ;;  %923 = vmatpush.msrb.mxu2 %v2749_v51  ;;  %v3906_v8 = vand.u32 4294901760, %v2999_v37  ;;  %v510_v51 = vand.u32 4294901760, %v509_v42  ;;  %v3034_v27 = vand.u32 4294901760, %v379_v47 }
  0x45   : > { %1718 = vperm.xlu2 %2521, %v1606_v13   ;;  %780 = vmatmul.f32.gmra.mxu1 %v2850_v59  ;;  %v638_v52 = vand.u32 4294901760, %v637_v16  ;;  %v3067_v16 = vand.u32 4294901760, %v430_v61 }
  0x46   : > { %1713 = vperm.xlu1 %2520, %v1605_v10   ;;  %1708 = vperm.xlu0 %2519, %v1604_v11   ;;  %v645_v9 = vsub.f32 %v2999_v37, %v3906_v8  ;;  %v3054_v13 = vsub.f32 %v379_v47, %v3034_v27  ;;  %v382_v10 = vsel %vm359_vm0, %v328_v41, 0  ;;  %v1611_v11 = vld [vmem:[%s3899_s2 + $0xc8] sm:$0xff] }
  0x47   : > { %631 = vmatmul.f32.gmra.mxu2 %v630_v21  ;;  %1096 = vmatpush.msrb.mxu3 %v2676_v19  ;;  %v1610_v21 = vld [vmem:[%s3899_s2 + $0xc0] sm:$0xff]  ;;  %3964 = vst [vmem:[#allocation6_spill] sm:$0xff] %v3067_v16  ;;  %v3071_v42 = vand.u32 4294901760, %v382_v10 }
  0x48   : > { %844 = vmatmul.f32.gmra.mxu3 %v2845_v56  ;;  %1462 = vmatpush.msrb.mxu1 %v2676_v19  ;;  %v1608_v19 = vld [vmem:[%s3899_s2 + $0xb0] sm:$0xff]  ;;  %v646_v14 = vand.u32 4294901760, %v645_v9  ;;  %v1615_v9 = vld [vmem:[%s3899_s2 + $0xe8] sm:$0xff] }
  0x49   : > { %1098 = vmatpush.msrb.mxu3 %v2692_v26  ;;  %1319 = vmatpush.msrb.mxu0 %v767_v62  ;;  %v3919_v62 = vand.u32 4294901760, %v3012_v43  ;;  %v3091_v15 = vsub.f32 %v382_v10, %v3071_v42 }
  0x4a   : > { %1464 = vmatpush.msrb.mxu1 %v2692_v26  ;;  %v3043_v26 = vsub.f32 %v427_v20, %v3029_v53  ;;  %v3918_v20 = vand.u32 4294901760, %v3054_v13 }
  0x4b   : > { %v517_v0 = vsub.f32 %v3012_v43, %v3919_v62 }
  0x4c   : > { %511 = vmatmul.f32.gmra.mxu0 %v510_v51  ;;  %v3905_v39 = vand.u32 4294901760, %v3043_v26  ;;  %v525_v51 = vsub.f32 %v3054_v13, %v3918_v20 }
  0x4d   : > { %1733 = vperm.xlu2 %2521, %v1609_v7   ;;  %784 = vmatmul.f32.gmra.mxu1 %v2894_v38  ;;  %v518_v50 = vand.u32 4294901760, %v517_v0  ;;  %v345_v7 = vld [vmem:[%s3898_s1 + $0xc0] sm:$0xff]  ;;  %v1613_v0 = vld [vmem:[%s3899_s2 + $0xd8] sm:$0xff] }
  0x4e   : > { %1728 = vperm.xlu1 %2520, %v1608_v19   ;;  %1723 = vperm.xlu0 %2519, %v1607_v49   ;;  %v653_v47 = vsub.f32 %v3043_v26, %v3905_v39  ;;  %v3080_v19 = vsub.f32 %v430_v61, %v3067_v16  ;;  %v329_v49 = vld [vmem:[%s3898_s1 + $0x40] sm:$0xff]  ;;  %v526_v10 = vand.u32 4294901760, %v525_v51  ;;  %v330_v51 = vld [vmem:[%s3898_s1 + $0x48] sm:$0xff] }
  0x4f   : > { %639 = vmatmul.f32.gmra.mxu2 %v638_v52  ;;  %v433_v52 = vsel %vm359_vm0, %v345_v7, 0  ;;  %v385_v41 = vsel %vm359_vm0, %v329_v49, 0  ;;  %v1614_v61 = vld [vmem:[%s3899_s2 + $0xe0] sm:$0xff]  ;;  %v346_v7 = vld [vmem:[%s3898_s1 + $0xc8] sm:$0xff] }
  0x50   : > { %848 = vmatmul.f32.gmra.mxu3 %v2887_v34  ;;  %3965 = vst [vmem:[#allocation7_spill] sm:$0xff] %v3080_v19 }
  0x54   : > { %519 = vmatmul.f32.gmra.mxu0 %v518_v50  ;;  %v3108_v50 = vand.u32 4294901760, %v385_v41 }
  0x55   : > { %1748 = vperm.xlu2 %2521, %v1612_v4   ;;  %788 = vmatmul.f32.gmra.mxu1 %v2942_v60  ;;  %v654_v4 = vand.u32 4294901760, %v653_v47 }
  0x56   : > { %1743 = vperm.xlu1 %2520, %v1611_v11   ;;  %1738 = vperm.xlu0 %2519, %v1610_v21   ;;  %v3904_v11 = vand.u32 4294901760, %v3080_v19  ;;  %v3104_v21 = vand.u32 4294901760, %v433_v52 }
  0x57   : > { %647 = vmatmul.f32.gmra.mxu2 %v646_v14  ;;  %v3915_v14 = vand.u32 4294901760, %v3091_v15 }
  0x58   : > { %852 = vmatmul.f32.gmra.mxu3 %v2933_v57  ;;  %3966 = vst [vmem:[#allocation8_spill] sm:$0xff] %v3104_v21  ;;  %v661_v47 = vsub.f32 %v3080_v19, %v3904_v11  ;;  %v3117_v49 = vsub.f32 %v433_v52, %v3104_v21  ;;  %v1798_v52 = vld [vmem:[%s3900_s3 + $0x10] sm:$0xff]  ;;  %v1797_v11 = vld [vmem:[%s3900_s3 + $0x8] sm:$0xff] }
  0x5a   : > { %3967 = vst [vmem:[#allocation9_spill] sm:$0xff] %v3117_v49  ;;  %v3910_v39 = vand.u32 4294901760, %v3117_v49 }
  0x5c   : > { %527 = vmatmul.f32.gmra.mxu0 %v526_v10  ;;  %v1796_v10 = vld [vmem:[%s3900_s3] sm:$0xff] }
  0x5d   : > { %1763 = vperm.xlu2 %2521, %v1615_v9   ;;  %792 = vmatmul.f32.gmra.mxu1 %v2990_v44  ;;  %v436_v9 = vsel %vm359_vm0, %v346_v7, 0  ;;  %v662_v7 = vand.u32 4294901760, %v661_v47  ;;  %v669_v47 = vsub.f32 %v3117_v49, %v3910_v39  ;;  %v1800_v39 = vld [vmem:[%s3900_s3 + $0x20] sm:$0xff] }
  0x5e   : > { %1758 = vperm.xlu1 %2520, %v1614_v61   ;;  %1753 = vperm.xlu0 %2519, %v1613_v0   ;;  %v533_v61 = vsub.f32 %v3091_v15, %v3915_v14  ;;  %v3128_v0 = vsub.f32 %v385_v41, %v3108_v50  ;;  %v3141_v8 = vand.u32 4294901760, %v436_v9 }
  0x5f   : > { %655 = vmatmul.f32.gmra.mxu2 %v654_v4  ;;  %v388_v4 = vsel %vm359_vm0, %v330_v51, 0 }
  0x60   : > { %856 = vmatmul.f32.gmra.mxu3 %v2981_v18  ;;  %3968 = vst [vmem:[#allocation10_spill] sm:$0xff] %v3141_v8  ;;  %v534_v41 = vand.u32 4294901760, %v533_v61  ;;  %v3914_v23 = vand.u32 4294901760, %v3128_v0  ;;  %v3145_v51 = vand.u32 4294901760, %v388_v4  ;;  %v331_v61 = vld [vmem:[%s3898_s1 + $0x50] sm:$0xff] }
  0x64   : > { %535 = vmatmul.f32.gmra.mxu0 %v534_v41  ;;  %v670_v41 = vand.u32 4294901760, %v669_v47 }
  0x65   : > { %1838 = vperm.xlu2 %2521, %v1798_v52   ;;  %796 = vmatmul.f32.gmra.mxu1 %v3034_v27  ;;  %v3154_v52 = vsub.f32 %v436_v9, %v3141_v8  ;;  %v1801_v9 = vld [vmem:[%s3900_s3 + $0x28] sm:$0xff] }
  0x66   : > { %1833 = vperm.xlu1 %2520, %v1797_v11   ;;  %1828 = vperm.xlu0 %2519, %v1796_v10   ;;  %v541_v11 = vsub.f32 %v3128_v0, %v3914_v23  ;;  %v3165_v10 = vsub.f32 %v388_v4, %v3145_v51  ;;  %v348_v23 = vld [vmem:[%s3898_s1 + $0xd8] sm:$0xff] }
  0x67   : > { %663 = vmatmul.f32.gmra.mxu2 %v662_v7  ;;  %3969 = vst [vmem:[#allocation11_spill] sm:$0xff] %v3154_v52  ;;  %v391_v7 = vsel %vm359_vm0, %v331_v61, 0  ;;  %v3916_v55 = vand.u32 4294901760, %v3154_v52  ;;  %v442_v14 = vsel %vm359_vm0, %v348_v23, 0  ;;  %v1802_v23 = vld [vmem:[%s3900_s3 + $0x30] sm:$0xff] }
  0x68   : > { %860 = vmatmul.f32.gmra.mxu3 %v3029_v53  ;;  %v542_v4 = vand.u32 4294901760, %v541_v11  ;;  %v3917_v48 = vand.u32 4294901760, %v3165_v10  ;;  %v3182_v61 = vand.u32 4294901760, %v391_v7  ;;  %v332_v11 = vld [vmem:[%s3898_s1 + $0x58] sm:$0xff]  ;;  %v3215_v20 = vand.u32 4294901760, %v442_v14 }
  0x69   : > { %v677_v47 = vsub.f32 %v3154_v52, %v3916_v55  ;;  %v1803_v55 = vld [vmem:[%s3900_s3 + $0x38] sm:$0xff] }
  0x6a   : > { %3972 = vst [vmem:[#allocation14_spill] sm:$0xff] %v3215_v20 }
  0x6c   : > { %543 = vmatmul.f32.gmra.mxu0 %v542_v4  ;;  %v678_v4 = vand.u32 4294901760, %v677_v47 }
  0x6d   : > { %1853 = vperm.xlu2 %2521, %v1801_v9   ;;  %800 = vmatmul.f32.gmra.mxu1 %v3071_v42  ;;  %v3191_v9 = vsub.f32 %v439_v24, %v3178_v22  ;;  %v1804_v24 = vld [vmem:[%s3900_s3 + $0x40] sm:$0xff] }
  0x6e   : > { %1848 = vperm.xlu1 %2520, %v1800_v39   ;;  %1843 = vperm.xlu0 %2519, %v1799_v54   ;;  %v549_v39 = vsub.f32 %v3165_v10, %v3917_v48  ;;  %v3202_v54 = vsub.f32 %v391_v7, %v3182_v61 }
  0x6f   : > { %671 = vmatmul.f32.gmra.mxu2 %v670_v41  ;;  %3971 = vst [vmem:[#allocation13_spill] sm:$0xff] %v3191_v9  ;;  %v394_v41 = vsel %vm359_vm0, %v332_v11, 0  ;;  %v3922_v48 = vand.u32 4294901760, %v3191_v9 }
  0x70   : > { %864 = vmatmul.f32.gmra.mxu3 %v3067_v16  ;;  %v550_v7 = vand.u32 4294901760, %v549_v39  ;;  %v3923_v62 = vand.u32 4294901760, %v3202_v54  ;;  %v3219_v11 = vand.u32 4294901760, %v394_v41  ;;  %v333_v39 = vld [vmem:[%s3898_s1 + $0x60] sm:$0xff] }
  0x71   : > { %v685_v47 = vsub.f32 %v3191_v9, %v3922_v48  ;;  %v1806_v48 = vld [vmem:[%s3900_s3 + $0x50] sm:$0xff]  ;;  %v350_v9 = vld [vmem:[%s3898_s1 + $0xe8] sm:$0xff] }
  0x74   : > { %551 = vmatmul.f32.gmra.mxu0 %v550_v7  ;;  %v686_v7 = vand.u32 4294901760, %v685_v47 }
  0x75   : > { %1868 = vperm.xlu2 %2521, %v1804_v24   ;;  %804 = vmatmul.f32.gmra.mxu1 %v3108_v50  ;;  %v3228_v24 = vsub.f32 %v442_v14, %v3215_v20  ;;  %v1807_v14 = vld [vmem:[%s3900_s3 + $0x58] sm:$0xff] }
  0x76   : > { %1863 = vperm.xlu1 %2520, %v1803_v55   ;;  %1858 = vperm.xlu0 %2519, %v1802_v23   ;;  %v557_v55 = vsub.f32 %v3202_v54, %v3923_v62  ;;  %v3239_v23 = vsub.f32 %v394_v41, %v3219_v11  ;;  %v3254_v41 = vpop.permute.xlu2 %1638 }
  0x77   : > { %679 = vmatmul.f32.gmra.mxu2 %v678_v4  ;;  %3973 = vst [vmem:[#allocation15_spill] sm:$0xff] %v3228_v24  ;;  %v397_v4 = vsel %vm359_vm0, %v333_v39, 0  ;;  %v3929_v62 = vand.u32 4294901760, %v3228_v24  ;;  %v448_v39 = vsel %vm359_vm0, %v350_v9, 0 }
  0x78   : > { %868 = vmatmul.f32.gmra.mxu3 %v3104_v21  ;;  %v558_v58 = vand.u32 4294901760, %v557_v55  ;;  %v3258_v28 = vand.u32 4294901760, %v397_v4  ;;  %v334_v55 = vld [vmem:[%s3898_s1 + $0x68] sm:$0xff] }
  0x79   : > { %v693_v47 = vsub.f32 %v3228_v24, %v3929_v62  ;;  %v400_v62 = vsel %vm359_vm0, %v334_v55, 0  ;;  %v1809_v24 = vld [vmem:[%s3900_s3 + $0x68] sm:$0xff] }
  0x7a   : > { %v3295_v55 = vand.u32 4294901760, %v400_v62 }
  0x7b   : > { %v694_v9 = vand.u32 4294901760, %v693_v47 }
  0x7c   : > { %559 = vmatmul.f32.gmra.mxu0 %v558_v58  ;;  %v1808_v58 = vld [vmem:[%s3900_s3 + $0x60] sm:$0xff] }
  0x7d   : > { %1883 = vperm.xlu2 %2521, %v1807_v14   ;;  %808 = vmatmul.f32.gmra.mxu1 %v3145_v51  ;;  %v3267_v14 = vsub.f32 %v445_v35, %v3252_v30  ;;  %v1810_v35 = vld [vmem:[%s3900_s3 + $0x70] sm:$0xff] }
  0x7e   : > { %1878 = vperm.xlu1 %2520, %v1806_v48   ;;  %1873 = vperm.xlu0 %2519, %v1805_v36   ;;  %v3976_v48 = vand.u32 4294901760, %v3239_v23  ;;  %v3297_v52 = vpop.permute.xlu2 %1643 }
  0x7f   : > { %687 = vmatmul.f32.gmra.mxu2 %v686_v7  ;;  %3975 = vst [vmem:[#allocation17_spill] sm:$0xff] %v3267_v14  ;;  %v3278_v7 = vsub.f32 %v397_v4, %v3258_v28 }
  0x80   : > { %872 = vmatmul.f32.gmra.mxu3 %v3141_v8  ;;  %v565_v36 = vsub.f32 %v3239_v23, %v3976_v48  ;;  %v3940_v48 = vand.u32 4294901760, %v3267_v14  ;;  %v3291_v8 = vand.u32 4294901760, %v448_v39  ;;  %3978 = vst [vmem:[#allocation19_spill] sm:$0xff] %v3297_v52 }
  0x81   : > { %v3945_v21 = vand.u32 4294901760, %v3278_v7 }
  0x82   : > { %3977 = vst [vmem:[#allocation18_spill] sm:$0xff] %v3291_v8  ;;  %v566_v4 = vand.u32 4294901760, %v565_v36  ;;  %v701_v47 = vsub.f32 %v3267_v14, %v3940_v48  ;;  %v335_v36 = vld [vmem:[%s3898_s1 + $0x70] sm:$0xff]  ;;  %v1812_v14 = vld [vmem:[%s3900_s3 + $0x80] sm:$0xff] }
  0x83   : > { %v403_v48 = vsel %vm359_vm0, %v335_v36, 0 }
  0x84   : > { %v3299_v16 = vpop.permute.xlu1 %1628  ;;  %567 = vmatmul.f32.gmra.mxu0 %v566_v4  ;;  %v1811_v4 = vld [vmem:[%s3900_s3 + $0x78] sm:$0xff]  ;;  %v3332_v52 = vand.u32 4294901760, %v403_v48 }
  0x85   : > { %1898 = vperm.xlu2 %2521, %v1810_v35   ;;  %812 = vmatmul.f32.gmra.mxu1 %v3182_v61  ;;  %v3305_v35 = vsub.f32 %v448_v39, %v3291_v8  ;;  %v1813_v39 = vld [vmem:[%s3900_s3 + $0x88] sm:$0xff] }
  0x86   : > { %1893 = vperm.xlu1 %2520, %v1809_v24   ;;  %1888 = vperm.xlu0 %2519, %v1808_v58   ;;  %v3311_v24 = vpop.permute.xlu0 %1618  ;;  %v573_v58 = vsub.f32 %v3278_v7, %v3945_v21 }
  0x87   : > { %695 = vmatmul.f32.gmra.mxu2 %v694_v9  ;;  %3979 = vst [vmem:[#allocation20_spill] sm:$0xff] %v3305_v35  ;;  %v3317_v9 = vsub.f32 %v400_v62, %v3295_v55  ;;  %v3950_v21 = vand.u32 4294901760, %v3305_v35 }
  0x88   : > { %876 = vmatmul.f32.gmra.mxu3 %v3178_v22  ;;  %v702_v22 = vand.u32 4294901760, %v701_v47  ;;  %v574_v62 = vand.u32 4294901760, %v573_v58 }
  0x89   : > { %v3951_v49 = vand.u32 4294901760, %v3317_v9  ;;  %v709_v53 = vsub.f32 %v3305_v35, %v3950_v21  ;;  %v1814_v21 = vld [vmem:[%s3900_s3 + $0x90] sm:$0xff] }
  0x8b   : > { %v581_v58 = vsub.f32 %v3317_v9, %v3951_v49 }
  0x8c   : > { %v3334_v36 = vpop.permute.xlu1 %1633  ;;  %575 = vmatmul.f32.gmra.mxu0 %v574_v62  ;;  %v710_v62 = vand.u32 4294901760, %v709_v53 }
  0x8d   : > { %1913 = vperm.xlu2 %2521, %v1813_v39   ;;  %816 = vmatmul.f32.gmra.mxu1 %v3219_v11  ;;  %v3342_v39 = vpop.permute.xlu2 %1658  ;;  %v582_v49 = vand.u32 4294901760, %v581_v58  ;;  %v1819_v58 = vld [vmem:[%s3900_s3 + $0xb8] sm:$0xff] }
  0x8e   : > { %1908 = vperm.xlu1 %2520, %v1812_v14   ;;  %1903 = vperm.xlu0 %2519, %v1811_v4   ;;  %v3340_v47 = vpop.permute.xlu0 %1623  ;;  %3980 = vst [vmem:[#allocation21_spill] sm:$0xff] %v3342_v39  ;;  %v3348_v14 = vsub.f32 %v403_v48, %v3332_v52  ;;  %v1815_v4 = vld [vmem:[%s3900_s3 + $0x98] sm:$0xff] }
  0x8f   : > { %703 = vmatmul.f32.gmra.mxu2 %v702_v22  ;;  %v1816_v22 = vld [vmem:[%s3900_s3 + $0xa0] sm:$0xff] }
  0x90   : > { %880 = vmatmul.f32.gmra.mxu3 %v3215_v20  ;;  %v3956_v48 = vand.u32 4294901760, %v3348_v14 }
  0x92   : > { %v589_v53 = vsub.f32 %v3348_v14, %v3956_v48 }
  0x94   : > { %583 = vmatmul.f32.gmra.mxu0 %v582_v49  ;;  %v590_v49 = vand.u32 4294901760, %v589_v53  ;;  %v1820_v53 = vld [vmem:[%s3900_s3 + $0xc0] sm:$0xff] }
  0x95   : > { %1928 = vperm.xlu2 %2521, %v1816_v22   ;;  %820 = vmatmul.f32.gmra.mxu1 %v3258_v28  ;;  %v3372_v22 = vpop.permute.xlu2 %1673 }
  0x96   : > { %1923 = vperm.xlu1 %2520, %v1815_v4   ;;  %1918 = vperm.xlu0 %2519, %v1814_v21   ;;  %v3361_v35 = vpop.permute.xlu1 %1653  ;;  %3983 = vst [vmem:[#allocation24_spill] sm:$0xff] %v3372_v22  ;;  %v1818_v21 = vld [vmem:[%s3900_s3 + $0xb0] sm:$0xff]  ;;  %v1817_v4 = vld [vmem:[%s3900_s3 + $0xa8] sm:$0xff] }
  0x97   : > { %711 = vmatmul.f32.gmra.mxu2 %v710_v62  ;;  %3981 = vst [vmem:[#allocation22_spill] sm:$0xff] %v3361_v35  ;;  %v3364_v20 = vpop.permute.xlu0 %1648  ;;  %v1822_v22 = vld [vmem:[%s3900_s3 + $0xd0] sm:$0xff] }
  0x98   : > { %884 = vmatmul.f32.gmra.mxu3 %v3252_v30  ;;  %3982 = vst [vmem:[#allocation23_spill] sm:$0xff] %v3364_v20 }
  0x9c   : > { %591 = vmatmul.f32.gmra.mxu0 %v590_v49 }
  0x9d   : > { %1943 = vperm.xlu2 %2521, %v1819_v58   ;;  %824 = vmatmul.f32.gmra.mxu1 %v3295_v55  ;;  %v1821_v58 = vld [vmem:[%s3900_s3 + $0xc8] sm:$0xff] }
  0x9e   : > { %1938 = vperm.xlu1 %2520, %v1818_v21   ;;  %1933 = vperm.xlu0 %2519, %v1817_v4   ;;  %v3396_v21 = vpop.permute.xlu2 %1688  ;;  %v3987_v4 = vand.u32 4294901760, %v2800_v12 }
  0x9f   : > { %926 = vmatmul.f32.vlgmr.msrb.gmra.mxu2 %v2800_v12  ;;  %v3383_v62 = vpop.permute.xlu1 %1668  ;;  %3986 = vst [vmem:[#allocation27_spill] sm:$0xff] %v3396_v21  ;;  %v1823_v12 = vld [vmem:[%s3900_s3 + $0xd8] sm:$0xff]  ;;  %v3991_v21 = vand.u32 4294901760, %v2830_v45 }
  0xa0   : > { %888 = vmatmul.f32.gmra.mxu3 %v3291_v8  ;;  %3984 = vst [vmem:[#allocation25_spill] sm:$0xff] %v3383_v62  ;;  %v3385_v48 = vpop.permute.xlu0 %1663 }
  0xa1   : > { %3985 = vst [vmem:[#allocation26_spill] sm:$0xff] %v3385_v48  ;;  %v2036_v48 = vld [vmem:[#allocation2] sm:$0xff] }
  0xa4   : > { %1321 = vmatmul.f32.vlgmr.msrb.gmra.mxu0 %v2786_v2 }
  0xa5   : > { %1958 = vperm.xlu2 %2521, %v1822_v22   ;;  %828 = vmatmul.f32.gmra.mxu1 %v3332_v52  ;;  %v1825_v22 = vld [vmem:[%s3900_s3 + $0xe8] sm:$0xff] }
  0xa6   : > { %1953 = vperm.xlu1 %2520, %v1821_v58   ;;  %1948 = vperm.xlu0 %2519, %v1820_v53   ;;  %v1824_v58 = vld [vmem:[%s3900_s3 + $0xe0] sm:$0xff] }
  0xa7   : > { %931 = vmatmul.f32.gmra.mxu2 %v2830_v45 }
  0xa8   : > { %1102 = vmatmul.f32.vlgmr.msrb.gmra.mxu3 %v3987_v4  ;;  %v3402_v49 = vpop.permute.xlu1 %1683  ;;  %v3404_v8 = vpop.permute.xlu0 %1678 }
  0xa9   : > { %3988 = vst [vmem:[#allocation28_spill] sm:$0xff] %v3402_v49  ;;  %v600_v30 = vpop.f32.mrf.mxu2  ;;  %v3417_v53 = vpop.f32.mrf.mxu0 }
  0xaa   : > { %3989 = vst [vmem:[#allocation29_spill] sm:$0xff] %v3404_v8  ;;  %v3419_v4 = vpop.permute.xlu2 %1703 }
  0xab   : > { %3990 = vst [vmem:[#allocation30_spill] sm:$0xff] %v3419_v4 }
  0xac   : > { %1325 = vmatmul.f32.gmra.mxu0 %v2802_v17 }
  0xad   : > { %1973 = vperm.xlu2 %2521, %v1825_v22   ;;  %1466 = vmatmul.f32.vlgmr.msrb.gmra.mxu1 %v2786_v2  ;;  %v2038_v2 = vld [vmem:[#allocation2 + $0x10] sm:$0xff] }
  0xae   : > { %1968 = vperm.xlu1 %2520, %v1824_v58   ;;  %1963 = vperm.xlu0 %2519, %v1823_v12   ;;  %v2037_v12 = vld [vmem:[#allocation2 + $0x8] sm:$0xff] }
  0xaf   : > { %936 = vmatmul.f32.gmra.mxu2 %v2871_v3 }
  0xb0   : > { %1108 = vmatmul.f32.gmra.mxu3 %v3991_v21  ;;  %v3424_v49 = vpop.permute.xlu1 %1698  ;;  %v3426_v8 = vpop.permute.xlu0 %1693  ;;  %v3995_v21 = vand.u32 4294901760, %v2871_v3 }
  0xb1   : > { %3992 = vst [vmem:[#allocation31_spill] sm:$0xff] %v3424_v49  ;;  %v3434_v45 = vpop.f32.mrf.mxu0 }
  0xb2   : > { %3993 = vst [vmem:[#allocation32_spill] sm:$0xff] %v3426_v8  ;;  %v608_v22 = vpop.f32.mrf.mxu2  ;;  %v3429_v62 = vpop.f32.mrf.mxu1 }
  0xb3   : > { %v833_v58 = vpop.f32.mrf.mxu3  ;;  %v3443_v8 = vpop.permute.xlu2 %1718 }
  0xb4   : > { %v3431_v39 = vadd.f32 %v833_v58, %v600_v30  ;;  %3998 = vst [vmem:[#allocation36_spill] sm:$0xff] %v3443_v8  ;;  %1329 = vmatmul.f32.gmra.mxu0 %v2850_v59  ;;  %v2040_v58 = vld [vmem:[#allocation2 + $0x20] sm:$0xff] }
  0xb5   : > { %2078 = vperm.xlu2 %2521, %v2038_v2   ;;  %1470 = vmatmul.f32.gmra.mxu1 %v2802_v17  ;;  %v2041_v17 = vld [vmem:[#allocation2 + $0x28] sm:$0xff] }
  0xb6   : > { %3994 = vst [vmem:[#allocation33_spill] sm:$0xff] %v3431_v39  ;;  %2073 = vperm.xlu1 %2520, %v2037_v12   ;;  %2068 = vperm.xlu0 %2519, %v2036_v48   ;;  %v2039_v12 = vld [vmem:[#allocation2 + $0x18] sm:$0xff] }
  0xb7   : > { %941 = vmatmul.f32.gmra.mxu2 %v2917_v46 }
  0xb8   : > { %1114 = vmatmul.f32.gmra.mxu3 %v3995_v21  ;;  %v3439_v4 = vpop.permute.xlu1 %1713  ;;  %v3441_v49 = vpop.permute.xlu0 %1708  ;;  %v4000_v21 = vand.u32 4294901760, %v2917_v46 }
  0xb9   : > { %3996 = vst [vmem:[#allocation34_spill] sm:$0xff] %v3439_v4  ;;  %v3451_v3 = vpop.f32.mrf.mxu0 }
  0xba   : > { %3997 = vst [vmem:[#allocation35_spill] sm:$0xff] %v3441_v49  ;;  %v616_v30 = vpop.f32.mrf.mxu2  ;;  %v3446_v2 = vpop.f32.mrf.mxu1  ;;  %v2042_v49 = vld [vmem:[#allocation2 + $0x30] sm:$0xff] }
  0xbb   : > { %v837_v48 = vpop.f32.mrf.mxu3 }
  0xbc   : > { %v3448_v39 = vadd.f32 %v837_v48, %v608_v22  ;;  %1333 = vmatmul.f32.gmra.mxu0 %v2894_v38 }
  0xbd   : > { %2093 = vperm.xlu2 %2521, %v2041_v17   ;;  %1474 = vmatmul.f32.gmra.mxu1 %v2850_v59  ;;  %v2044_v17 = vld [vmem:[#allocation2 + $0x40] sm:$0xff]  ;;  %v3463_v59 = vpop.permute.xlu2 %1733 }
  0xbe   : > { %3999 = vst [vmem:[#allocation37_spill] sm:$0xff] %v3448_v39  ;;  %2088 = vperm.xlu1 %2520, %v2040_v58   ;;  %2083 = vperm.xlu0 %2519, %v2039_v12   ;;  %v2043_v12 = vld [vmem:[#allocation2 + $0x38] sm:$0xff] }
  0xbf   : > { %946 = vmatmul.f32.gmra.mxu2 %v2964_v1  ;;  %4003 = vst [vmem:[#allocation40_spill] sm:$0xff] %v3463_v59 }
  0xc0   : > { %1120 = vmatmul.f32.gmra.mxu3 %v4000_v21  ;;  %v3456_v8 = vpop.permute.xlu1 %1728  ;;  %v3458_v4 = vpop.permute.xlu0 %1723  ;;  %v4005_v21 = vand.u32 4294901760, %v2964_v1 }
  0xc1   : > { %4001 = vst [vmem:[#allocation38_spill] sm:$0xff] %v3456_v8  ;;  %v3468_v46 = vpop.f32.mrf.mxu0 }
  0xc2   : > { %4002 = vst [vmem:[#allocation39_spill] sm:$0xff] %v3458_v4  ;;  %v624_v22 = vpop.f32.mrf.mxu2  ;;  %v3461_v48 = vpop.f32.mrf.mxu1 }
  0xc3   : > { %v841_v58 = vpop.f32.mrf.mxu3 }
  0xc4   : > { %v3465_v39 = vadd.f32 %v841_v58, %v616_v30  ;;  %1337 = vmatmul.f32.gmra.mxu0 %v2942_v60 }
  0xc5   : > { %2108 = vperm.xlu2 %2521, %v2044_v17   ;;  %1478 = vmatmul.f32.gmra.mxu1 %v2894_v38  ;;  %v2047_v17 = vld [vmem:[#allocation2 + $0x58] sm:$0xff] }
  0xc6   : > { %4004 = vst [vmem:[#allocation41_spill] sm:$0xff] %v3465_v39  ;;  %2103 = vperm.xlu1 %2520, %v2043_v12   ;;  %2098 = vperm.xlu0 %2519, %v2042_v49   ;;  %v2046_v12 = vld [vmem:[#allocation2 + $0x50] sm:$0xff]  ;;  %v2045_v49 = vld [vmem:[#allocation2 + $0x48] sm:$0xff]  ;;  %v3482_v39 = vpop.permute.xlu2 %1748 }
  0xc7   : > { %951 = vmatmul.f32.gmra.mxu2 %v3012_v43  ;;  %4009 = vst [vmem:[#allocation45_spill] sm:$0xff] %v3482_v39 }
  0xc8   : > { %1126 = vmatmul.f32.gmra.mxu3 %v4005_v21  ;;  %v3473_v8 = vpop.permute.xlu1 %1743  ;;  %v3475_v59 = vpop.permute.xlu0 %1738  ;;  %v4010_v21 = vand.u32 4294901760, %v3012_v43 }
  0xc9   : > { %4006 = vst [vmem:[#allocation42_spill] sm:$0xff] %v3473_v8  ;;  %v3485_v1 = vpop.f32.mrf.mxu0 }
  0xca   : > { %4007 = vst [vmem:[#allocation43_spill] sm:$0xff] %v3475_v59  ;;  %v632_v30 = vpop.f32.mrf.mxu2  ;;  %v3478_v58 = vpop.f32.mrf.mxu1 }
  0xcb   : > { %v845_v38 = vpop.f32.mrf.mxu3 }
  0xcc   : > { %v3480_v4 = vadd.f32 %v845_v38, %v624_v22  ;;  %1341 = vmatmul.f32.gmra.mxu0 %v2990_v44 }
  0xcd   : > { %2123 = vperm.xlu2 %2521, %v2047_v17   ;;  %1482 = vmatmul.f32.gmra.mxu1 %v2942_v60  ;;  %v2050_v17 = vld [vmem:[#allocation2 + $0x70] sm:$0xff] }
  0xce   : > { %4008 = vst [vmem:[#allocation44_spill] sm:$0xff] %v3480_v4  ;;  %2118 = vperm.xlu1 %2520, %v2046_v12   ;;  %2113 = vperm.xlu0 %2519, %v2045_v49   ;;  %v2049_v12 = vld [vmem:[#allocation2 + $0x68] sm:$0xff]  ;;  %v2048_v49 = vld [vmem:[#allocation2 + $0x60] sm:$0xff] }
  0xcf   : > { %956 = vmatmul.f32.gmra.mxu2 %v3054_v13 }
  0xd0   : > { %1132 = vmatmul.f32.gmra.mxu3 %v4010_v21  ;;  %v3490_v8 = vpop.permute.xlu1 %1758  ;;  %v3492_v59 = vpop.permute.xlu0 %1753 }
  0xd1   : > { %4011 = vst [vmem:[#allocation46_spill] sm:$0xff] %v3490_v8  ;;  %v3500_v43 = vpop.f32.mrf.mxu0  ;;  %v3502_v21 = vpop.permute.xlu2 %1763  ;;  %v4015_v8 = vand.u32 4294901760, %v3054_v13  ;;  %v4018_v13 = vand.u32 4294901760, %v3091_v15 }
  0xd2   : > { %4012 = vst [vmem:[#allocation47_spill] sm:$0xff] %v3492_v59  ;;  %v640_v22 = vpop.f32.mrf.mxu2  ;;  %v3495_v38 = vpop.f32.mrf.mxu1 }
  0xd3   : > { %v849_v60 = vpop.f32.mrf.mxu3  ;;  %4014 = vst [vmem:[#allocation49_spill] sm:$0xff] %v3502_v21 }
  0xd4   : > { %v3497_v39 = vadd.f32 %v849_v60, %v632_v30  ;;  %1345 = vmatmul.f32.gmra.mxu0 %v3034_v27 }
  0xd5   : > { %2138 = vperm.xlu2 %2521, %v2050_v17   ;;  %1486 = vmatmul.f32.gmra.mxu1 %v2990_v44  ;;  %v2053_v44 = vld [vmem:[#allocation2 + $0x88] sm:$0xff] }
  0xd6   : > { %4013 = vst [vmem:[#allocation48_spill] sm:$0xff] %v3497_v39  ;;  %2133 = vperm.xlu1 %2520, %v2049_v12   ;;  %2128 = vperm.xlu0 %2519, %v2048_v49   ;;  %v2052_v12 = vld [vmem:[#allocation2 + $0x80] sm:$0xff]  ;;  %v2051_v49 = vld [vmem:[#allocation2 + $0x78] sm:$0xff] }
  0xd7   : > { %961 = vmatmul.f32.gmra.mxu2 %v3091_v15 }
  0xd8   : > { %1138 = vmatmul.f32.gmra.mxu3 %v4015_v8  ;;  %v3507_v59 = vpop.permute.xlu0 %1828  ;;  %v3509_v4 = vpop.permute.xlu1 %1833 }
  0xd9   : > { %v3517_v8 = vpop.f32.mrf.mxu0  ;;  %v3524_v35 = vpop.permute.xlu2 %1838 }
  0xda   : > { %v648_v30 = vpop.f32.mrf.mxu2  ;;  %v3512_v17 = vpop.f32.mrf.mxu1  ;;  %4017 = vst [vmem:[#allocation51_spill] sm:$0xff] %v3517_v8 }
  0xdb   : > { %v853_v60 = vpop.f32.mrf.mxu3 }
  0xdc   : > { %v3514_v39 = vadd.f32 %v853_v60, %v640_v22  ;;  %1349 = vmatmul.f32.gmra.mxu0 %v3071_v42 }
  0xdd   : > { %2153 = vperm.xlu2 %2521, %v2053_v44   ;;  %1490 = vmatmul.f32.gmra.mxu1 %v3034_v27  ;;  %v2056_v44 = vld [vmem:[#allocation2 + $0xa0] sm:$0xff] }
  0xde   : > { %4016 = vst [vmem:[#allocation50_spill] sm:$0xff] %v3514_v39  ;;  %2148 = vperm.xlu1 %2520, %v2052_v12   ;;  %2143 = vperm.xlu0 %2519, %v2051_v49   ;;  %v2055_v49 = vld [vmem:[#allocation2 + $0x98] sm:$0xff]  ;;  %v2054_v39 = vld [vmem:[#allocation2 + $0x90] sm:$0xff] }
  0xdf   : > { %966 = vmatmul.f32.gmra.mxu2 %v3128_v0 }
  0xe0   : > { %1144 = vmatmul.f32.gmra.mxu3 %v4018_v13  ;;  %v3522_v21 = vpop.permute.xlu0 %1843  ;;  %v3529_v27 = vpop.permute.xlu1 %1848  ;;  %v4021_v13 = vand.u32 4294901760, %v3128_v0 }
  0xe1   : > { %v3534_v15 = vpop.f32.mrf.mxu0 }
  0xe2   : > { %v656_v22 = vpop.f32.mrf.mxu2  ;;  %v3527_v60 = vpop.f32.mrf.mxu1 }
  0xe3   : > { %4019 = vst [vmem:[#allocation52_spill] sm:$0xff] %v3527_v60  ;;  %v857_v12 = vpop.f32.mrf.mxu3 }
  0xe4   : > { %v3531_v20 = vadd.f32 %v857_v12, %v648_v30  ;;  %1353 = vmatmul.f32.gmra.mxu0 %v3108_v50  ;;  %v2059_v30 = vld [vmem:[#allocation2 + $0xb8] sm:$0xff]  ;;  %v2058_v12 = vld [vmem:[#allocation2 + $0xb0] sm:$0xff] }
  0xe5   : > { %2168 = vperm.xlu2 %2521, %v2056_v44   ;;  %1494 = vmatmul.f32.gmra.mxu1 %v3071_v42  ;;  %v3544_v44 = vpop.permute.xlu2 %1853 }
  0xe6   : > { %4020 = vst [vmem:[#allocation53_spill] sm:$0xff] %v3531_v20  ;;  %2163 = vperm.xlu1 %2520, %v2055_v49   ;;  %2158 = vperm.xlu0 %2519, %v2054_v39   ;;  %v2057_v39 = vld [vmem:[#allocation2 + $0xa8] sm:$0xff] }
  0xe7   : > { %971 = vmatmul.f32.gmra.mxu2 %v3165_v10 }
  0xe8   : > { %1150 = vmatmul.f32.gmra.mxu3 %v4021_v13  ;;  %v3539_v60 = vpop.permute.xlu0 %1858  ;;  %v3548_v20 = vpop.permute.xlu1 %1863  ;;  %v4025_v13 = vand.u32 4294901760, %v3165_v10 }
  0xe9   : > { %4022 = vst [vmem:[#allocation54_spill] sm:$0xff] %v3539_v60  ;;  %v3551_v0 = vpop.f32.mrf.mxu0 }
  0xea   : > { %v664_v8 = vpop.f32.mrf.mxu2  ;;  %v3542_v19 = vpop.f32.mrf.mxu1  ;;  %4024 = vst [vmem:[#allocation56_spill] sm:$0xff] %v3548_v20  ;;  %v2061_v20 = vld [vmem:[#allocation2 + $0xc8] sm:$0xff] }
  0xeb   : > { %v861_v42 = vpop.f32.mrf.mxu3 }
  0xec   : > { %v3546_v49 = vadd.f32 %v861_v42, %v656_v22  ;;  %1357 = vmatmul.f32.gmra.mxu0 %v3145_v51 }
  0xed   : > { %2183 = vperm.xlu2 %2521, %v2059_v30   ;;  %1498 = vmatmul.f32.gmra.mxu1 %v3108_v50  ;;  %v2060_v50 = vld [vmem:[#allocation2 + $0xc0] sm:$0xff] }
  0xee   : > { %4023 = vst [vmem:[#allocation55_spill] sm:$0xff] %v3546_v49  ;;  %2178 = vperm.xlu1 %2520, %v2058_v12   ;;  %2173 = vperm.xlu0 %2519, %v2057_v39   ;;  %v2062_v49 = vld [vmem:[#allocation2 + $0xd0] sm:$0xff]  ;;  %v3563_v39 = vpop.permute.xlu2 %1868 }
  0xef   : > { %976 = vmatmul.f32.gmra.mxu2 %v3202_v54 }
  0xf0   : > { %1156 = vmatmul.f32.gmra.mxu3 %v4025_v13  ;;  %v3556_v60 = vpop.permute.xlu0 %1873  ;;  %v3568_v13 = vpop.permute.xlu1 %1878 }
  0xf1   : > { %4026 = vst [vmem:[#allocation57_spill] sm:$0xff] %v3556_v60  ;;  %v3566_v10 = vpop.f32.mrf.mxu0  ;;  %v4030_v60 = vand.u32 4294901760, %v3202_v54 }
  0xf2   : > { %v672_v22 = vpop.f32.mrf.mxu2  ;;  %v3559_v42 = vpop.f32.mrf.mxu1  ;;  %4029 = vst [vmem:[#allocation60_spill] sm:$0xff] %v3568_v13 }
  0xf3   : > { %4027 = vst [vmem:[#allocation58_spill] sm:$0xff] %v3559_v42  ;;  %v865_v30 = vpop.f32.mrf.mxu3 }
  0xf4   : > { %v3561_v12 = vadd.f32 %v865_v30, %v664_v8  ;;  %1361 = vmatmul.f32.gmra.mxu0 %v3182_v61 }
  0xf5   : > { %2198 = vperm.xlu2 %2521, %v2062_v49   ;;  %1502 = vmatmul.f32.gmra.mxu1 %v3145_v51  ;;  %v2065_v49 = vld [vmem:[#allocation2 + $0xe8] sm:$0xff] }
  0xf6   : > { %4028 = vst [vmem:[#allocation59_spill] sm:$0xff] %v3561_v12  ;;  %2193 = vperm.xlu1 %2520, %v2061_v20   ;;  %2188 = vperm.xlu0 %2519, %v2060_v50   ;;  %v2064_v20 = vld [vmem:[#allocation2 + $0xe0] sm:$0xff]  ;;  %v2063_v50 = vld [vmem:[#allocation2 + $0xd8] sm:$0xff] }
  0xf7   : > { %981 = vmatmul.f32.gmra.mxu2 %v3239_v23 }
  0xf8   : > { %1162 = vmatmul.f32.gmra.mxu3 %v4030_v60  ;;  %v3573_v42 = vpop.permute.xlu0 %1888  ;;  %v3583_v60 = vpop.permute.xlu2 %1883 }
  0xf9   : > { %4031 = vst [vmem:[#allocation61_spill] sm:$0xff] %v3573_v42  ;;  %v3581_v54 = vpop.f32.mrf.mxu0  ;;  %v4033_v42 = vand.u32 4294901760, %v3239_v23  ;;  %v3588_v13 = vpop.permute.xlu1 %1893  ;;  %v4037_v23 = vand.u32 4294901760, %v3278_v7 }
  0xfa   : > { %v680_v8 = vpop.f32.mrf.mxu2  ;;  %v3576_v30 = vpop.f32.mrf.mxu1  ;;  %4034 = vst [vmem:[#allocation63_spill] sm:$0xff] %v3588_v13 }
  0xfb   : > { %v869_v51 = vpop.f32.mrf.mxu3 }
  0xfc   : > { %v3578_v12 = vadd.f32 %v869_v51, %v672_v22  ;;  %1365 = vmatmul.f32.gmra.mxu0 %v3219_v11 }
  0xfd   : > { %2213 = vperm.xlu2 %2521, %v2065_v49   ;;  %1506 = vmatmul.f32.gmra.mxu1 %v3182_v61 }
  0xfe   : > { %4032 = vst [vmem:[#allocation62_spill] sm:$0xff] %v3578_v12  ;;  %2208 = vperm.xlu1 %2520, %v2064_v20   ;;  %2203 = vperm.xlu0 %2519, %v2063_v50  }
  0xff   : > { %986 = vmatmul.f32.gmra.mxu2 %v3278_v7  ;;  %v4042_v7 = vand.u32 4294901760, %v3317_v9 }
 0x100   : > { %1168 = vmatmul.f32.gmra.mxu3 %v4033_v42  ;;  %v3593_v49 = vpop.permute.xlu0 %1903  ;;  %v3603_v42 = vpop.permute.xlu2 %1898 }
 0x101   : > { %4035 = vst [vmem:[#allocation64_spill] sm:$0xff] %v3593_v49  ;;  %v3598_v50 = vpop.f32.mrf.mxu0  ;;  %v3608_v49 = vpop.permute.xlu1 %1908 }
 0x102   : > { %v688_v22 = vpop.f32.mrf.mxu2  ;;  %v3591_v51 = vpop.f32.mrf.mxu1  ;;  %4038 = vst [vmem:[#allocation66_spill] sm:$0xff] %v3603_v42 }
 0x103   : > { %v873_v61 = vpop.f32.mrf.mxu3  ;;  %4039 = vst [vmem:[#allocation67_spill] sm:$0xff] %v3608_v49 }
 0x104   : > { %v3595_v20 = vadd.f32 %v873_v61, %v680_v8  ;;  %1369 = vmatmul.f32.gmra.mxu0 %v3258_v28 }
 0x105   : > { %1510 = vmatmul.f32.gmra.mxu1 %v3219_v11 }
 0x106   : > { %4036 = vst [vmem:[#allocation65_spill] sm:$0xff] %v3595_v20 }
 0x107   : > { %991 = vmatmul.f32.gmra.mxu2 %v3317_v9  ;;  %v4047_v9 = vand.u32 4294901760, %v3348_v14 }
 0x108   : > { %1174 = vmatmul.f32.gmra.mxu3 %v4037_v23  ;;  %v3612_v11 = vpop.permute.xlu0 %1918  ;;  %v3623_v49 = vpop.permute.xlu2 %1913 }
 0x109   : > { %4041 = vst [vmem:[#allocation69_spill] sm:$0xff] %v3612_v11  ;;  %v3615_v20 = vpop.f32.mrf.mxu0 }
 0x10a   : > { %v696_v12 = vpop.f32.mrf.mxu2  ;;  %v3606_v13 = vpop.f32.mrf.mxu1  ;;  %4043 = vst [vmem:[#allocation70_spill] sm:$0xff] %v3623_v49 }
 0x10b   : > { %v877_v8 = vpop.f32.mrf.mxu3 }
 0x10c   : > { %v3610_v61 = vadd.f32 %v877_v8, %v688_v22  ;;  %1373 = vmatmul.f32.gmra.mxu0 %v3295_v55 }
 0x10d   : > { %1514 = vmatmul.f32.gmra.mxu1 %v3258_v28 }
 0x10e   : > { %4040 = vst [vmem:[#allocation68_spill] sm:$0xff] %v3610_v61  ;;  %v3627_v61 = vpop.permute.xlu1 %1923 }
 0x10f   : > { %996 = vmatmul.f32.gmra.mxu2 %v3348_v14  ;;  %4045 = vst [vmem:[#allocation72_spill] sm:$0xff] %v3627_v61  ;;  %v4052_v14 = vand.u32 4294901760, %v2728_v40 }
 0x110   : > { %1180 = vmatmul.f32.gmra.mxu3 %v4042_v7  ;;  %v3632_v11 = vpop.permute.xlu0 %1933 }
 0x111   : > { %v3630_v28 = vpop.f32.mrf.mxu0  ;;  %4046 = vst [vmem:[#allocation73_spill] sm:$0xff] %v3632_v11 }
 0x112   : > { %v704_v23 = vpop.f32.mrf.mxu2  ;;  %v3621_v42 = vpop.f32.mrf.mxu1 }
 0x113   : > { %v881_v22 = vpop.f32.mrf.mxu3 }
 0x114   : > { %v3625_v8 = vadd.f32 %v881_v22, %v696_v12  ;;  %1377 = vmatmul.f32.gmra.mxu0 %v3332_v52 }
 0x115   : > { %1518 = vmatmul.f32.gmra.mxu1 %v3295_v55 }
 0x116   : > { %4044 = vst [vmem:[#allocation71_spill] sm:$0xff] %v3625_v8  ;;  %v3642_v8 = vpop.permute.xlu2 %1928  ;;  %v3647_v11 = vpop.permute.xlu1 %1938 }
 0x117   : > { %1001 = vmatmul.f32.gmra.mxu2 %v2728_v40  ;;  %4049 = vst [vmem:[#allocation75_spill] sm:$0xff] %v3642_v8  ;;  %v774_v40 = vadd.f32 %v3429_v62, %v3417_v53  ;;  %v4058_v53 = vand.u32 4294901760, %v2815_v29 }
 0x118   : > { %1186 = vmatmul.f32.gmra.mxu3 %v4047_v9  ;;  %4051 = vst [vmem:[#allocation77_spill] sm:$0xff] %v3647_v11  ;;  %v3652_v9 = vpop.permute.xlu0 %1948 }
 0x119   : > { %v3645_v55 = vpop.f32.mrf.mxu0  ;;  %4053 = vst [vmem:[#allocation78_spill] sm:$0xff] %v3652_v9 }
 0x11a   : > { %v712_v7 = vpop.f32.mrf.mxu2  ;;  %v3638_v49 = vpop.f32.mrf.mxu1  ;;  %4050 = vst [vmem:[#allocation76_spill] sm:$0xff] %v3645_v55 }
 0x11b   : > { %v885_v12 = vpop.f32.mrf.mxu3 }
 0x11c   : > { %v3640_v22 = vadd.f32 %v885_v12, %v704_v23  ;;  %1381 = vmatmul.f32.gmra.mxu0 %v2704_v32 }
 0x11d   : > { %1522 = vmatmul.f32.gmra.mxu1 %v3332_v52 }
 0x11e   : > { %4048 = vst [vmem:[#allocation74_spill] sm:$0xff] %v3640_v22  ;;  %v3660_v8 = vpop.permute.xlu2 %1943  ;;  %v3667_v9 = vpop.permute.xlu1 %1953 }
 0x11f   : > { %1006 = vmatmul.f32.gmra.mxu2 %v2792_v5  ;;  %4056 = vst [vmem:[#allocation81_spill] sm:$0xff] %v3660_v8 }
 0x120   : > { %1192 = vmatmul.f32.gmra.mxu3 %v4052_v14  ;;  %v4057_v14 = vand.u32 4294901760, %v2792_v5  ;;  %v778_v5 = vadd.f32 %v3446_v2, %v3434_v45 }
 0x121   : > { %v1322_v52 = vpop.f32.mrf.mxu0 }
 0x122   : > { %v927_v61 = vpop.f32.mrf.mxu2  ;;  %v3655_v23 = vpop.f32.mrf.mxu1 }
 0x123   : > { %4054 = vst [vmem:[#allocation79_spill] sm:$0xff] %v3655_v23  ;;  %v889_v12 = vpop.f32.mrf.mxu3  ;;  %v928_v11 = vadd.f32 %v927_v61, %v774_v40 }
 0x124   : > { %v3657_v22 = vadd.f32 %v889_v12, %v712_v7  ;;  %1385 = vmatmul.f32.gmra.mxu0 %v2780_v63 }
 0x125   : > { %1526 = vmatmul.f32.gmra.mxu1 %v2704_v32  ;;  %v3670_v32 = vpop.permute.xlu0 %1963 }
 0x126   : > { %4055 = vst [vmem:[#allocation80_spill] sm:$0xff] %v3657_v22  ;;  %v3678_v61 = vpop.permute.xlu2 %1958 }
 0x127   : > { %1011 = vmatmul.f32.gmra.mxu2 %v2815_v29 }
 0x128   : > { %1198 = vmatmul.f32.gmra.mxu3 %v4057_v14 }
 0x129   : > { %v1326_v55 = vpop.f32.mrf.mxu0 }
 0x12a   : > { %v932_v7 = vpop.f32.mrf.mxu2  ;;  %v1467_v12 = vpop.f32.mrf.mxu1 }
 0x12b   : > { %v1103_v22 = vpop.f32.mrf.mxu3  ;;  %v933_v40 = vadd.f32 %v932_v7, %v778_v5  ;;  %v782_v7 = vadd.f32 %v3461_v48, %v3451_v3  ;;  %v4059_v5 = vand.u32 4294901760, %v2859_v25 }
 0x12c   : > { %v1104_v8 = vadd.f32 %v1103_v22, %v928_v11  ;;  %1389 = vmatmul.f32.gmra.mxu0 %v2794_v6  ;;  %v3683_v22 = vpop.permute.xlu1 %1968 }
 0x12d   : > { %1530 = vmatmul.f32.gmra.mxu1 %v2780_v63  ;;  %v2069_v2 = vpop.permute.xlu0 %2068 }
 0x12e   : > { %v1323_v23 = vadd.f32 %v1322_v52, %v1104_v8 }
 0x12f   : > { %1016 = vmatmul.f32.gmra.mxu2 %v2859_v25 }
 0x130   : > { %v1468_v62 = vadd.f32 %v1467_v12, %v1323_v23  ;;  %1204 = vmatmul.f32.gmra.mxu3 %v4058_v53 }
 0x131   : > { %v1330_v23 = vpop.f32.mrf.mxu0 }
 0x132   : > { %v1766_v11 = vmul.f32 %v3311_v24, %v1468_v62  ;;  %v937_v63 = vpop.f32.mrf.mxu2  ;;  %v1471_v8 = vpop.f32.mrf.mxu1 }
 0x133   : > { %v1109_v52 = vpop.f32.mrf.mxu3 }
 0x134   : > { %v1976_v14 = vadd.f32 %v3507_v59, %v1766_v11  ;;  %v1110_v45 = vadd.f32 %v1109_v52, %v933_v40  ;;  %1393 = vmatmul.f32.gmra.mxu0 %v2845_v56  ;;  %v2074_v48 = vpop.permute.xlu1 %2073 }
 0x135   : > { %1534 = vmatmul.f32.gmra.mxu1 %v2794_v6  ;;  %v938_v6 = vadd.f32 %v937_v63, %v782_v7 }
 0x136   : > { %vm2006_vm1 = vcmp.ge.f32.partialorder %v1976_v14, 0.0  ;;  %v2216_v29 = vmul.f32 %v2069_v2, %v1976_v14  ;;  %v1327_v24 = vadd.f32 %v1326_v55, %v1110_v45  ;;  %v3700_v55 = vpop.permute.xlu2 %1973  ;;  %v4060_v2 = vand.u32 4294901760, %v2904_v31 }
 0x137   : > { %1021 = vmatmul.f32.gmra.mxu2 %v2904_v31 }
 0x138   : > { %v2246_v59 = vsel %vm2006_vm1, %v1976_v14, %v2216_v29  ;;  %v1472_v12 = vadd.f32 %v1471_v8, %v1327_v24  ;;  %1210 = vmatmul.f32.gmra.mxu3 %v4059_v5  ;;  %v790_v5 = vadd.f32 %v3495_v38, %v3485_v1 }
 0x139   : > { %2276 = vst [vmem:[%s3690_s16] sm:$0xff] %v2246_v59  ;;  %v1334_v14 = vpop.f32.mrf.mxu0 }
 0x13a   : > { %v1767_v62 = vmul.f32 %v3340_v47, %v1472_v12  ;;  %v942_v53 = vpop.f32.mrf.mxu2  ;;  %v1475_v40 = vpop.f32.mrf.mxu1  ;;  %v786_v47 = vadd.f32 %v3478_v58, %v3468_v46 }
 0x13b   : > { %v1115_v11 = vpop.f32.mrf.mxu3 }
 0x13c   : > { %v1977_v52 = vadd.f32 %v3509_v4, %v1767_v62  ;;  %v1116_v3 = vadd.f32 %v1115_v11, %v938_v6  ;;  %1397 = vmatmul.f32.gmra.mxu0 %v2887_v34  ;;  %v943_v4 = vadd.f32 %v942_v53, %v786_v47  ;;  %v4061_v62 = vand.u32 4294901760, %v2951_v33 }
 0x13d   : > { %1538 = vmatmul.f32.gmra.mxu1 %v2845_v56 }
 0x13e   : > { %vm2007_vm2 = vcmp.ge.f32.partialorder %v1977_v52, 0.0  ;;  %v2217_v25 = vmul.f32 %v2074_v48, %v1977_v52  ;;  %v1331_v8 = vadd.f32 %v1330_v23, %v1116_v3  ;;  %v2079_v12 = vpop.permute.xlu2 %2078  ;;  %v2084_v48 = vpop.permute.xlu0 %2083 }
 0x13f   : > { %1026 = vmatmul.f32.gmra.mxu2 %v2951_v33 }
 0x140   : > { %v2247_v63 = vsel %vm2007_vm2, %v1977_v52, %v2217_v25  ;;  %v1476_v45 = vadd.f32 %v1475_v40, %v1331_v8  ;;  %1216 = vmatmul.f32.gmra.mxu3 %v4060_v2  ;;  %v794_v25 = vadd.f32 %v3512_v17, %v3500_v43 }
 0x141   : > { %2277 = vst [vmem:[%s3690_s16 + $0x8] sm:$0xff] %v2247_v63  ;;  %v1338_v58 = vpop.f32.mrf.mxu0 }
 0x142   : > { %v1768_v56 = vmul.f32 %v3299_v16, %v1476_v45  ;;  %v947_v29 = vpop.f32.mrf.mxu2  ;;  %v1479_v24 = vpop.f32.mrf.mxu1 }
 0x143   : > { %v1121_v23 = vpop.f32.mrf.mxu3 }
 0x144   : > { %v1978_v7 = vadd.f32 %v3524_v35, %v1768_v56  ;;  %v1122_v59 = vadd.f32 %v1121_v23, %v943_v4  ;;  %1401 = vmatmul.f32.gmra.mxu0 %v2933_v57  ;;  %v948_v35 = vadd.f32 %v947_v29, %v790_v5  ;;  %v2089_v56 = vpop.permute.xlu1 %2088  ;;  %v4063_v29 = vld [vmem:[#allocation7_spill] sm:$0xff]  ;;  %v4065_v23 = vld [vmem:[#allocation52_spill] sm:$0xff] }
 0x145   : > { %1542 = vmatmul.f32.gmra.mxu1 %v2887_v34 }
 0x146   : > { %vm2008_vm3 = vcmp.ge.f32.partialorder %v1978_v7, 0.0  ;;  %v2218_v46 = vmul.f32 %v2079_v12, %v1978_v7  ;;  %v1335_v31 = vadd.f32 %v1334_v14, %v1122_v59  ;;  %v4062_v14 = vand.u32 4294901760, %v2999_v37 }
 0x147   : > { %1031 = vmatmul.f32.gmra.mxu2 %v2999_v37  ;;  %v4066_v12 = vand.u32 4294901760, %v3043_v26 }
 0x148   : > { %v2248_v16 = vsel %vm2008_vm3, %v1978_v7, %v2218_v46  ;;  %v1480_v6 = vadd.f32 %v1479_v24, %v1335_v31  ;;  %1222 = vmatmul.f32.gmra.mxu3 %v4061_v62  ;;  %v4064_v24 = vld [vmem:[#allocation51_spill] sm:$0xff] }
 0x149   : > { %2278 = vst [vmem:[%s3690_s16 + $0x10] sm:$0xff] %v2248_v16  ;;  %v1342_v38 = vpop.f32.mrf.mxu0  ;;  %v798_v7 = vadd.f32 %v4065_v23, %v4064_v24  ;;  %v4068_v31 = vld [vmem:[#allocation19_spill] sm:$0xff]  ;;  %v4078_v24 = vld [vmem:[#allocation22_spill] sm:$0xff] }
 0x14a   : > { %v1769_v34 = vmul.f32 %v3334_v36, %v1480_v6  ;;  %v952_v53 = vpop.f32.mrf.mxu2  ;;  %v1483_v40 = vpop.f32.mrf.mxu1 }
 0x14b   : > { %v1127_v11 = vpop.f32.mrf.mxu3 }
 0x14c   : > { %v1979_v52 = vadd.f32 %v3522_v21, %v1769_v34  ;;  %v1128_v3 = vadd.f32 %v1127_v11, %v948_v35  ;;  %1405 = vmatmul.f32.gmra.mxu0 %v2981_v18  ;;  %v953_v21 = vadd.f32 %v952_v53, %v794_v25  ;;  %v2094_v35 = vpop.permute.xlu2 %2093  ;;  %v802_v11 = vadd.f32 %v3542_v19, %v3534_v15 }
 0x14d   : > { %1546 = vmatmul.f32.gmra.mxu1 %v2933_v57 }
 0x14e   : > { %vm2009_vm4 = vcmp.ge.f32.partialorder %v1979_v52, 0.0  ;;  %v2219_v1 = vmul.f32 %v2084_v48, %v1979_v52  ;;  %v1339_v33 = vadd.f32 %v1338_v58, %v1128_v3  ;;  %v4070_v48 = vand.u32 4294901760, %v4063_v29 }
 0x14f   : > { %1036 = vmatmul.f32.gmra.mxu2 %v3043_v26 }
 0x150   : > { %v2249_v36 = vsel %vm2009_vm4, %v1979_v52, %v2219_v1  ;;  %v1484_v8 = vadd.f32 %v1483_v40, %v1339_v33  ;;  %1228 = vmatmul.f32.gmra.mxu3 %v4062_v14  ;;  %v4069_v40 = vld [vmem:[#allocation9_spill] sm:$0xff]  ;;  %v4072_v33 = vld [vmem:[#allocation23_spill] sm:$0xff]  ;;  %v4073_v14 = vld [vmem:[#allocation54_spill] sm:$0xff] }
 0x151   : > { %2279 = vst [vmem:[%s3690_s16 + $0x18] sm:$0xff] %v2249_v36  ;;  %v1346_v17 = vpop.f32.mrf.mxu0 }
 0x152   : > { %v1770_v57 = vmul.f32 %v3254_v41, %v1484_v8  ;;  %v957_v47 = vpop.f32.mrf.mxu2  ;;  %v1487_v63 = vpop.f32.mrf.mxu1 }
 0x153   : > { %v1133_v45 = vpop.f32.mrf.mxu3  ;;  %v958_v46 = vadd.f32 %v957_v47, %v798_v7  ;;  %v2099_v47 = vpop.permute.xlu0 %2098 }
 0x154   : > { %v1980_v2 = vadd.f32 %v3529_v27, %v1770_v57  ;;  %v1134_v4 = vadd.f32 %v1133_v45, %v953_v21  ;;  %v4067_v27 = vld [vmem:[#allocation5_spill] sm:$0xff]  ;;  %v4074_v45 = vld [vmem:[#allocation11_spill] sm:$0xff] }
 0x155   : > { %1550 = vmatmul.f32.gmra.mxu1 %v2981_v18  ;;  %1409 = vmatmul.f32.gmra.mxu0 %v4067_v27 }
 0x156   : > { %vm2010_vm5 = vcmp.ge.f32.partialorder %v1980_v2, 0.0  ;;  %v2220_v43 = vmul.f32 %v2089_v56, %v1980_v2  ;;  %v1343_v37 = vadd.f32 %v1342_v38, %v1134_v4 }
 0x157   : > { %1041 = vmatmul.f32.gmra.mxu2 %v4063_v29 }
 0x158   : > { %v2250_v41 = vsel %vm2010_vm5, %v1980_v2, %v2220_v43  ;;  %v1488_v59 = vadd.f32 %v1487_v63, %v1343_v37  ;;  %1234 = vmatmul.f32.gmra.mxu3 %v4066_v12  ;;  %v4075_v2 = vld [vmem:[#allocation58_spill] sm:$0xff]  ;;  %v4076_v37 = vand.u32 4294901760, %v4069_v40  ;;  %v4079_v12 = vld [vmem:[#allocation56_spill] sm:$0xff] }
 0x159   : > { %2280 = vst [vmem:[%s3690_s16 + $0x20] sm:$0xff] %v2250_v41  ;;  %v1350_v53 = vpop.f32.mrf.mxu0  ;;  %v806_v4 = vadd.f32 %v4075_v2, %v3551_v0 }
 0x15a   : > { %v1771_v18 = vmul.f32 %v4068_v31, %v1488_v59  ;;  %v962_v58 = vpop.f32.mrf.mxu2  ;;  %v1491_v5 = vpop.f32.mrf.mxu1 }
 0x15b   : > { %v1139_v16 = vpop.f32.mrf.mxu3  ;;  %v963_v1 = vadd.f32 %v962_v58, %v802_v11  ;;  %v2104_v31 = vpop.permute.xlu1 %2103 }
 0x15c   : > { %v1981_v6 = vadd.f32 %v3544_v44, %v1771_v18  ;;  %v1140_v62 = vadd.f32 %v1139_v16, %v958_v46  ;;  %v4071_v44 = vld [vmem:[#allocation6_spill] sm:$0xff]  ;;  %v810_v16 = vadd.f32 %v3576_v30, %v3566_v10 }
 0x15d   : > { %1554 = vmatmul.f32.gmra.mxu1 %v4067_v27  ;;  %1413 = vmatmul.f32.gmra.mxu0 %v4071_v44 }
 0x15e   : > { %vm2011_vm6 = vcmp.ge.f32.partialorder %v1981_v6, 0.0  ;;  %v2221_v34 = vmul.f32 %v2094_v35, %v1981_v6  ;;  %v1347_v26 = vadd.f32 %v1346_v17, %v1140_v62  ;;  %v4077_v17 = vld [vmem:[#allocation8_spill] sm:$0xff]  ;;  %v4081_v35 = vand.u32 4294901760, %v4074_v45 }
 0x15f   : > { %1046 = vmatmul.f32.gmra.mxu2 %v4069_v40 }
 0x160   : > { %v2251_v52 = vsel %vm2011_vm6, %v1981_v6, %v2221_v34  ;;  %v1492_v3 = vadd.f32 %v1491_v5, %v1347_v26  ;;  %1240 = vmatmul.f32.gmra.mxu3 %v4070_v48  ;;  %v4080_v5 = vld [vmem:[#allocation13_spill] sm:$0xff]  ;;  %v4082_v34 = vld [vmem:[#allocation10_spill] sm:$0xff] }
 0x161   : > { %2281 = vst [vmem:[%s3690_s16 + $0x28] sm:$0xff] %v2251_v52  ;;  %v1354_v63 = vpop.f32.mrf.mxu0 }
 0x162   : > { %v1772_v38 = vmul.f32 %v4072_v33, %v1492_v3  ;;  %v967_v25 = vpop.f32.mrf.mxu2  ;;  %v1495_v36 = vpop.f32.mrf.mxu1 }
 0x163   : > { %v1145_v8 = vpop.f32.mrf.mxu3  ;;  %v968_v29 = vadd.f32 %v967_v25, %v806_v4  ;;  %v814_v25 = vadd.f32 %v3591_v51, %v3581_v54 }
 0x164   : > { %v1982_v21 = vadd.f32 %v4073_v14, %v1772_v38  ;;  %v1146_v57 = vadd.f32 %v1145_v8, %v963_v1  ;;  %v2109_v1 = vpop.permute.xlu2 %2108  ;;  %v4084_v38 = vld [vmem:[#allocation15_spill] sm:$0xff]  ;;  %v4085_v14 = vand.u32 4294901760, %v4080_v5 }
 0x165   : > { %1558 = vmatmul.f32.gmra.mxu1 %v4071_v44  ;;  %1417 = vmatmul.f32.gmra.mxu0 %v4077_v17 }
 0x166   : > { %vm2012_vm7 = vcmp.ge.f32.partialorder %v1982_v21, 0.0  ;;  %v2222_v19 = vmul.f32 %v2099_v47, %v1982_v21  ;;  %v1351_v15 = vadd.f32 %v1350_v53, %v1146_v57  ;;  %v4083_v53 = vld [vmem:[#allocation21_spill] sm:$0xff]  ;;  %v4087_v57 = vld [vmem:[#allocation26_spill] sm:$0xff] }
 0x167   : > { %1051 = vmatmul.f32.gmra.mxu2 %v4074_v45  ;;  %v4088_v45 = vld [vmem:[#allocation57_spill] sm:$0xff] }
 0x168   : > { %v2252_v56 = vsel %vm2012_vm7, %v1982_v21, %v2222_v19  ;;  %v1496_v43 = vadd.f32 %v1495_v36, %v1351_v15  ;;  %1246 = vmatmul.f32.gmra.mxu3 %v4076_v37  ;;  %v4089_v37 = vld [vmem:[#allocation17_spill] sm:$0xff] }
 0x169   : > { %2282 = vst [vmem:[%s3690_s16 + $0x30] sm:$0xff] %v2252_v56  ;;  %v1358_v58 = vpop.f32.mrf.mxu0  ;;  %v2114_v56 = vpop.permute.xlu0 %2113 }
 0x16a   : > { %v1773_v23 = vmul.f32 %v4078_v24, %v1496_v43  ;;  %v972_v7 = vpop.f32.mrf.mxu2  ;;  %v1499_v41 = vpop.f32.mrf.mxu1 }
 0x16b   : > { %v1151_v59 = vpop.f32.mrf.mxu3  ;;  %v973_v26 = vadd.f32 %v972_v7, %v810_v16  ;;  %v4091_v7 = vld [vmem:[#allocation14_spill] sm:$0xff] }
 0x16c   : > { %v1983_v27 = vadd.f32 %v4079_v12, %v1773_v23  ;;  %v1152_v46 = vadd.f32 %v1151_v59, %v968_v29  ;;  %v4090_v23 = vand.u32 4294901760, %v4084_v38  ;;  %v4092_v59 = vld [vmem:[#allocation25_spill] sm:$0xff] }
 0x16d   : > { %1562 = vmatmul.f32.gmra.mxu1 %v4077_v17  ;;  %1421 = vmatmul.f32.gmra.mxu0 %v4082_v34  ;;  %v818_v17 = vadd.f32 %v3606_v13, %v3598_v50 }
 0x16e   : > { %vm2013_vm8 = vcmp.ge.f32.partialorder %v1983_v27, 0.0  ;;  %v2223_v0 = vmul.f32 %v2104_v31, %v1983_v27  ;;  %v1355_v18 = vadd.f32 %v1354_v63, %v1152_v46 }
 0x16f   : > { %1056 = vmatmul.f32.gmra.mxu2 %v4080_v5  ;;  %v2119_v5 = vpop.permute.xlu1 %2118 }
 0x170   : > { %v2253_v6 = vsel %vm2013_vm8, %v1983_v27, %v2223_v0  ;;  %v1500_v62 = vadd.f32 %v1499_v41, %v1355_v18  ;;  %1252 = vmatmul.f32.gmra.mxu3 %v4081_v35  ;;  %v4093_v0 = vld [vmem:[#allocation60_spill] sm:$0xff] }
 0x171   : > { %2283 = vst [vmem:[%s3690_s16 + $0x38] sm:$0xff] %v2253_v6  ;;  %v1362_v33 = vpop.f32.mrf.mxu0  ;;  %v4094_v6 = vld [vmem:[#allocation20_spill] sm:$0xff] }
 0x172   : > { %v1774_v40 = vmul.f32 %v4083_v53, %v1500_v62  ;;  %v977_v11 = vpop.f32.mrf.mxu2  ;;  %v1503_v52 = vpop.f32.mrf.mxu1  ;;  %v822_v62 = vadd.f32 %v3621_v42, %v3615_v20  ;;  %v4096_v53 = vld [vmem:[#allocation16_spill] sm:$0xff] }
 0x173   : > { %v1157_v3 = vpop.f32.mrf.mxu3  ;;  %v978_v21 = vadd.f32 %v977_v11, %v814_v25  ;;  %v4097_v11 = vld [vmem:[#allocation24_spill] sm:$0xff] }
 0x174   : > { %v1984_v48 = vadd.f32 %v3563_v39, %v1774_v40  ;;  %v1158_v44 = vadd.f32 %v1157_v3, %v973_v26  ;;  %v4086_v39 = vld [vmem:[#allocation12_spill] sm:$0xff]  ;;  %v4095_v26 = vand.u32 4294901760, %v4089_v37 }
 0x175   : > { %1566 = vmatmul.f32.gmra.mxu1 %v4082_v34  ;;  %1425 = vmatmul.f32.gmra.mxu0 %v4086_v39 }
 0x176   : > { %vm2014_vm9 = vcmp.ge.f32.partialorder %v1984_v48, 0.0  ;;  %v2224_v10 = vmul.f32 %v2109_v1, %v1984_v48  ;;  %v1359_v30 = vadd.f32 %v1358_v58, %v1158_v44 }
 0x177   : > { %1061 = vmatmul.f32.gmra.mxu2 %v4084_v38  ;;  %v826_v38 = vadd.f32 %v3638_v49, %v3630_v28 }
 0x178   : > { %v2254_v36 = vsel %vm2014_vm9, %v1984_v48, %v2224_v10  ;;  %v1504_v8 = vadd.f32 %v1503_v52, %v1359_v30  ;;  %1258 = vmatmul.f32.gmra.mxu3 %v4085_v14  ;;  %v2124_v30 = vpop.permute.xlu2 %2123  ;;  %v4099_v14 = vld [vmem:[#allocation18_spill] sm:$0xff] }
 0x179   : > { %2284 = vst [vmem:[%s3690_s16 + $0x40] sm:$0xff] %v2254_v36  ;;  %v1366_v43 = vpop.f32.mrf.mxu0 }
 0x17a   : > { %v1775_v47 = vmul.f32 %v4087_v57, %v1504_v8  ;;  %v982_v19 = vpop.f32.mrf.mxu2  ;;  %v1507_v15 = vpop.f32.mrf.mxu1  ;;  %v4098_v8 = vand.u32 4294901760, %v4094_v6 }
 0x17b   : > { %v1163_v63 = vpop.f32.mrf.mxu3  ;;  %v983_v41 = vadd.f32 %v982_v19, %v818_v17 }
 0x17c   : > { %v1985_v2 = vadd.f32 %v4088_v45, %v1775_v47  ;;  %v1164_v4 = vadd.f32 %v1163_v63, %v978_v21 }
 0x17d   : > { %1570 = vmatmul.f32.gmra.mxu1 %v4086_v39  ;;  %1429 = vmatmul.f32.gmra.mxu0 %v4091_v7  ;;  %v4100_v39 = vld [vmem:[#allocation29_spill] sm:$0xff] }
 0x17e   : > { %vm2015_vm10 = vcmp.ge.f32.partialorder %v1985_v2, 0.0  ;;  %v2225_v54 = vmul.f32 %v2114_v56, %v1985_v2  ;;  %v1363_v51 = vadd.f32 %v1362_v33, %v1164_v4  ;;  %v4102_v56 = vld [vmem:[#allocation76_spill] sm:$0xff] }
 0x17f   : > { %1066 = vmatmul.f32.gmra.mxu2 %v4089_v37 }
 0x180   : > { %v2255_v29 = vsel %vm2015_vm10, %v1985_v2, %v2225_v54  ;;  %v1508_v24 = vadd.f32 %v1507_v15, %v1363_v51  ;;  %1264 = vmatmul.f32.gmra.mxu3 %v4090_v23  ;;  %v4101_v15 = vld [vmem:[#allocation61_spill] sm:$0xff]  ;;  %v2129_v2 = vpop.permute.xlu0 %2128  ;;  %v4103_v54 = vld [vmem:[#allocation79_spill] sm:$0xff] }
 0x181   : > { %2285 = vst [vmem:[%s3690_s16 + $0x48] sm:$0xff] %v2255_v29  ;;  %v1370_v16 = vpop.f32.mrf.mxu0  ;;  %v830_v51 = vadd.f32 %v4103_v54, %v4102_v56  ;;  %v4104_v29 = vld [vmem:[#allocation28_spill] sm:$0xff]  ;;  %v4114_v56 = vld [vmem:[#allocation67_spill] sm:$0xff] }
 0x182   : > { %v1776_v12 = vmul.f32 %v4092_v59, %v1508_v24  ;;  %v987_v27 = vpop.f32.mrf.mxu2  ;;  %v1511_v46 = vpop.f32.mrf.mxu1  ;;  %v4105_v59 = vld [vmem:[#allocation63_spill] sm:$0xff] }
 0x183   : > { %v1169_v31 = vpop.f32.mrf.mxu3  ;;  %v988_v40 = vadd.f32 %v987_v27, %v822_v62 }
 0x184   : > { %v1986_v18 = vadd.f32 %v4093_v0, %v1776_v12  ;;  %v1170_v58 = vadd.f32 %v1169_v31, %v983_v41 }
 0x185   : > { %1574 = vmatmul.f32.gmra.mxu1 %v4091_v7  ;;  %1433 = vmatmul.f32.gmra.mxu0 %v4096_v53 }
 0x186   : > { %vm2016_vm11 = vcmp.ge.f32.partialorder %v1986_v18, 0.0  ;;  %v2226_v13 = vmul.f32 %v2119_v5, %v1986_v18  ;;  %v1367_v50 = vadd.f32 %v1366_v43, %v1170_v58 }
 0x187   : > { %1071 = vmatmul.f32.gmra.mxu2 %v4094_v6 }
 0x188   : > { %v2256_v35 = vsel %vm2016_vm11, %v1986_v18, %v2226_v13  ;;  %v1512_v34 = vadd.f32 %v1511_v46, %v1367_v50  ;;  %1270 = vmatmul.f32.gmra.mxu3 %v4095_v26  ;;  %v2134_v46 = vpop.permute.xlu1 %2133  ;;  %v4106_v13 = vld [vmem:[#allocation33_spill] sm:$0xff]  ;;  %v4108_v26 = vld [vmem:[#allocation66_spill] sm:$0xff] }
 0x189   : > { %2286 = vst [vmem:[%s3690_s16 + $0x50] sm:$0xff] %v2256_v35  ;;  %v1374_v33 = vpop.f32.mrf.mxu0 }
 0x18a   : > { %v1777_v52 = vmul.f32 %v4097_v11, %v1512_v34  ;;  %v992_v3 = vpop.f32.mrf.mxu2  ;;  %v1515_v48 = vpop.f32.mrf.mxu1 }
 0x18b   : > { %v1175_v44 = vpop.f32.mrf.mxu3  ;;  %v2139_v11 = vpop.permute.xlu2 %2138 }
 0x18c   : > { %v1987_v1 = vadd.f32 %v3583_v60, %v1777_v52  ;;  %v1176_v10 = vadd.f32 %v1175_v44, %v988_v40  ;;  %v993_v60 = vadd.f32 %v992_v3, %v826_v38 }
 0x18d   : > { %1578 = vmatmul.f32.gmra.mxu1 %v4096_v53  ;;  %1437 = vmatmul.f32.gmra.mxu0 %v4099_v14 }
 0x18e   : > { %vm2017_vm12 = vcmp.ge.f32.partialorder %v1987_v1, 0.0  ;;  %v2227_v20 = vmul.f32 %v2124_v30, %v1987_v1  ;;  %v1371_v42 = vadd.f32 %v1370_v16, %v1176_v10  ;;  %v4107_v16 = vld [vmem:[#allocation27_spill] sm:$0xff]  ;;  %v4109_v10 = vld [vmem:[#allocation37_spill] sm:$0xff] }
 0x190   : > { %v2257_v25 = vsel %vm2017_vm12, %v1987_v1, %v2227_v20  ;;  %v1516_v36 = vadd.f32 %v1515_v48, %v1371_v42  ;;  %1276 = vmatmul.f32.gmra.mxu3 %v4098_v8  ;;  %v4110_v20 = vld [vmem:[#allocation32_spill] sm:$0xff] }
 0x191   : > { %2287 = vst [vmem:[%s3690_s16 + $0x58] sm:$0xff] %v2257_v25  ;;  %v1378_v4 = vpop.f32.mrf.mxu0 }
 0x192   : > { %v1778_v21 = vmul.f32 %v4100_v39, %v1516_v36  ;;  %v997_v57 = vpop.f32.mrf.mxu2  ;;  %v1519_v47 = vpop.f32.mrf.mxu1  ;;  %v4111_v36 = vld [vmem:[#allocation64_spill] sm:$0xff] }
 0x193   : > { %v1181_v19 = vpop.f32.mrf.mxu3  ;;  %v998_v17 = vadd.f32 %v997_v57, %v830_v51 }
 0x194   : > { %v1988_v63 = vadd.f32 %v4101_v15, %v1778_v21  ;;  %v1182_v45 = vadd.f32 %v1181_v19, %v993_v60  ;;  %v2144_v60 = vpop.permute.xlu0 %2143  ;;  %v4112_v15 = vld [vmem:[#allocation41_spill] sm:$0xff] }
 0x195   : > { %1582 = vmatmul.f32.gmra.mxu1 %v4099_v14 }
 0x196   : > { %vm2018_vm13 = vcmp.ge.f32.partialorder %v1988_v63, 0.0  ;;  %v2228_v49 = vmul.f32 %v2129_v2, %v1988_v63  ;;  %v1375_v28 = vadd.f32 %v1374_v33, %v1182_v45  ;;  %v4113_v45 = vld [vmem:[#allocation31_spill] sm:$0xff] }
 0x198   : > { %v2258_v43 = vsel %vm2018_vm13, %v1988_v63, %v2228_v49  ;;  %v1520_v37 = vadd.f32 %v1519_v47, %v1375_v28 }
 0x199   : > { %2288 = vst [vmem:[%s3690_s16 + $0x60] sm:$0xff] %v2258_v43  ;;  %v1382_v18 = vpop.f32.mrf.mxu0  ;;  %v2149_v43 = vpop.permute.xlu1 %2148 }
 0x19a   : > { %v1779_v24 = vmul.f32 %v4104_v29, %v1520_v37  ;;  %v1002_v23 = vpop.f32.mrf.mxu2  ;;  %v1523_v7 = vpop.f32.mrf.mxu1 }
 0x19b   : > { %v1187_v41 = vpop.f32.mrf.mxu3  ;;  %v1003_v50 = vadd.f32 %v1002_v23, %v4106_v13 }
 0x19c   : > { %v1989_v12 = vadd.f32 %v4105_v59, %v1779_v24  ;;  %v1188_v27 = vadd.f32 %v1187_v41, %v998_v17  ;;  %v4116_v59 = vld [vmem:[#allocation30_spill] sm:$0xff] }
 0x19e   : > { %vm2019_vm14 = vcmp.ge.f32.partialorder %v1989_v12, 0.0  ;;  %v2229_v31 = vmul.f32 %v2134_v46, %v1989_v12  ;;  %v1379_v0 = vadd.f32 %v1378_v4, %v1188_v27 }
 0x1a0   : > { %v2259_v58 = vsel %vm2019_vm14, %v1989_v12, %v2229_v31  ;;  %v1524_v5 = vadd.f32 %v1523_v7, %v1379_v0  ;;  %v4115_v7 = vld [vmem:[#allocation44_spill] sm:$0xff]  ;;  %v4117_v0 = vld [vmem:[#allocation70_spill] sm:$0xff] }
 0x1a1   : > { %2289 = vst [vmem:[%s3690_s16 + $0x68] sm:$0xff] %v2259_v58  ;;  %v1386_v48 = vpop.f32.mrf.mxu0 }
 0x1a2   : > { %v1780_v6 = vmul.f32 %v4107_v16, %v1524_v5  ;;  %v1007_v62 = vpop.f32.mrf.mxu2  ;;  %v1527_v35 = vpop.f32.mrf.mxu1 }
 0x1a3   : > { %v1193_v34 = vpop.f32.mrf.mxu3  ;;  %v1008_v30 = vadd.f32 %v1007_v62, %v4109_v10  ;;  %v2154_v5 = vpop.permute.xlu2 %2153 }
 0x1a4   : > { %v1990_v53 = vadd.f32 %v4108_v26, %v1780_v6  ;;  %v1194_v40 = vadd.f32 %v1193_v34, %v1003_v50  ;;  %v4119_v26 = vld [vmem:[#allocation35_spill] sm:$0xff] }
 0x1a6   : > { %vm2020_vm15 = vcmp.ge.f32.partialorder %v1990_v53, 0.0  ;;  %v2230_v52 = vmul.f32 %v2139_v11, %v1990_v53  ;;  %v1383_v3 = vadd.f32 %v1382_v18, %v1194_v40 }
 0x1a8   : > { %v2260_v44 = vsel %vm2020_vm15, %v1990_v53, %v2230_v52  ;;  %v1528_v1 = vadd.f32 %v1527_v35, %v1383_v3  ;;  %v4118_v35 = vld [vmem:[#allocation48_spill] sm:$0xff]  ;;  %v4120_v3 = vld [vmem:[#allocation69_spill] sm:$0xff] }
 0x1a9   : > { %2290 = vst [vmem:[%s3690_s16 + $0x70] sm:$0xff] %v2260_v44  ;;  %v1390_v57 = vpop.f32.mrf.mxu0 }
 0x1aa   : > { %v1781_v42 = vmul.f32 %v4110_v20, %v1528_v1  ;;  %v1012_v33 = vpop.f32.mrf.mxu2  ;;  %v1531_v38 = vpop.f32.mrf.mxu1 }
 0x1ab   : > { %v1199_v25 = vpop.f32.mrf.mxu3  ;;  %v1013_v63 = vadd.f32 %v1012_v33, %v4112_v15  ;;  %v2159_v1 = vpop.permute.xlu0 %2158 }
 0x1ac   : > { %v1991_v8 = vadd.f32 %v4111_v36, %v1781_v42  ;;  %v1200_v14 = vadd.f32 %v1199_v25, %v1008_v30  ;;  %v4122_v36 = vld [vmem:[#allocation34_spill] sm:$0xff] }
 0x1ae   : > { %vm2021_vm0 = vcmp.ge.f32.partialorder %v1991_v8, 0.0  ;;  %v2231_v39 = vmul.f32 %v2144_v60, %v1991_v8  ;;  %v1387_v21 = vadd.f32 %v1386_v48, %v1200_v14 }
 0x1b0   : > { %v2261_v47 = vsel %vm2021_vm0, %v1991_v8, %v2231_v39  ;;  %v1532_v19 = vadd.f32 %v1531_v38, %v1387_v21  ;;  %v4121_v38 = vld [vmem:[#allocation50_spill] sm:$0xff]  ;;  %v4123_v21 = vld [vmem:[#allocation72_spill] sm:$0xff] }
 0x1b1   : > { %2291 = vst [vmem:[%s3690_s16 + $0x78] sm:$0xff] %v2261_v47  ;;  %v1394_v29 = vpop.f32.mrf.mxu0 }
 0x1b2   : > { %v1782_v2 = vmul.f32 %v4113_v45, %v1532_v19  ;;  %v1017_v49 = vpop.f32.mrf.mxu2  ;;  %v1535_v28 = vpop.f32.mrf.mxu1 }
 0x1b3   : > { %v1205_v4 = vpop.f32.mrf.mxu3  ;;  %v1018_v41 = vadd.f32 %v1017_v49, %v4115_v7  ;;  %v2164_v19 = vpop.permute.xlu1 %2163 }
 0x1b4   : > { %v1992_v54 = vadd.f32 %v4114_v56, %v1782_v2  ;;  %v1206_v51 = vadd.f32 %v1205_v4, %v1013_v63  ;;  %v4125_v56 = vld [vmem:[#allocation36_spill] sm:$0xff] }
 0x1b6   : > { %vm2022_vm1 = vcmp.ge.f32.partialorder %v1992_v54, 0.0  ;;  %v2232_v37 = vmul.f32 %v2149_v43, %v1992_v54  ;;  %v1391_v17 = vadd.f32 %v1390_v57, %v1206_v51 }
 0x1b8   : > { %v2262_v24 = vsel %vm2022_vm1, %v1992_v54, %v2232_v37  ;;  %v1536_v23 = vadd.f32 %v1535_v28, %v1391_v17  ;;  %v4124_v28 = vld [vmem:[#allocation53_spill] sm:$0xff]  ;;  %v4126_v17 = vld [vmem:[#allocation75_spill] sm:$0xff] }
 0x1b9   : > { %2292 = vst [vmem:[%s3690_s16 + $0x80] sm:$0xff] %v2262_v24  ;;  %v1398_v16 = vpop.f32.mrf.mxu0 }
 0x1ba   : > { %v1783_v12 = vmul.f32 %v4116_v59, %v1536_v23  ;;  %v1022_v27 = vpop.f32.mrf.mxu2  ;;  %v1539_v46 = vpop.f32.mrf.mxu1 }
 0x1bb   : > { %v1211_v31 = vpop.f32.mrf.mxu3  ;;  %v1023_v34 = vadd.f32 %v1022_v27, %v4118_v35  ;;  %v2169_v23 = vpop.permute.xlu2 %2168 }
 0x1bc   : > { %v1993_v18 = vadd.f32 %v4117_v0, %v1783_v12  ;;  %v1212_v58 = vadd.f32 %v1211_v31, %v1018_v41  ;;  %v4128_v0 = vld [vmem:[#allocation39_spill] sm:$0xff] }
 0x1be   : > { %vm2023_vm2 = vcmp.ge.f32.partialorder %v1993_v18, 0.0  ;;  %v2233_v13 = vmul.f32 %v2154_v5, %v1993_v18  ;;  %v1395_v50 = vadd.f32 %v1394_v29, %v1212_v58 }
 0x1c0   : > { %v2263_v6 = vsel %vm2023_vm2, %v1993_v18, %v2233_v13  ;;  %v1540_v62 = vadd.f32 %v1539_v46, %v1395_v50  ;;  %v4127_v46 = vld [vmem:[#allocation55_spill] sm:$0xff]  ;;  %v4129_v50 = vld [vmem:[#allocation73_spill] sm:$0xff] }
 0x1c1   : > { %2293 = vst [vmem:[%s3690_s16 + $0x88] sm:$0xff] %v2263_v6  ;;  %v1402_v20 = vpop.f32.mrf.mxu0 }
 0x1c2   : > { %v1784_v53 = vmul.f32 %v4119_v26, %v1540_v62  ;;  %v1027_v40 = vpop.f32.mrf.mxu2  ;;  %v1543_v11 = vpop.f32.mrf.mxu1 }
 0x1c3   : > { %v1217_v52 = vpop.f32.mrf.mxu3  ;;  %v1028_v25 = vadd.f32 %v1027_v40, %v4121_v38  ;;  %v2174_v62 = vpop.permute.xlu0 %2173 }
 0x1c4   : > { %v1994_v48 = vadd.f32 %v4120_v3, %v1784_v53  ;;  %v1218_v44 = vadd.f32 %v1217_v52, %v1023_v34  ;;  %v4131_v3 = vld [vmem:[#allocation38_spill] sm:$0xff] }
 0x1c6   : > { %vm2024_vm3 = vcmp.ge.f32.partialorder %v1994_v48, 0.0  ;;  %v2234_v10 = vmul.f32 %v2159_v1, %v1994_v48  ;;  %v1399_v30 = vadd.f32 %v1398_v16, %v1218_v44 }
 0x1c8   : > { %v2264_v42 = vsel %vm2024_vm3, %v1994_v48, %v2234_v10  ;;  %v1544_v33 = vadd.f32 %v1543_v11, %v1399_v30  ;;  %v4130_v11 = vld [vmem:[#allocation59_spill] sm:$0xff]  ;;  %v4132_v30 = vld [vmem:[#allocation77_spill] sm:$0xff] }
 0x1c9   : > { %2294 = vst [vmem:[%s3690_s16 + $0x90] sm:$0xff] %v2264_v42  ;;  %v1406_v45 = vpop.f32.mrf.mxu0 }
 0x1ca   : > { %v1785_v8 = vmul.f32 %v4122_v36, %v1544_v33  ;;  %v1032_v14 = vpop.f32.mrf.mxu2  ;;  %v1547_v60 = vpop.f32.mrf.mxu1 }
 0x1cb   : > { %v1223_v39 = vpop.f32.mrf.mxu3  ;;  %v1033_v4 = vadd.f32 %v1032_v14, %v4124_v28  ;;  %v2179_v33 = vpop.permute.xlu1 %2178 }
 0x1cc   : > { %v1995_v57 = vadd.f32 %v4123_v21, %v1785_v8  ;;  %v1224_v47 = vadd.f32 %v1223_v39, %v1028_v25  ;;  %v4134_v21 = vld [vmem:[#allocation40_spill] sm:$0xff] }
 0x1ce   : > { %vm2025_vm4 = vcmp.ge.f32.partialorder %v1995_v57, 0.0  ;;  %v2235_v15 = vmul.f32 %v2164_v19, %v1995_v57  ;;  %v1403_v63 = vadd.f32 %v1402_v20, %v1224_v47 }
 0x1d0   : > { %v2265_v2 = vsel %vm2025_vm4, %v1995_v57, %v2235_v15  ;;  %v1548_v49 = vadd.f32 %v1547_v60, %v1403_v63  ;;  %v4133_v60 = vld [vmem:[#allocation62_spill] sm:$0xff]  ;;  %v4135_v63 = vld [vmem:[#allocation81_spill] sm:$0xff] }
 0x1d1   : > { %2295 = vst [vmem:[%s3690_s16 + $0x98] sm:$0xff] %v2265_v2 }
 0x1d2   : > { %v1786_v54 = vmul.f32 %v4125_v56, %v1548_v49  ;;  %v1037_v51 = vpop.f32.mrf.mxu2  ;;  %v1551_v43 = vpop.f32.mrf.mxu1 }
 0x1d3   : > { %v1229_v37 = vpop.f32.mrf.mxu3  ;;  %v1410_v59 = vpop.f32.mrf.mxu0  ;;  %v1038_v31 = vadd.f32 %v1037_v51, %v4127_v46 }
 0x1d4   : > { %v1996_v29 = vadd.f32 %v4126_v17, %v1786_v54  ;;  %v1230_v24 = vadd.f32 %v1229_v37, %v1033_v4  ;;  %v2184_v49 = vpop.permute.xlu2 %2183  ;;  %v4137_v17 = vld [vmem:[#allocation43_spill] sm:$0xff] }
 0x1d6   : > { %vm2026_vm5 = vcmp.ge.f32.partialorder %v1996_v29, 0.0  ;;  %v2236_v7 = vmul.f32 %v2169_v23, %v1996_v29  ;;  %v1407_v41 = vadd.f32 %v1406_v45, %v1230_v24 }
 0x1d8   : > { %v2266_v12 = vsel %vm2026_vm5, %v1996_v29, %v2236_v7  ;;  %v1552_v27 = vadd.f32 %v1551_v43, %v1407_v41  ;;  %v4136_v43 = vld [vmem:[#allocation65_spill] sm:$0xff]  ;;  %v4138_v41 = vld [vmem:[#allocation78_spill] sm:$0xff] }
 0x1d9   : > { %2296 = vst [vmem:[%s3690_s16 + $0xa0] sm:$0xff] %v2266_v12 }
 0x1da   : > { %v1787_v18 = vmul.f32 %v4128_v0, %v1552_v27  ;;  %v1042_v58 = vpop.f32.mrf.mxu2  ;;  %v1555_v5 = vpop.f32.mrf.mxu1 }
 0x1db   : > { %v1235_v13 = vpop.f32.mrf.mxu3  ;;  %v1414_v26 = vpop.f32.mrf.mxu0  ;;  %v1043_v52 = vadd.f32 %v1042_v58, %v4130_v11 }
 0x1dc   : > { %v1997_v16 = vadd.f32 %v4129_v50, %v1787_v18  ;;  %v1236_v6 = vadd.f32 %v1235_v13, %v1038_v31  ;;  %v2189_v27 = vpop.permute.xlu0 %2188  ;;  %v4140_v50 = vld [vmem:[#allocation42_spill] sm:$0xff] }
 0x1de   : > { %vm2027_vm6 = vcmp.ge.f32.partialorder %v1997_v16, 0.0  ;;  %v2237_v35 = vmul.f32 %v2174_v62, %v1997_v16  ;;  %v1411_v34 = vadd.f32 %v1410_v59, %v1236_v6 }
 0x1e0   : > { %v2267_v53 = vsel %vm2027_vm6, %v1997_v16, %v2237_v35  ;;  %v1556_v40 = vadd.f32 %v1555_v5, %v1411_v34  ;;  %v4139_v5 = vld [vmem:[#allocation68_spill] sm:$0xff] }
 0x1e1   : > { %2297 = vst [vmem:[%s3690_s16 + $0xa8] sm:$0xff] %v2267_v53  ;;  %v2194_v53 = vpop.permute.xlu1 %2193 }
 0x1e2   : > { %v1788_v48 = vmul.f32 %v4131_v3, %v1556_v40  ;;  %v1047_v44 = vpop.f32.mrf.mxu2  ;;  %v1559_v1 = vpop.f32.mrf.mxu1 }
 0x1e3   : > { %v1241_v10 = vpop.f32.mrf.mxu3  ;;  %v1418_v36 = vpop.f32.mrf.mxu0  ;;  %v1048_v39 = vadd.f32 %v1047_v44, %v4133_v60  ;;  %v4141_v44 = vld [vmem:[#allocation71_spill] sm:$0xff] }
 0x1e4   : > { %v1998_v20 = vadd.f32 %v4132_v30, %v1788_v48  ;;  %v1242_v42 = vadd.f32 %v1241_v10, %v1043_v52  ;;  %v4142_v10 = vld [vmem:[#allocation45_spill] sm:$0xff] }
 0x1e6   : > { %vm2028_vm7 = vcmp.ge.f32.partialorder %v1998_v20, 0.0  ;;  %v2238_v38 = vmul.f32 %v2179_v33, %v1998_v20  ;;  %v1415_v25 = vadd.f32 %v1414_v26, %v1242_v42 }
 0x1e8   : > { %v2268_v8 = vsel %vm2028_vm7, %v1998_v20, %v2238_v38  ;;  %v1560_v14 = vadd.f32 %v1559_v1, %v1415_v25 }
 0x1e9   : > { %2298 = vst [vmem:[%s3690_s16 + $0xb0] sm:$0xff] %v2268_v8 }
 0x1ea   : > { %v1789_v57 = vmul.f32 %v4134_v21, %v1560_v14  ;;  %v1052_v47 = vpop.f32.mrf.mxu2  ;;  %v1563_v19 = vpop.f32.mrf.mxu1  ;;  %v4143_v21 = vld [vmem:[#allocation74_spill] sm:$0xff] }
 0x1eb   : > { %v1247_v15 = vpop.f32.mrf.mxu3  ;;  %v1422_v56 = vpop.f32.mrf.mxu0  ;;  %v1053_v37 = vadd.f32 %v1052_v47, %v4136_v43  ;;  %v4144_v47 = vld [vmem:[#allocation47_spill] sm:$0xff] }
 0x1ec   : > { %v1999_v45 = vadd.f32 %v4135_v63, %v1789_v57  ;;  %v1248_v2 = vadd.f32 %v1247_v15, %v1048_v39 }
 0x1ee   : > { %vm2029_vm8 = vcmp.ge.f32.partialorder %v1999_v45, 0.0  ;;  %v2239_v28 = vmul.f32 %v2184_v49, %v1999_v45  ;;  %v1419_v4 = vadd.f32 %v1418_v36, %v1248_v2  ;;  %v2204_v2 = vpop.permute.xlu0 %2203 }
 0x1f0   : > { %v2269_v54 = vsel %vm2029_vm8, %v1999_v45, %v2239_v28  ;;  %v1564_v51 = vadd.f32 %v1563_v19, %v1419_v4 }
 0x1f1   : > { %2299 = vst [vmem:[%s3690_s16 + $0xb8] sm:$0xff] %v2269_v54 }
 0x1f2   : > { %v1790_v29 = vmul.f32 %v4137_v17, %v1564_v51  ;;  %v1057_v24 = vpop.f32.mrf.mxu2  ;;  %v1567_v23 = vpop.f32.mrf.mxu1  ;;  %v4145_v51 = vld [vmem:[#allocation80_spill] sm:$0xff] }
 0x1f3   : > { %v1253_v7 = vpop.f32.mrf.mxu3  ;;  %v1426_v0 = vpop.f32.mrf.mxu0  ;;  %v1058_v13 = vadd.f32 %v1057_v24, %v4139_v5 }
 0x1f4   : > { %v2000_v59 = vadd.f32 %v4138_v41, %v1790_v29  ;;  %v1254_v12 = vadd.f32 %v1253_v7, %v1053_v37  ;;  %v4146_v37 = vld [vmem:[#allocation46_spill] sm:$0xff]  ;;  %v2209_v7 = vpop.permute.xlu1 %2208 }
 0x1f6   : > { %vm2030_vm9 = vcmp.ge.f32.partialorder %v2000_v59, 0.0  ;;  %v2240_v46 = vmul.f32 %v2189_v27, %v2000_v59  ;;  %v1423_v31 = vadd.f32 %v1422_v56, %v1254_v12 }
 0x1f8   : > { %v2270_v18 = vsel %vm2030_vm9, %v2000_v59, %v2240_v46  ;;  %v1568_v58 = vadd.f32 %v1567_v23, %v1423_v31  ;;  %v4147_v31 = vld [vmem:[#allocation49_spill] sm:$0xff] }
 0x1f9   : > { %2300 = vst [vmem:[%s3866_s20] sm:$0xff] %v2270_v18 }
 0x1fa   : > { %v1791_v16 = vmul.f32 %v4140_v50, %v1568_v58  ;;  %v1571_v6 = vpop.f32.mrf.mxu1  ;;  %v1062_v62 = vpop.f32.mrf.mxu2 }
 0x1fb   : > { %v1259_v35 = vpop.f32.mrf.mxu3  ;;  %v1430_v52 = vpop.f32.mrf.mxu0  ;;  %v1063_v1 = vadd.f32 %v1062_v62, %v4141_v44 }
 0x1fc   : > { %v2001_v34 = vadd.f32 %v3667_v9, %v1791_v16  ;;  %v1260_v26 = vadd.f32 %v1259_v35, %v1058_v13  ;;  %v2199_v9 = vpop.permute.xlu2 %2198 }
 0x1fe   : > { %vm2031_vm10 = vcmp.ge.f32.partialorder %v2001_v34, 0.0  ;;  %v2241_v40 = vmul.f32 %v2194_v53, %v2001_v34  ;;  %v1427_v11 = vadd.f32 %v1426_v0, %v1260_v26 }
 0x200   : > { %v2271_v3 = vsel %vm2031_vm10, %v2001_v34, %v2241_v40  ;;  %v1572_v48 = vadd.f32 %v1571_v6, %v1427_v11 }
 0x201   : > { %2301 = vst [vmem:[%s3866_s20 + $0x8] sm:$0xff] %v2271_v3 }
 0x202   : > { %v1792_v30 = vmul.f32 %v4142_v10, %v1572_v48  ;;  %v1575_v20 = vpop.f32.mrf.mxu1  ;;  %v1067_v25 = vpop.f32.mrf.mxu2 }
 0x203   : > { %v1265_v42 = vpop.f32.mrf.mxu3  ;;  %v1434_v39 = vpop.f32.mrf.mxu0  ;;  %v1068_v57 = vadd.f32 %v1067_v25, %v4143_v21 }
 0x204   : > { %v2002_v33 = vadd.f32 %v3678_v61, %v1792_v30  ;;  %v1266_v38 = vadd.f32 %v1265_v42, %v1063_v1  ;;  %v2214_v58 = vpop.permute.xlu2 %2213 }
 0x206   : > { %vm2032_vm11 = vcmp.ge.f32.partialorder %v2002_v33, 0.0  ;;  %v2242_v36 = vmul.f32 %v2199_v9, %v2002_v33  ;;  %v1431_v8 = vadd.f32 %v1430_v52, %v1266_v38 }
 0x208   : > { %v2272_v14 = vsel %vm2032_vm11, %v2002_v33, %v2242_v36  ;;  %v1576_v60 = vadd.f32 %v1575_v20, %v1431_v8 }
 0x209   : > { %2302 = vst [vmem:[%s3866_s20 + $0x10] sm:$0xff] %v2272_v14 }
 0x20a   : > { %v1793_v19 = vmul.f32 %v4144_v47, %v1576_v60  ;;  %v1579_v63 = vpop.f32.mrf.mxu1  ;;  %v1072_v4 = vpop.f32.mrf.mxu2 }
 0x20b   : > { %v1271_v15 = vpop.f32.mrf.mxu3  ;;  %v1073_v43 = vadd.f32 %v1072_v4, %v4145_v51  ;;  %v1438_v24 = vpop.f32.mrf.mxu0 }
 0x20c   : > { %v2003_v45 = vadd.f32 %v3670_v32, %v1793_v19  ;;  %v1272_v61 = vadd.f32 %v1271_v15, %v1068_v57 }
 0x20e   : > { %vm2033_vm12 = vcmp.ge.f32.partialorder %v2003_v45, 0.0  ;;  %v2243_v49 = vmul.f32 %v2204_v2, %v2003_v45  ;;  %v1435_v28 = vadd.f32 %v1434_v39, %v1272_v61 }
 0x210   : > { %v2273_v56 = vsel %vm2033_vm12, %v2003_v45, %v2243_v49  ;;  %v1580_v54 = vadd.f32 %v1579_v63, %v1435_v28 }
 0x211   : > { %2303 = vst [vmem:[%s3866_s20 + $0x18] sm:$0xff] %v2273_v56 }
 0x212   : > { %v1794_v17 = vmul.f32 %v4146_v37, %v1580_v54  ;;  %v1583_v41 = vpop.f32.mrf.mxu1 }
 0x213   : > { %v1277_v29 = vpop.f32.mrf.mxu3 }
 0x214   : > { %v2004_v23 = vadd.f32 %v3683_v22, %v1794_v17  ;;  %v1278_v32 = vadd.f32 %v1277_v29, %v1073_v43 }
 0x216   : > { %vm2034_vm13 = vcmp.ge.f32.partialorder %v2004_v23, 0.0  ;;  %v2244_v59 = vmul.f32 %v2209_v7, %v2004_v23  ;;  %v1439_v12 = vadd.f32 %v1438_v24, %v1278_v32 }
 0x218   : > { %v2274_v27 = vsel %vm2034_vm13, %v2004_v23, %v2244_v59  ;;  %v1584_v46 = vadd.f32 %v1583_v41, %v1439_v12 }
 0x219   : > { %2304 = vst [vmem:[%s3866_s20 + $0x20] sm:$0xff] %v2274_v27 }
 0x21a   : > { %v1795_v0 = vmul.f32 %v4147_v31, %v1584_v46 }
 0x21c   : > { %v2005_v18 = vadd.f32 %v3700_v55, %v1795_v0 }
 0x21e   : > { %vm2035_vm14 = vcmp.ge.f32.partialorder %v2005_v18, 0.0  ;;  %v2245_v5 = vmul.f32 %v2214_v58, %v2005_v18 }
 0x220   : > { %v2275_v13 = vsel %vm2035_vm14, %v2005_v18, %v2245_v5 }
 0x221   : > { %2305 = vst [vmem:[%s3866_s20 + $0x28] sm:$0xff] %v2275_v13 }
 0x222 PF: > { %s18_s23 = sadd.s32 1, %s2578_s23   ;;  %s4148_s21 = smov %s2574_s22 }
 0x223   : > { %p15_p8 = scmp.ge.s32.totalorder %s18_s23, 4   ;;  %s4149_s22 = smov %s4151_s25 }
 0x225   :  { %17 = sbr.rel (!%p15_p8) target bundleno = 2 (0x2), region = 87 }
 0x22a   :  { %2355 = vsyncpa [#allocation3], 1 }
 0x22b   :  { %2357 = vsyncpa [#allocation3 + $0x1], 1 }

// kernel: scalewise_graphconv.4
= control target key start
LH: loop header
LB: loop body
LE: loop exit
PB: predicated region body
PF: predicated region fallthrough
CT: control target
= control target key end

     0   :  { %s2736_s15 = smov 0   ;;  %s2738_s16 = smov 0   ;;  %s4013_s0 = inlined_call_operand.vmem [shape: f32[2,24,256], index: 0, kind: input, shape index: {}]   ;;  %s4014_s1 = inlined_call_operand.vmem [shape: f32[192,24], index: 1, kind: input, shape index: {}]   ;;  %s4015_s2 = inlined_call_operand.vmem [shape: f32[192,1], index: 2, kind: input, shape index: {}]   ;;  %s4016_s3 = inlined_call_operand.vmem [shape: f32[192,1], index: 3, kind: input, shape index: {}]   ;;  %s4017_s4 = inlined_call_operand.vmem [shape: f32[2,192,256], index: 4, kind: output, shape index: {}]  }
   0x1   :  { %s2740_s17 = smov 0  }
   0x2 LB: > { %s26_s18 = sadd.s32 1, %s2704_s16  ;;  %p2639_p0 = scmp.ge.s32.totalorder %s2708_s17, 1  ;;  %s2708_s17 = sphi %s2740_s17, %s14_s17   ;;  %s2704_s16 = sphi %s2738_s16, %s4336_s16   ;;  %s2700_s15 = sphi %s2736_s15, %s4335_s15  }
   0x3   : > { %p28_p1 = scmp.ge.s32.totalorder %s26_s18, 2  ;;  %p183_p2 = scmp.lt.s32.totalorder %s2708_s17, 3 }
   0x5   : > { %s4338_s18 = smov (%p28_p1, %s26_s18), 0  ;;  %p184_p3 = pnand %p2639_p0, %p183_p2 }
   0x7   : > { %187 = sbr.rel (%p184_p3) target bundleno = 746 (0x2ea), region = 36 }
   0xc   : > { %p218_p4 = scmp.lt.s32.totalorder %s2700_s15, 1  ;;  %v249_v0 = vld [vmem:[%s4014_s1] sm:$0xff]  ;;  %vm273_vm0 = vcmask 195584   ;;  %v250_v3 = vld [vmem:[%s4014_s1 + $0x8] sm:$0xff]  ;;  %v251_v12 = vld [vmem:[%s4014_s1 + $0x10] sm:$0xff] }
   0xd   : > { %v275_v1 = vsel %vm273_vm0, %v249_v0, 0  ;;  %v278_v8 = vsel %vm273_vm0, %v250_v3, 0  ;;  %v281_v16 = vsel %vm273_vm0, %v251_v12, 0  ;;  %v252_v33 = vld [vmem:[%s4014_s1 + $0x18] sm:$0xff]  ;;  %v253_v50 = vld [vmem:[%s4014_s1 + $0x20] sm:$0xff]  ;;  %v254_v57 = vld [vmem:[%s4014_s1 + $0x28] sm:$0xff] }
   0xe   : > { %s4340_s15 = smov (!%p218_p4, %s2700_s15), 1  ;;  %v2760_v2 = vand.u32 4294901760, %v275_v1  ;;  %v2782_v11 = vand.u32 4294901760, %v278_v8  ;;  %v2793_v24 = vand.u32 4294901760, %v281_v16  ;;  %v284_v42 = vsel %vm273_vm0, %v252_v33, 0  ;;  %v255_v0 = vld [vmem:[%s4014_s1 + $0x30] sm:$0xff] }
   0xf   : > { %s2644_s21 = smul.u32 48, %s4340_s15  ;;  %v2827_v49 = vand.u32 4294901760, %v284_v42  ;;  %v287_v53 = vsel %vm273_vm0, %v253_v50, 0  ;;  %v290_v60 = vsel %vm273_vm0, %v254_v57, 0  ;;  %v259_v50 = vld [vmem:[%s4014_s1 + $0x50] sm:$0xff] }
  0x10   : > { %v2772_v4 = vsub.f32 %v275_v1, %v2760_v2  ;;  %v2790_v15 = vsub.f32 %v278_v8, %v2782_v11  ;;  %v2813_v39 = vsub.f32 %v281_v16, %v2793_v24  ;;  %v2848_v56 = vand.u32 4294901760, %v287_v53 }
  0x11   : > { %s2769_s26 = scalar_lea.vmem %s4013_s0, %s2644_s21  ;;  %v2838_v52 = vsub.f32 %v284_v42, %v2827_v49  ;;  %v2869_v63 = vand.u32 4294901760, %v290_v60  ;;  %v305_v57 = vsel %vm273_vm0, %v259_v50, 0  ;;  %s2645_s21 = smul.u32 384, %s4340_s15 }
  0x12   : > { %4123 = vst [vmem:[#allocation2_spill] sm:$0xff] %v2772_v4  ;;  %v241_v5 = vld [vmem:[%s2769_s26 + $0x20] sm:$0xff]  ;;  %v239_v6 = vld [vmem:[%s2769_s26 + $0x10] sm:$0xff]  ;;  %v242_v9 = vld [vmem:[%s2769_s26 + $0x28] sm:$0xff]  ;;  %v2780_v10 = vand.u32 4294901760, %v2772_v4  ;;  %v2800_v28 = vand.u32 4294901760, %v2790_v15  ;;  %v2859_v59 = vsub.f32 %v287_v53, %v2848_v56 }
  0x13   : > { %v237_v7 = vld [vmem:[%s2769_s26] sm:$0xff]  ;;  %2674 = vtanh.f32 %v241_v5  ;;  %4125 = vst [vmem:[#allocation4_spill] sm:$0xff] %v2790_v15  ;;  %v2825_v48 = vand.u32 4294901760, %v2813_v39  ;;  %v2846_v55 = vand.u32 4294901760, %v2838_v52  ;;  %v2879_v3 = vsub.f32 %v290_v60, %v2869_v63  ;;  %v240_v16 = vld [vmem:[%s2769_s26 + $0x18] sm:$0xff]  ;;  %s3577_s25 = scalar_lea.vmem %s4017_s4, %s2645_s21 }
  0x14   : > { %2676 = vtanh.f32 %v239_v6  ;;  %4124 = vst [vmem:[#allocation3_spill] sm:$0xff] %v2780_v10  ;;  %v368_v14 = vsub.f32 %v2772_v4, %v2780_v10  ;;  %v376_v38 = vsub.f32 %v2790_v15, %v2800_v28  ;;  %v2867_v62 = vand.u32 4294901760, %v2859_v59 }
  0x15   : > { %2678 = vtanh.f32 %v237_v7  ;;  %4126 = vst [vmem:[#allocation5_spill] sm:$0xff] %v2800_v28  ;;  %v384_v51 = vsub.f32 %v2813_v39, %v2825_v48  ;;  %v392_v58 = vsub.f32 %v2838_v52, %v2846_v55  ;;  %v293_v5 = vsel %vm273_vm0, %v255_v0, 0 }
  0x16   : > { %2680 = vtanh.f32 %v242_v9  ;;  %v2795_v25 = vand.u32 4294901760, %v368_v14  ;;  %4127 = vst [vmem:[#allocation6_spill] sm:$0xff] %v2813_v39  ;;  %v2822_v47 = vand.u32 4294901760, %v376_v38  ;;  %v400_v1 = vsub.f32 %v2859_v59, %v2867_v62  ;;  %v256_v9 = vld [vmem:[%s4014_s1 + $0x38] sm:$0xff] }
  0x17   : > { %4128 = vst [vmem:[#allocation7_spill] sm:$0xff] %v2825_v48  ;;  %v2843_v54 = vand.u32 4294901760, %v384_v51  ;;  %v2864_v61 = vand.u32 4294901760, %v392_v58  ;;  %v2887_v7 = vand.u32 4294901760, %v2879_v3  ;;  %v2889_v8 = vand.u32 4294901760, %v293_v5 }
  0x18   : > { %4129 = vst [vmem:[#allocation8_spill] sm:$0xff] %v2838_v52  ;;  %v2884_v6 = vand.u32 4294901760, %v400_v1  ;;  %v296_v14 = vsel %vm273_vm0, %v256_v9, 0  ;;  %2682 = vtanh.f32 %v240_v16  ;;  %v2982_v0 = vand.u32 4294901760, %v305_v57  ;;  %v260_v1 = vld [vmem:[%s4014_s1 + $0x58] sm:$0xff] }
  0x19   : > { %v2675_v13 = vpop.eup %2674  ;;  %4130 = vst [vmem:[#allocation9_spill] sm:$0xff] %v2846_v55  ;;  %v408_v12 = vsub.f32 %v2879_v3, %v2887_v7 }
  0x1a   : > { %v2677_v17 = vpop.eup %2676  ;;  %v359_v18 = vand.u32 4294901760, %v2675_v13  ;;  %4131 = vst [vmem:[#allocation10_spill] sm:$0xff] %v2859_v59  ;;  %v2992_v9 = vsub.f32 %v305_v57, %v2982_v0 }
  0x1b   : > { %v2679_v19 = vpop.eup %2678  ;;  %v361_v20 = vand.u32 4294901760, %v2677_v17  ;;  %4132 = vst [vmem:[#allocation11_spill] sm:$0xff] %v2867_v62 }
  0x1c   : > { %v2681_v21 = vpop.eup %2680  ;;  %360 = vmatpush.msra.mxu0 %v359_v18  ;;  %v363_v22 = vand.u32 4294901760, %v2679_v19  ;;  %v572_v23 = vsub.f32 %v2675_v13, %v359_v18  ;;  %843 = vmatpush.msra.mxu3 %v359_v18  ;;  %4133 = vst [vmem:[#allocation12_spill] sm:$0xff] %v2879_v3  ;;  %v2899_v13 = vsub.f32 %v293_v5, %v2889_v8  ;;  %v3000_v16 = vand.u32 4294901760, %v2992_v9 }
  0x1d   : > { %v578_v26 = vsub.f32 %v2677_v17, %v361_v20  ;;  %v2797_v27 = vand.u32 4294901760, %v2681_v21  ;;  %4134 = vst [vmem:[#allocation13_spill] sm:$0xff] %v2887_v7  ;;  %v2905_v17 = vand.u32 4294901760, %v408_v12  ;;  %v308_v12 = vsel %vm273_vm0, %v260_v1, 0 }
  0x1e   : > { %362 = vmatpush.msra.mxu0 %v361_v20  ;;  %701 = vmatpush.msra.mxu2 %v572_v23  ;;  %v573_v29 = vand.u32 4294901760, %v572_v23  ;;  %v584_v30 = vsub.f32 %v2679_v19, %v363_v22  ;;  %4135 = vst [vmem:[#allocation14_spill] sm:$0xff] %v2889_v8  ;;  %v2910_v19 = vand.u32 4294901760, %v296_v14 }
  0x1f   : > { %845 = vmatpush.msra.mxu3 %v361_v20  ;;  %v579_v31 = vand.u32 4294901760, %v578_v26  ;;  %v2803_v32 = vsub.f32 %v2681_v21, %v2797_v27  ;;  %4136 = vst [vmem:[#allocation15_spill] sm:$0xff] %v2899_v13 }
  0x20   : > { %364 = vmatpush.msra.mxu0 %v363_v22  ;;  %704 = vmatpush.msra.mxu2 %v578_v26  ;;  %v574_v34 = vsub.f32 %v572_v23, %v573_v29  ;;  %v585_v35 = vand.u32 4294901760, %v584_v30  ;;  %4138 = vst [vmem:[#allocation17_spill] sm:$0xff] %v2910_v19  ;;  %v2683_v23 = vpop.eup %2682 }
  0x21   : > { %370 = vmatmul.f32.vlgmr.msra.gmra.mxu0 %v2795_v25  ;;  %847 = vmatpush.msra.mxu3 %v363_v22  ;;  %v580_v36 = vsub.f32 %v578_v26, %v579_v31  ;;  %v4019_v37 = vand.u32 4294901760, %v2803_v32  ;;  %4147 = vst [vmem:[#allocation26_spill] sm:$0xff] %v2982_v0 }
  0x22   : > { %v575_v40 = vand.u32 4294901760, %v574_v34  ;;  %707 = vmatpush.msra.mxu2 %v584_v30  ;;  %851 = vmatmul.f32.vlgmr.msra.gmra.mxu3 %v2780_v10  ;;  %v586_v41 = vsub.f32 %v584_v30, %v585_v35  ;;  %4148 = vst [vmem:[#allocation27_spill] sm:$0xff] %v2992_v9 }
  0x23   : > { %710 = vmatmul.f32.vlgmr.msra.gmra.mxu2 %v2772_v4  ;;  %v581_v43 = vand.u32 4294901760, %v580_v36  ;;  %1009 = vmatpush.msrb.mxu0 %v573_v29  ;;  %v1459_v44 = vsub.f32 %v2803_v32, %v4019_v37  ;;  %v2925_v29 = vand.u32 4294901760, %v2683_v23  ;;  %v258_v36 = vld [vmem:[%s4014_s1 + $0x48] sm:$0xff]  ;;  %4149 = vst [vmem:[#allocation28_spill] sm:$0xff] %v3000_v16 }
  0x24   : > { %576 = vmatpush.msra.mxu1 %v575_v40  ;;  %1245 = vmatpush.msrb.mxu2 %v2797_v27  ;;  %v587_v45 = vand.u32 4294901760, %v586_v41  ;;  %v302_v42 = vsel %vm273_vm0, %v258_v36, 0 }
  0x25   : > { %v1460_v46 = vand.u32 4294901760, %v1459_v44  ;;  %1013 = vmatpush.msrb.mxu0 %v579_v31  ;;  %v2936_v34 = vsub.f32 %v2683_v23, %v2925_v29  ;;  %v448_v23 = vsub.f32 %v2992_v9, %v3000_v16 }
  0x26   : > { %582 = vmatpush.msra.mxu1 %v581_v43  ;;  %1247 = vmatpush.msrb.mxu2 %v2925_v29 }
  0x27   : > { %1461 = vmatpush.msrb.mxu3 %v1460_v46  ;;  %1017 = vmatpush.msrb.mxu0 %v585_v35  ;;  %v4018_v35 = vand.u32 4294901760, %v2936_v34  ;;  %v2962_v46 = vand.u32 4294901760, %v302_v42 }
  0x28   : > { %588 = vmatpush.msra.mxu1 %v587_v45 }
  0x29   : > { %1586 = vmatpush.msra.mxu0 %v2803_v32  ;;  %590 = vmatmul.f32.vlgmr.msra.gmra.mxu1 %v2760_v2  ;;  %v1465_v41 = vsub.f32 %v2936_v34, %v4018_v35  ;;  %4144 = vst [vmem:[#allocation23_spill] sm:$0xff] %v2962_v46  ;;  %v2972_v53 = vsub.f32 %v302_v42, %v2962_v46 }
  0x2a   : > { %378 = vmatmul.f32.gmra.mxu0 %v2822_v47  ;;  %1129 = vmatpush.msrb.mxu1 %v359_v18  ;;  %v2908_v18 = vand.u32 4294901760, %v2899_v13 }
  0x2b   : > { %857 = vmatmul.f32.gmra.mxu3 %v2800_v28  ;;  %715 = vmatmul.f32.gmra.mxu2 %v2790_v15  ;;  %v1466_v43 = vand.u32 4294901760, %v1465_v41  ;;  %4145 = vst [vmem:[#allocation24_spill] sm:$0xff] %v2972_v53  ;;  %v2980_v60 = vand.u32 4294901760, %v2972_v53 }
  0x2c   : > { %1131 = vmatpush.msrb.mxu1 %v361_v20  ;;  %4137 = vst [vmem:[#allocation16_spill] sm:$0xff] %v2908_v18  ;;  %v257_v20 = vld [vmem:[%s4014_s1 + $0x40] sm:$0xff]  ;;  %v416_v21 = vsub.f32 %v2899_v13, %v2908_v18  ;;  %1589 = vmatpush.msra.mxu0 %v2936_v34 }
  0x2d   : > { %v299_v26 = vsel %vm273_vm0, %v257_v20, 0  ;;  %1467 = vmatpush.msrb.mxu3 %v1466_v43  ;;  %4146 = vst [vmem:[#allocation25_spill] sm:$0xff] %v2980_v60  ;;  %v440_v5 = vsub.f32 %v2972_v53, %v2980_v60  ;;  %v3002_v20 = vand.u32 4294901760, %v308_v12  ;;  %v262_v43 = vld [vmem:[%s4014_s1 + $0x68] sm:$0xff] }
  0x2e   : > { %1133 = vmatpush.msrb.mxu1 %v363_v22  ;;  %v2920_v22 = vsub.f32 %v296_v14, %v2910_v19  ;;  %v2927_v30 = vand.u32 4294901760, %v416_v21  ;;  %v2932_v33 = vand.u32 4294901760, %v299_v26  ;;  %v261_v21 = vld [vmem:[%s4014_s1 + $0x60] sm:$0xff]  ;;  %v314_v57 = vsel %vm273_vm0, %v262_v43, 0 }
  0x2f   : > { %v2997_v14 = vand.u32 4294901760, %v440_v5  ;;  %4150 = vst [vmem:[#allocation29_spill] sm:$0xff] %v3002_v20  ;;  %v311_v36 = vsel %vm273_vm0, %v261_v21, 0  ;;  %v263_v21 = vld [vmem:[%s4014_s1 + $0x70] sm:$0xff] }
  0x30   : > { %1728 = vmatpush.msra.mxu1 %v2797_v27  ;;  %4139 = vst [vmem:[#allocation18_spill] sm:$0xff] %v2920_v22  ;;  %v2930_v31 = vand.u32 4294901760, %v2920_v22  ;;  %v2949_v40 = vsub.f32 %v299_v26, %v2932_v33  ;;  %v3012_v26 = vsub.f32 %v308_v12, %v3002_v20  ;;  %v3022_v42 = vand.u32 4294901760, %v311_v36 }
  0x31   : > { %594 = vmatmul.f32.gmra.mxu1 %v2782_v11  ;;  %4141 = vst [vmem:[#allocation20_spill] sm:$0xff] %v2932_v33  ;;  %v3042_v12 = vand.u32 4294901760, %v314_v57  ;;  %v317_v43 = vsel %vm273_vm0, %v263_v21, 0 }
  0x32   : > { %386 = vmatmul.f32.gmra.mxu0 %v2843_v54  ;;  %4140 = vst [vmem:[#allocation19_spill] sm:$0xff] %v2930_v31  ;;  %1730 = vmatpush.msra.mxu1 %v2925_v29  ;;  %v424_v38 = vsub.f32 %v2920_v22, %v2930_v31  ;;  %v2960_v45 = vand.u32 4294901760, %v2949_v40  ;;  %v3020_v41 = vand.u32 4294901760, %v3012_v26  ;;  %v3062_v37 = vand.u32 4294901760, %v317_v43 }
  0x33   : > { %863 = vmatmul.f32.gmra.mxu3 %v2825_v48  ;;  %720 = vmatmul.f32.gmra.mxu2 %v2813_v39  ;;  %4142 = vst [vmem:[#allocation21_spill] sm:$0xff] %v2949_v40 }
  0x34   : > { %v2957_v44 = vand.u32 4294901760, %v424_v38  ;;  %4143 = vst [vmem:[#allocation22_spill] sm:$0xff] %v2960_v45  ;;  %v432_v51 = vsub.f32 %v2949_v40, %v2960_v45  ;;  %v3017_v38 = vand.u32 4294901760, %v448_v23  ;;  %v456_v50 = vsub.f32 %v3012_v26, %v3020_v41 }
  0x35   : > { %4151 = vst [vmem:[#allocation30_spill] sm:$0xff] %v3012_v26  ;;  %v3072_v21 = vsub.f32 %v317_v43, %v3062_v37  ;;  %v265_v43 = vld [vmem:[%s4014_s1 + $0x80] sm:$0xff] }
  0x36   : > { %v2977_v58 = vand.u32 4294901760, %v432_v51  ;;  %4152 = vst [vmem:[#allocation31_spill] sm:$0xff] %v3020_v41  ;;  %v3032_v51 = vsub.f32 %v311_v36, %v3022_v42  ;;  %v3037_v1 = vand.u32 4294901760, %v456_v50  ;;  %v3052_v36 = vsub.f32 %v314_v57, %v3042_v12 }
  0x37   : > { %4155 = vst [vmem:[#allocation34_spill] sm:$0xff] %v3042_v12 }
  0x38   : > { %4153 = vst [vmem:[#allocation32_spill] sm:$0xff] %v3032_v51  ;;  %v3040_v5 = vand.u32 4294901760, %v3032_v51  ;;  %v3060_v35 = vand.u32 4294901760, %v3052_v36 }
  0x39   : > { %598 = vmatmul.f32.gmra.mxu1 %v2793_v24  ;;  %4156 = vst [vmem:[#allocation35_spill] sm:$0xff] %v3052_v36 }
  0x3a   : > { %394 = vmatmul.f32.gmra.mxu0 %v2864_v61  ;;  %4154 = vst [vmem:[#allocation33_spill] sm:$0xff] %v3040_v5  ;;  %v464_v23 = vsub.f32 %v3032_v51, %v3040_v5  ;;  %v472_v57 = vsub.f32 %v3052_v36, %v3060_v35 }
  0x3b   : > { %869 = vmatmul.f32.gmra.mxu3 %v2846_v55  ;;  %725 = vmatmul.f32.gmra.mxu2 %v2838_v52  ;;  %4157 = vst [vmem:[#allocation36_spill] sm:$0xff] %v3060_v35 }
  0x3c   : > { %v3057_v50 = vand.u32 4294901760, %v464_v23  ;;  %4158 = vst [vmem:[#allocation37_spill] sm:$0xff] %v3062_v37 }
  0x3d   : > { %4159 = vst [vmem:[#allocation38_spill] sm:$0xff] %v3072_v21 }
  0x41   : > { %602 = vmatmul.f32.gmra.mxu1 %v2827_v49 }
  0x42   : > { %402 = vmatmul.f32.gmra.mxu0 %v2884_v6 }
  0x43   : > { %875 = vmatmul.f32.gmra.mxu3 %v2867_v62  ;;  %730 = vmatmul.f32.gmra.mxu2 %v2859_v59 }
  0x49   : > { %606 = vmatmul.f32.gmra.mxu1 %v2848_v56 }
  0x4a   : > { %410 = vmatmul.f32.gmra.mxu0 %v2905_v17 }
  0x4b   : > { %881 = vmatmul.f32.gmra.mxu3 %v2887_v7  ;;  %735 = vmatmul.f32.gmra.mxu2 %v2879_v3 }
  0x51   : > { %610 = vmatmul.f32.gmra.mxu1 %v2869_v63 }
  0x52   : > { %418 = vmatmul.f32.gmra.mxu0 %v2927_v30 }
  0x53   : > { %887 = vmatmul.f32.gmra.mxu3 %v2908_v18  ;;  %740 = vmatmul.f32.gmra.mxu2 %v2899_v13 }
  0x59   : > { %614 = vmatmul.f32.gmra.mxu1 %v2889_v8 }
  0x5a   : > { %426 = vmatmul.f32.gmra.mxu0 %v2957_v44 }
  0x5b   : > { %893 = vmatmul.f32.gmra.mxu3 %v2930_v31  ;;  %745 = vmatmul.f32.gmra.mxu2 %v2920_v22 }
  0x61   : > { %618 = vmatmul.f32.gmra.mxu1 %v2910_v19 }
  0x62   : > { %434 = vmatmul.f32.gmra.mxu0 %v2977_v58 }
  0x63   : > { %899 = vmatmul.f32.gmra.mxu3 %v2960_v45  ;;  %750 = vmatmul.f32.gmra.mxu2 %v2949_v40 }
  0x69   : > { %622 = vmatmul.f32.gmra.mxu1 %v2932_v33 }
  0x6a   : > { %442 = vmatmul.f32.gmra.mxu0 %v2997_v14 }
  0x6b   : > { %905 = vmatmul.f32.gmra.mxu3 %v2980_v60  ;;  %755 = vmatmul.f32.gmra.mxu2 %v2972_v53  ;;  %v3081_v60 = vand.u32 4294901760, %v3072_v21 }
  0x6d   : > { %4160 = vst [vmem:[#allocation39_spill] sm:$0xff] %v3081_v60 }
  0x71   : > { %626 = vmatmul.f32.gmra.mxu1 %v2962_v46 }
  0x72   : > { %450 = vmatmul.f32.gmra.mxu0 %v3017_v38 }
  0x73   : > { %911 = vmatmul.f32.gmra.mxu3 %v3000_v16  ;;  %760 = vmatmul.f32.gmra.mxu2 %v2992_v9  ;;  %v264_v16 = vld [vmem:[%s4014_s1 + $0x78] sm:$0xff] }
  0x74   : > { %v320_v23 = vsel %vm273_vm0, %v264_v16, 0  ;;  %v480_v16 = vsub.f32 %v3072_v21, %v3081_v60 }
  0x75   : > { %v3083_v9 = vand.u32 4294901760, %v320_v23 }
  0x76   : > { %v3098_v45 = vand.u32 4294901760, %v480_v16  ;;  %v4165_v16 = vand.u32 4294901760, %v2936_v34 }
  0x77   : > { %4161 = vst [vmem:[#allocation40_spill] sm:$0xff] %v3083_v9 }
  0x79   : > { %630 = vmatmul.f32.gmra.mxu1 %v2982_v0 }
  0x7a   : > { %458 = vmatmul.f32.gmra.mxu0 %v3037_v1 }
  0x7b   : > { %917 = vmatmul.f32.gmra.mxu3 %v3020_v41  ;;  %765 = vmatmul.f32.gmra.mxu2 %v3012_v26  ;;  %v238_v41 = vld [vmem:[%s2769_s26 + $0x8] sm:$0xff]  ;;  %v3078_v26 = vand.u32 4294901760, %v472_v57 }
  0x7c   : > { %2684 = vtanh.f32 %v238_v41  ;;  %v3093_v41 = vsub.f32 %v320_v23, %v3083_v9  ;;  %v4164_v23 = vand.u32 4294901760, %v2803_v32 }
  0x7e   : > { %4162 = vst [vmem:[#allocation41_spill] sm:$0xff] %v3093_v41  ;;  %v3101_v53 = vand.u32 4294901760, %v3093_v41 }
  0x80   : > { %4163 = vst [vmem:[#allocation42_spill] sm:$0xff] %v3101_v53 }
  0x81   : > { %634 = vmatmul.f32.gmra.mxu1 %v3002_v20 }
  0x82   : > { %466 = vmatmul.f32.gmra.mxu0 %v3057_v50  ;;  %v2685_v57 = vpop.eup %2684 }
  0x83   : > { %923 = vmatmul.f32.gmra.mxu3 %v3040_v5  ;;  %770 = vmatmul.f32.gmra.mxu2 %v3032_v51  ;;  %v323_v5 = vsel %vm273_vm0, %v265_v43, 0  ;;  %v1248_v51 = vand.u32 4294901760, %v2685_v57  ;;  %v266_v43 = vld [vmem:[%s4014_s1 + $0x88] sm:$0xff] }
  0x84   : > { %v3103_v31 = vand.u32 4294901760, %v323_v5 }
  0x85   : > { %1249 = vmatpush.msrb.mxu2 %v1248_v51  ;;  %v1469_v40 = vsub.f32 %v2685_v57, %v1248_v51  ;;  %1732 = vmatpush.msra.mxu1 %v1248_v51  ;;  %v488_v57 = vsub.f32 %v3093_v41, %v3101_v53 }
  0x87   : > { %1894 = vmatpush.msra.mxu2 %v4164_v23  ;;  %v1470_v18 = vand.u32 4294901760, %v1469_v40  ;;  %1592 = vmatpush.msra.mxu0 %v1469_v40  ;;  %v326_v23 = vsel %vm273_vm0, %v266_v43, 0 }
  0x88   : > { %v3127_v22 = vand.u32 4294901760, %v326_v23 }
  0x89   : > { %638 = vmatmul.f32.gmra.mxu1 %v3022_v42  ;;  %1898 = vmatpush.msra.mxu2 %v4165_v16  ;;  %v1471_v32 = vsub.f32 %v1469_v40, %v1470_v18  ;;  %v3122_v16 = vand.u32 4294901760, %v488_v57  ;;  %v267_v40 = vld [vmem:[%s4014_s1 + $0x90] sm:$0xff] }
  0x8a   : > { %474 = vmatmul.f32.gmra.mxu0 %v3078_v26  ;;  %v3141_v43 = vsub.f32 %v326_v23, %v3127_v22  ;;  %v329_v57 = vsel %vm273_vm0, %v267_v40, 0  ;;  %v268_v23 = vld [vmem:[%s4014_s1 + $0x98] sm:$0xff]  ;;  %v2118_v40 = vld [vmem:[%s4015_s2 + $0x10] sm:$0xff] }
  0x8b   : > { %929 = vmatmul.f32.gmra.mxu3 %v3060_v35  ;;  %775 = vmatmul.f32.gmra.mxu2 %v3052_v36  ;;  %v3117_v35 = vsub.f32 %v323_v5, %v3103_v31  ;;  %v1472_v34 = vand.u32 4294901760, %v1471_v32  ;;  %v2710_v5 = vmov 0  }
  0x8c   : > { %1902 = vmatpush.msra.mxu2 %v1470_v18  ;;  %2671 = vset.pattern.permute.xlu0 %v2710_v5  ;;  %v2116_v18 = vld [vmem:[%s4015_s2] sm:$0xff]  ;;  %4168 = vst [vmem:[#allocation45_spill] sm:$0xff] %v3141_v43 }
  0x8d   : > { %4166 = vst [vmem:[#allocation43_spill] sm:$0xff] %v3117_v35  ;;  %v3125_v36 = vand.u32 4294901760, %v3117_v35  ;;  %1473 = vmatpush.msrb.mxu3 %v1472_v34  ;;  %2672 = vset.pattern.permute.xlu1 %v2710_v5  ;;  %v3150_v34 = vand.u32 4294901760, %v3141_v43 }
  0x8e   : > { %2142 = vperm.xlu0 %2671, %v2116_v18   ;;  %2673 = vset.pattern.permute.xlu2 %v2710_v5  ;;  %v3152_v5 = vand.u32 4294901760, %v329_v57 }
  0x8f   : > { %4167 = vst [vmem:[#allocation44_spill] sm:$0xff] %v3125_v36  ;;  %2014 = vmatpush.msra.mxu3 %v2797_v27  ;;  %v496_v27 = vsub.f32 %v3117_v35, %v3125_v36  ;;  %2152 = vperm.xlu1 %2672, %v2118_v40  }
  0x90   : > { %4169 = vst [vmem:[#allocation46_spill] sm:$0xff] %v3150_v34 }
  0x91   : > { %642 = vmatmul.f32.gmra.mxu1 %v3042_v12  ;;  %2016 = vmatpush.msra.mxu3 %v2925_v29  ;;  %v3147_v32 = vand.u32 4294901760, %v496_v27  ;;  %v2117_v29 = vld [vmem:[%s4015_s2 + $0x8] sm:$0xff]  ;;  %v3168_v27 = vsub.f32 %v329_v57, %v3152_v5  ;;  %v269_v57 = vld [vmem:[%s4014_s1 + $0xa0] sm:$0xff] }
  0x92   : > { %482 = vmatmul.f32.gmra.mxu0 %v3098_v45 }
  0x93   : > { %935 = vmatmul.f32.gmra.mxu3 %v3081_v60  ;;  %780 = vmatmul.f32.gmra.mxu2 %v3072_v21  ;;  %4170 = vst [vmem:[#allocation47_spill] sm:$0xff] %v3168_v27  ;;  %v3176_v40 = vand.u32 4294901760, %v3168_v27 }
  0x94   : > { %2018 = vmatpush.msra.mxu3 %v1248_v51  ;;  %v504_v51 = vsub.f32 %v3141_v43, %v3150_v34 }
  0x95   : > { %4171 = vst [vmem:[#allocation48_spill] sm:$0xff] %v3176_v40 }
  0x96   : > { %2147 = vperm.xlu0 %2671, %v2117_v29  }
  0x99   : > { %646 = vmatmul.f32.gmra.mxu1 %v3062_v37 }
  0x9a   : > { %490 = vmatmul.f32.gmra.mxu0 %v3122_v16 }
  0x9b   : > { %941 = vmatmul.f32.gmra.mxu3 %v3101_v53  ;;  %785 = vmatmul.f32.gmra.mxu2 %v3093_v41  ;;  %v332_v53 = vsel %vm273_vm0, %v268_v23, 0  ;;  %v3173_v41 = vand.u32 4294901760, %v504_v51  ;;  %v2119_v23 = vld [vmem:[%s4015_s2 + $0x18] sm:$0xff]  ;;  %v2122_v51 = vld [vmem:[%s4015_s2 + $0x30] sm:$0xff] }
  0x9c   : > { %v3178_v29 = vand.u32 4294901760, %v332_v53  ;;  %2157 = vperm.xlu1 %2672, %v2119_v23  }
  0x9e   : > { %v371_v18 = vpop.f32.mrf.mxu0  ;;  %4172 = vst [vmem:[#allocation49_spill] sm:$0xff] %v3178_v29  ;;  %2172 = vperm.xlu0 %2671, %v2122_v51  }
  0xa1   : > { %650 = vmatmul.f32.gmra.mxu1 %v3083_v9 }
  0xa2   : > { %498 = vmatmul.f32.gmra.mxu0 %v3147_v32 }
  0xa3   : > { %947 = vmatmul.f32.gmra.mxu3 %v3125_v36  ;;  %790 = vmatmul.f32.gmra.mxu2 %v3117_v35  ;;  %v335_v35 = vsel %vm273_vm0, %v269_v57, 0  ;;  %v270_v57 = vld [vmem:[%s4014_s1 + $0xa8] sm:$0xff] }
  0xa4   : > { %v3206_v51 = vand.u32 4294901760, %v335_v35 }
  0xa5   : > { %v852_v60 = vpop.f32.mrf.mxu3 }
  0xa6   : > { %v591_v7 = vpop.f32.mrf.mxu1  ;;  %v711_v62 = vpop.f32.mrf.mxu2 }
  0xa7   : > { %v379_v21 = vpop.f32.mrf.mxu0  ;;  %v592_v13 = vadd.f32 %v591_v7, %v371_v18  ;;  %v512_v7 = vsub.f32 %v3168_v27, %v3176_v40  ;;  %v3194_v18 = vsub.f32 %v332_v53, %v3178_v29 }
  0xa9   : > { %v712_v36 = vadd.f32 %v711_v62, %v592_v13  ;;  %654 = vmatmul.f32.gmra.mxu1 %v3103_v31  ;;  %4173 = vst [vmem:[#allocation50_spill] sm:$0xff] %v3194_v18  ;;  %v3201_v62 = vand.u32 4294901760, %v512_v7  ;;  %v3204_v13 = vand.u32 4294901760, %v3194_v18 }
  0xaa   : > { %506 = vmatmul.f32.gmra.mxu0 %v3173_v41 }
  0xab   : > { %953 = vmatmul.f32.gmra.mxu3 %v3150_v34  ;;  %v3198_v3 = vadd.f32 %v852_v60, %v712_v36  ;;  %795 = vmatmul.f32.gmra.mxu2 %v3141_v43  ;;  %4174 = vst [vmem:[#allocation51_spill] sm:$0xff] %v3204_v13  ;;  %v2123_v60 = vld [vmem:[%s4015_s2 + $0x38] sm:$0xff]  ;;  %v2125_v36 = vld [vmem:[%s4015_s2 + $0x48] sm:$0xff]  ;;  %v338_v34 = vsel %vm273_vm0, %v270_v57, 0  ;;  %v271_v57 = vld [vmem:[%s4014_s1 + $0xb0] sm:$0xff] }
  0xac   : > { %2177 = vperm.xlu1 %2672, %v2123_v60   ;;  %2187 = vperm.xlu0 %2671, %v2125_v36   ;;  %v3234_v36 = vand.u32 4294901760, %v338_v34 }
  0xae   : > { %v858_v23 = vpop.f32.mrf.mxu3  ;;  %v595_v59 = vpop.f32.mrf.mxu1 }
  0xaf   : > { %v387_v55 = vpop.f32.mrf.mxu0  ;;  %v596_v53 = vadd.f32 %v595_v59, %v379_v21  ;;  %v716_v48 = vpop.f32.mrf.mxu2  ;;  %v520_v59 = vsub.f32 %v3194_v18, %v3204_v13  ;;  %v3222_v21 = vsub.f32 %v335_v35, %v3206_v51 }
  0xb1   : > { %v717_v7 = vadd.f32 %v716_v48, %v596_v53  ;;  %658 = vmatmul.f32.gmra.mxu1 %v3127_v22  ;;  %4175 = vst [vmem:[#allocation52_spill] sm:$0xff] %v3222_v21  ;;  %v3229_v48 = vand.u32 4294901760, %v520_v59  ;;  %v3232_v53 = vand.u32 4294901760, %v3222_v21 }
  0xb2   : > { %514 = vmatmul.f32.gmra.mxu0 %v3201_v62 }
  0xb3   : > { %959 = vmatmul.f32.gmra.mxu3 %v3176_v40  ;;  %v3226_v43 = vadd.f32 %v858_v23, %v717_v7  ;;  %800 = vmatmul.f32.gmra.mxu2 %v3168_v27  ;;  %4176 = vst [vmem:[#allocation53_spill] sm:$0xff] %v3229_v48  ;;  %v2126_v23 = vld [vmem:[%s4015_s2 + $0x50] sm:$0xff]  ;;  %v2128_v7 = vld [vmem:[%s4015_s2 + $0x60] sm:$0xff]  ;;  %v341_v40 = vsel %vm273_vm0, %v271_v57, 0 }
  0xb4   : > { %4177 = vst [vmem:[#allocation54_spill] sm:$0xff] %v3232_v53  ;;  %2192 = vperm.xlu1 %2672, %v2126_v23   ;;  %2202 = vperm.xlu0 %2671, %v2128_v7   ;;  %v3262_v7 = vand.u32 4294901760, %v341_v40 }
  0xb6   : > { %v864_v60 = vpop.f32.mrf.mxu3  ;;  %v599_v28 = vpop.f32.mrf.mxu1 }
  0xb7   : > { %v395_v52 = vpop.f32.mrf.mxu0  ;;  %v600_v35 = vadd.f32 %v599_v28, %v387_v55  ;;  %v721_v39 = vpop.f32.mrf.mxu2  ;;  %v528_v28 = vsub.f32 %v3222_v21, %v3232_v53  ;;  %v3250_v55 = vsub.f32 %v338_v34, %v3234_v36  ;;  %v272_v34 = vld [vmem:[%s4014_s1 + $0xb8] sm:$0xff] }
  0xb8   : > { %v344_v4 = vsel %vm273_vm0, %v272_v34, 0  ;;  %v2121_v34 = vld [vmem:[%s4015_s2 + $0x28] sm:$0xff] }
  0xb9   : > { %v722_v59 = vadd.f32 %v721_v39, %v600_v35  ;;  %662 = vmatmul.f32.gmra.mxu1 %v3152_v5  ;;  %4178 = vst [vmem:[#allocation55_spill] sm:$0xff] %v3250_v55  ;;  %v3257_v39 = vand.u32 4294901760, %v528_v28  ;;  %v3260_v35 = vand.u32 4294901760, %v3250_v55  ;;  %v2131_v28 = vld [vmem:[%s4015_s2 + $0x78] sm:$0xff] }
  0xba   : > { %522 = vmatmul.f32.gmra.mxu0 %v3229_v48 }
  0xbb   : > { %965 = vmatmul.f32.gmra.mxu3 %v3204_v13  ;;  %v3254_v27 = vadd.f32 %v864_v60, %v722_v59  ;;  %805 = vmatmul.f32.gmra.mxu2 %v3194_v18  ;;  %4180 = vst [vmem:[#allocation57_spill] sm:$0xff] %v3257_v39  ;;  %v2120_v60 = vld [vmem:[%s4015_s2 + $0x20] sm:$0xff]  ;;  %v2129_v59 = vld [vmem:[%s4015_s2 + $0x68] sm:$0xff] }
  0xbc   : > { %4181 = vst [vmem:[#allocation58_spill] sm:$0xff] %v3260_v35  ;;  %2162 = vperm.xlu2 %2673, %v2120_v60   ;;  %2207 = vperm.xlu1 %2672, %v2129_v59   ;;  %v3293_v59 = vand.u32 4294901760, %v344_v4 }
  0xbd   : > { %4179 = vst [vmem:[#allocation56_spill] sm:$0xff] %v3254_v27  ;;  %2217 = vperm.xlu0 %2671, %v2131_v28  }
  0xbe   : > { %v870_v23 = vpop.f32.mrf.mxu3  ;;  %v603_v15 = vpop.f32.mrf.mxu1 }
  0xbf   : > { %v403_v10 = vpop.f32.mrf.mxu0  ;;  %v604_v13 = vadd.f32 %v603_v15, %v395_v52  ;;  %v726_v57 = vpop.f32.mrf.mxu2  ;;  %v536_v15 = vsub.f32 %v3250_v55, %v3260_v35  ;;  %v3281_v52 = vsub.f32 %v341_v40, %v3262_v7 }
  0xc1   : > { %v727_v18 = vadd.f32 %v726_v57, %v604_v13  ;;  %666 = vmatmul.f32.gmra.mxu1 %v3178_v29  ;;  %4182 = vst [vmem:[#allocation59_spill] sm:$0xff] %v3281_v52  ;;  %v3288_v57 = vand.u32 4294901760, %v536_v15  ;;  %v3291_v60 = vand.u32 4294901760, %v3281_v52  ;;  %v3309_v15 = vsub.f32 %v344_v4, %v3293_v59  ;;  %v2124_v4 = vld [vmem:[%s4015_s2 + $0x40] sm:$0xff] }
  0xc2   : > { %530 = vmatmul.f32.gmra.mxu0 %v3257_v39 }
  0xc3   : > { %971 = vmatmul.f32.gmra.mxu3 %v3232_v53  ;;  %v3285_v48 = vadd.f32 %v870_v23, %v727_v18  ;;  %810 = vmatmul.f32.gmra.mxu2 %v3222_v21  ;;  %4183 = vst [vmem:[#allocation60_spill] sm:$0xff] %v3288_v57  ;;  %v2132_v18 = vld [vmem:[%s4015_s2 + $0x80] sm:$0xff]  ;;  %v2134_v23 = vld [vmem:[%s4015_s2 + $0x90] sm:$0xff] }
  0xc4   : > { %4184 = vst [vmem:[#allocation61_spill] sm:$0xff] %v3291_v60  ;;  %2167 = vperm.xlu2 %2673, %v2121_v34   ;;  %2222 = vperm.xlu1 %2672, %v2132_v18  }
  0xc5   : > { %4185 = vst [vmem:[#allocation62_spill] sm:$0xff] %v3309_v15  ;;  %2232 = vperm.xlu0 %2671, %v2134_v23   ;;  %v2137_v23 = vld [vmem:[%s4015_s2 + $0xa8] sm:$0xff] }
  0xc6   : > { %v876_v13 = vpop.f32.mrf.mxu3  ;;  %v607_v40 = vpop.f32.mrf.mxu1 }
  0xc7   : > { %v411_v39 = vpop.f32.mrf.mxu0  ;;  %v608_v29 = vadd.f32 %v607_v40, %v403_v10  ;;  %v731_v27 = vpop.f32.mrf.mxu2  ;;  %v544_v10 = vsub.f32 %v3281_v52, %v3291_v60 }
  0xc9   : > { %v732_v28 = vadd.f32 %v731_v27, %v608_v29  ;;  %670 = vmatmul.f32.gmra.mxu1 %v3206_v51  ;;  %v3315_v18 = vand.u32 4294901760, %v544_v10  ;;  %v3318_v27 = vand.u32 4294901760, %v3309_v15 }
  0xca   : > { %538 = vmatmul.f32.gmra.mxu0 %v3288_v57 }
  0xcb   : > { %977 = vmatmul.f32.gmra.mxu3 %v3260_v35  ;;  %v3312_v40 = vadd.f32 %v876_v13, %v732_v28  ;;  %815 = vmatmul.f32.gmra.mxu2 %v3250_v55  ;;  %4186 = vst [vmem:[#allocation63_spill] sm:$0xff] %v3315_v18  ;;  %v2135_v13 = vld [vmem:[%s4015_s2 + $0x98] sm:$0xff] }
  0xcc   : > { %4187 = vst [vmem:[#allocation64_spill] sm:$0xff] %v3318_v27  ;;  %2182 = vperm.xlu2 %2673, %v2124_v4   ;;  %2237 = vperm.xlu1 %2672, %v2135_v13   ;;  %v2127_v55 = vld [vmem:[%s4015_s2 + $0x58] sm:$0xff] }
  0xcd   : > { %2247 = vperm.xlu0 %2671, %v2137_v23  }
  0xce   : > { %v882_v34 = vpop.f32.mrf.mxu3  ;;  %v611_v53 = vpop.f32.mrf.mxu1 }
  0xcf   : > { %v419_v29 = vpop.f32.mrf.mxu0  ;;  %v612_v21 = vadd.f32 %v611_v53, %v411_v39  ;;  %v736_v57 = vpop.f32.mrf.mxu2  ;;  %v552_v53 = vsub.f32 %v3309_v15, %v3318_v27 }
  0xd1   : > { %v737_v28 = vadd.f32 %v736_v57, %v612_v21  ;;  %674 = vmatmul.f32.gmra.mxu1 %v3234_v36  ;;  %v3337_v35 = vand.u32 4294901760, %v552_v53 }
  0xd2   : > { %546 = vmatmul.f32.gmra.mxu0 %v3315_v18 }
  0xd3   : > { %983 = vmatmul.f32.gmra.mxu3 %v3291_v60  ;;  %v3334_v39 = vadd.f32 %v882_v34, %v737_v28  ;;  %820 = vmatmul.f32.gmra.mxu2 %v3281_v52  ;;  %v2138_v60 = vld [vmem:[%s4015_s2 + $0xb0] sm:$0xff]  ;;  %v2308_v34 = vld [vmem:[%s4016_s3] sm:$0xff] }
  0xd4   : > { %2197 = vperm.xlu2 %2673, %v2127_v55   ;;  %2252 = vperm.xlu1 %2672, %v2138_v60   ;;  %v2130_v55 = vld [vmem:[%s4015_s2 + $0x70] sm:$0xff]  ;;  %v2309_v60 = vld [vmem:[%s4016_s3 + $0x8] sm:$0xff] }
  0xd5   : > { %2334 = vperm.xlu0 %2671, %v2308_v34  }
  0xd6   : > { %v888_v10 = vpop.f32.mrf.mxu3  ;;  %v615_v13 = vpop.f32.mrf.mxu1 }
  0xd7   : > { %v427_v4 = vpop.f32.mrf.mxu0  ;;  %v616_v21 = vadd.f32 %v615_v13, %v419_v29  ;;  %v741_v57 = vpop.f32.mrf.mxu2 }
  0xd9   : > { %v742_v23 = vadd.f32 %v741_v57, %v616_v21  ;;  %678 = vmatmul.f32.gmra.mxu1 %v3262_v7 }
  0xda   : > { %554 = vmatmul.f32.gmra.mxu0 %v3337_v35 }
  0xdb   : > { %989 = vmatmul.f32.gmra.mxu3 %v3318_v27  ;;  %v3351_v29 = vadd.f32 %v888_v10, %v742_v23  ;;  %825 = vmatmul.f32.gmra.mxu2 %v3309_v15 }
  0xdc   : > { %2212 = vperm.xlu2 %2673, %v2130_v55   ;;  %2339 = vperm.xlu1 %2672, %v2309_v60   ;;  %v2133_v55 = vld [vmem:[%s4015_s2 + $0x88] sm:$0xff] }
  0xde   : > { %v894_v28 = vpop.f32.mrf.mxu3  ;;  %v619_v13 = vpop.f32.mrf.mxu1 }
  0xdf   : > { %v435_v53 = vpop.f32.mrf.mxu0  ;;  %v620_v52 = vadd.f32 %v619_v13, %v427_v4  ;;  %v746_v18 = vpop.f32.mrf.mxu2 }
  0xe1   : > { %v747_v21 = vadd.f32 %v746_v18, %v620_v52  ;;  %682 = vmatmul.f32.gmra.mxu1 %v3293_v59 }
  0xe2   : > { %1019 = vmatmul.f32.vlgmr.msrb.gmra.mxu0 %v2760_v2 }
  0xe3   : > { %1475 = vmatmul.f32.vlgmr.msrb.gmra.mxu3 %v2760_v2  ;;  %v3363_v10 = vadd.f32 %v894_v28, %v747_v21  ;;  %1255 = vmatmul.f32.vlgmr.msrb.gmra.mxu2 %v2795_v25 }
  0xe4   : > { %2227 = vperm.xlu2 %2673, %v2133_v55  }
  0xe6   : > { %v900_v4 = vpop.f32.mrf.mxu3  ;;  %v623_v34 = vpop.f32.mrf.mxu1 }
  0xe7   : > { %v443_v57 = vpop.f32.mrf.mxu0  ;;  %v624_v23 = vadd.f32 %v623_v34, %v435_v53  ;;  %v751_v13 = vpop.f32.mrf.mxu2  ;;  %v2136_v34 = vld [vmem:[%s4015_s2 + $0xa0] sm:$0xff] }
  0xe9   : > { %v752_v52 = vadd.f32 %v751_v13, %v624_v23  ;;  %1135 = vmatmul.f32.vlgmr.msrb.gmra.mxu1 %v2760_v2  ;;  %v2311_v23 = vld [vmem:[%s4016_s3 + $0x18] sm:$0xff] }
  0xea   : > { %1023 = vmatmul.f32.gmra.mxu0 %v2782_v11  ;;  %2349 = vperm.xlu0 %2671, %v2311_v23  }
  0xeb   : > { %1479 = vmatmul.f32.gmra.mxu3 %v2782_v11  ;;  %v3372_v18 = vadd.f32 %v900_v4, %v752_v52  ;;  %1263 = vmatmul.f32.gmra.mxu2 %v2822_v47 }
  0xec   : > { %2242 = vperm.xlu2 %2673, %v2136_v34   ;;  %v2139_v34 = vld [vmem:[%s4015_s2 + $0xb8] sm:$0xff] }
  0xee   : > { %v906_v25 = vpop.f32.mrf.mxu3  ;;  %v627_v53 = vpop.f32.mrf.mxu1 }
  0xef   : > { %v451_v28 = vpop.f32.mrf.mxu0  ;;  %v628_v60 = vadd.f32 %v627_v53, %v443_v57  ;;  %v756_v21 = vpop.f32.mrf.mxu2 }
  0xf1   : > { %v757_v13 = vadd.f32 %v756_v21, %v628_v60  ;;  %1139 = vmatmul.f32.gmra.mxu1 %v2782_v11  ;;  %v2312_v60 = vld [vmem:[%s4016_s3 + $0x20] sm:$0xff] }
  0xf2   : > { %1027 = vmatmul.f32.gmra.mxu0 %v2793_v24  ;;  %2354 = vperm.xlu1 %2672, %v2312_v60  }
  0xf3   : > { %1483 = vmatmul.f32.gmra.mxu3 %v2793_v24  ;;  %v3384_v47 = vadd.f32 %v906_v25, %v757_v13  ;;  %1271 = vmatmul.f32.gmra.mxu2 %v2843_v54 }
  0xf4   : > { %2257 = vperm.xlu2 %2673, %v2139_v34   ;;  %v2310_v34 = vld [vmem:[%s4016_s3 + $0x10] sm:$0xff] }
  0xf6   : > { %v912_v4 = vpop.f32.mrf.mxu3  ;;  %v631_v55 = vpop.f32.mrf.mxu1 }
  0xf7   : > { %v459_v57 = vpop.f32.mrf.mxu0  ;;  %v632_v52 = vadd.f32 %v631_v55, %v451_v28  ;;  %v761_v53 = vpop.f32.mrf.mxu2 }
  0xf9   : > { %v762_v21 = vadd.f32 %v761_v53, %v632_v52  ;;  %1143 = vmatmul.f32.gmra.mxu1 %v2793_v24 }
  0xfa   : > { %1031 = vmatmul.f32.gmra.mxu0 %v2827_v49 }
  0xfb   : > { %1487 = vmatmul.f32.gmra.mxu3 %v2827_v49  ;;  %v3396_v54 = vadd.f32 %v912_v4, %v762_v21  ;;  %1279 = vmatmul.f32.gmra.mxu2 %v2864_v61 }
  0xfc   : > { %2344 = vperm.xlu2 %2673, %v2310_v34  }
  0xfe   : > { %v918_v25 = vpop.f32.mrf.mxu3  ;;  %v635_v23 = vpop.f32.mrf.mxu1 }
  0xff   : > { %v467_v28 = vpop.f32.mrf.mxu0  ;;  %v636_v13 = vadd.f32 %v635_v23, %v459_v57  ;;  %v766_v55 = vpop.f32.mrf.mxu2  ;;  %v2314_v23 = vld [vmem:[%s4016_s3 + $0x30] sm:$0xff] }
 0x100   : > { %2364 = vperm.xlu0 %2671, %v2314_v23  }
 0x101   : > { %v767_v52 = vadd.f32 %v766_v55, %v636_v13  ;;  %1147 = vmatmul.f32.gmra.mxu1 %v2827_v49  ;;  %v3437_v27 = vpop.permute.xlu1 %2152 }
 0x102   : > { %1035 = vmatmul.f32.gmra.mxu0 %v2848_v56  ;;  %4191 = vst [vmem:[#allocation68_spill] sm:$0xff] %v3437_v27 }
 0x103   : > { %1491 = vmatmul.f32.gmra.mxu3 %v2848_v56  ;;  %v3405_v4 = vadd.f32 %v918_v25, %v767_v52  ;;  %1287 = vmatmul.f32.gmra.mxu2 %v2884_v6 }
 0x106   : > { %v924_v61 = vpop.f32.mrf.mxu3  ;;  %v639_v57 = vpop.f32.mrf.mxu1 }
 0x107   : > { %v475_v53 = vpop.f32.mrf.mxu0  ;;  %v640_v60 = vadd.f32 %v639_v57, %v467_v28  ;;  %v771_v21 = vpop.f32.mrf.mxu2  ;;  %v2315_v57 = vld [vmem:[%s4016_s3 + $0x38] sm:$0xff] }
 0x108   : > { %2369 = vperm.xlu1 %2672, %v2315_v57  }
 0x109   : > { %v772_v13 = vadd.f32 %v771_v21, %v640_v60  ;;  %1151 = vmatmul.f32.gmra.mxu1 %v2848_v56 }
 0x10a   : > { %1039 = vmatmul.f32.gmra.mxu0 %v2869_v63 }
 0x10b   : > { %1495 = vmatmul.f32.gmra.mxu3 %v2869_v63  ;;  %v3414_v25 = vadd.f32 %v924_v61, %v772_v13  ;;  %1295 = vmatmul.f32.gmra.mxu2 %v2905_v17 }
 0x10e   : > { %v930_v6 = vpop.f32.mrf.mxu3  ;;  %v643_v28 = vpop.f32.mrf.mxu1 }
 0x10f   : > { %v483_v55 = vpop.f32.mrf.mxu0  ;;  %v644_v34 = vadd.f32 %v643_v28, %v475_v53  ;;  %v776_v52 = vpop.f32.mrf.mxu2 }
 0x110   : > { %v3426_v28 = vpop.permute.xlu0 %2142 }
 0x111   : > { %v777_v60 = vadd.f32 %v776_v52, %v644_v34  ;;  %1155 = vmatmul.f32.gmra.mxu1 %v2869_v63  ;;  %4189 = vst [vmem:[#allocation66_spill] sm:$0xff] %v3426_v28  ;;  %v2313_v34 = vld [vmem:[%s4016_s3 + $0x28] sm:$0xff] }
 0x112   : > { %1043 = vmatmul.f32.gmra.mxu0 %v2889_v8  ;;  %2359 = vperm.xlu2 %2673, %v2313_v34  }
 0x113   : > { %1499 = vmatmul.f32.gmra.mxu3 %v2889_v8  ;;  %v3423_v61 = vadd.f32 %v930_v6, %v777_v60  ;;  %1303 = vmatmul.f32.gmra.mxu2 %v2927_v30 }
 0x115   : > { %4188 = vst [vmem:[#allocation65_spill] sm:$0xff] %v3423_v61 }
 0x116   : > { %v936_v17 = vpop.f32.mrf.mxu3  ;;  %v647_v53 = vpop.f32.mrf.mxu1 }
 0x117   : > { %v491_v21 = vpop.f32.mrf.mxu0  ;;  %v648_v23 = vadd.f32 %v647_v53, %v483_v55  ;;  %v781_v13 = vpop.f32.mrf.mxu2 }
 0x119   : > { %v782_v52 = vadd.f32 %v781_v13, %v648_v23  ;;  %1159 = vmatmul.f32.gmra.mxu1 %v2889_v8  ;;  %v2317_v23 = vld [vmem:[%s4016_s3 + $0x48] sm:$0xff] }
 0x11a   : > { %1047 = vmatmul.f32.gmra.mxu0 %v2910_v19  ;;  %2379 = vperm.xlu0 %2671, %v2317_v23  }
 0x11b   : > { %1503 = vmatmul.f32.gmra.mxu3 %v2910_v19  ;;  %v3434_v30 = vadd.f32 %v936_v17, %v782_v52  ;;  %1311 = vmatmul.f32.gmra.mxu2 %v2957_v44  ;;  %v3444_v17 = vpop.permute.xlu0 %2147 }
 0x11c   : > { %4192 = vst [vmem:[#allocation69_spill] sm:$0xff] %v3444_v17 }
 0x11d   : > { %4190 = vst [vmem:[#allocation67_spill] sm:$0xff] %v3434_v30  ;;  %v3450_v30 = vpop.permute.xlu2 %2162 }
 0x11e   : > { %v942_v6 = vpop.f32.mrf.mxu3  ;;  %v651_v57 = vpop.f32.mrf.mxu1  ;;  %4194 = vst [vmem:[#allocation71_spill] sm:$0xff] %v3450_v30 }
 0x11f   : > { %v499_v55 = vpop.f32.mrf.mxu0  ;;  %v652_v60 = vadd.f32 %v651_v57, %v491_v21  ;;  %v786_v53 = vpop.f32.mrf.mxu2 }
 0x121   : > { %v787_v13 = vadd.f32 %v786_v53, %v652_v60  ;;  %1163 = vmatmul.f32.gmra.mxu1 %v2910_v19  ;;  %v2318_v60 = vld [vmem:[%s4016_s3 + $0x50] sm:$0xff] }
 0x122   : > { %1051 = vmatmul.f32.gmra.mxu0 %v2932_v33  ;;  %2384 = vperm.xlu1 %2672, %v2318_v60  }
 0x123   : > { %1507 = vmatmul.f32.gmra.mxu3 %v2932_v33  ;;  %v3447_v44 = vadd.f32 %v942_v6, %v787_v13  ;;  %1319 = vmatmul.f32.gmra.mxu2 %v2977_v58  ;;  %v3457_v6 = vpop.permute.xlu1 %2157 }
 0x124   : > { %4195 = vst [vmem:[#allocation72_spill] sm:$0xff] %v3457_v6 }
 0x125   : > { %4193 = vst [vmem:[#allocation70_spill] sm:$0xff] %v3447_v44 }
 0x126   : > { %v948_v21 = vpop.f32.mrf.mxu3  ;;  %v655_v52 = vpop.f32.mrf.mxu1 }
 0x127   : > { %v507_v34 = vpop.f32.mrf.mxu0  ;;  %v656_v57 = vadd.f32 %v655_v52, %v499_v55  ;;  %v791_v15 = vpop.f32.mrf.mxu2 }
 0x128   : > { %v3463_v55 = vpop.permute.xlu0 %2172 }
 0x129   : > { %v792_v53 = vadd.f32 %v791_v15, %v656_v57  ;;  %1167 = vmatmul.f32.gmra.mxu1 %v2932_v33  ;;  %v2316_v15 = vld [vmem:[%s4016_s3 + $0x40] sm:$0xff] }
 0x12a   : > { %1055 = vmatmul.f32.gmra.mxu0 %v2962_v46  ;;  %2374 = vperm.xlu2 %2673, %v2316_v15  }
 0x12b   : > { %1511 = vmatmul.f32.gmra.mxu3 %v2962_v46  ;;  %v3460_v58 = vadd.f32 %v948_v21, %v792_v53  ;;  %1327 = vmatmul.f32.gmra.mxu2 %v2997_v14  ;;  %v3470_v21 = vpop.permute.xlu2 %2167 }
 0x12d   : > { %4196 = vst [vmem:[#allocation73_spill] sm:$0xff] %v3460_v58 }
 0x12e   : > { %v954_v23 = vpop.f32.mrf.mxu3  ;;  %v659_v52 = vpop.f32.mrf.mxu1 }
 0x12f   : > { %v515_v13 = vpop.f32.mrf.mxu0  ;;  %v660_v44 = vadd.f32 %v659_v52, %v507_v34  ;;  %v796_v60 = vpop.f32.mrf.mxu2 }
 0x130   : > { %v3476_v34 = vpop.permute.xlu1 %2177  ;;  %v3478_v52 = vpop.permute.xlu0 %2187 }
 0x131   : > { %v797_v57 = vadd.f32 %v796_v60, %v660_v44  ;;  %1171 = vmatmul.f32.gmra.mxu1 %v2962_v46  ;;  %v2320_v46 = vld [vmem:[%s4016_s3 + $0x60] sm:$0xff] }
 0x132   : > { %1059 = vmatmul.f32.gmra.mxu0 %v2982_v0  ;;  %2394 = vperm.xlu0 %2671, %v2320_v46  }
 0x133   : > { %1515 = vmatmul.f32.gmra.mxu3 %v2982_v0  ;;  %v3473_v14 = vadd.f32 %v954_v23, %v797_v57  ;;  %1335 = vmatmul.f32.gmra.mxu2 %v3017_v38  ;;  %v3489_v23 = vpop.permute.xlu2 %2182 }
 0x134   : > { %4199 = vst [vmem:[#allocation76_spill] sm:$0xff] %v3489_v23 }
 0x135   : > { %4197 = vst [vmem:[#allocation74_spill] sm:$0xff] %v3473_v14 }
 0x136   : > { %v960_v53 = vpop.f32.mrf.mxu3  ;;  %v663_v15 = vpop.f32.mrf.mxu1 }
 0x137   : > { %v523_v58 = vpop.f32.mrf.mxu0  ;;  %v664_v44 = vadd.f32 %v663_v15, %v515_v13  ;;  %v801_v60 = vpop.f32.mrf.mxu2 }
 0x138   : > { %v3491_v57 = vpop.permute.xlu1 %2192 }
 0x139   : > { %v802_v33 = vadd.f32 %v801_v60, %v664_v44  ;;  %1175 = vmatmul.f32.gmra.mxu1 %v2982_v0  ;;  %v3493_v44 = vpop.permute.xlu0 %2202  ;;  %v2321_v60 = vld [vmem:[%s4016_s3 + $0x68] sm:$0xff] }
 0x13a   : > { %1063 = vmatmul.f32.gmra.mxu0 %v3002_v20  ;;  %4200 = vst [vmem:[#allocation77_spill] sm:$0xff] %v3493_v44  ;;  %2399 = vperm.xlu1 %2672, %v2321_v60  }
 0x13b   : > { %1519 = vmatmul.f32.gmra.mxu3 %v3002_v20  ;;  %v3486_v38 = vadd.f32 %v960_v53, %v802_v33  ;;  %1343 = vmatmul.f32.gmra.mxu2 %v3037_v1 }
 0x13d   : > { %4198 = vst [vmem:[#allocation75_spill] sm:$0xff] %v3486_v38 }
 0x13e   : > { %v966_v13 = vpop.f32.mrf.mxu3  ;;  %v667_v14 = vpop.f32.mrf.mxu1 }
 0x13f   : > { %v531_v15 = vpop.f32.mrf.mxu0  ;;  %v668_v19 = vadd.f32 %v667_v14, %v523_v58  ;;  %v806_v46 = vpop.f32.mrf.mxu2 }
 0x140   : > { %v3504_v14 = vpop.permute.xlu2 %2197  ;;  %v3506_v61 = vpop.permute.xlu1 %2207 }
 0x141   : > { %v807_v33 = vadd.f32 %v806_v46, %v668_v19  ;;  %1179 = vmatmul.f32.gmra.mxu1 %v3002_v20  ;;  %4202 = vst [vmem:[#allocation79_spill] sm:$0xff] %v3506_v61  ;;  %v2319_v19 = vld [vmem:[%s4016_s3 + $0x58] sm:$0xff] }
 0x142   : > { %1067 = vmatmul.f32.gmra.mxu0 %v3022_v42  ;;  %2389 = vperm.xlu2 %2673, %v2319_v19  }
 0x143   : > { %1523 = vmatmul.f32.gmra.mxu3 %v3022_v42  ;;  %v3501_v1 = vadd.f32 %v966_v13, %v807_v33  ;;  %1351 = vmatmul.f32.gmra.mxu2 %v3057_v50  ;;  %v3513_v50 = vpop.permute.xlu0 %2217 }
 0x144   : > { %4203 = vst [vmem:[#allocation80_spill] sm:$0xff] %v3513_v50 }
 0x145   : > { %4201 = vst [vmem:[#allocation78_spill] sm:$0xff] %v3501_v1 }
 0x146   : > { %v972_v58 = vpop.f32.mrf.mxu3  ;;  %v671_v38 = vpop.f32.mrf.mxu1 }
 0x147   : > { %v539_v53 = vpop.f32.mrf.mxu0  ;;  %v672_v0 = vadd.f32 %v671_v38, %v531_v15  ;;  %v811_v8 = vpop.f32.mrf.mxu2 }
 0x148   : > { %v3519_v20 = vpop.permute.xlu2 %2212 }
 0x149   : > { %v812_v46 = vadd.f32 %v811_v8, %v672_v0  ;;  %1183 = vmatmul.f32.gmra.mxu1 %v3022_v42  ;;  %4205 = vst [vmem:[#allocation82_spill] sm:$0xff] %v3519_v20  ;;  %v2323_v8 = vld [vmem:[%s4016_s3 + $0x78] sm:$0xff] }
 0x14a   : > { %1071 = vmatmul.f32.gmra.mxu0 %v3042_v12  ;;  %2409 = vperm.xlu0 %2671, %v2323_v8  }
 0x14b   : > { %1527 = vmatmul.f32.gmra.mxu3 %v3042_v12  ;;  %v3516_v13 = vadd.f32 %v972_v58, %v812_v46  ;;  %1359 = vmatmul.f32.gmra.mxu2 %v3078_v26  ;;  %v3526_v58 = vpop.permute.xlu1 %2222 }
 0x14c   : > { %4206 = vst [vmem:[#allocation83_spill] sm:$0xff] %v3526_v58 }
 0x14d   : > { %4204 = vst [vmem:[#allocation81_spill] sm:$0xff] %v3516_v13 }
 0x14e   : > { %v978_v38 = vpop.f32.mrf.mxu3  ;;  %v675_v60 = vpop.f32.mrf.mxu1 }
 0x14f   : > { %v547_v15 = vpop.f32.mrf.mxu0  ;;  %v676_v33 = vadd.f32 %v675_v60, %v539_v53  ;;  %v816_v1 = vpop.f32.mrf.mxu2 }
 0x150   : > { %v3532_v53 = vpop.permute.xlu0 %2232 }
 0x151   : > { %v817_v0 = vadd.f32 %v816_v1, %v676_v33  ;;  %1187 = vmatmul.f32.gmra.mxu1 %v3042_v12  ;;  %4208 = vst [vmem:[#allocation85_spill] sm:$0xff] %v3532_v53  ;;  %v2324_v1 = vld [vmem:[%s4016_s3 + $0x80] sm:$0xff] }
 0x152   : > { %1075 = vmatmul.f32.gmra.mxu0 %v3062_v37  ;;  %2414 = vperm.xlu1 %2672, %v2324_v1  }
 0x153   : > { %1531 = vmatmul.f32.gmra.mxu3 %v3062_v37  ;;  %v3529_v26 = vadd.f32 %v978_v38, %v817_v0  ;;  %1367 = vmatmul.f32.gmra.mxu2 %v3098_v45  ;;  %v3539_v38 = vpop.permute.xlu2 %2227 }
 0x154   : > { %4209 = vst [vmem:[#allocation86_spill] sm:$0xff] %v3539_v38 }
 0x155   : > { %4207 = vst [vmem:[#allocation84_spill] sm:$0xff] %v3529_v26 }
 0x156   : > { %v984_v19 = vpop.f32.mrf.mxu3  ;;  %v679_v60 = vpop.f32.mrf.mxu1 }
 0x157   : > { %v555_v46 = vpop.f32.mrf.mxu0  ;;  %v680_v13 = vadd.f32 %v679_v60, %v547_v15  ;;  %v821_v8 = vpop.f32.mrf.mxu2 }
 0x158   : > { %v3545_v15 = vpop.permute.xlu1 %2237  ;;  %v3547_v60 = vpop.permute.xlu0 %2247 }
 0x159   : > { %v822_v33 = vadd.f32 %v821_v8, %v680_v13  ;;  %1191 = vmatmul.f32.gmra.mxu1 %v3062_v37  ;;  %4211 = vst [vmem:[#allocation88_spill] sm:$0xff] %v3545_v15  ;;  %v2322_v37 = vld [vmem:[%s4016_s3 + $0x70] sm:$0xff] }
 0x15a   : > { %1079 = vmatmul.f32.gmra.mxu0 %v3083_v9  ;;  %4212 = vst [vmem:[#allocation89_spill] sm:$0xff] %v3547_v60  ;;  %2404 = vperm.xlu2 %2673, %v2322_v37  }
 0x15b   : > { %1535 = vmatmul.f32.gmra.mxu3 %v3083_v9  ;;  %v3542_v45 = vadd.f32 %v984_v19, %v822_v33  ;;  %1375 = vmatmul.f32.gmra.mxu2 %v3122_v16  ;;  %v3558_v19 = vpop.permute.xlu2 %2242 }
 0x15c   : > { %4213 = vst [vmem:[#allocation90_spill] sm:$0xff] %v3558_v19 }
 0x15d   : > { %4210 = vst [vmem:[#allocation87_spill] sm:$0xff] %v3542_v45 }
 0x15e   : > { %v990_v0 = vpop.f32.mrf.mxu3  ;;  %v683_v26 = vpop.f32.mrf.mxu1 }
 0x15f   : > { %v1020_v13 = vpop.f32.mrf.mxu0  ;;  %v684_v8 = vadd.f32 %v683_v26, %v555_v46  ;;  %v826_v1 = vpop.f32.mrf.mxu2 }
 0x160   : > { %v1021_v26 = vadd.f32 %v1020_v13, %v3198_v3  ;;  %v3561_v33 = vpop.permute.xlu1 %2252 }
 0x161   : > { %v827_v12 = vadd.f32 %v826_v1, %v684_v8  ;;  %1195 = vmatmul.f32.gmra.mxu1 %v3083_v9  ;;  %4214 = vst [vmem:[#allocation91_spill] sm:$0xff] %v3561_v33  ;;  %v2326_v9 = vld [vmem:[%s4016_s3 + $0x90] sm:$0xff] }
 0x162   : > { %1083 = vmatmul.f32.gmra.mxu0 %v3103_v31  ;;  %2424 = vperm.xlu0 %2671, %v2326_v9  }
 0x163   : > { %1539 = vmatmul.f32.gmra.mxu3 %v3103_v31  ;;  %v3555_v16 = vadd.f32 %v990_v0, %v827_v12  ;;  %1383 = vmatmul.f32.gmra.mxu2 %v3147_v32  ;;  %v3569_v0 = vpop.permute.xlu0 %2334  ;;  %v3584_v13 = vpop.permute.xlu2 %2257 }
 0x164   : > { %4216 = vst [vmem:[#allocation93_spill] sm:$0xff] %v3569_v0 }
 0x165   : > { %4217 = vst [vmem:[#allocation94_spill] sm:$0xff] %v3584_v13 }
 0x166   : > { %v1476_v46 = vpop.f32.mrf.mxu3  ;;  %v1136_v8 = vpop.f32.mrf.mxu1 }
 0x167   : > { %v1024_v37 = vpop.f32.mrf.mxu0  ;;  %v1137_v1 = vadd.f32 %v1136_v8, %v1021_v26  ;;  %v1256_v45 = vpop.f32.mrf.mxu2 }
 0x168   : > { %v3567_v12 = vadd.f32 %v1476_v46, %v1256_v45  ;;  %v1025_v9 = vadd.f32 %v1024_v37, %v3226_v43  ;;  %v4219_v37 = vld [vmem:[#allocation56_spill] sm:$0xff] }
 0x169   : > { %1199 = vmatmul.f32.gmra.mxu1 %v3103_v31  ;;  %v2260_v3 = vmul.f32 %v3426_v28, %v1137_v1  ;;  %v2327_v28 = vld [vmem:[%s4016_s3 + $0x98] sm:$0xff] }
 0x16a   : > { %4215 = vst [vmem:[#allocation92_spill] sm:$0xff] %v3567_v12  ;;  %1087 = vmatmul.f32.gmra.mxu0 %v3127_v22  ;;  %2429 = vperm.xlu1 %2672, %v2327_v28  }
 0x16b   : > { %1543 = vmatmul.f32.gmra.mxu3 %v3127_v22  ;;  %v2452_v32 = vadd.f32 %v3569_v0, %v2260_v3  ;;  %1391 = vmatmul.f32.gmra.mxu2 %v3173_v41  ;;  %v3591_v3 = vpop.permute.xlu1 %2339  ;;  %v2325_v0 = vld [vmem:[%s4016_s3 + $0x88] sm:$0xff] }
 0x16c   : > { %4218 = vst [vmem:[#allocation95_spill] sm:$0xff] %v3591_v3  ;;  %2419 = vperm.xlu2 %2673, %v2325_v0  }
 0x16d   : > { %2500 = vst [vmem:[%s3577_s25] sm:$0xff] %v2452_v32 }
 0x16e   : > { %v1480_v45 = vpop.f32.mrf.mxu3  ;;  %v1140_v46 = vpop.f32.mrf.mxu1 }
 0x16f   : > { %v1028_v26 = vpop.f32.mrf.mxu0  ;;  %v1141_v8 = vadd.f32 %v1140_v46, %v1025_v9  ;;  %v1264_v1 = vpop.f32.mrf.mxu2 }
 0x170   : > { %v3589_v12 = vadd.f32 %v1480_v45, %v1264_v1  ;;  %v1029_v32 = vadd.f32 %v1028_v26, %v4219_v37 }
 0x171   : > { %1203 = vmatmul.f32.gmra.mxu1 %v3127_v22  ;;  %v2262_v41 = vmul.f32 %v3444_v17, %v1141_v8  ;;  %v3606_v17 = vpop.permute.xlu2 %2344 }
 0x172   : > { %1091 = vmatmul.f32.gmra.mxu0 %v3152_v5 }
 0x173   : > { %1547 = vmatmul.f32.gmra.mxu3 %v3152_v5  ;;  %v2454_v43 = vadd.f32 %v3591_v3, %v2262_v41  ;;  %1399 = vmatmul.f32.gmra.mxu2 %v3201_v62  ;;  %v4220_v41 = vld [vmem:[#allocation49_spill] sm:$0xff]  ;;  %v2329_v3 = vld [vmem:[%s4016_s3 + $0xa8] sm:$0xff] }
 0x174   : > { %2439 = vperm.xlu0 %2671, %v2329_v3  }
 0x175   : > { %2502 = vst [vmem:[%s3577_s25 + $0x10] sm:$0xff] %v2454_v43  ;;  %v4221_v43 = vld [vmem:[#allocation53_spill] sm:$0xff] }
 0x176   : > { %v1484_v9 = vpop.f32.mrf.mxu3  ;;  %v1144_v46 = vpop.f32.mrf.mxu1 }
 0x177   : > { %v1032_v45 = vpop.f32.mrf.mxu0  ;;  %v1145_v28 = vadd.f32 %v1144_v46, %v1029_v32  ;;  %v1272_v1 = vpop.f32.mrf.mxu2 }
 0x178   : > { %v3604_v8 = vadd.f32 %v1484_v9, %v1272_v1  ;;  %v1033_v37 = vadd.f32 %v1032_v45, %v3285_v48 }
 0x179   : > { %1207 = vmatmul.f32.gmra.mxu1 %v3152_v5  ;;  %v2264_v62 = vmul.f32 %v3437_v27, %v1145_v28  ;;  %v3621_v27 = vpop.permute.xlu0 %2349 }
 0x17a   : > { %1095 = vmatmul.f32.gmra.mxu0 %v4220_v41 }
 0x17b   : > { %1551 = vmatmul.f32.gmra.mxu3 %v4220_v41  ;;  %v2456_v26 = vadd.f32 %v3606_v17, %v2264_v62  ;;  %1407 = vmatmul.f32.gmra.mxu2 %v4221_v43  ;;  %v4222_v62 = vld [vmem:[#allocation57_spill] sm:$0xff] }
 0x17d   : > { %2504 = vst [vmem:[%s3577_s25 + $0x20] sm:$0xff] %v2456_v26 }
 0x17e   : > { %v1488_v32 = vpop.f32.mrf.mxu3  ;;  %v1148_v46 = vpop.f32.mrf.mxu1 }
 0x17f   : > { %v1036_v9 = vpop.f32.mrf.mxu0  ;;  %v1149_v0 = vadd.f32 %v1148_v46, %v1033_v37  ;;  %v1280_v1 = vpop.f32.mrf.mxu2 }
 0x180   : > { %v3619_v28 = vadd.f32 %v1488_v32, %v1280_v1  ;;  %v1037_v26 = vadd.f32 %v1036_v9, %v3312_v40  ;;  %v2330_v1 = vld [vmem:[%s4016_s3 + $0xb0] sm:$0xff] }
 0x181   : > { %1211 = vmatmul.f32.gmra.mxu1 %v4220_v41  ;;  %v2266_v48 = vmul.f32 %v3457_v6, %v1149_v0  ;;  %v3636_v6 = vpop.permute.xlu1 %2354  ;;  %2444 = vperm.xlu1 %2672, %v2330_v1   ;;  %v2328_v1 = vld [vmem:[%s4016_s3 + $0xa0] sm:$0xff] }
 0x182   : > { %1099 = vmatmul.f32.gmra.mxu0 %v3206_v51  ;;  %4223 = vst [vmem:[#allocation56_spill] sm:$0xff] %v3636_v6  ;;  %2434 = vperm.xlu2 %2673, %v2328_v1  }
 0x183   : > { %1555 = vmatmul.f32.gmra.mxu3 %v3206_v51  ;;  %v2458_v45 = vadd.f32 %v3621_v27, %v2266_v48  ;;  %1415 = vmatmul.f32.gmra.mxu2 %v4222_v62  ;;  %v4224_v48 = vld [vmem:[#allocation60_spill] sm:$0xff] }
 0x185   : > { %2506 = vst [vmem:[%s3577_s25 + $0x30] sm:$0xff] %v2458_v45 }
 0x186   : > { %v1492_v43 = vpop.f32.mrf.mxu3  ;;  %v1152_v32 = vpop.f32.mrf.mxu1 }
 0x187   : > { %v1040_v37 = vpop.f32.mrf.mxu0  ;;  %v1153_v3 = vadd.f32 %v1152_v32, %v1037_v26  ;;  %v1288_v46 = vpop.f32.mrf.mxu2 }
 0x188   : > { %v3634_v0 = vadd.f32 %v1492_v43, %v1288_v46  ;;  %v1041_v45 = vadd.f32 %v1040_v37, %v3334_v39 }
 0x189   : > { %1215 = vmatmul.f32.gmra.mxu1 %v3206_v51  ;;  %v2268_v40 = vmul.f32 %v3450_v30, %v1153_v3  ;;  %v3651_v30 = vpop.permute.xlu2 %2359 }
 0x18a   : > { %1103 = vmatmul.f32.gmra.mxu0 %v3234_v36 }
 0x18b   : > { %1559 = vmatmul.f32.gmra.mxu3 %v3234_v36  ;;  %v2460_v9 = vadd.f32 %v3636_v6, %v2268_v40  ;;  %1423 = vmatmul.f32.gmra.mxu2 %v4224_v48  ;;  %v4225_v40 = vld [vmem:[#allocation63_spill] sm:$0xff]  ;;  %v3663_v6 = vpop.permute.xlu0 %2364 }
 0x18d   : > { %2508 = vst [vmem:[%s3577_s25 + $0x40] sm:$0xff] %v2460_v9 }
 0x18e   : > { %v1496_v62 = vpop.f32.mrf.mxu3  ;;  %v1156_v43 = vpop.f32.mrf.mxu1 }
 0x18f   : > { %v1044_v26 = vpop.f32.mrf.mxu0  ;;  %v1157_v32 = vadd.f32 %v1156_v43, %v1041_v45  ;;  %v1296_v46 = vpop.f32.mrf.mxu2 }
 0x190   : > { %v3649_v3 = vadd.f32 %v1496_v62, %v1296_v46  ;;  %v1045_v9 = vadd.f32 %v1044_v26, %v3351_v29 }
 0x191   : > { %1219 = vmatmul.f32.gmra.mxu1 %v3234_v36  ;;  %v2270_v39 = vmul.f32 %v3470_v21, %v1157_v32 }
 0x192   : > { %1107 = vmatmul.f32.gmra.mxu0 %v3262_v7 }
 0x193   : > { %1563 = vmatmul.f32.gmra.mxu3 %v3262_v7  ;;  %v2462_v37 = vadd.f32 %v3651_v30, %v2270_v39  ;;  %1431 = vmatmul.f32.gmra.mxu2 %v4225_v40 }
 0x195   : > { %2510 = vst [vmem:[%s3577_s25 + $0x50] sm:$0xff] %v2462_v37 }
 0x196   : > { %v1500_v48 = vpop.f32.mrf.mxu3  ;;  %v1160_v62 = vpop.f32.mrf.mxu1 }
 0x197   : > { %v1048_v45 = vpop.f32.mrf.mxu0  ;;  %v1161_v43 = vadd.f32 %v1160_v62, %v1045_v9  ;;  %v1304_v46 = vpop.f32.mrf.mxu2 }
 0x198   : > { %v3661_v1 = vadd.f32 %v1500_v48, %v1304_v46  ;;  %v1049_v26 = vadd.f32 %v1048_v45, %v3363_v10  ;;  %v3675_v46 = vpop.permute.xlu1 %2369 }
 0x199   : > { %1223 = vmatmul.f32.gmra.mxu1 %v3262_v7  ;;  %v2272_v32 = vmul.f32 %v3463_v55, %v1161_v43  ;;  %v4226_v43 = vld [vmem:[#allocation2_spill] sm:$0xff] }
 0x19a   : > { %1111 = vmatmul.f32.gmra.mxu0 %v3293_v59 }
 0x19b   : > { %1567 = vmatmul.f32.gmra.mxu3 %v3293_v59  ;;  %v2464_v29 = vadd.f32 %v3663_v6, %v2272_v32  ;;  %1439 = vmatmul.f32.gmra.mxu2 %v3337_v35 }
 0x19d   : > { %2512 = vst [vmem:[%s3577_s25 + $0x60] sm:$0xff] %v2464_v29 }
 0x19e   : > { %v1504_v39 = vpop.f32.mrf.mxu3  ;;  %v1164_v40 = vpop.f32.mrf.mxu1 }
 0x19f   : > { %v1052_v37 = vpop.f32.mrf.mxu0  ;;  %v1165_v9 = vadd.f32 %v1164_v40, %v1049_v26  ;;  %v1312_v48 = vpop.f32.mrf.mxu2 }
 0x1a0   : > { %v3673_v62 = vadd.f32 %v1504_v39, %v1312_v48  ;;  %v1053_v10 = vadd.f32 %v1052_v37, %v3372_v18  ;;  %v2331_v48 = vld [vmem:[%s4016_s3 + $0xb8] sm:$0xff] }
 0x1a1   : > { %1227 = vmatmul.f32.gmra.mxu1 %v3293_v59  ;;  %v2274_v32 = vmul.f32 %v3476_v34, %v1165_v9  ;;  %2449 = vperm.xlu2 %2673, %v2331_v48  }
 0x1a2   : > { %1595 = vmatmul.f32.vlgmr.msra.gmra.mxu0 %v4226_v43  ;;  %v3690_v43 = vpop.permute.xlu2 %2374 }
 0x1a3   : > { %2020 = vmatmul.f32.vlgmr.msra.gmra.mxu3 %v2760_v2  ;;  %v2466_v35 = vadd.f32 %v3675_v46, %v2274_v32  ;;  %1904 = vmatmul.f32.vlgmr.msra.gmra.mxu2 %v2760_v2  ;;  %v4227_v32 = vld [vmem:[#allocation4_spill] sm:$0xff]  ;;  %v4228_v2 = vld [vmem:[#allocation3_spill] sm:$0xff] }
 0x1a5   : > { %2514 = vst [vmem:[%s3577_s25 + $0x70] sm:$0xff] %v2466_v35 }
 0x1a6   : > { %v1508_v45 = vpop.f32.mrf.mxu3  ;;  %v1168_v26 = vpop.f32.mrf.mxu1 }
 0x1a7   : > { %v1056_v29 = vpop.f32.mrf.mxu0  ;;  %v1169_v39 = vadd.f32 %v1168_v26, %v1053_v10  ;;  %v1320_v40 = vpop.f32.mrf.mxu2 }
 0x1a8   : > { %v3688_v9 = vadd.f32 %v1508_v45, %v1320_v40  ;;  %v1057_v35 = vadd.f32 %v1056_v29, %v3384_v47 }
 0x1a9   : > { %1736 = vmatmul.f32.vlgmr.msra.gmra.mxu1 %v4228_v2  ;;  %v2276_v18 = vmul.f32 %v3489_v23, %v1169_v39  ;;  %v3702_v2 = vpop.permute.xlu0 %2379  ;;  %v4229_v39 = vld [vmem:[#allocation6_spill] sm:$0xff]  ;;  %v4230_v23 = vld [vmem:[#allocation5_spill] sm:$0xff] }
 0x1aa   : > { %1600 = vmatmul.f32.gmra.mxu0 %v4227_v32 }
 0x1ab   : > { %2024 = vmatmul.f32.gmra.mxu3 %v2782_v11  ;;  %v2468_v37 = vadd.f32 %v3690_v43, %v2276_v18  ;;  %1908 = vmatmul.f32.gmra.mxu2 %v2782_v11 }
 0x1ad   : > { %2516 = vst [vmem:[%s3577_s25 + $0x80] sm:$0xff] %v2468_v37 }
 0x1ae   : > { %v1512_v10 = vpop.f32.mrf.mxu3  ;;  %v1172_v26 = vpop.f32.mrf.mxu1 }
 0x1af   : > { %v1060_v45 = vpop.f32.mrf.mxu0  ;;  %v1173_v40 = vadd.f32 %v1172_v26, %v1057_v35  ;;  %v1328_v48 = vpop.f32.mrf.mxu2 }
 0x1b0   : > { %v3700_v32 = vadd.f32 %v1512_v10, %v1328_v48  ;;  %v1061_v47 = vadd.f32 %v1060_v45, %v3396_v54 }
 0x1b1   : > { %1742 = vmatmul.f32.gmra.mxu1 %v4230_v23  ;;  %v2278_v18 = vmul.f32 %v3478_v52, %v1173_v40  ;;  %v3714_v23 = vpop.permute.xlu1 %2384  ;;  %v4231_v40 = vld [vmem:[#allocation8_spill] sm:$0xff] }
 0x1b2   : > { %1605 = vmatmul.f32.gmra.mxu0 %v4229_v39  ;;  %v4232_v39 = vld [vmem:[#allocation7_spill] sm:$0xff] }
 0x1b3   : > { %2028 = vmatmul.f32.gmra.mxu3 %v2793_v24  ;;  %v2470_v11 = vadd.f32 %v3702_v2, %v2278_v18  ;;  %1912 = vmatmul.f32.gmra.mxu2 %v2793_v24 }
 0x1b5   : > { %2518 = vst [vmem:[%s3577_s25 + $0x90] sm:$0xff] %v2470_v11 }
 0x1b6   : > { %v1516_v29 = vpop.f32.mrf.mxu3  ;;  %v1176_v35 = vpop.f32.mrf.mxu1 }
 0x1b7   : > { %v1064_v37 = vpop.f32.mrf.mxu0  ;;  %v1177_v10 = vadd.f32 %v1176_v35, %v1061_v47  ;;  %v1336_v26 = vpop.f32.mrf.mxu2 }
 0x1b8   : > { %v3712_v48 = vadd.f32 %v1516_v29, %v1336_v26  ;;  %v1065_v54 = vadd.f32 %v1064_v37, %v3405_v4 }
 0x1b9   : > { %1748 = vmatmul.f32.gmra.mxu1 %v4232_v39  ;;  %v2280_v18 = vmul.f32 %v3491_v57, %v1177_v10  ;;  %v4233_v10 = vld [vmem:[#allocation10_spill] sm:$0xff]  ;;  %v4234_v39 = vld [vmem:[#allocation9_spill] sm:$0xff] }
 0x1ba   : > { %1610 = vmatmul.f32.gmra.mxu0 %v4231_v40  ;;  %v3726_v40 = vpop.permute.xlu2 %2389 }
 0x1bb   : > { %2032 = vmatmul.f32.gmra.mxu3 %v2827_v49  ;;  %v2472_v24 = vadd.f32 %v3714_v23, %v2280_v18  ;;  %1916 = vmatmul.f32.gmra.mxu2 %v2827_v49 }
 0x1bd   : > { %2520 = vst [vmem:[%s3577_s25 + $0xa0] sm:$0xff] %v2472_v24 }
 0x1be   : > { %v1520_v45 = vpop.f32.mrf.mxu3  ;;  %v1180_v47 = vpop.f32.mrf.mxu1 }
 0x1bf   : > { %v1068_v11 = vpop.f32.mrf.mxu0  ;;  %v1181_v29 = vadd.f32 %v1180_v47, %v1065_v54  ;;  %v1344_v35 = vpop.f32.mrf.mxu2 }
 0x1c0   : > { %v3724_v26 = vadd.f32 %v1520_v45, %v1344_v35  ;;  %v1069_v4 = vadd.f32 %v1068_v11, %v3414_v25  ;;  %v4238_v25 = vld [vmem:[#allocation65_spill] sm:$0xff] }
 0x1c1   : > { %1754 = vmatmul.f32.gmra.mxu1 %v4234_v39  ;;  %v2282_v18 = vmul.f32 %v3504_v14, %v1181_v29  ;;  %v4236_v29 = vld [vmem:[#allocation12_spill] sm:$0xff]  ;;  %v4237_v39 = vld [vmem:[#allocation11_spill] sm:$0xff] }
 0x1c2   : > { %1615 = vmatmul.f32.gmra.mxu0 %v4233_v10  ;;  %v3738_v10 = vpop.permute.xlu0 %2394 }
 0x1c3   : > { %2036 = vmatmul.f32.gmra.mxu3 %v2848_v56  ;;  %v2474_v49 = vadd.f32 %v3726_v40, %v2282_v18  ;;  %1920 = vmatmul.f32.gmra.mxu2 %v2848_v56  ;;  %4235 = vst [vmem:[#allocation49_spill] sm:$0xff] %v3738_v10 }
 0x1c5   : > { %2522 = vst [vmem:[%s3577_s25 + $0xb0] sm:$0xff] %v2474_v49 }
 0x1c6   : > { %v1524_v37 = vpop.f32.mrf.mxu3  ;;  %v1184_v54 = vpop.f32.mrf.mxu1 }
 0x1c7   : > { %v1072_v24 = vpop.f32.mrf.mxu0  ;;  %v1185_v45 = vadd.f32 %v1184_v54, %v1069_v4  ;;  %v1352_v47 = vpop.f32.mrf.mxu2 }
 0x1c8   : > { %v3736_v35 = vadd.f32 %v1524_v37, %v1352_v47  ;;  %v1073_v11 = vadd.f32 %v1072_v24, %v4238_v25 }
 0x1c9   : > { %1760 = vmatmul.f32.gmra.mxu1 %v4237_v39  ;;  %v2284_v18 = vmul.f32 %v3493_v44, %v1185_v45  ;;  %v3750_v39 = vpop.permute.xlu1 %2399  ;;  %v4240_v45 = vld [vmem:[#allocation15_spill] sm:$0xff]  ;;  %v4241_v44 = vld [vmem:[#allocation13_spill] sm:$0xff] }
 0x1ca   : > { %1620 = vmatmul.f32.gmra.mxu0 %v4236_v29  ;;  %4239 = vst [vmem:[#allocation53_spill] sm:$0xff] %v3750_v39 }
 0x1cb   : > { %2040 = vmatmul.f32.gmra.mxu3 %v2869_v63  ;;  %v2476_v56 = vadd.f32 %v3738_v10, %v2284_v18  ;;  %1924 = vmatmul.f32.gmra.mxu2 %v2869_v63  ;;  %v4242_v63 = vld [vmem:[#allocation14_spill] sm:$0xff] }
 0x1cd   : > { %2524 = vst [vmem:[%s3577_s25 + $0xc0] sm:$0xff] %v2476_v56  ;;  %v4243_v56 = vld [vmem:[#allocation67_spill] sm:$0xff] }
 0x1ce   : > { %v1528_v49 = vpop.f32.mrf.mxu3  ;;  %v1188_v37 = vpop.f32.mrf.mxu1 }
 0x1cf   : > { %v1076_v4 = vpop.f32.mrf.mxu0  ;;  %v1189_v54 = vadd.f32 %v1188_v37, %v1073_v11  ;;  %v1360_v47 = vpop.f32.mrf.mxu2 }
 0x1d0   : > { %v3748_v29 = vadd.f32 %v1528_v49, %v1360_v47  ;;  %v1077_v25 = vadd.f32 %v1076_v4, %v4243_v56 }
 0x1d1   : > { %1766 = vmatmul.f32.gmra.mxu1 %v4241_v44  ;;  %v2286_v18 = vmul.f32 %v3506_v61, %v1189_v54  ;;  %v3762_v44 = vpop.permute.xlu2 %2404  ;;  %v4245_v54 = vld [vmem:[#allocation18_spill] sm:$0xff]  ;;  %v4246_v61 = vld [vmem:[#allocation16_spill] sm:$0xff] }
 0x1d2   : > { %1625 = vmatmul.f32.gmra.mxu0 %v4240_v45  ;;  %4244 = vst [vmem:[#allocation57_spill] sm:$0xff] %v3762_v44 }
 0x1d3   : > { %2044 = vmatmul.f32.gmra.mxu3 %v4242_v63  ;;  %v2478_v24 = vadd.f32 %v3750_v39, %v2286_v18  ;;  %1928 = vmatmul.f32.gmra.mxu2 %v4242_v63  ;;  %v4247_v63 = vld [vmem:[#allocation17_spill] sm:$0xff] }
 0x1d5   : > { %2526 = vst [vmem:[%s3577_s25 + $0xd0] sm:$0xff] %v2478_v24  ;;  %v4248_v24 = vld [vmem:[#allocation70_spill] sm:$0xff] }
 0x1d6   : > { %v1532_v11 = vpop.f32.mrf.mxu3  ;;  %v1192_v37 = vpop.f32.mrf.mxu1 }
 0x1d7   : > { %v1080_v49 = vpop.f32.mrf.mxu0  ;;  %v1193_v47 = vadd.f32 %v1192_v37, %v1077_v25  ;;  %v1368_v10 = vpop.f32.mrf.mxu2 }
 0x1d8   : > { %v3760_v45 = vadd.f32 %v1532_v11, %v1368_v10  ;;  %v1081_v56 = vadd.f32 %v1080_v49, %v4248_v24 }
 0x1d9   : > { %1772 = vmatmul.f32.gmra.mxu1 %v4246_v61  ;;  %v2288_v18 = vmul.f32 %v3519_v20, %v1193_v47  ;;  %v3774_v61 = vpop.permute.xlu0 %2409  ;;  %v4250_v47 = vld [vmem:[#allocation21_spill] sm:$0xff]  ;;  %v4251_v20 = vld [vmem:[#allocation19_spill] sm:$0xff] }
 0x1da   : > { %1630 = vmatmul.f32.gmra.mxu0 %v4245_v54  ;;  %4249 = vst [vmem:[#allocation60_spill] sm:$0xff] %v3774_v61 }
 0x1db   : > { %2048 = vmatmul.f32.gmra.mxu3 %v4247_v63  ;;  %v2480_v4 = vadd.f32 %v3762_v44, %v2288_v18  ;;  %1932 = vmatmul.f32.gmra.mxu2 %v4247_v63  ;;  %v4252_v63 = vld [vmem:[#allocation20_spill] sm:$0xff] }
 0x1dd   : > { %2528 = vst [vmem:[%s3577_s25 + $0xe0] sm:$0xff] %v2480_v4  ;;  %v4253_v4 = vld [vmem:[#allocation73_spill] sm:$0xff] }
 0x1de   : > { %v1536_v10 = vpop.f32.mrf.mxu3  ;;  %v1196_v11 = vpop.f32.mrf.mxu1 }
 0x1df   : > { %v1084_v25 = vpop.f32.mrf.mxu0  ;;  %v1197_v37 = vadd.f32 %v1196_v11, %v1081_v56  ;;  %v1376_v39 = vpop.f32.mrf.mxu2 }
 0x1e0   : > { %v3772_v54 = vadd.f32 %v1536_v10, %v1376_v39  ;;  %v1085_v24 = vadd.f32 %v1084_v25, %v4253_v4 }
 0x1e1   : > { %1778 = vmatmul.f32.gmra.mxu1 %v4251_v20  ;;  %v2290_v18 = vmul.f32 %v3513_v50, %v1197_v37  ;;  %v3786_v20 = vpop.permute.xlu1 %2414  ;;  %v4255_v37 = vld [vmem:[#allocation24_spill] sm:$0xff]  ;;  %v4256_v50 = vld [vmem:[#allocation22_spill] sm:$0xff] }
 0x1e2   : > { %1635 = vmatmul.f32.gmra.mxu0 %v4250_v47  ;;  %4254 = vst [vmem:[#allocation63_spill] sm:$0xff] %v3786_v20 }
 0x1e3   : > { %2052 = vmatmul.f32.gmra.mxu3 %v4252_v63  ;;  %v2482_v49 = vadd.f32 %v3774_v61, %v2290_v18  ;;  %1936 = vmatmul.f32.gmra.mxu2 %v4252_v63  ;;  %v4257_v63 = vld [vmem:[#allocation23_spill] sm:$0xff] }
 0x1e5   : > { %2530 = vst [vmem:[%s3577_s25 + $0xf0] sm:$0xff] %v2482_v49  ;;  %v4258_v49 = vld [vmem:[#allocation74_spill] sm:$0xff] }
 0x1e6   : > { %v1540_v39 = vpop.f32.mrf.mxu3  ;;  %v1200_v10 = vpop.f32.mrf.mxu1 }
 0x1e7   : > { %v1088_v56 = vpop.f32.mrf.mxu0  ;;  %v1201_v11 = vadd.f32 %v1200_v10, %v1085_v24  ;;  %v1384_v44 = vpop.f32.mrf.mxu2 }
 0x1e8   : > { %v3784_v47 = vadd.f32 %v1540_v39, %v1384_v44  ;;  %v1089_v4 = vadd.f32 %v1088_v56, %v4258_v49 }
 0x1e9   : > { %1784 = vmatmul.f32.gmra.mxu1 %v4256_v50  ;;  %v2292_v18 = vmul.f32 %v3526_v58, %v1201_v11  ;;  %v3798_v50 = vpop.permute.xlu2 %2419  ;;  %v4260_v11 = vld [vmem:[#allocation27_spill] sm:$0xff]  ;;  %v4261_v58 = vld [vmem:[#allocation25_spill] sm:$0xff] }
 0x1ea   : > { %1640 = vmatmul.f32.gmra.mxu0 %v4255_v37  ;;  %4259 = vst [vmem:[#allocation2_spill] sm:$0xff] %v3798_v50 }
 0x1eb   : > { %2056 = vmatmul.f32.gmra.mxu3 %v4257_v63  ;;  %v2484_v25 = vadd.f32 %v3786_v20, %v2292_v18  ;;  %1940 = vmatmul.f32.gmra.mxu2 %v4257_v63  ;;  %v4262_v63 = vld [vmem:[#allocation26_spill] sm:$0xff] }
 0x1ed   : > { %2532 = vst [vmem:[%s3577_s25 + $0x100] sm:$0xff] %v2484_v25  ;;  %v4263_v25 = vld [vmem:[#allocation75_spill] sm:$0xff] }
 0x1ee   : > { %v1544_v44 = vpop.f32.mrf.mxu3  ;;  %v1204_v39 = vpop.f32.mrf.mxu1 }
 0x1ef   : > { %v1092_v24 = vpop.f32.mrf.mxu0  ;;  %v1205_v10 = vadd.f32 %v1204_v39, %v1089_v4  ;;  %v1392_v61 = vpop.f32.mrf.mxu2 }
 0x1f0   : > { %v3796_v37 = vadd.f32 %v1544_v44, %v1392_v61  ;;  %v1093_v49 = vadd.f32 %v1092_v24, %v4263_v25 }
 0x1f1   : > { %1790 = vmatmul.f32.gmra.mxu1 %v4261_v58  ;;  %v2294_v18 = vmul.f32 %v3539_v38, %v1205_v10  ;;  %v3810_v58 = vpop.permute.xlu0 %2424  ;;  %v4264_v10 = vld [vmem:[#allocation30_spill] sm:$0xff]  ;;  %v4265_v38 = vld [vmem:[#allocation28_spill] sm:$0xff] }
 0x1f2   : > { %1645 = vmatmul.f32.gmra.mxu0 %v4260_v11 }
 0x1f3   : > { %2060 = vmatmul.f32.gmra.mxu3 %v4262_v63  ;;  %v2486_v56 = vadd.f32 %v3798_v50, %v2294_v18  ;;  %1944 = vmatmul.f32.gmra.mxu2 %v4262_v63  ;;  %v4266_v63 = vld [vmem:[#allocation29_spill] sm:$0xff] }
 0x1f5   : > { %2534 = vst [vmem:[%s3577_s25 + $0x110] sm:$0xff] %v2486_v56  ;;  %v4267_v56 = vld [vmem:[#allocation78_spill] sm:$0xff] }
 0x1f6   : > { %v1548_v61 = vpop.f32.mrf.mxu3  ;;  %v1208_v44 = vpop.f32.mrf.mxu1 }
 0x1f7   : > { %v1096_v4 = vpop.f32.mrf.mxu0  ;;  %v1209_v39 = vadd.f32 %v1208_v44, %v1093_v49  ;;  %v1400_v20 = vpop.f32.mrf.mxu2 }
 0x1f8   : > { %v3808_v11 = vadd.f32 %v1548_v61, %v1400_v20  ;;  %v1097_v25 = vadd.f32 %v1096_v4, %v4267_v56 }
 0x1f9   : > { %1796 = vmatmul.f32.gmra.mxu1 %v4265_v38  ;;  %v2296_v18 = vmul.f32 %v3532_v53, %v1209_v39  ;;  %v3822_v38 = vpop.permute.xlu1 %2429  ;;  %v4269_v39 = vld [vmem:[#allocation32_spill] sm:$0xff]  ;;  %v4270_v53 = vld [vmem:[#allocation31_spill] sm:$0xff] }
 0x1fa   : > { %1650 = vmatmul.f32.gmra.mxu0 %v4264_v10  ;;  %4268 = vst [vmem:[#allocation4_spill] sm:$0xff] %v3822_v38 }
 0x1fb   : > { %2064 = vmatmul.f32.gmra.mxu3 %v4266_v63  ;;  %v2488_v24 = vadd.f32 %v3810_v58, %v2296_v18  ;;  %1948 = vmatmul.f32.gmra.mxu2 %v4266_v63  ;;  %v4271_v63 = vld [vmem:[#allocation81_spill] sm:$0xff] }
 0x1fd   : > { %2536 = vst [vmem:[%s3577_s25 + $0x120] sm:$0xff] %v2488_v24 }
 0x1fe   : > { %v1552_v20 = vpop.f32.mrf.mxu3  ;;  %v1212_v61 = vpop.f32.mrf.mxu1 }
 0x1ff   : > { %v1100_v49 = vpop.f32.mrf.mxu0  ;;  %v1213_v44 = vadd.f32 %v1212_v61, %v1097_v25  ;;  %v1408_v50 = vpop.f32.mrf.mxu2 }
 0x200   : > { %v3820_v10 = vadd.f32 %v1552_v20, %v1408_v50  ;;  %v1101_v24 = vadd.f32 %v1100_v49, %v4271_v63 }
 0x201   : > { %1802 = vmatmul.f32.gmra.mxu1 %v4270_v53  ;;  %v2298_v18 = vmul.f32 %v3545_v15, %v1213_v44  ;;  %v3834_v53 = vpop.permute.xlu2 %2434  ;;  %v4273_v44 = vld [vmem:[#allocation35_spill] sm:$0xff]  ;;  %v4274_v15 = vld [vmem:[#allocation33_spill] sm:$0xff] }
 0x202   : > { %1655 = vmatmul.f32.gmra.mxu0 %v4269_v39  ;;  %4272 = vst [vmem:[#allocation3_spill] sm:$0xff] %v3834_v53 }
 0x203   : > { %2068 = vmatmul.f32.gmra.mxu3 %v3022_v42  ;;  %v2490_v4 = vadd.f32 %v3822_v38, %v2298_v18  ;;  %1952 = vmatmul.f32.gmra.mxu2 %v3022_v42  ;;  %v4275_v42 = vld [vmem:[#allocation34_spill] sm:$0xff] }
 0x205   : > { %2538 = vst [vmem:[%s3577_s25 + $0x130] sm:$0xff] %v2490_v4  ;;  %v4276_v4 = vld [vmem:[#allocation84_spill] sm:$0xff] }
 0x206   : > { %v1556_v50 = vpop.f32.mrf.mxu3  ;;  %v1216_v25 = vpop.f32.mrf.mxu1 }
 0x207   : > { %v1104_v56 = vpop.f32.mrf.mxu0  ;;  %v1217_v20 = vadd.f32 %v1216_v25, %v1101_v24  ;;  %v1416_v61 = vpop.f32.mrf.mxu2 }
 0x208   : > { %v3832_v39 = vadd.f32 %v1556_v50, %v1416_v61  ;;  %v1105_v63 = vadd.f32 %v1104_v56, %v4276_v4 }
 0x209   : > { %1808 = vmatmul.f32.gmra.mxu1 %v4274_v15  ;;  %v2300_v18 = vmul.f32 %v3558_v19, %v1217_v20  ;;  %v3846_v15 = vpop.permute.xlu0 %2439  ;;  %v4277_v20 = vld [vmem:[#allocation38_spill] sm:$0xff]  ;;  %v4278_v19 = vld [vmem:[#allocation36_spill] sm:$0xff] }
 0x20a   : > { %1660 = vmatmul.f32.gmra.mxu0 %v4273_v44 }
 0x20b   : > { %2072 = vmatmul.f32.gmra.mxu3 %v4275_v42  ;;  %v2492_v49 = vadd.f32 %v3834_v53, %v2300_v18  ;;  %1956 = vmatmul.f32.gmra.mxu2 %v4275_v42  ;;  %v4279_v42 = vld [vmem:[#allocation37_spill] sm:$0xff] }
 0x20d   : > { %2540 = vst [vmem:[%s3577_s25 + $0x140] sm:$0xff] %v2492_v49  ;;  %v4280_v49 = vld [vmem:[#allocation87_spill] sm:$0xff] }
 0x20e   : > { %v1560_v24 = vpop.f32.mrf.mxu3  ;;  %v1220_v25 = vpop.f32.mrf.mxu1 }
 0x20f   : > { %v1108_v50 = vpop.f32.mrf.mxu0  ;;  %v1221_v61 = vadd.f32 %v1220_v25, %v1105_v63  ;;  %v1424_v38 = vpop.f32.mrf.mxu2 }
 0x210   : > { %v3844_v44 = vadd.f32 %v1560_v24, %v1424_v38  ;;  %v1109_v4 = vadd.f32 %v1108_v50, %v4280_v49 }
 0x211   : > { %1814 = vmatmul.f32.gmra.mxu1 %v4278_v19  ;;  %v2302_v18 = vmul.f32 %v3547_v60, %v1221_v61  ;;  %v3858_v19 = vpop.permute.xlu1 %2444  ;;  %v4282_v61 = vld [vmem:[#allocation41_spill] sm:$0xff]  ;;  %v4283_v60 = vld [vmem:[#allocation39_spill] sm:$0xff] }
 0x212   : > { %1665 = vmatmul.f32.gmra.mxu0 %v4277_v20  ;;  %4281 = vst [vmem:[#allocation6_spill] sm:$0xff] %v3858_v19 }
 0x213   : > { %2076 = vmatmul.f32.gmra.mxu3 %v4279_v42  ;;  %v2494_v56 = vadd.f32 %v3846_v15, %v2302_v18  ;;  %1960 = vmatmul.f32.gmra.mxu2 %v4279_v42  ;;  %v4284_v42 = vld [vmem:[#allocation40_spill] sm:$0xff] }
 0x215   : > { %2542 = vst [vmem:[%s3577_s25 + $0x150] sm:$0xff] %v2494_v56 }
 0x216   : > { %v1564_v38 = vpop.f32.mrf.mxu3  ;;  %v1224_v24 = vpop.f32.mrf.mxu1 }
 0x217   : > { %v1112_v63 = vpop.f32.mrf.mxu0  ;;  %v1225_v25 = vadd.f32 %v1224_v24, %v1109_v4  ;;  %v1432_v53 = vpop.f32.mrf.mxu2 }
 0x218   : > { %v3856_v20 = vadd.f32 %v1564_v38, %v1432_v53  ;;  %v1113_v56 = vadd.f32 %v1112_v63, %v3555_v16  ;;  %v4288_v63 = vld [vmem:[#allocation92_spill] sm:$0xff] }
 0x219   : > { %1820 = vmatmul.f32.gmra.mxu1 %v4283_v60  ;;  %v2304_v18 = vmul.f32 %v3561_v33, %v1225_v25  ;;  %v3870_v60 = vpop.permute.xlu2 %2449  ;;  %v4286_v25 = vld [vmem:[#allocation43_spill] sm:$0xff]  ;;  %v4287_v33 = vld [vmem:[#allocation42_spill] sm:$0xff] }
 0x21a   : > { %1670 = vmatmul.f32.gmra.mxu0 %v4282_v61  ;;  %4285 = vst [vmem:[#allocation5_spill] sm:$0xff] %v3870_v60 }
 0x21b   : > { %2080 = vmatmul.f32.gmra.mxu3 %v4284_v42  ;;  %v2496_v50 = vadd.f32 %v3858_v19, %v2304_v18  ;;  %1964 = vmatmul.f32.gmra.mxu2 %v4284_v42  ;;  %v4289_v19 = vld [vmem:[#allocation45_spill] sm:$0xff] }
 0x21d   : > { %2544 = vst [vmem:[%s3577_s25 + $0x160] sm:$0xff] %v2496_v50 }
 0x21e   : > { %v1568_v53 = vpop.f32.mrf.mxu3  ;;  %v1228_v49 = vpop.f32.mrf.mxu1 }
 0x21f   : > { %v1596_v4 = vpop.f32.mrf.mxu0  ;;  %v1229_v38 = vadd.f32 %v1228_v49, %v1113_v56  ;;  %v1440_v24 = vpop.f32.mrf.mxu2 }
 0x220   : > { %v3868_v61 = vadd.f32 %v1568_v53, %v1440_v24  ;;  %v1597_v42 = vadd.f32 %v1596_v4, %v4288_v63  ;;  %v4291_v4 = vld [vmem:[#allocation66_spill] sm:$0xff] }
 0x221   : > { %1826 = vmatmul.f32.gmra.mxu1 %v4287_v33  ;;  %v2306_v18 = vmul.f32 %v3584_v13, %v1229_v38  ;;  %v4290_v33 = vld [vmem:[#allocation44_spill] sm:$0xff] }
 0x222   : > { %1675 = vmatmul.f32.gmra.mxu0 %v4286_v25 }
 0x223   : > { %2084 = vmatmul.f32.gmra.mxu3 %v3103_v31  ;;  %v2498_v16 = vadd.f32 %v3870_v60, %v2306_v18  ;;  %1968 = vmatmul.f32.gmra.mxu2 %v3103_v31 }
 0x225   : > { %2546 = vst [vmem:[%s3577_s25 + $0x170] sm:$0xff] %v2498_v16 }
 0x226   : > { %v2021_v50 = vpop.f32.mrf.mxu3  ;;  %v1737_v53 = vpop.f32.mrf.mxu1 }
 0x227   : > { %v1601_v56 = vpop.f32.mrf.mxu0  ;;  %v1738_v49 = vadd.f32 %v1737_v53, %v1597_v42  ;;  %v1905_v24 = vpop.f32.mrf.mxu2  ;;  %v4292_v42 = vld [vmem:[#allocation93_spill] sm:$0xff] }
 0x228   : > { %v1602_v31 = vadd.f32 %v1601_v56, %v3589_v12 }
 0x229   : > { %v1906_v25 = vadd.f32 %v1905_v24, %v1738_v49  ;;  %1832 = vmatmul.f32.gmra.mxu1 %v4290_v33  ;;  %v4293_v24 = vld [vmem:[#allocation47_spill] sm:$0xff]  ;;  %v4294_v33 = vld [vmem:[#allocation46_spill] sm:$0xff] }
 0x22a   : > { %1680 = vmatmul.f32.gmra.mxu0 %v4289_v19 }
 0x22b   : > { %2088 = vmatmul.f32.gmra.mxu3 %v3127_v22  ;;  %v2022_v38 = vadd.f32 %v2021_v50, %v1906_v25  ;;  %1972 = vmatmul.f32.gmra.mxu2 %v3127_v22  ;;  %v4295_v50 = vld [vmem:[#allocation69_spill] sm:$0xff] }
 0x22d   : > { %v2261_v18 = vmul.f32 %v4291_v4, %v2022_v38 }
 0x22e   : > { %v2025_v16 = vpop.f32.mrf.mxu3  ;;  %v1743_v60 = vpop.f32.mrf.mxu1 }
 0x22f   : > { %v1606_v63 = vpop.f32.mrf.mxu0  ;;  %v2453_v53 = vadd.f32 %v4292_v42, %v2261_v18  ;;  %v1744_v13 = vadd.f32 %v1743_v60, %v1602_v31  ;;  %v1909_v49 = vpop.f32.mrf.mxu2  ;;  %v4296_v31 = vld [vmem:[#allocation95_spill] sm:$0xff] }
 0x230   : > { %v1607_v12 = vadd.f32 %v1606_v63, %v3604_v8 }
 0x231   : > { %2501 = vst [vmem:[%s3577_s25 + $0x8] sm:$0xff] %v2453_v53  ;;  %v1910_v19 = vadd.f32 %v1909_v49, %v1744_v13  ;;  %1838 = vmatmul.f32.gmra.mxu1 %v4294_v33  ;;  %v4297_v53 = vld [vmem:[#allocation50_spill] sm:$0xff]  ;;  %v4298_v49 = vld [vmem:[#allocation48_spill] sm:$0xff] }
 0x232   : > { %1685 = vmatmul.f32.gmra.mxu0 %v4293_v24 }
 0x233   : > { %2092 = vmatmul.f32.gmra.mxu3 %v3152_v5  ;;  %v2026_v22 = vadd.f32 %v2025_v16, %v1910_v19  ;;  %1976 = vmatmul.f32.gmra.mxu2 %v3152_v5  ;;  %v4299_v16 = vld [vmem:[#allocation68_spill] sm:$0xff] }
 0x235   : > { %v2263_v56 = vmul.f32 %v4295_v50, %v2026_v22 }
 0x236   : > { %v2029_v25 = vpop.f32.mrf.mxu3  ;;  %v1749_v60 = vpop.f32.mrf.mxu1 }
 0x237   : > { %v1611_v38 = vpop.f32.mrf.mxu0  ;;  %v2455_v4 = vadd.f32 %v4296_v31, %v2263_v56  ;;  %v1750_v18 = vadd.f32 %v1749_v60, %v1607_v12  ;;  %v1913_v13 = vpop.f32.mrf.mxu2  ;;  %v4300_v60 = vld [vmem:[#allocation52_spill] sm:$0xff]  ;;  %v4301_v31 = vld [vmem:[#allocation51_spill] sm:$0xff] }
 0x238   : > { %v1612_v8 = vadd.f32 %v1611_v38, %v3619_v28 }
 0x239   : > { %2503 = vst [vmem:[%s3577_s25 + $0x18] sm:$0xff] %v2455_v4  ;;  %v1914_v42 = vadd.f32 %v1913_v13, %v1750_v18  ;;  %1844 = vmatmul.f32.gmra.mxu1 %v4298_v49 }
 0x23a   : > { %1690 = vmatmul.f32.gmra.mxu0 %v4297_v53 }
 0x23b   : > { %2096 = vmatmul.f32.gmra.mxu3 %v4220_v41  ;;  %v2030_v5 = vadd.f32 %v2029_v25, %v1914_v42  ;;  %1980 = vmatmul.f32.gmra.mxu2 %v4220_v41  ;;  %v4302_v25 = vld [vmem:[#allocation72_spill] sm:$0xff] }
 0x23d   : > { %v2265_v63 = vmul.f32 %v4299_v16, %v2030_v5  ;;  %v4303_v5 = vld [vmem:[#allocation55_spill] sm:$0xff] }
 0x23e   : > { %v2033_v19 = vpop.f32.mrf.mxu3  ;;  %v1755_v33 = vpop.f32.mrf.mxu1  ;;  %v4305_v16 = vld [vmem:[#allocation71_spill] sm:$0xff] }
 0x23f   : > { %v1616_v24 = vpop.f32.mrf.mxu0  ;;  %v2457_v22 = vadd.f32 %v3606_v17, %v2265_v63  ;;  %v1756_v12 = vadd.f32 %v1755_v33, %v1612_v8  ;;  %v1917_v50 = vpop.f32.mrf.mxu2  ;;  %v4304_v8 = vld [vmem:[#allocation54_spill] sm:$0xff]  ;;  %v4306_v33 = vld [vmem:[#allocation56_spill] sm:$0xff] }
 0x240   : > { %v1617_v28 = vadd.f32 %v1616_v24, %v3634_v0 }
 0x241   : > { %2505 = vst [vmem:[%s3577_s25 + $0x28] sm:$0xff] %v2457_v22  ;;  %v1918_v56 = vadd.f32 %v1917_v50, %v1756_v12  ;;  %1850 = vmatmul.f32.gmra.mxu1 %v4301_v31  ;;  %v4308_v31 = vld [vmem:[#allocation58_spill] sm:$0xff] }
 0x242   : > { %1695 = vmatmul.f32.gmra.mxu0 %v4300_v60  ;;  %v4307_v60 = vld [vmem:[#allocation59_spill] sm:$0xff] }
 0x243   : > { %2100 = vmatmul.f32.gmra.mxu3 %v3206_v51  ;;  %v2034_v41 = vadd.f32 %v2033_v19, %v1918_v56  ;;  %1984 = vmatmul.f32.gmra.mxu2 %v3206_v51 }
 0x245   : > { %v2267_v38 = vmul.f32 %v4302_v25, %v2034_v41 }
 0x246   : > { %v2037_v4 = vpop.f32.mrf.mxu3  ;;  %v1761_v18 = vpop.f32.mrf.mxu1 }
 0x247   : > { %v1621_v17 = vpop.f32.mrf.mxu0  ;;  %v2459_v13 = vadd.f32 %v3621_v27, %v2267_v38  ;;  %v1762_v42 = vadd.f32 %v1761_v18, %v1617_v28  ;;  %v1921_v53 = vpop.f32.mrf.mxu2 }
 0x248   : > { %v1622_v0 = vadd.f32 %v1621_v17, %v3649_v3 }
 0x249   : > { %2507 = vst [vmem:[%s3577_s25 + $0x38] sm:$0xff] %v2459_v13  ;;  %v1922_v49 = vadd.f32 %v1921_v53, %v1762_v42  ;;  %1856 = vmatmul.f32.gmra.mxu1 %v4304_v8  ;;  %v4309_v42 = vld [vmem:[#allocation62_spill] sm:$0xff]  ;;  %v4310_v53 = vld [vmem:[#allocation61_spill] sm:$0xff] }
 0x24a   : > { %1700 = vmatmul.f32.gmra.mxu0 %v4303_v5 }
 0x24b   : > { %2104 = vmatmul.f32.gmra.mxu3 %v3234_v36  ;;  %v2038_v51 = vadd.f32 %v2037_v4, %v1922_v49  ;;  %1988 = vmatmul.f32.gmra.mxu2 %v3234_v36 }
 0x24d   : > { %v2269_v63 = vmul.f32 %v4305_v16, %v2038_v51 }
 0x24e   : > { %v2041_v19 = vpop.f32.mrf.mxu3  ;;  %v1767_v24 = vpop.f32.mrf.mxu1 }
 0x24f   : > { %v1626_v27 = vpop.f32.mrf.mxu0  ;;  %v2461_v22 = vadd.f32 %v4306_v33, %v2269_v63  ;;  %v1768_v12 = vadd.f32 %v1767_v24, %v1622_v0  ;;  %v1925_v50 = vpop.f32.mrf.mxu2  ;;  %v4311_v63 = vld [vmem:[#allocation64_spill] sm:$0xff] }
 0x250   : > { %v1627_v3 = vadd.f32 %v1626_v27, %v3661_v1 }
 0x251   : > { %2509 = vst [vmem:[%s3577_s25 + $0x48] sm:$0xff] %v2461_v22  ;;  %v1926_v56 = vadd.f32 %v1925_v50, %v1768_v12  ;;  %1862 = vmatmul.f32.gmra.mxu1 %v4308_v31 }
 0x252   : > { %1705 = vmatmul.f32.gmra.mxu0 %v4307_v60  ;;  %v4312_v60 = vld [vmem:[#allocation76_spill] sm:$0xff] }
 0x253   : > { %2108 = vmatmul.f32.gmra.mxu3 %v3262_v7  ;;  %v2042_v36 = vadd.f32 %v2041_v19, %v1926_v56  ;;  %1992 = vmatmul.f32.gmra.mxu2 %v3262_v7 }
 0x255   : > { %v2271_v41 = vmul.f32 %v3470_v21, %v2042_v36 }
 0x256   : > { %v2045_v28 = vpop.f32.mrf.mxu3  ;;  %v1773_v38 = vpop.f32.mrf.mxu1 }
 0x257   : > { %v1631_v25 = vpop.f32.mrf.mxu0  ;;  %v2463_v4 = vadd.f32 %v3651_v30, %v2271_v41  ;;  %v1774_v17 = vadd.f32 %v1773_v38, %v1627_v3  ;;  %v1929_v18 = vpop.f32.mrf.mxu2 }
 0x258   : > { %v1632_v21 = vadd.f32 %v1631_v25, %v3673_v62 }
 0x259   : > { %2511 = vst [vmem:[%s3577_s25 + $0x58] sm:$0xff] %v2463_v4  ;;  %v1930_v13 = vadd.f32 %v1929_v18, %v1774_v17  ;;  %1868 = vmatmul.f32.gmra.mxu1 %v4310_v53 }
 0x25a   : > { %1710 = vmatmul.f32.gmra.mxu0 %v4309_v42 }
 0x25b   : > { %2112 = vmatmul.f32.gmra.mxu3 %v3293_v59  ;;  %v2046_v7 = vadd.f32 %v2045_v28, %v1930_v13  ;;  %1996 = vmatmul.f32.gmra.mxu2 %v3293_v59 }
 0x25d   : > { %v2273_v1 = vmul.f32 %v3463_v55, %v2046_v7 }
 0x25e   : > { %v2049_v49 = vpop.f32.mrf.mxu3  ;;  %v1779_v5 = vpop.f32.mrf.mxu1 }
 0x25f   : > { %v1636_v30 = vpop.f32.mrf.mxu0  ;;  %v2465_v8 = vadd.f32 %v3663_v6, %v2273_v1  ;;  %v1780_v51 = vadd.f32 %v1779_v5, %v1632_v21  ;;  %v1933_v0 = vpop.f32.mrf.mxu2 }
 0x260   : > { %v1637_v27 = vadd.f32 %v1636_v30, %v3688_v9 }
 0x261   : > { %2513 = vst [vmem:[%s3577_s25 + $0x68] sm:$0xff] %v2465_v8  ;;  %v1934_v16 = vadd.f32 %v1933_v0, %v1780_v51  ;;  %1874 = vmatmul.f32.gmra.mxu1 %v4311_v63 }
 0x263   : > { %v2050_v19 = vadd.f32 %v2049_v49, %v1934_v16 }
 0x265   : > { %v2275_v59 = vmul.f32 %v3476_v34, %v2050_v19 }
 0x266   : > { %v2053_v62 = vpop.f32.mrf.mxu3  ;;  %v1785_v55 = vpop.f32.mrf.mxu1 }
 0x267   : > { %v1641_v24 = vpop.f32.mrf.mxu0  ;;  %v2467_v33 = vadd.f32 %v3675_v46, %v2275_v59  ;;  %v1786_v22 = vadd.f32 %v1785_v55, %v1637_v27  ;;  %v1937_v12 = vpop.f32.mrf.mxu2  ;;  %v4313_v55 = vld [vmem:[#allocation77_spill] sm:$0xff] }
 0x268   : > { %v1642_v56 = vadd.f32 %v1641_v24, %v3700_v32 }
 0x269   : > { %2515 = vst [vmem:[%s3577_s25 + $0x78] sm:$0xff] %v2467_v33  ;;  %v1938_v6 = vadd.f32 %v1937_v12, %v1786_v22 }
 0x26b   : > { %v2054_v50 = vadd.f32 %v2053_v62, %v1938_v6 }
 0x26d   : > { %v2277_v31 = vmul.f32 %v4312_v60, %v2054_v50 }
 0x26e   : > { %v2057_v36 = vpop.f32.mrf.mxu3  ;;  %v1791_v9 = vpop.f32.mrf.mxu1 }
 0x26f   : > { %v1646_v3 = vpop.f32.mrf.mxu0  ;;  %v2469_v34 = vadd.f32 %v3690_v43, %v2277_v31  ;;  %v1792_v41 = vadd.f32 %v1791_v9, %v1642_v56  ;;  %v1941_v28 = vpop.f32.mrf.mxu2 }
 0x270   : > { %v1647_v38 = vadd.f32 %v1646_v3, %v3712_v48 }
 0x271   : > { %2517 = vst [vmem:[%s3577_s25 + $0x88] sm:$0xff] %v2469_v34  ;;  %v1942_v25 = vadd.f32 %v1941_v28, %v1792_v41  ;;  %v4316_v41 = vld [vmem:[#allocation53_spill] sm:$0xff] }
 0x273   : > { %v2058_v46 = vadd.f32 %v2057_v36, %v1942_v25  ;;  %v4315_v36 = vld [vmem:[#allocation79_spill] sm:$0xff] }
 0x275   : > { %v2279_v4 = vmul.f32 %v3478_v52, %v2058_v46 }
 0x276   : > { %v2061_v17 = vpop.f32.mrf.mxu3  ;;  %v1797_v32 = vpop.f32.mrf.mxu1 }
 0x277   : > { %v1651_v18 = vpop.f32.mrf.mxu0  ;;  %v2471_v13 = vadd.f32 %v3702_v2, %v2279_v4  ;;  %v1798_v42 = vadd.f32 %v1797_v32, %v1647_v38  ;;  %v1945_v53 = vpop.f32.mrf.mxu2 }
 0x278   : > { %v1652_v21 = vadd.f32 %v1651_v18, %v3724_v26  ;;  %v4317_v18 = vld [vmem:[#allocation82_spill] sm:$0xff] }
 0x279   : > { %2519 = vst [vmem:[%s3577_s25 + $0x98] sm:$0xff] %v2471_v13  ;;  %v1946_v7 = vadd.f32 %v1945_v53, %v1798_v42  ;;  %v4318_v53 = vld [vmem:[#allocation57_spill] sm:$0xff] }
 0x27b   : > { %v2062_v43 = vadd.f32 %v2061_v17, %v1946_v7 }
 0x27d   : > { %v2281_v1 = vmul.f32 %v3491_v57, %v2062_v43 }
 0x27e   : > { %v2065_v49 = vpop.f32.mrf.mxu3  ;;  %v1803_v48 = vpop.f32.mrf.mxu1 }
 0x27f   : > { %v1656_v30 = vpop.f32.mrf.mxu0  ;;  %v2473_v52 = vadd.f32 %v3714_v23, %v2281_v1  ;;  %v1804_v5 = vadd.f32 %v1803_v48, %v1652_v21  ;;  %v1949_v8 = vpop.f32.mrf.mxu2  ;;  %v4319_v48 = vld [vmem:[#allocation80_spill] sm:$0xff] }
 0x280   : > { %v1657_v0 = vadd.f32 %v1656_v30, %v3736_v35 }
 0x281   : > { %2521 = vst [vmem:[%s3577_s25 + $0xa8] sm:$0xff] %v2473_v52  ;;  %v1950_v51 = vadd.f32 %v1949_v8, %v1804_v5 }
 0x283   : > { %v2066_v2 = vadd.f32 %v2065_v49, %v1950_v51  ;;  %v4320_v51 = vld [vmem:[#allocation60_spill] sm:$0xff] }
 0x285   : > { %v2283_v16 = vmul.f32 %v3504_v14, %v2066_v2  ;;  %v4314_v14 = vld [vmem:[#allocation49_spill] sm:$0xff] }
 0x286   : > { %v2069_v63 = vpop.f32.mrf.mxu3  ;;  %v1809_v26 = vpop.f32.mrf.mxu1 }
 0x287   : > { %v1661_v19 = vpop.f32.mrf.mxu0  ;;  %v2475_v57 = vadd.f32 %v3726_v40, %v2283_v16  ;;  %v1810_v27 = vadd.f32 %v1809_v26, %v1657_v0  ;;  %v1953_v59 = vpop.f32.mrf.mxu2 }
 0x288   : > { %v1662_v24 = vadd.f32 %v1661_v19, %v3748_v29 }
 0x289   : > { %2523 = vst [vmem:[%s3577_s25 + $0xb8] sm:$0xff] %v2475_v57  ;;  %v1954_v62 = vadd.f32 %v1953_v59, %v1810_v27  ;;  %v4321_v57 = vld [vmem:[#allocation83_spill] sm:$0xff] }
 0x28b   : > { %v2070_v23 = vadd.f32 %v2069_v63, %v1954_v62 }
 0x28d   : > { %v2285_v33 = vmul.f32 %v4313_v55, %v2070_v23  ;;  %v4322_v23 = vld [vmem:[#allocation63_spill] sm:$0xff] }
 0x28e   : > { %v2073_v22 = vpop.f32.mrf.mxu3  ;;  %v1815_v35 = vpop.f32.mrf.mxu1 }
 0x28f   : > { %v1666_v12 = vpop.f32.mrf.mxu0  ;;  %v2477_v6 = vadd.f32 %v4314_v14, %v2285_v33  ;;  %v1816_v50 = vadd.f32 %v1815_v35, %v1662_v24  ;;  %v1957_v56 = vpop.f32.mrf.mxu2  ;;  %v4323_v14 = vld [vmem:[#allocation86_spill] sm:$0xff] }
 0x290   : > { %v1667_v31 = vadd.f32 %v1666_v12, %v3760_v45 }
 0x291   : > { %2525 = vst [vmem:[%s3577_s25 + $0xc8] sm:$0xff] %v2477_v6  ;;  %v1958_v60 = vadd.f32 %v1957_v56, %v1816_v50 }
 0x293   : > { %v2074_v40 = vadd.f32 %v2073_v22, %v1958_v60  ;;  %v4324_v60 = vld [vmem:[#allocation2_spill] sm:$0xff] }
 0x295   : > { %v2287_v3 = vmul.f32 %v4315_v36, %v2074_v40 }
 0x296   : > { %v2077_v9 = vpop.f32.mrf.mxu3  ;;  %v1821_v29 = vpop.f32.mrf.mxu1 }
 0x297   : > { %v1671_v34 = vpop.f32.mrf.mxu0  ;;  %v2479_v28 = vadd.f32 %v4316_v41, %v2287_v3  ;;  %v1822_v25 = vadd.f32 %v1821_v29, %v1667_v31  ;;  %v1961_v46 = vpop.f32.mrf.mxu2  ;;  %v4325_v29 = vld [vmem:[#allocation85_spill] sm:$0xff] }
 0x298   : > { %v1672_v17 = vadd.f32 %v1671_v34, %v3772_v54 }
 0x299   : > { %2527 = vst [vmem:[%s3577_s25 + $0xd8] sm:$0xff] %v2479_v28  ;;  %v1962_v38 = vadd.f32 %v1961_v46, %v1822_v25 }
 0x29b   : > { %v2078_v4 = vadd.f32 %v2077_v9, %v1962_v38 }
 0x29d   : > { %v2289_v32 = vmul.f32 %v4317_v18, %v2078_v4 }
 0x29e   : > { %v2081_v13 = vpop.f32.mrf.mxu3  ;;  %v1827_v45 = vpop.f32.mrf.mxu1 }
 0x29f   : > { %v1676_v42 = vpop.f32.mrf.mxu0  ;;  %v2481_v7 = vadd.f32 %v4318_v53, %v2289_v32  ;;  %v1828_v43 = vadd.f32 %v1827_v45, %v1672_v17  ;;  %v1965_v21 = vpop.f32.mrf.mxu2 }
 0x2a0   : > { %v1677_v30 = vadd.f32 %v1676_v42, %v3784_v47 }
 0x2a1   : > { %2529 = vst [vmem:[%s3577_s25 + $0xe8] sm:$0xff] %v2481_v7  ;;  %v1966_v1 = vadd.f32 %v1965_v21, %v1828_v43  ;;  %v4327_v7 = vld [vmem:[#allocation4_spill] sm:$0xff] }
 0x2a3   : > { %v2082_v49 = vadd.f32 %v2081_v13, %v1966_v1  ;;  %v4326_v13 = vld [vmem:[#allocation88_spill] sm:$0xff] }
 0x2a5   : > { %v2291_v52 = vmul.f32 %v4319_v48, %v2082_v49  ;;  %v4328_v48 = vld [vmem:[#allocation90_spill] sm:$0xff] }
 0x2a6   : > { %v2085_v5 = vpop.f32.mrf.mxu3  ;;  %v1833_v54 = vpop.f32.mrf.mxu1 }
 0x2a7   : > { %v1681_v8 = vpop.f32.mrf.mxu0  ;;  %v2483_v2 = vadd.f32 %v4320_v51, %v2291_v52  ;;  %v1834_v0 = vadd.f32 %v1833_v54, %v1677_v30  ;;  %v1969_v16 = vpop.f32.mrf.mxu2 }
 0x2a8   : > { %v1682_v26 = vadd.f32 %v1681_v8, %v3796_v37  ;;  %v4329_v8 = vld [vmem:[#allocation3_spill] sm:$0xff] }
 0x2a9   : > { %2531 = vst [vmem:[%s3577_s25 + $0xf8] sm:$0xff] %v2483_v2  ;;  %v1970_v63 = vadd.f32 %v1969_v16, %v1834_v0 }
 0x2ab   : > { %v2086_v19 = vadd.f32 %v2085_v5, %v1970_v63 }
 0x2ad   : > { %v2293_v27 = vmul.f32 %v4321_v57, %v2086_v19 }
 0x2ae   : > { %v2089_v59 = vpop.f32.mrf.mxu3  ;;  %v1839_v47 = vpop.f32.mrf.mxu1 }
 0x2af   : > { %v1686_v62 = vpop.f32.mrf.mxu0  ;;  %v2485_v24 = vadd.f32 %v4322_v23, %v2293_v27  ;;  %v1840_v55 = vadd.f32 %v1839_v47, %v1682_v26  ;;  %v1973_v33 = vpop.f32.mrf.mxu2  ;;  %v4330_v26 = vld [vmem:[#allocation89_spill] sm:$0xff] }
 0x2b0   : > { %v1687_v35 = vadd.f32 %v1686_v62, %v3808_v11 }
 0x2b1   : > { %2533 = vst [vmem:[%s3577_s25 + $0x108] sm:$0xff] %v2485_v24  ;;  %v1974_v22 = vadd.f32 %v1973_v33, %v1840_v55 }
 0x2b3   : > { %v2090_v12 = vadd.f32 %v2089_v59, %v1974_v22  ;;  %v4331_v22 = vld [vmem:[#allocation91_spill] sm:$0xff] }
 0x2b5   : > { %v2295_v6 = vmul.f32 %v4323_v14, %v2090_v12 }
 0x2b6   : > { %v2093_v50 = vpop.f32.mrf.mxu3  ;;  %v1845_v37 = vpop.f32.mrf.mxu1 }
 0x2b7   : > { %v1691_v56 = vpop.f32.mrf.mxu0  ;;  %v2487_v40 = vadd.f32 %v4324_v60, %v2295_v6  ;;  %v1846_v31 = vadd.f32 %v1845_v37, %v1687_v35  ;;  %v1977_v36 = vpop.f32.mrf.mxu2  ;;  %v4333_v60 = vld [vmem:[#allocation94_spill] sm:$0xff] }
 0x2b8   : > { %v1692_v34 = vadd.f32 %v1691_v56, %v3820_v10 }
 0x2b9   : > { %2535 = vst [vmem:[%s3577_s25 + $0x118] sm:$0xff] %v2487_v40  ;;  %v1978_v3 = vadd.f32 %v1977_v36, %v1846_v31  ;;  %v4334_v31 = vld [vmem:[#allocation5_spill] sm:$0xff] }
 0x2bb   : > { %v2094_v9 = vadd.f32 %v2093_v50, %v1978_v3 }
 0x2bd   : > { %v2297_v41 = vmul.f32 %v4325_v29, %v2094_v9 }
 0x2be   : > { %v2097_v28 = vpop.f32.mrf.mxu3  ;;  %v1851_v11 = vpop.f32.mrf.mxu1 }
 0x2bf   : > { %v1696_v25 = vpop.f32.mrf.mxu0  ;;  %v2489_v46 = vadd.f32 %v3810_v58, %v2297_v41  ;;  %v1852_v38 = vadd.f32 %v1851_v11, %v1692_v34  ;;  %v1981_v4 = vpop.f32.mrf.mxu2 }
 0x2c0   : > { %v1697_v32 = vadd.f32 %v1696_v25, %v3832_v39 }
 0x2c1   : > { %2537 = vst [vmem:[%s3577_s25 + $0x128] sm:$0xff] %v2489_v46  ;;  %v1982_v17 = vadd.f32 %v1981_v4, %v1852_v38 }
 0x2c3   : > { %v2098_v18 = vadd.f32 %v2097_v28, %v1982_v17 }
 0x2c5   : > { %v2299_v42 = vmul.f32 %v4326_v13, %v2098_v18 }
 0x2c6   : > { %v2101_v45 = vpop.f32.mrf.mxu3  ;;  %v1857_v10 = vpop.f32.mrf.mxu1 }
 0x2c7   : > { %v1701_v53 = vpop.f32.mrf.mxu0  ;;  %v2491_v43 = vadd.f32 %v4327_v7, %v2299_v42  ;;  %v1858_v21 = vadd.f32 %v1857_v10, %v1697_v32  ;;  %v1985_v1 = vpop.f32.mrf.mxu2 }
 0x2c8   : > { %v1702_v30 = vadd.f32 %v1701_v53, %v3844_v44 }
 0x2c9   : > { %2539 = vst [vmem:[%s3577_s25 + $0x138] sm:$0xff] %v2491_v43  ;;  %v1986_v49 = vadd.f32 %v1985_v1, %v1858_v21 }
 0x2cb   : > { %v2102_v58 = vadd.f32 %v2101_v45, %v1986_v49 }
 0x2cd   : > { %v2301_v52 = vmul.f32 %v4328_v48, %v2102_v58 }
 0x2ce   : > { %v2105_v5 = vpop.f32.mrf.mxu3  ;;  %v1863_v39 = vpop.f32.mrf.mxu1 }
 0x2cf   : > { %v2493_v54 = vadd.f32 %v4329_v8, %v2301_v52  ;;  %v1864_v51 = vadd.f32 %v1863_v39, %v1702_v30  ;;  %v1989_v2 = vpop.f32.mrf.mxu2  ;;  %v1706_v0 = vpop.f32.mrf.mxu0 }
 0x2d0   : > { %v1707_v19 = vadd.f32 %v1706_v0, %v3856_v20  ;;  %v4332_v20 = vld [vmem:[#allocation6_spill] sm:$0xff] }
 0x2d1   : > { %2541 = vst [vmem:[%s3577_s25 + $0x148] sm:$0xff] %v2493_v54  ;;  %v1990_v16 = vadd.f32 %v1989_v2, %v1864_v51 }
 0x2d3   : > { %v2106_v63 = vadd.f32 %v2105_v5, %v1990_v16 }
 0x2d5   : > { %v2303_v57 = vmul.f32 %v4330_v26, %v2106_v63 }
 0x2d6   : > { %v1869_v27 = vpop.f32.mrf.mxu1  ;;  %v2109_v44 = vpop.f32.mrf.mxu3 }
 0x2d7   : > { %v2495_v59 = vadd.f32 %v3846_v15, %v2303_v57  ;;  %v1870_v62 = vadd.f32 %v1869_v27, %v1707_v19  ;;  %v1993_v47 = vpop.f32.mrf.mxu2  ;;  %v1711_v24 = vpop.f32.mrf.mxu0 }
 0x2d8   : > { %v1712_v33 = vadd.f32 %v1711_v24, %v3868_v61 }
 0x2d9   : > { %2543 = vst [vmem:[%s3577_s25 + $0x158] sm:$0xff] %v2495_v59  ;;  %v1994_v23 = vadd.f32 %v1993_v47, %v1870_v62 }
 0x2db   : > { %v2110_v55 = vadd.f32 %v2109_v44, %v1994_v23 }
 0x2dd   : > { %v2305_v12 = vmul.f32 %v4331_v22, %v2110_v55 }
 0x2de   : > { %v1875_v35 = vpop.f32.mrf.mxu1  ;;  %v2113_v56 = vpop.f32.mrf.mxu3 }
 0x2df   : > { %v2497_v14 = vadd.f32 %v4332_v20, %v2305_v12  ;;  %v1876_v6 = vadd.f32 %v1875_v35, %v1712_v33  ;;  %v1997_v50 = vpop.f32.mrf.mxu2 }
 0x2e1   : > { %2545 = vst [vmem:[%s3577_s25 + $0x168] sm:$0xff] %v2497_v14  ;;  %v1998_v37 = vadd.f32 %v1997_v50, %v1876_v6 }
 0x2e3   : > { %v2114_v15 = vadd.f32 %v2113_v56, %v1998_v37 }
 0x2e5   : > { %v2307_v40 = vmul.f32 %v4333_v60, %v2114_v15 }
 0x2e7   : > { %v2499_v36 = vadd.f32 %v4334_v31, %v2307_v40 }
 0x2e9   : > { %2547 = vst [vmem:[%s3577_s25 + $0x178] sm:$0xff] %v2499_v36 }
 0x2ea PF: > { %s14_s17 = sadd.s32 1, %s2708_s17   ;;  %s4335_s15 = smov %s2704_s16 }
 0x2eb   : > { %p11_p5 = scmp.ge.s32.totalorder %s14_s17, 4   ;;  %s4336_s16 = smov %s4338_s18 }
 0x2ed   :  { %13 = sbr.rel (!%p11_p5) target bundleno = 2 (0x2), region = 66 }

// kernel: scalewise_graphconv.5
= control target key start
LH: loop header
LB: loop body
LE: loop exit
PB: predicated region body
PF: predicated region fallthrough
CT: control target
= control target key end

     0   :  { %s9202_s18 = smov 0   ;;  %s9204_s19 = smov 0   ;;  %s11841_s0 = inlined_call_operand.vmem [shape: f32[3,16,16], index: 0, kind: input, shape index: {}]   ;;  %s11842_s1 = inlined_call_operand.vmem [shape: f32[2,4,48,16,16], index: 1, kind: input, shape index: {}]   ;;  %s11843_s2 = inlined_call_operand.vmem [shape: f32[2,4,48,8,16], index: 2, kind: input, shape index: {}]   ;;  %s11844_s3 = inlined_call_operand.vmem [shape: f32[4,16,1,16], index: 3, kind: input, shape index: {}]   ;;  %s11845_s4 = inlined_call_operand.vmem [shape: f32[4,16,1,16], index: 4, kind: input, shape index: {}]   ;;  %s11846_s5 = inlined_call_operand.vmem [shape: f32[2,4,16,8,16], index: 5, kind: output, shape index: {}]  }
   0x1   :  { %s9206_s20 = smov 0   ;;  %s9208_s21 = smov 0  }
   0x2   :  { %s9210_s22 = smov 0  }
   0x3 LB: > { %s24_s23 = sadd.s32 1, %s9162_s20  ;;  %s27_s24 = sadd.s32 1, %s9166_s21  ;;  %s9170_s22 = sphi %s9210_s22, %s15_s22   ;;  %s9166_s21 = sphi %s9208_s21, %s11850_s21   ;;  %s9162_s20 = sphi %s9206_s20, %s11849_s20   ;;  %s9158_s19 = sphi %s9204_s19, %s11848_s19   ;;  %s9154_s18 = sphi %s9202_s18, %s11847_s18  }
   0x4   : > { %p25_p0 = scmp.ge.s32.totalorder %s24_s23, 4  ;;  %p9040_p1 = scmp.ge.s32.totalorder %s9170_s22, 1 }
   0x5   : > { %p241_p2 = scmp.lt.s32.totalorder %s9170_s22, 9 }
   0x6   : > { %s11852_s23 = smov (%p25_p0, %s24_s23), 0  ;;  %s11854_s24 = smov (!%p25_p0, %s27_s24), %s9166_s21 }
   0x7   : > { %p242_p3 = pnand %p9040_p1, %p241_p2  ;;  %p29_p4 = scmp.ge.s32.totalorder %s11854_s24, 2 }
   0x8   : > { %p294_p5 = scmp.lt.s32.totalorder (!%p242_p3), %s9158_s19, 1  ;;  %p296_p6 = scmp.lt.s32.totalorder (!%p242_p3), %s9154_s18, 3 }
   0x9   : > { %s11856_s24 = smov (%p29_p4, %s11854_s24), 0  ;;  %245 = sbr.rel (%p242_p3) target bundleno = 752 (0x2f0), region = 40 }
   0xe   : > { %s11858_s19 = smov (!%p294_p5, %s9158_s19), 1  ;;  %s11860_s18 = smov (!%p296_p6, %s9154_s18), 3  ;;  %v9243_v0 = vld [vmem:[%s11841_s0 + $0x8] sm:$0xff]  ;;  %v9248_v1 = vld [vmem:[%s11841_s0] sm:$0xff]  ;;  %vm575_vm0 = vcmask 130048  }
   0xf   : > { %s9051_s25 = smul.u32 384, %s11858_s19  ;;  %s9046_s10 = sshll.u32 %s11858_s19, 6 }
  0x10   : > { %s9050_s26 = smul.u32 96, %s11860_s18 }
  0x11   : > { %s9052_s27 = smul.u32 48, %s11860_s18 }
  0x12   : > { %s300_s28 = sadd.s32 %s9051_s25, %s9050_s26  ;;  %s9053_s29 = smul.u32 192, %s11858_s19 }
  0x13   : > { %s9041_s30 = sshll.u32 %s300_s28, 3  ;;  %s10976_s25 = sshll.u32 %s11860_s18, 4 }
  0x14   : > { %s9253_s12 = scalar_lea.vmem %s11842_s1, %s9041_s30  ;;  %s309_s13 = sadd.s32 %s9053_s29, %s9052_s27 }
  0x15   : > { %v336_v2 = vld [vmem:[%s9253_s12 + $0x8] sm:$0xff]  ;;  %v335_v3 = vld [vmem:[%s9253_s12] sm:$0xff]  ;;  %s9042_s14 = sshll.u32 %s309_s13, 3  ;;  %v338_v4 = vld [vmem:[%s9253_s12 + $0x18] sm:$0xff]  ;;  %s10990_s27 = scalar_lea.vmem %s11844_s3, %s10976_s25 }
  0x16   : > { %v432_v5 = vadd.f32 %v336_v2, %v9243_v0  ;;  %v431_v6 = vadd.f32 %v335_v3, %v9248_v1  ;;  %s9263_s17 = scalar_lea.vmem %s11843_s2, %s9042_s14  ;;  %v434_v7 = vadd.f32 %v338_v4, %v9243_v0  ;;  %v337_v8 = vld [vmem:[%s9253_s12 + $0x10] sm:$0xff]  ;;  %v340_v9 = vld [vmem:[%s9253_s12 + $0x28] sm:$0xff]  ;;  %v339_v22 = vld [vmem:[%s9253_s12 + $0x20] sm:$0xff]  ;;  %s10996_s30 = scalar_lea.vmem %s11845_s4, %s10976_s25 }
  0x17   : > { %v527_v10 = vld [vmem:[%s9263_s17] sm:$0xff]  ;;  %v433_v11 = vadd.f32 %v337_v8, %v9248_v1  ;;  %v528_v12 = vld [vmem:[%s9263_s17 + $0x8] sm:$0xff]  ;;  %v436_v13 = vadd.f32 %v340_v9, %v9243_v0  ;;  %v435_v32 = vadd.f32 %v339_v22, %v9248_v1  ;;  %v342_v47 = vld [vmem:[%s9253_s12 + $0x38] sm:$0xff]  ;;  %s11605_s19 = sadd.s32 %s9046_s10, %s10976_s25 }
  0x18   : > { %v583_v14 = vsel %vm575_vm0, %v432_v5, 0  ;;  %v580_v15 = vsel %vm575_vm0, %v431_v6, 0  ;;  %v577_v16 = vsel %vm575_vm0, %v527_v10, 0  ;;  %v751_v17 = vsel %vm575_vm0, %v434_v7, 0  ;;  %v341_v48 = vld [vmem:[%s9253_s12 + $0x30] sm:$0xff]  ;;  %v530_v9 = vld [vmem:[%s9263_s17 + $0x18] sm:$0xff] }
  0x19   : > { %v9276_v18 = vand.u32 4294901760, %v583_v14  ;;  %v9278_v19 = vand.u32 4294901760, %v580_v15  ;;  %v9280_v20 = vand.u32 4294901760, %v577_v16  ;;  %v9282_v21 = vand.u32 4294901760, %v751_v17  ;;  %v529_v52 = vld [vmem:[%s9263_s17 + $0x10] sm:$0xff] }
  0x1a   : > { %v748_v23 = vsel %vm575_vm0, %v433_v11, 0  ;;  %v745_v24 = vsel %vm575_vm0, %v528_v12, 0  ;;  %v919_v31 = vsel %vm575_vm0, %v436_v13, 0  ;;  %v916_v46 = vsel %vm575_vm0, %v435_v32, 0 }
  0x1b   : > { %600 = vmatpush.xpose.msra.mxu0 %v9276_v18  ;;  %v627_v25 = vsub.f32 %v583_v14, %v9276_v18  ;;  %684 = vmatpush.xpose.msra.mxu3 %v9276_v18  ;;  %v633_v26 = vsub.f32 %v580_v15, %v9278_v19  ;;  %v604_v27 = vsub.f32 %v577_v16, %v9280_v20  ;;  %v9292_v28 = vand.u32 4294901760, %v748_v23  ;;  %v344_v16 = vld [vmem:[%s9253_s12 + $0x48] sm:$0xff] }
  0x1c   : > { %v795_v29 = vsub.f32 %v751_v17, %v9282_v21  ;;  %v9295_v30 = vand.u32 4294901760, %v745_v24  ;;  %v9309_v45 = vand.u32 4294901760, %v919_v31  ;;  %v9317_v55 = vand.u32 4294901760, %v916_v46 }
  0x1d   : > { %659 = vmatpush.xpose.msra.mxu2 %v627_v25  ;;  %v628_v33 = vand.u32 4294901760, %v627_v25  ;;  %v605_v34 = vand.u32 4294901760, %v604_v27  ;;  %v634_v35 = vand.u32 4294901760, %v633_v26  ;;  %v9300_v36 = vsub.f32 %v748_v23, %v9292_v28 }
  0x1e   : > { %v796_v37 = vand.u32 4294901760, %v795_v29  ;;  %v9303_v38 = vsub.f32 %v745_v24, %v9295_v30  ;;  %v438_v56 = vadd.f32 %v342_v47, %v9243_v0  ;;  %v437_v57 = vadd.f32 %v341_v48, %v9248_v1 }
  0x1f   : > { %602 = vmatpush.xpose.msra.mxu0 %v9278_v19  ;;  %v629_v39 = vsub.f32 %v627_v25, %v628_v33  ;;  %686 = vmatpush.xpose.msra.mxu3 %v9278_v19  ;;  %v606_v40 = vsub.f32 %v604_v27, %v605_v34  ;;  %v635_v41 = vsub.f32 %v633_v26, %v634_v35  ;;  %v802_v42 = vand.u32 4294901760, %v9300_v36  ;;  %v346_v25 = vld [vmem:[%s9253_s12 + $0x58] sm:$0xff] }
  0x20   : > { %v797_v43 = vsub.f32 %v795_v29, %v796_v37  ;;  %v773_v44 = vand.u32 4294901760, %v9303_v38  ;;  %v9325_v60 = vsub.f32 %v919_v31, %v9309_v45  ;;  %v913_v61 = vsel %vm575_vm0, %v529_v52, 0 }
  0x21   : > { %v630_v49 = vand.u32 4294901760, %v629_v39  ;;  %662 = vmatpush.xpose.msra.mxu2 %v633_v26  ;;  %v607_v50 = vand.u32 4294901760, %v606_v40  ;;  %v803_v51 = vsub.f32 %v9300_v36, %v802_v42  ;;  %v636_v54 = vand.u32 4294901760, %v635_v41  ;;  %v343_v26 = vld [vmem:[%s9253_s12 + $0x40] sm:$0xff] }
  0x22   : > { %690 = vmatmul.f32.vlgmr.msra.gmra.mxu3 %v605_v34  ;;  %v798_v53 = vand.u32 4294901760, %v797_v43  ;;  %v774_v59 = vsub.f32 %v9303_v38, %v773_v44  ;;  %v1087_v62 = vsel %vm575_vm0, %v438_v56, 0  ;;  %v1084_v2 = vsel %vm575_vm0, %v437_v57, 0  ;;  %v532_v56 = vld [vmem:[%s9263_s17 + $0x28] sm:$0xff] }
  0x23   : > { %711 = vmatpush.xpose.msrb.mxu0 %v628_v33  ;;  %631 = vmatpush.xpose.msra.mxu1 %v630_v49  ;;  %v804_v58 = vand.u32 4294901760, %v803_v51  ;;  %v9330_v63 = vand.u32 4294901760, %v1087_v62  ;;  %v9333_v3 = vand.u32 4294901760, %v913_v61  ;;  %v964_v5 = vand.u32 4294901760, %v9325_v60 }
  0x24   : > { %608 = vmatmul.f32.vlgmr.msra.gmra.mxu0 %v607_v50  ;;  %665 = vmatmul.f32.vlgmr.msra.gmra.mxu2 %v604_v27  ;;  %v775_v4 = vand.u32 4294901760, %v774_v59  ;;  %v9338_v6 = vsub.f32 %v916_v46, %v9317_v55  ;;  %v9344_v8 = vand.u32 4294901760, %v1084_v2  ;;  %v1081_v15 = vsel %vm575_vm0, %v530_v9, 0 }
  0x25   : > { %768 = vmatpush.xpose.msrb.mxu2 %v9282_v21  ;;  %799 = vmatpush.xpose.msrb.mxu3 %v798_v53  ;;  %v9341_v7 = vsub.f32 %v1087_v62, %v9330_v63  ;;  %v940_v10 = vsub.f32 %v913_v61, %v9333_v3  ;;  %v965_v12 = vsub.f32 %v9325_v60, %v964_v5  ;;  %v9370_v22 = vand.u32 4294901760, %v1081_v15  ;;  %v348_v62 = vld [vmem:[%s9253_s12 + $0x68] sm:$0xff] }
  0x26   : > { %v970_v13 = vand.u32 4294901760, %v9338_v6  ;;  %v9358_v14 = vsub.f32 %v1084_v2, %v9344_v8  ;;  %v440_v24 = vadd.f32 %v344_v16, %v9243_v0  ;;  %v442_v32 = vadd.f32 %v346_v25, %v9243_v0 }
  0x27   : > { %715 = vmatpush.xpose.msrb.mxu0 %v634_v35  ;;  %637 = vmatpush.xpose.msra.mxu1 %v636_v54  ;;  %v1132_v11 = vand.u32 4294901760, %v9341_v7  ;;  %v941_v17 = vand.u32 4294901760, %v940_v10  ;;  %v9383_v31 = vsub.f32 %v1081_v15, %v9370_v22  ;;  %v439_v34 = vadd.f32 %v343_v26, %v9248_v1  ;;  %v345_v35 = vld [vmem:[%s9253_s12 + $0x50] sm:$0xff] }
  0x28   : > { %v1138_v23 = vand.u32 4294901760, %v9358_v14  ;;  %v1255_v33 = vsel %vm575_vm0, %v440_v24, 0  ;;  %v1423_v39 = vsel %vm575_vm0, %v442_v32, 0  ;;  %v441_v43 = vadd.f32 %v345_v35, %v9248_v1  ;;  %v533_v26 = vld [vmem:[%s9263_s17 + $0x30] sm:$0xff] }
  0x29   : > { %770 = vmatpush.xpose.msrb.mxu2 %v9292_v28  ;;  %805 = vmatpush.xpose.msrb.mxu3 %v804_v58  ;;  %v942_v27 = vsub.f32 %v940_v10, %v941_v17  ;;  %v1252_v41 = vsel %vm575_vm0, %v439_v34, 0  ;;  %v9403_v46 = vand.u32 4294901760, %v1423_v39  ;;  %v1417_v61 = vsel %vm575_vm0, %v532_v56, 0 }
  0x2a   : > { %639 = vmatmul.f32.vlgmr.msra.gmra.mxu1 %v9280_v20  ;;  %v9410_v49 = vand.u32 4294901760, %v1252_v41  ;;  %v444_v9 = vadd.f32 %v348_v62, %v9243_v0 }
  0x2b   : > { %827 = vmatpush.xpose.msra.mxu0 %v795_v29  ;;  %736 = vmatpush.xpose.msrb.mxu1 %v9276_v18  ;;  %v1133_v18 = vsub.f32 %v9341_v7, %v1132_v11  ;;  %v9421_v50 = vsub.f32 %v1423_v39, %v9403_v46 }
  0x2c   : > { %717 = vmatmul.f32.vlgmr.msrb.gmra.mxu0 %v9280_v20  ;;  %807 = vmatmul.f32.vlgmr.msrb.gmra.mxu3 %v9295_v30  ;;  %v9425_v53 = vsub.f32 %v1252_v41, %v9410_v49  ;;  %v1591_v16 = vsel %vm575_vm0, %v444_v9, 0 }
  0x2d   : > { %879 = vmatpush.xpose.msra.mxu2 %v796_v37  ;;  %904 = vmatpush.xpose.msra.mxu3 %v9282_v21  ;;  %v1134_v29 = vand.u32 4294901760, %v1133_v18  ;;  %v9394_v37 = vand.u32 4294901760, %v1255_v33 }
  0x2e   : > { %776 = vmatmul.f32.vlgmr.msrb.gmra.mxu2 %v775_v4  ;;  %v1306_v59 = vand.u32 4294901760, %v9425_v53 }
  0x2f   : > { %830 = vmatpush.xpose.msra.mxu0 %v9300_v36  ;;  %738 = vmatpush.xpose.msrb.mxu1 %v9278_v19  ;;  %v966_v19 = vand.u32 4294901760, %v965_v12  ;;  %v1109_v36 = vand.u32 4294901760, %v9383_v31  ;;  %v1299_v48 = vsub.f32 %v1255_v33, %v9394_v37 }
  0x31   : > { %883 = vmatpush.xpose.msra.mxu2 %v802_v42  ;;  %906 = vmatpush.xpose.msra.mxu3 %v9292_v28  ;;  %v531_v42 = vld [vmem:[%s9263_s17 + $0x20] sm:$0xff]  ;;  %v1110_v47 = vsub.f32 %v9383_v31, %v1109_v36  ;;  %v1300_v52 = vand.u32 4294901760, %v1299_v48 }
  0x32   : > { %740 = vmatmul.f32.vlgmr.msrb.gmra.mxu1 %v9280_v20  ;;  %v1139_v20 = vsub.f32 %v9358_v14, %v1138_v23 }
  0x33   : > { %852 = vmatpush.xpose.msra.mxu1 %v9282_v21  ;;  %936 = vmatpush.xpose.msrb.mxu0 %v9309_v45  ;;  %v971_v21 = vsub.f32 %v9338_v6, %v970_v13  ;;  %v1111_v51 = vand.u32 4294901760, %v1110_v47  ;;  %v1301_v58 = vsub.f32 %v1299_v48, %v1300_v52 }
  0x34   : > { %833 = vmatmul.f32.vlgmr.msra.gmra.mxu0 %v9303_v38  ;;  %908 = vmatmul.f32.vlgmr.msra.gmra.mxu3 %v9295_v30  ;;  %v1140_v40 = vand.u32 4294901760, %v1139_v20  ;;  %v1249_v38 = vsel %vm575_vm0, %v531_v42, 0 }
  0x35   : > { %995 = vmatpush.xpose.msrb.mxu2 %v9325_v60  ;;  %1020 = vmatpush.xpose.msrb.mxu3 %v9309_v45  ;;  %v1302_v4 = vand.u32 4294901760, %v1301_v58 }
  0x36   : > { %885 = vmatmul.f32.vlgmr.msra.gmra.mxu2 %v9295_v30  ;;  %v943_v30 = vand.u32 4294901760, %v942_v27 }
  0x37   : > { %854 = vmatpush.xpose.msra.mxu1 %v9292_v28  ;;  %v972_v28 = vand.u32 4294901760, %v971_v21  ;;  %938 = vmatpush.xpose.msrb.mxu0 %v9317_v55 }
  0x39   : > { %998 = vmatpush.xpose.msrb.mxu2 %v9338_v6  ;;  %1022 = vmatpush.xpose.msrb.mxu3 %v9317_v55  ;;  %v9451_v6 = vand.u32 4294901760, %v1417_v61 }
  0x3a   : > { %858 = vmatmul.f32.vlgmr.msra.gmra.mxu1 %v773_v44  ;;  %v1420_v44 = vsel %vm575_vm0, %v441_v43, 0 }
  0x3b   : > { %967 = vmatpush.xpose.msrb.mxu1 %v966_v19  ;;  %1047 = vmatpush.xpose.msra.mxu0 %v964_v5  ;;  %v9427_v54 = vand.u32 4294901760, %v1420_v44  ;;  %v1307_v5 = vsub.f32 %v9425_v53, %v1306_v59  ;;  %v349_v19 = vld [vmem:[%s9253_s12 + $0x70] sm:$0xff] }
  0x3c   : > { %944 = vmatmul.f32.vlgmr.msrb.gmra.mxu0 %v943_v30  ;;  %1026 = vmatmul.f32.vlgmr.msrb.gmra.mxu3 %v941_v17  ;;  %v445_v27 = vadd.f32 %v349_v19, %v9248_v1 }
  0x3d   : > { %1104 = vmatpush.xpose.msra.mxu2 %v9330_v63  ;;  %1135 = vmatpush.xpose.msra.mxu3 %v1134_v29  ;;  %v9440_v60 = vsub.f32 %v1420_v44, %v9427_v54 }
  0x3e   : > { %1001 = vmatmul.f32.vlgmr.msrb.gmra.mxu2 %v940_v10  ;;  %v350_v10 = vld [vmem:[%s9253_s12 + $0x78] sm:$0xff]  ;;  %v1756_v33 = vsel %vm575_vm0, %v445_v27, 0 }
  0x3f   : > { %973 = vmatpush.xpose.msrb.mxu1 %v972_v28  ;;  %1051 = vmatpush.xpose.msra.mxu0 %v970_v13  ;;  %v1308_v13 = vand.u32 4294901760, %v1307_v5  ;;  %v446_v15 = vadd.f32 %v350_v10, %v9243_v0  ;;  %v9507_v39 = vand.u32 4294901760, %v1756_v33 }
  0x41   : > { %1106 = vmatpush.xpose.msra.mxu2 %v9344_v8  ;;  %1141 = vmatpush.xpose.msra.mxu3 %v1140_v40  ;;  %v534_v40 = vld [vmem:[%s9263_s17 + $0x38] sm:$0xff] }
  0x42   : > { %975 = vmatmul.f32.vlgmr.msrb.gmra.mxu1 %v9333_v3 }
  0x43   : > { %1072 = vmatpush.xpose.msra.mxu1 %v9309_v45  ;;  %1163 = vmatpush.xpose.msrb.mxu0 %v9341_v7  ;;  %v9418_v45 = vand.u32 4294901760, %v1249_v38  ;;  %v1474_v7 = vand.u32 4294901760, %v9440_v60 }
  0x44   : > { %1053 = vmatmul.f32.vlgmr.msra.gmra.mxu0 %v9333_v3  ;;  %1143 = vmatmul.f32.vlgmr.msra.gmra.mxu3 %v9370_v22 }
  0x45   : > { %1215 = vmatpush.xpose.msrb.mxu2 %v1132_v11  ;;  %1240 = vmatpush.xpose.msrb.mxu3 %v9330_v63  ;;  %v1276_v57 = vsub.f32 %v1249_v38, %v9418_v45  ;;  %v347_v11 = vld [vmem:[%s9253_s12 + $0x60] sm:$0xff]  ;;  %v352_v38 = vld [vmem:[%s9253_s12 + $0x88] sm:$0xff] }
  0x46   : > { %1112 = vmatmul.f32.vlgmr.msra.gmra.mxu2 %v1111_v51  ;;  %v443_v17 = vadd.f32 %v347_v11, %v9248_v1  ;;  %v448_v56 = vadd.f32 %v352_v38, %v9243_v0  ;;  %v535_v11 = vld [vmem:[%s9263_s17 + $0x40] sm:$0xff] }
  0x47   : > { %1074 = vmatpush.xpose.msra.mxu1 %v9317_v55  ;;  %v1468_v55 = vand.u32 4294901760, %v9421_v50  ;;  %1166 = vmatpush.xpose.msrb.mxu0 %v9358_v14  ;;  %v9463_v14 = vsub.f32 %v1417_v61, %v9451_v6 }
  0x48   : > { %v1588_v25 = vsel %vm575_vm0, %v443_v17, 0  ;;  %v1927_v62 = vsel %vm575_vm0, %v448_v56, 0 }
  0x49   : > { %1219 = vmatpush.xpose.msrb.mxu2 %v1138_v23  ;;  %1242 = vmatpush.xpose.msrb.mxu3 %v9344_v8  ;;  %v1469_v2 = vsub.f32 %v9421_v50, %v1468_v55  ;;  %v1445_v21 = vand.u32 4294901760, %v9463_v14  ;;  %v1759_v23 = vsel %vm575_vm0, %v446_v15, 0  ;;  %v9490_v20 = vand.u32 4294901760, %v1588_v25 }
  0x4a   : > { %1076 = vmatmul.f32.vlgmr.msra.gmra.mxu1 %v9333_v3  ;;  %v1475_v3 = vsub.f32 %v9440_v60, %v1474_v7  ;;  %v9483_v29 = vand.u32 4294901760, %v1759_v23 }
  0x4b   : > { %1188 = vmatpush.xpose.msrb.mxu1 %v9330_v63  ;;  %1272 = vmatpush.xpose.msra.mxu0 %v9394_v37  ;;  %v1277_v63 = vand.u32 4294901760, %v1276_v57  ;;  %v1470_v12 = vand.u32 4294901760, %v1469_v2  ;;  %v1446_v28 = vsub.f32 %v9463_v14, %v1445_v21 }
  0x4c   : > { %1169 = vmatmul.f32.vlgmr.msrb.gmra.mxu0 %v9383_v31  ;;  %1244 = vmatmul.f32.vlgmr.msrb.gmra.mxu3 %v9370_v22  ;;  %v1476_v24 = vand.u32 4294901760, %v1475_v3  ;;  %v1585_v31 = vsel %vm575_vm0, %v533_v26, 0  ;;  %v9501_v30 = vsub.f32 %v1759_v23, %v9483_v29 }
  0x4d   : > { %1331 = vmatpush.xpose.msra.mxu2 %v1299_v48  ;;  %1356 = vmatpush.xpose.msra.mxu3 %v9394_v37  ;;  %v9498_v34 = vand.u32 4294901760, %v1585_v31  ;;  %v1447_v35 = vand.u32 4294901760, %v1446_v28  ;;  %v9520_v48 = vsub.f32 %v1756_v33, %v9507_v39 }
  0x4e   : > { %1221 = vmatmul.f32.vlgmr.msrb.gmra.mxu2 %v9370_v22  ;;  %v9474_v22 = vand.u32 4294901760, %v1591_v16  ;;  %v1804_v42 = vand.u32 4294901760, %v9501_v30 }
  0x4f   : > { %1190 = vmatpush.xpose.msrb.mxu1 %v9344_v8  ;;  %v1278_v8 = vsub.f32 %v1276_v57, %v1277_v63  ;;  %1274 = vmatpush.xpose.msra.mxu0 %v9410_v49  ;;  %v1612_v41 = vsub.f32 %v1585_v31, %v9498_v34  ;;  %v356_v31 = vld [vmem:[%s9253_s12 + $0xa8] sm:$0xff] }
  0x50   : > { %v1635_v32 = vsub.f32 %v1591_v16, %v9474_v22  ;;  %v1805_v44 = vsub.f32 %v9501_v30, %v1804_v42 }
  0x51   : > { %1334 = vmatpush.xpose.msra.mxu2 %v9425_v53  ;;  %1358 = vmatpush.xpose.msra.mxu3 %v9410_v49  ;;  %v1279_v18 = vand.u32 4294901760, %v1278_v8  ;;  %v1810_v53 = vand.u32 4294901760, %v9520_v48 }
  0x52   : > { %1194 = vmatmul.f32.vlgmr.msrb.gmra.mxu1 %v1109_v36  ;;  %v1636_v36 = vand.u32 4294901760, %v1635_v32  ;;  %v1806_v58 = vand.u32 4294901760, %v1805_v44 }
  0x53   : > { %1303 = vmatpush.xpose.msra.mxu1 %v1302_v4  ;;  %1383 = vmatpush.xpose.msrb.mxu0 %v1300_v52  ;;  %v353_v4 = vld [vmem:[%s9253_s12 + $0x90] sm:$0xff] }
  0x54   : > { %1280 = vmatmul.f32.vlgmr.msra.gmra.mxu0 %v1279_v18  ;;  %1362 = vmatmul.f32.vlgmr.msra.gmra.mxu3 %v1277_v63  ;;  %v1637_v43 = vsub.f32 %v1635_v32, %v1636_v36  ;;  %v449_v8 = vadd.f32 %v353_v4, %v9248_v1 }
  0x55   : > { %1440 = vmatpush.xpose.msrb.mxu2 %v9403_v46  ;;  %1471 = vmatpush.xpose.msrb.mxu3 %v1470_v12 }
  0x56   : > { %1337 = vmatmul.f32.vlgmr.msra.gmra.mxu2 %v1276_v57  ;;  %v354_v57 = vld [vmem:[%s9253_s12 + $0x98] sm:$0xff]  ;;  %v2092_v16 = vsel %vm575_vm0, %v449_v8, 0 }
  0x57   : > { %1309 = vmatpush.xpose.msra.mxu1 %v1308_v13  ;;  %1387 = vmatpush.xpose.msrb.mxu0 %v1306_v59  ;;  %v450_v61 = vadd.f32 %v354_v57, %v9243_v0  ;;  %v9587_v23 = vand.u32 4294901760, %v2092_v16 }
  0x59   : > { %1442 = vmatpush.xpose.msrb.mxu2 %v9427_v54  ;;  %1477 = vmatpush.xpose.msrb.mxu3 %v1476_v24  ;;  %v536_v24 = vld [vmem:[%s9263_s17 + $0x48] sm:$0xff] }
  0x5a   : > { %1311 = vmatmul.f32.vlgmr.msra.gmra.mxu1 %v9418_v45 }
  0x5b   : > { %1408 = vmatpush.xpose.msrb.mxu1 %v9394_v37  ;;  %1499 = vmatpush.xpose.msra.mxu0 %v9421_v50  ;;  %v9505_v37 = vsub.f32 %v1588_v25, %v9490_v20  ;;  %v1638_v50 = vand.u32 4294901760, %v1637_v43 }
  0x5c   : > { %1389 = vmatmul.f32.vlgmr.msrb.gmra.mxu0 %v9418_v45  ;;  %1479 = vmatmul.f32.vlgmr.msrb.gmra.mxu3 %v9451_v6 }
  0x5d   : > { %1551 = vmatpush.xpose.msra.mxu2 %v1468_v55  ;;  %1576 = vmatpush.xpose.msra.mxu3 %v9403_v46  ;;  %v1642_v47 = vand.u32 4294901760, %v9505_v37  ;;  %v351_v55 = vld [vmem:[%s9253_s12 + $0x80] sm:$0xff] }
  0x5e   : > { %1448 = vmatmul.f32.vlgmr.msrb.gmra.mxu2 %v1447_v35  ;;  %v447_v63 = vadd.f32 %v351_v55, %v9248_v1  ;;  %v537_v55 = vld [vmem:[%s9263_s17 + $0x50] sm:$0xff] }
  0x5f   : > { %1410 = vmatpush.xpose.msrb.mxu1 %v9410_v49  ;;  %1502 = vmatpush.xpose.msra.mxu0 %v9440_v60  ;;  %v1753_v49 = vsel %vm575_vm0, %v534_v40, 0  ;;  %v1643_v51 = vsub.f32 %v9505_v37, %v1642_v47  ;;  %v452_v40 = vadd.f32 %v356_v31, %v9243_v0 }
  0x60   : > { %v9531_v52 = vand.u32 4294901760, %v1753_v49  ;;  %v1924_v10 = vsel %vm575_vm0, %v447_v63, 0 }
  0x61   : > { %1555 = vmatpush.xpose.msra.mxu2 %v1474_v7  ;;  %1578 = vmatpush.xpose.msra.mxu3 %v9427_v54  ;;  %v1644_v59 = vand.u32 4294901760, %v1643_v51  ;;  %v2095_v7 = vsel %vm575_vm0, %v450_v61, 0  ;;  %v9570_v3 = vand.u32 4294901760, %v1924_v10  ;;  %v2263_v38 = vsel %vm575_vm0, %v452_v40, 0 }
  0x62   : > { %1412 = vmatmul.f32.vlgmr.msrb.gmra.mxu1 %v9418_v45  ;;  %v9543_v60 = vsub.f32 %v1753_v49, %v9531_v52  ;;  %v1811_v45 = vsub.f32 %v9520_v48, %v1810_v53  ;;  %v9563_v12 = vand.u32 4294901760, %v2095_v7 }
  0x63   : > { %1524 = vmatpush.xpose.msra.mxu1 %v9403_v46  ;;  %1608 = vmatpush.xpose.msrb.mxu0 %v9474_v22  ;;  %v1613_v46 = vand.u32 4294901760, %v1612_v41 }
  0x64   : > { %1505 = vmatmul.f32.vlgmr.msra.gmra.mxu0 %v9463_v14  ;;  %1580 = vmatmul.f32.vlgmr.msra.gmra.mxu3 %v9451_v6  ;;  %v1781_v5 = vand.u32 4294901760, %v9543_v60  ;;  %v1812_v9 = vand.u32 4294901760, %v1811_v45  ;;  %v1921_v14 = vsel %vm575_vm0, %v535_v11, 0  ;;  %v9581_v18 = vsub.f32 %v2095_v7, %v9563_v12 }
  0x65   : > { %1667 = vmatpush.xpose.msrb.mxu2 %v1635_v32  ;;  %1692 = vmatpush.xpose.msrb.mxu3 %v9474_v22  ;;  %v9578_v17 = vand.u32 4294901760, %v1921_v14  ;;  %v9600_v32 = vsub.f32 %v2092_v16, %v9587_v23 }
  0x66   : > { %1557 = vmatmul.f32.vlgmr.msra.gmra.mxu2 %v9451_v6  ;;  %v9554_v6 = vand.u32 4294901760, %v1927_v62  ;;  %v1782_v13 = vsub.f32 %v9543_v60, %v1781_v5  ;;  %v2140_v26 = vand.u32 4294901760, %v9581_v18 }
  0x67   : > { %1526 = vmatpush.xpose.msra.mxu1 %v9427_v54  ;;  %v1614_v54 = vsub.f32 %v1612_v41, %v1613_v46  ;;  %1610 = vmatpush.xpose.msrb.mxu0 %v9490_v20  ;;  %v1948_v25 = vsub.f32 %v1921_v14, %v9578_v17  ;;  %v360_v14 = vld [vmem:[%s9253_s12 + $0xc8] sm:$0xff] }
  0x68   : > { %v1971_v15 = vsub.f32 %v1927_v62, %v9554_v6  ;;  %v1783_v19 = vand.u32 4294901760, %v1782_v13  ;;  %v2141_v33 = vsub.f32 %v9581_v18, %v2140_v26 }
  0x69   : > { %1670 = vmatpush.xpose.msrb.mxu2 %v9505_v37  ;;  %1694 = vmatpush.xpose.msrb.mxu3 %v9490_v20  ;;  %v1615_v2 = vand.u32 4294901760, %v1614_v54  ;;  %v2146_v37 = vand.u32 4294901760, %v9600_v32 }
  0x6a   : > { %1530 = vmatmul.f32.vlgmr.msra.gmra.mxu1 %v1445_v21  ;;  %v1972_v21 = vand.u32 4294901760, %v1971_v15  ;;  %v2142_v43 = vand.u32 4294901760, %v2141_v33 }
  0x6b   : > { %1639 = vmatpush.xpose.msrb.mxu1 %v1638_v50  ;;  %1719 = vmatpush.xpose.msra.mxu0 %v1636_v36  ;;  %v357_v50 = vld [vmem:[%s9253_s12 + $0xb0] sm:$0xff] }
  0x6c   : > { %1616 = vmatmul.f32.vlgmr.msrb.gmra.mxu0 %v1615_v2  ;;  %1698 = vmatmul.f32.vlgmr.msrb.gmra.mxu3 %v1613_v46  ;;  %v1973_v27 = vsub.f32 %v1971_v15, %v1972_v21  ;;  %v453_v54 = vadd.f32 %v357_v50, %v9248_v1 }
  0x6d   : > { %1776 = vmatpush.xpose.msra.mxu2 %v9483_v29  ;;  %1807 = vmatpush.xpose.msra.mxu3 %v1806_v58 }
  0x6e   : > { %1673 = vmatmul.f32.vlgmr.msrb.gmra.mxu2 %v1612_v41  ;;  %v358_v41 = vld [vmem:[%s9253_s12 + $0xb8] sm:$0xff]  ;;  %v2428_v62 = vsel %vm575_vm0, %v453_v54, 0 }
  0x6f   : > { %1645 = vmatpush.xpose.msrb.mxu1 %v1644_v59  ;;  %1723 = vmatpush.xpose.msra.mxu0 %v1642_v47  ;;  %v454_v49 = vadd.f32 %v358_v41, %v9243_v0  ;;  %v9667_v7 = vand.u32 4294901760, %v2428_v62  ;;  %v539_v41 = vld [vmem:[%s9263_s17 + $0x60] sm:$0xff] }
  0x71   : > { %1778 = vmatpush.xpose.msra.mxu2 %v9507_v39  ;;  %1813 = vmatpush.xpose.msra.mxu3 %v1812_v9  ;;  %v538_v9 = vld [vmem:[%s9263_s17 + $0x58] sm:$0xff] }
  0x72   : > { %1647 = vmatmul.f32.vlgmr.msrb.gmra.mxu1 %v9498_v34 }
  0x73   : > { %1744 = vmatpush.xpose.msra.mxu1 %v9474_v22  ;;  %1835 = vmatpush.xpose.msrb.mxu0 %v9501_v30  ;;  %v9585_v22 = vsub.f32 %v1924_v10, %v9570_v3  ;;  %v1974_v30 = vand.u32 4294901760, %v1973_v27 }
  0x74   : > { %1725 = vmatmul.f32.vlgmr.msra.gmra.mxu0 %v9498_v34  ;;  %1815 = vmatmul.f32.vlgmr.msra.gmra.mxu3 %v9531_v52 }
  0x75   : > { %1887 = vmatpush.xpose.msrb.mxu2 %v1804_v42  ;;  %1912 = vmatpush.xpose.msrb.mxu3 %v9483_v29  ;;  %v1978_v28 = vand.u32 4294901760, %v9585_v22  ;;  %v355_v42 = vld [vmem:[%s9253_s12 + $0xa0] sm:$0xff] }
  0x76   : > { %1784 = vmatmul.f32.vlgmr.msra.gmra.mxu2 %v1783_v19  ;;  %v451_v46 = vadd.f32 %v355_v42, %v9248_v1 }
  0x77   : > { %1746 = vmatpush.xpose.msra.mxu1 %v9490_v20  ;;  %1838 = vmatpush.xpose.msrb.mxu0 %v9520_v48  ;;  %v2089_v20 = vsel %vm575_vm0, %v536_v24, 0  ;;  %v1979_v35 = vsub.f32 %v9585_v22, %v1978_v28  ;;  %v456_v24 = vadd.f32 %v360_v14, %v9243_v0 }
  0x78   : > { %v9611_v36 = vand.u32 4294901760, %v2089_v20  ;;  %v2260_v57 = vsel %vm575_vm0, %v451_v46, 0 }
  0x79   : > { %1891 = vmatpush.xpose.msrb.mxu2 %v1810_v53  ;;  %1914 = vmatpush.xpose.msrb.mxu3 %v9507_v39  ;;  %v1980_v47 = vand.u32 4294901760, %v1979_v35  ;;  %v2431_v53 = vsel %vm575_vm0, %v454_v49, 0  ;;  %v9650_v45 = vand.u32 4294901760, %v2260_v57  ;;  %v2599_v31 = vsel %vm575_vm0, %v456_v24, 0 }
  0x7a   : > { %1748 = vmatmul.f32.vlgmr.msra.gmra.mxu1 %v9498_v34  ;;  %v9623_v48 = vsub.f32 %v2089_v20, %v9611_v36  ;;  %v2147_v34 = vsub.f32 %v9600_v32, %v2146_v37  ;;  %v9643_v58 = vand.u32 4294901760, %v2431_v53  ;;  %v9714_v35 = vand.u32 4294901760, %v2599_v31 }
  0x7b   : > { %1860 = vmatpush.xpose.msrb.mxu1 %v9483_v29  ;;  %1944 = vmatpush.xpose.msra.mxu0 %v9554_v6  ;;  %v1949_v29 = vand.u32 4294901760, %v1948_v25  ;;  %v2593_v49 = vsel %vm575_vm0, %v539_v41, 0 }
  0x7c   : > { %1841 = vmatmul.f32.vlgmr.msrb.gmra.mxu0 %v9543_v60  ;;  %1916 = vmatmul.f32.vlgmr.msrb.gmra.mxu3 %v9531_v52  ;;  %v2117_v51 = vand.u32 4294901760, %v9623_v48  ;;  %v2148_v56 = vand.u32 4294901760, %v2147_v34  ;;  %v2257_v60 = vsel %vm575_vm0, %v537_v55, 0  ;;  %v9661_v2 = vsub.f32 %v2431_v53, %v9643_v58  ;;  %v540_v53 = vld [vmem:[%s9263_s17 + $0x68] sm:$0xff] }
  0x7d   : > { %2003 = vmatpush.xpose.msra.mxu2 %v1971_v15  ;;  %2028 = vmatpush.xpose.msra.mxu3 %v9554_v6  ;;  %v9658_v63 = vand.u32 4294901760, %v2257_v60  ;;  %v9680_v15 = vsub.f32 %v2428_v62, %v9667_v7  ;;  %v9740_v34 = vand.u32 4294901760, %v2593_v49 }
  0x7e   : > { %1893 = vmatmul.f32.vlgmr.msrb.gmra.mxu2 %v9531_v52  ;;  %v9634_v52 = vand.u32 4294901760, %v2263_v38  ;;  %v2118_v59 = vsub.f32 %v9623_v48, %v2117_v51  ;;  %v2476_v11 = vand.u32 4294901760, %v9661_v2 }
  0x7f   : > { %1862 = vmatpush.xpose.msrb.mxu1 %v9507_v39  ;;  %v1950_v39 = vsub.f32 %v1948_v25, %v1949_v29  ;;  %1946 = vmatpush.xpose.msra.mxu0 %v9570_v3  ;;  %v2284_v10 = vsub.f32 %v2257_v60, %v9658_v63 }
  0x80   : > { %v2307_v61 = vsub.f32 %v2263_v38, %v9634_v52  ;;  %v2119_v4 = vand.u32 4294901760, %v2118_v59  ;;  %v2477_v16 = vsub.f32 %v9661_v2, %v2476_v11 }
  0x81   : > { %2006 = vmatpush.xpose.msra.mxu2 %v9585_v22  ;;  %2030 = vmatpush.xpose.msra.mxu3 %v9570_v3  ;;  %v1951_v44 = vand.u32 4294901760, %v1950_v39  ;;  %v2482_v22 = vand.u32 4294901760, %v9680_v15 }
  0x82   : > { %1866 = vmatmul.f32.vlgmr.msrb.gmra.mxu1 %v1781_v5  ;;  %v2308_v5 = vand.u32 4294901760, %v2307_v61  ;;  %v2478_v27 = vand.u32 4294901760, %v2477_v16 }
  0x83   : > { %1975 = vmatpush.xpose.msra.mxu1 %v1974_v30  ;;  %2055 = vmatpush.xpose.msrb.mxu0 %v1972_v21  ;;  %v361_v30 = vld [vmem:[%s9253_s12 + $0xd0] sm:$0xff] }
  0x84   : > { %1952 = vmatmul.f32.vlgmr.msra.gmra.mxu0 %v1951_v44  ;;  %2034 = vmatmul.f32.vlgmr.msra.gmra.mxu3 %v1949_v29  ;;  %v2309_v8 = vsub.f32 %v2307_v61, %v2308_v5  ;;  %v457_v42 = vadd.f32 %v361_v30, %v9248_v1 }
  0x85   : > { %2112 = vmatpush.xpose.msrb.mxu2 %v9563_v12  ;;  %2143 = vmatpush.xpose.msrb.mxu3 %v2142_v43 }
  0x86   : > { %2009 = vmatmul.f32.vlgmr.msra.gmra.mxu2 %v1948_v25  ;;  %v362_v25 = vld [vmem:[%s9253_s12 + $0xd8] sm:$0xff] }
  0x87   : > { %1981 = vmatpush.xpose.msra.mxu1 %v1980_v47  ;;  %2059 = vmatpush.xpose.msrb.mxu0 %v1978_v28  ;;  %v458_v20 = vadd.f32 %v362_v25, %v9243_v0  ;;  %v9730_v47 = vsub.f32 %v2599_v31, %v9714_v35  ;;  %v365_v31 = vld [vmem:[%s9253_s12 + $0xf0] sm:$0xff] }
  0x89   : > { %2114 = vmatpush.xpose.msrb.mxu2 %v9587_v23  ;;  %2149 = vmatpush.xpose.msrb.mxu3 %v2148_v56  ;;  %v2644_v50 = vand.u32 4294901760, %v9730_v47  ;;  %v9757_v56 = vsub.f32 %v2593_v49, %v9740_v34 }
  0x8a   : > { %1983 = vmatmul.f32.vlgmr.msra.gmra.mxu1 %v9578_v17 }
  0x8b   : > { %2080 = vmatpush.xpose.msrb.mxu1 %v9554_v6  ;;  %2171 = vmatpush.xpose.msra.mxu0 %v9581_v18  ;;  %v9665_v6 = vsub.f32 %v2260_v57, %v9650_v45  ;;  %v2310_v18 = vand.u32 4294901760, %v2309_v8  ;;  %v2645_v55 = vsub.f32 %v9730_v47, %v2644_v50 }
  0x8c   : > { %2061 = vmatmul.f32.vlgmr.msrb.gmra.mxu0 %v9578_v17  ;;  %2151 = vmatmul.f32.vlgmr.msrb.gmra.mxu3 %v9611_v36 }
  0x8d   : > { %2223 = vmatpush.xpose.msra.mxu2 %v2140_v26  ;;  %2248 = vmatpush.xpose.msra.mxu3 %v9563_v12  ;;  %v2314_v13 = vand.u32 4294901760, %v9665_v6  ;;  %v359_v26 = vld [vmem:[%s9253_s12 + $0xc0] sm:$0xff] }
  0x8e   : > { %2120 = vmatmul.f32.vlgmr.msrb.gmra.mxu2 %v2119_v4  ;;  %v455_v29 = vadd.f32 %v359_v26, %v9248_v1  ;;  %v2764_v1 = vsel %vm575_vm0, %v457_v42, 0  ;;  %v541_v42 = vld [vmem:[%s9263_s17 + $0x70] sm:$0xff] }
  0x8f   : > { %2082 = vmatpush.xpose.msrb.mxu1 %v9570_v3  ;;  %2174 = vmatpush.xpose.msra.mxu0 %v9600_v32  ;;  %v2425_v3 = vsel %vm575_vm0, %v538_v9, 0  ;;  %v2315_v19 = vsub.f32 %v9665_v6, %v2314_v13  ;;  %v2646_v9 = vand.u32 4294901760, %v2645_v55 }
  0x90   : > { %v9691_v21 = vand.u32 4294901760, %v2425_v3  ;;  %v2596_v40 = vsel %vm575_vm0, %v455_v29, 0 }
  0x91   : > { %2227 = vmatpush.xpose.msra.mxu2 %v2146_v37  ;;  %2250 = vmatpush.xpose.msra.mxu3 %v9587_v23  ;;  %v2316_v28 = vand.u32 4294901760, %v2315_v19 }
  0x92   : > { %2084 = vmatmul.f32.vlgmr.msrb.gmra.mxu1 %v9578_v17  ;;  %v9703_v32 = vsub.f32 %v2425_v3, %v9691_v21  ;;  %v2483_v17 = vsub.f32 %v9680_v15, %v2482_v22  ;;  %v366_v3 = vld [vmem:[%s9253_s12 + $0xf8] sm:$0xff] }
  0x93   : > { %2196 = vmatpush.xpose.msra.mxu1 %v9563_v12  ;;  %2280 = vmatpush.xpose.msrb.mxu0 %v9634_v52  ;;  %v2285_v12 = vand.u32 4294901760, %v2284_v10 }
  0x94   : > { %2177 = vmatmul.f32.vlgmr.msra.gmra.mxu0 %v9623_v48  ;;  %2252 = vmatmul.f32.vlgmr.msra.gmra.mxu3 %v9611_v36  ;;  %v2453_v0 = vand.u32 4294901760, %v9703_v32  ;;  %v2484_v37 = vand.u32 4294901760, %v2483_v17  ;;  %v9732_v48 = vand.u32 4294901760, %v2596_v40 }
  0x95   : > { %2339 = vmatpush.xpose.msrb.mxu2 %v2307_v61  ;;  %2364 = vmatpush.xpose.msrb.mxu3 %v9634_v52 }
  0x96   : > { %2229 = vmatmul.f32.vlgmr.msra.gmra.mxu2 %v9611_v36  ;;  %v2767_v36 = vsel %vm575_vm0, %v458_v20, 0  ;;  %v2454_v43 = vsub.f32 %v9703_v32, %v2453_v0 }
  0x97   : > { %2198 = vmatpush.xpose.msra.mxu1 %v9587_v23  ;;  %v2286_v23 = vsub.f32 %v2284_v10, %v2285_v12  ;;  %2282 = vmatpush.xpose.msrb.mxu0 %v9650_v45  ;;  %v9723_v39 = vand.u32 4294901760, %v2767_v36 }
  0x98   : > { %v2455_v44 = vand.u32 4294901760, %v2454_v43 }
  0x99   : > { %2342 = vmatpush.xpose.msrb.mxu2 %v9665_v6  ;;  %2366 = vmatpush.xpose.msrb.mxu3 %v9650_v45  ;;  %v2287_v33 = vand.u32 4294901760, %v2286_v23  ;;  %v9743_v38 = vsub.f32 %v2767_v36, %v9723_v39 }
  0x9a   : > { %2202 = vmatmul.f32.vlgmr.msra.gmra.mxu1 %v2117_v51  ;;  %v9748_v51 = vsub.f32 %v2596_v40, %v9732_v48 }
  0x9b   : > { %2311 = vmatpush.xpose.msrb.mxu1 %v2310_v18  ;;  %2391 = vmatpush.xpose.msra.mxu0 %v2308_v5  ;;  %v2812_v57 = vand.u32 4294901760, %v9743_v38 }
  0x9c   : > { %2288 = vmatmul.f32.vlgmr.msrb.gmra.mxu0 %v2287_v33  ;;  %2370 = vmatmul.f32.vlgmr.msrb.gmra.mxu3 %v2285_v12  ;;  %v2650_v54 = vand.u32 4294901760, %v9748_v51 }
  0x9d   : > { %2448 = vmatpush.xpose.msra.mxu2 %v9643_v58  ;;  %2479 = vmatpush.xpose.msra.mxu3 %v2478_v27  ;;  %v2813_v4 = vsub.f32 %v9743_v38, %v2812_v57 }
  0x9e   : > { %2345 = vmatmul.f32.vlgmr.msrb.gmra.mxu2 %v2284_v10  ;;  %v2651_v10 = vsub.f32 %v9748_v51, %v2650_v54 }
  0x9f   : > { %2317 = vmatpush.xpose.msrb.mxu1 %v2316_v28  ;;  %2395 = vmatpush.xpose.msra.mxu0 %v2314_v13  ;;  %v9126_v13 = vld [vmem:[%s11841_s0 + $0x8] sm:$0xff]  ;;  %v2814_v16 = vand.u32 4294901760, %v2813_v4 }
  0xa0   : > { %v2652_v19 = vand.u32 4294901760, %v2651_v10 }
  0xa1   : > { %2450 = vmatpush.xpose.msra.mxu2 %v9667_v7  ;;  %2485 = vmatpush.xpose.msra.mxu3 %v2484_v37  ;;  %v609_v46 = vpop.f32.mrf.mxu0 }
  0xa2   : > { %2319 = vmatmul.f32.vlgmr.msrb.gmra.mxu1 %v9658_v63 }
  0xa3   : > { %2416 = vmatpush.xpose.msra.mxu1 %v9634_v52  ;;  %2507 = vmatpush.xpose.msrb.mxu0 %v9661_v2  ;;  %v9750_v52 = vand.u32 4294901760, %v2764_v1  ;;  %v2621_v2 = vand.u32 4294901760, %v9757_v56 }
  0xa4   : > { %2397 = vmatmul.f32.vlgmr.msra.gmra.mxu0 %v9658_v63  ;;  %2487 = vmatmul.f32.vlgmr.msra.gmra.mxu3 %v9691_v21 }
  0xa5   : > { %2559 = vmatpush.xpose.msrb.mxu2 %v2476_v11  ;;  %2584 = vmatpush.xpose.msrb.mxu3 %v9643_v58  ;;  %v691_v59 = vpop.f32.mrf.mxu3  ;;  %v9766_v61 = vsub.f32 %v2764_v1, %v9750_v52  ;;  %v2622_v12 = vsub.f32 %v9757_v56, %v2621_v2 }
  0xa6   : > { %2456 = vmatmul.f32.vlgmr.msra.gmra.mxu2 %v2455_v44 }
  0xa7   : > { %2418 = vmatpush.xpose.msra.mxu1 %v9650_v45  ;;  %2510 = vmatpush.xpose.msrb.mxu0 %v9680_v15  ;;  %v2761_v45 = vsel %vm575_vm0, %v540_v53, 0  ;;  %v640_v60 = vpop.f32.mrf.mxu1  ;;  %v666_v62 = vpop.f32.mrf.mxu2  ;;  %v2818_v8 = vand.u32 4294901760, %v9766_v61  ;;  %v2623_v17 = vand.u32 4294901760, %v2622_v12 }
  0xa8   : > { %v641_v5 = vadd.f32 %v640_v60, %v609_v46  ;;  %v9781_v11 = vand.u32 4294901760, %v2761_v45  ;;  %v542_v60 = vld [vmem:[%s9263_s17 + $0x78] sm:$0xff] }
  0xa9   : > { %2563 = vmatpush.xpose.msrb.mxu2 %v2482_v22  ;;  %2586 = vmatpush.xpose.msrb.mxu3 %v9667_v7  ;;  %v718_v6 = vpop.f32.mrf.mxu0  ;;  %v2819_v24 = vsub.f32 %v9766_v61, %v2818_v8 }
  0xaa   : > { %v667_v14 = vadd.f32 %v666_v62, %v641_v5  ;;  %2420 = vmatmul.f32.vlgmr.msra.gmra.mxu1 %v9658_v63  ;;  %v9796_v22 = vsub.f32 %v2761_v45, %v9781_v11  ;;  %v462_v63 = vadd.f32 %v9126_v13, %v366_v3 }
  0xab   : > { %2532 = vmatpush.xpose.msrb.mxu1 %v9643_v58  ;;  %2616 = vmatpush.xpose.msra.mxu0 %v9714_v35  ;;  %v364_v58 = vld [vmem:[%s9253_s12 + $0xe8] sm:$0xff]  ;;  %v2820_v40 = vand.u32 4294901760, %v2819_v24  ;;  %v370_v24 = vld [vmem:[%s9253_s12 + $0x118] sm:$0xff] }
  0xac   : > { %v460_v15 = vadd.f32 %v9126_v13, %v364_v58  ;;  %2513 = vmatmul.f32.vlgmr.msrb.gmra.mxu0 %v9703_v32  ;;  %2588 = vmatmul.f32.vlgmr.msrb.gmra.mxu3 %v9691_v21  ;;  %v692_v18 = vadd.f32 %v691_v59, %v667_v14  ;;  %v2789_v30 = vand.u32 4294901760, %v9796_v22  ;;  %v3103_v37 = vsel %vm575_vm0, %v462_v63, 0 }
  0xad   : > { %2675 = vmatpush.xpose.msra.mxu2 %v9730_v47  ;;  %2700 = vmatpush.xpose.msra.mxu3 %v9714_v35  ;;  %v9822_v47 = vand.u32 4294901760, %v3103_v37 }
  0xae   : > { %2565 = vmatmul.f32.vlgmr.msrb.gmra.mxu2 %v9691_v21  ;;  %v2935_v25 = vsel %vm575_vm0, %v460_v15, 0  ;;  %v9127_v21 = vld [vmem:[%s11841_s0] sm:$0xff]  ;;  %v9807_v23 = vadd.f32 %v718_v6, %v692_v18  ;;  %v2790_v49 = vsub.f32 %v9796_v22, %v2789_v30 }
  0xaf   : > { %2534 = vmatpush.xpose.msrb.mxu1 %v9667_v7  ;;  %v363_v7 = vld [vmem:[%s9253_s12 + $0xe0] sm:$0xff]  ;;  %2618 = vmatpush.xpose.msra.mxu0 %v9732_v48  ;;  %v808_v27 = vpop.f32.mrf.mxu3  ;;  %v9810_v28 = vpop.f32.mrf.mxu1  ;;  %v9814_v36 = vand.u32 4294901760, %v2935_v25  ;;  %v461_v43 = vadd.f32 %v9127_v21, %v365_v31 }
  0xb0   : > { %v459_v26 = vadd.f32 %v9127_v21, %v363_v7  ;;  %v2791_v59 = vand.u32 4294901760, %v2790_v49  ;;  %v367_v21 = vld [vmem:[%s9253_s12 + $0x100] sm:$0xff]  ;;  %v369_v49 = vld [vmem:[%s9253_s12 + $0x110] sm:$0xff] }
  0xb1   : > { %2678 = vmatpush.xpose.msra.mxu2 %v9748_v51  ;;  %2702 = vmatpush.xpose.msra.mxu3 %v9732_v48  ;;  %v777_v20 = vpop.f32.mrf.mxu2  ;;  %v834_v33 = vpop.f32.mrf.mxu0  ;;  %v9830_v1 = vsub.f32 %v2935_v25, %v9814_v36  ;;  %v9845_v51 = vsub.f32 %v3103_v37, %v9822_v47 }
  0xb2   : > { %v809_v29 = vadd.f32 %v808_v27, %v777_v20  ;;  %v2932_v41 = vsel %vm575_vm0, %v459_v26, 0  ;;  %2538 = vmatmul.f32.vlgmr.msrb.gmra.mxu1 %v2453_v0  ;;  %v2929_v0 = vsel %vm575_vm0, %v541_v42, 0 }
  0xb3   : > { %2647 = vmatpush.xpose.msra.mxu1 %v2646_v9  ;;  %2727 = vmatpush.xpose.msrb.mxu0 %v2644_v50  ;;  %v9832_v32 = vand.u32 4294901760, %v2932_v41  ;;  %v3148_v62 = vand.u32 4294901760, %v9845_v51  ;;  %v3097_v9 = vsel %vm575_vm0, %v542_v60, 0 }
  0xb4   : > { %2624 = vmatmul.f32.vlgmr.msra.gmra.mxu0 %v2623_v17  ;;  %2706 = vmatmul.f32.vlgmr.msra.gmra.mxu3 %v2621_v2  ;;  %v835_v46 = vadd.f32 %v834_v33, %v809_v29  ;;  %v9892_v18 = vand.u32 4294901760, %v3097_v9 }
  0xb5   : > { %2784 = vmatpush.xpose.msrb.mxu2 %v9723_v39  ;;  %2815 = vmatpush.xpose.msrb.mxu3 %v2814_v16  ;;  %v3149_v3 = vsub.f32 %v9845_v51, %v3148_v62 }
  0xb6   : > { %2681 = vmatmul.f32.vlgmr.msra.gmra.mxu2 %v9757_v56  ;;  %v9842_v56 = vand.u32 4294901760, %v2929_v0  ;;  %v9910_v17 = vsub.f32 %v3097_v9, %v9892_v18 }
  0xb7   : > { %2653 = vmatpush.xpose.msra.mxu1 %v2652_v19  ;;  %2731 = vmatpush.xpose.msrb.mxu0 %v2650_v54  ;;  %v909_v44 = vpop.f32.mrf.mxu3  ;;  %v859_v50 = vpop.f32.mrf.mxu1  ;;  %v3150_v27 = vand.u32 4294901760, %v3149_v3  ;;  %v544_v3 = vld [vmem:[%s9263_s17 + $0x88] sm:$0xff] }
  0xb8   : > { %v860_v55 = vadd.f32 %v859_v50, %v835_v46  ;;  %v3125_v46 = vand.u32 4294901760, %v9910_v17 }
  0xb9   : > { %2786 = vmatpush.xpose.msrb.mxu2 %v9750_v52  ;;  %2821 = vmatpush.xpose.msrb.mxu3 %v2820_v40  ;;  %v886_v53 = vpop.f32.mrf.mxu2  ;;  %v945_v54 = vpop.f32.mrf.mxu0 }
  0xba   : > { %v887_v58 = vadd.f32 %v886_v53, %v860_v55  ;;  %2655 = vmatmul.f32.vlgmr.msra.gmra.mxu1 %v9740_v34  ;;  %v543_v55 = vld [vmem:[%s9263_s17 + $0x80] sm:$0xff] }
  0xbb   : > { %2752 = vmatpush.xpose.msrb.mxu1 %v9714_v35  ;;  %2843 = vmatpush.xpose.msra.mxu0 %v9743_v38  ;;  %v3100_v35 = vsel %vm575_vm0, %v461_v43, 0  ;;  %v9850_v38 = vsub.f32 %v2932_v41, %v9832_v32 }
  0xbc   : > { %v9852_v45 = vand.u32 4294901760, %v3100_v35  ;;  %2733 = vmatmul.f32.vlgmr.msrb.gmra.mxu0 %v9740_v34  ;;  %2823 = vmatmul.f32.vlgmr.msrb.gmra.mxu3 %v9781_v11  ;;  %v9864_v2 = vadd.f32 %v909_v44, %v887_v58 }
  0xbd   : > { %2895 = vmatpush.xpose.msra.mxu2 %v2812_v57  ;;  %2920 = vmatpush.xpose.msra.mxu3 %v9723_v39  ;;  %v2980_v57 = vand.u32 4294901760, %v9830_v1  ;;  %v2986_v5 = vand.u32 4294901760, %v9850_v38 }
  0xbe   : > { %2792 = vmatmul.f32.vlgmr.msrb.gmra.mxu2 %v2791_v59  ;;  %v9872_v6 = vsub.f32 %v3100_v35, %v9852_v45 }
  0xbf   : > { %2754 = vmatpush.xpose.msrb.mxu1 %v9732_v48  ;;  %v9861_v48 = vsub.f32 %v2929_v0, %v9842_v56  ;;  %v2981_v4 = vsub.f32 %v9830_v1, %v2980_v57  ;;  %2846 = vmatpush.xpose.msra.mxu0 %v9766_v61  ;;  %v1027_v10 = vpop.f32.mrf.mxu3  ;;  %v976_v61 = vpop.f32.mrf.mxu1  ;;  %v2987_v16 = vsub.f32 %v9850_v38, %v2986_v5 }
  0xc0   : > { %v977_v14 = vadd.f32 %v976_v61, %v945_v54  ;;  %v3154_v19 = vand.u32 4294901760, %v9872_v6 }
  0xc1   : > { %2899 = vmatpush.xpose.msra.mxu2 %v2818_v8  ;;  %2922 = vmatpush.xpose.msra.mxu3 %v9750_v52  ;;  %v368_v8 = vld [vmem:[%s9253_s12 + $0x108] sm:$0xff]  ;;  %v1002_v13 = vpop.f32.mrf.mxu2  ;;  %v2957_v15 = vand.u32 4294901760, %v9861_v48  ;;  %v1054_v7 = vpop.f32.mrf.mxu0  ;;  %v2982_v12 = vand.u32 4294901760, %v2981_v4 }
  0xc2   : > { %v1003_v25 = vadd.f32 %v1002_v13, %v977_v14  ;;  %2756 = vmatmul.f32.vlgmr.msrb.gmra.mxu1 %v9740_v34  ;;  %v2988_v34 = vand.u32 4294901760, %v2987_v16  ;;  %v3155_v29 = vsub.f32 %v9872_v6, %v3154_v19 }
  0xc3   : > { %2868 = vmatpush.xpose.msra.mxu1 %v9723_v39  ;;  %2952 = vmatpush.xpose.msrb.mxu0 %v9814_v36  ;;  %v9880_v39 = vld [vmem:[%s11841_s0 + $0x18] sm:$0xff]  ;;  %v2958_v26 = vsub.f32 %v9861_v48, %v2957_v15 }
  0xc4   : > { %v464_v63 = vadd.f32 %v368_v8, %v9880_v39  ;;  %2849 = vmatmul.f32.vlgmr.msra.gmra.mxu0 %v9796_v22  ;;  %2924 = vmatmul.f32.vlgmr.msra.gmra.mxu3 %v9781_v11  ;;  %v1028_v20 = vadd.f32 %v1027_v10, %v1003_v25  ;;  %v466_v31 = vadd.f32 %v370_v24, %v9880_v39  ;;  %v3156_v50 = vand.u32 4294901760, %v3155_v29 }
  0xc5   : > { %3011 = vmatpush.xpose.msrb.mxu2 %v9830_v1  ;;  %3036 = vmatpush.xpose.msrb.mxu3 %v9814_v36  ;;  %v2959_v43 = vand.u32 4294901760, %v2958_v26 }
  0xc6   : > { %2901 = vmatmul.f32.vlgmr.msra.gmra.mxu2 %v9781_v11  ;;  %v3271_v33 = vsel %vm575_vm0, %v464_v63, 0  ;;  %v9920_v37 = vadd.f32 %v1054_v7, %v1028_v20  ;;  %v3439_v35 = vsel %vm575_vm0, %v466_v31, 0  ;;  %v3433_v63 = vsel %vm575_vm0, %v544_v3, 0 }
  0xc7   : > { %2870 = vmatpush.xpose.msra.mxu1 %v9750_v52  ;;  %v9902_v52 = vld [vmem:[%s11841_s0 + $0x10] sm:$0xff]  ;;  %2954 = vmatpush.xpose.msrb.mxu0 %v9832_v32  ;;  %v1144_v40 = vpop.f32.mrf.mxu3  ;;  %v9923_v41 = vpop.f32.mrf.mxu1  ;;  %v9927_v44 = vand.u32 4294901760, %v3271_v33  ;;  %v9936_v59 = vand.u32 4294901760, %v3439_v35  ;;  %v10001_v29 = vand.u32 4294901760, %v3433_v63 }
  0xc8   : > { %v463_v11 = vadd.f32 %v367_v21, %v9902_v52  ;;  %v465_v54 = vadd.f32 %v369_v49, %v9902_v52 }
  0xc9   : > { %3014 = vmatpush.xpose.msrb.mxu2 %v9850_v38  ;;  %3038 = vmatpush.xpose.msrb.mxu3 %v9832_v32  ;;  %v1113_v42 = vpop.f32.mrf.mxu2  ;;  %v1170_v0 = vpop.f32.mrf.mxu0  ;;  %v9944_v58 = vsub.f32 %v3271_v33, %v9927_v44  ;;  %v9959_v38 = vsub.f32 %v3439_v35, %v9936_v59  ;;  %v10014_v35 = vsub.f32 %v3433_v63, %v10001_v29 }
  0xca   : > { %v1145_v1 = vadd.f32 %v1144_v40, %v1113_v42  ;;  %v3268_v53 = vsel %vm575_vm0, %v463_v11, 0  ;;  %2874 = vmatmul.f32.vlgmr.msra.gmra.mxu1 %v2789_v30  ;;  %v3265_v30 = vsel %vm575_vm0, %v543_v55, 0  ;;  %v374_v40 = vld [vmem:[%s9253_s12 + $0x138] sm:$0xff] }
  0xcb   : > { %2983 = vmatpush.xpose.msrb.mxu1 %v2982_v12  ;;  %3063 = vmatpush.xpose.msra.mxu0 %v2980_v57  ;;  %v3126_v57 = vsub.f32 %v9910_v17, %v3125_v46  ;;  %v9946_v22 = vand.u32 4294901760, %v3268_v53  ;;  %v9956_v10 = vand.u32 4294901760, %v3265_v30  ;;  %v3484_v14 = vand.u32 4294901760, %v9959_v38 }
  0xcc   : > { %2960 = vmatmul.f32.vlgmr.msrb.gmra.mxu0 %v2959_v43  ;;  %3042 = vmatmul.f32.vlgmr.msrb.gmra.mxu3 %v2957_v15  ;;  %v1171_v60 = vadd.f32 %v1170_v0, %v1145_v1  ;;  %v371_v43 = vld [vmem:[%s9253_s12 + $0x120] sm:$0xff] }
  0xcd   : > { %3120 = vmatpush.xpose.msra.mxu2 %v9822_v47  ;;  %3151 = vmatpush.xpose.msra.mxu3 %v3150_v27  ;;  %v3127_v61 = vand.u32 4294901760, %v3126_v57  ;;  %v3485_v26 = vsub.f32 %v9959_v38, %v3484_v14 }
  0xce   : > { %3017 = vmatmul.f32.vlgmr.msrb.gmra.mxu2 %v9861_v48 }
  0xcf   : > { %2989 = vmatpush.xpose.msrb.mxu1 %v2988_v34  ;;  %3067 = vmatpush.xpose.msra.mxu0 %v2986_v5  ;;  %v1245_v4 = vpop.f32.mrf.mxu3  ;;  %v1195_v48 = vpop.f32.mrf.mxu1  ;;  %v3486_v49 = vand.u32 4294901760, %v3485_v26 }
  0xd0   : > { %v1196_v5 = vadd.f32 %v1195_v48, %v1171_v60  ;;  %v373_v60 = vld [vmem:[%s9253_s12 + $0x130] sm:$0xff]  ;;  %v3461_v48 = vand.u32 4294901760, %v10014_v35 }
  0xd1   : > { %3122 = vmatpush.xpose.msra.mxu2 %v9852_v45  ;;  %3157 = vmatpush.xpose.msra.mxu3 %v3156_v50  ;;  %v1222_v9 = vpop.f32.mrf.mxu2  ;;  %v1281_v8 = vpop.f32.mrf.mxu0 }
  0xd2   : > { %v1223_v15 = vadd.f32 %v1222_v9, %v1196_v5  ;;  %2991 = vmatmul.f32.vlgmr.msrb.gmra.mxu1 %v9842_v56 }
  0xd3   : > { %3088 = vmatpush.xpose.msra.mxu1 %v9814_v36  ;;  %3179 = vmatpush.xpose.msrb.mxu0 %v9845_v51  ;;  %v3436_v36 = vsel %vm575_vm0, %v465_v54, 0  ;;  %v9964_v51 = vsub.f32 %v3268_v53, %v9946_v22 }
  0xd4   : > { %v9966_v13 = vand.u32 4294901760, %v3436_v36  ;;  %3069 = vmatmul.f32.vlgmr.msra.gmra.mxu0 %v9842_v56  ;;  %3159 = vmatmul.f32.vlgmr.msra.gmra.mxu3 %v9892_v18  ;;  %v9978_v7 = vadd.f32 %v1245_v4, %v1223_v15  ;;  %v545_v15 = vld [vmem:[%s9263_s17 + $0x90] sm:$0xff] }
  0xd5   : > { %3231 = vmatpush.xpose.msrb.mxu2 %v3148_v62  ;;  %3256 = vmatpush.xpose.msrb.mxu3 %v9822_v47  ;;  %v3316_v62 = vand.u32 4294901760, %v9944_v58  ;;  %v3322_v16 = vand.u32 4294901760, %v9964_v51 }
  0xd6   : > { %3128 = vmatmul.f32.vlgmr.msra.gmra.mxu2 %v3127_v61 }
  0xd7   : > { %3090 = vmatpush.xpose.msra.mxu1 %v9832_v32  ;;  %v9975_v32 = vsub.f32 %v3265_v30, %v9956_v10  ;;  %v3317_v12 = vsub.f32 %v9944_v58, %v3316_v62  ;;  %3182 = vmatpush.xpose.msrb.mxu0 %v9872_v6  ;;  %v1363_v24 = vpop.f32.mrf.mxu3  ;;  %v1312_v25 = vpop.f32.mrf.mxu1  ;;  %v3323_v31 = vsub.f32 %v9964_v51, %v3322_v16 }
  0xd8   : > { %v1313_v27 = vadd.f32 %v1312_v25, %v1281_v8 }
  0xd9   : > { %3235 = vmatpush.xpose.msrb.mxu2 %v3154_v19  ;;  %3258 = vmatpush.xpose.msrb.mxu3 %v9852_v45  ;;  %v9986_v19 = vsub.f32 %v3436_v36, %v9966_v13  ;;  %v1338_v21 = vpop.f32.mrf.mxu2  ;;  %v3293_v6 = vand.u32 4294901760, %v9975_v32  ;;  %v1390_v20 = vpop.f32.mrf.mxu0  ;;  %v3318_v34 = vand.u32 4294901760, %v3317_v12  ;;  %v3324_v0 = vand.u32 4294901760, %v3323_v31 }
  0xda   : > { %v1339_v42 = vadd.f32 %v1338_v21, %v1313_v27  ;;  %3092 = vmatmul.f32.vlgmr.msra.gmra.mxu1 %v9842_v56  ;;  %v470_v56 = vadd.f32 %v374_v40, %v9880_v39  ;;  %v3462_v12 = vsub.f32 %v10014_v35, %v3461_v48 }
  0xdb   : > { %3204 = vmatpush.xpose.msrb.mxu1 %v9822_v47  ;;  %3288 = vmatpush.xpose.msra.mxu0 %v9927_v44  ;;  %v372_v47 = vld [vmem:[%s9253_s12 + $0x128] sm:$0xff]  ;;  %v3490_v33 = vand.u32 4294901760, %v9986_v19 }
  0xdc   : > { %v468_v11 = vadd.f32 %v372_v47, %v9880_v39  ;;  %3185 = vmatmul.f32.vlgmr.msrb.gmra.mxu0 %v9910_v17  ;;  %3260 = vmatmul.f32.vlgmr.msrb.gmra.mxu3 %v9892_v18  ;;  %v1364_v1 = vadd.f32 %v1363_v24, %v1339_v42  ;;  %v3775_v5 = vsel %vm575_vm0, %v470_v56, 0  ;;  %v3463_v26 = vand.u32 4294901760, %v3462_v12 }
  0xdd   : > { %3347 = vmatpush.xpose.msra.mxu2 %v9944_v58  ;;  %3372 = vmatpush.xpose.msra.mxu3 %v9927_v44  ;;  %v3491_v50 = vsub.f32 %v9986_v19, %v3490_v33  ;;  %v10040_v3 = vand.u32 4294901760, %v3775_v5 }
  0xde   : > { %3237 = vmatmul.f32.vlgmr.msrb.gmra.mxu2 %v9892_v18  ;;  %v3607_v53 = vsel %vm575_vm0, %v468_v11, 0  ;;  %v467_v18 = vadd.f32 %v371_v43, %v9902_v52  ;;  %v10024_v55 = vadd.f32 %v1390_v20, %v1364_v1 }
  0xdf   : > { %3206 = vmatpush.xpose.msrb.mxu1 %v9852_v45  ;;  %v3294_v45 = vsub.f32 %v9975_v32, %v3293_v6  ;;  %3290 = vmatpush.xpose.msra.mxu0 %v9946_v22  ;;  %v1480_v54 = vpop.f32.mrf.mxu3  ;;  %v10027_v57 = vpop.f32.mrf.mxu1  ;;  %v10031_v9 = vand.u32 4294901760, %v3607_v53  ;;  %v3492_v8 = vand.u32 4294901760, %v3491_v50 }
  0xe0   : > { %v3604_v61 = vsel %vm575_vm0, %v467_v18, 0 }
  0xe1   : > { %3350 = vmatpush.xpose.msra.mxu2 %v9964_v51  ;;  %3374 = vmatpush.xpose.msra.mxu3 %v9946_v22  ;;  %v1449_v58 = vpop.f32.mrf.mxu2  ;;  %v3295_v30 = vand.u32 4294901760, %v3294_v45  ;;  %v1506_v36 = vpop.f32.mrf.mxu0  ;;  %v10048_v63 = vsub.f32 %v3607_v53, %v10031_v9  ;;  %v10050_v17 = vand.u32 4294901760, %v3604_v61  ;;  %v10063_v51 = vsub.f32 %v3775_v5, %v10040_v3 }
  0xe2   : > { %v1481_v4 = vadd.f32 %v1480_v54, %v1449_v58  ;;  %3210 = vmatmul.f32.vlgmr.msrb.gmra.mxu1 %v3125_v46  ;;  %v3601_v46 = vsel %vm575_vm0, %v545_v15, 0 }
  0xe3   : > { %3319 = vmatpush.xpose.msra.mxu1 %v3318_v34  ;;  %3399 = vmatpush.xpose.msrb.mxu0 %v3316_v62  ;;  %v469_v62 = vadd.f32 %v373_v60, %v9902_v52  ;;  %v10060_v21 = vand.u32 4294901760, %v3601_v46  ;;  %v546_v34 = vld [vmem:[%s9263_s17 + $0x98] sm:$0xff]  ;;  %v3820_v31 = vand.u32 4294901760, %v10063_v51 }
  0xe4   : > { %3296 = vmatmul.f32.vlgmr.msra.gmra.mxu0 %v3295_v30  ;;  %3378 = vmatmul.f32.vlgmr.msra.gmra.mxu3 %v3293_v6  ;;  %v1507_v24 = vadd.f32 %v1506_v36, %v1481_v4  ;;  %v3769_v43 = vsel %vm575_vm0, %v546_v34, 0  ;;  %v378_v60 = vld [vmem:[%s9253_s12 + $0x158] sm:$0xff]  ;;  %v375_v36 = vld [vmem:[%s9253_s12 + $0x140] sm:$0xff] }
  0xe5   : > { %3456 = vmatpush.xpose.msrb.mxu2 %v9936_v59  ;;  %3487 = vmatpush.xpose.msrb.mxu3 %v3486_v49  ;;  %v10105_v54 = vand.u32 4294901760, %v3769_v43 }
  0xe6   : > { %3353 = vmatmul.f32.vlgmr.msra.gmra.mxu2 %v9975_v32 }
  0xe7   : > { %3325 = vmatpush.xpose.msra.mxu1 %v3324_v0  ;;  %3403 = vmatpush.xpose.msrb.mxu0 %v3322_v16  ;;  %v1581_v47 = vpop.f32.mrf.mxu3  ;;  %v1531_v32 = vpop.f32.mrf.mxu1  ;;  %v3821_v0 = vsub.f32 %v10063_v51, %v3820_v31  ;;  %v10118_v15 = vsub.f32 %v3769_v43, %v10105_v54  ;;  %v547_v43 = vld [vmem:[%s9263_s17 + $0xa0] sm:$0xff] }
  0xe8   : > { %v1532_v16 = vadd.f32 %v1531_v32, %v1507_v24  ;;  %v377_v32 = vld [vmem:[%s9253_s12 + $0x150] sm:$0xff] }
  0xe9   : > { %3458 = vmatpush.xpose.msrb.mxu2 %v9966_v13  ;;  %3493 = vmatpush.xpose.msrb.mxu3 %v3492_v8  ;;  %v1558_v25 = vpop.f32.mrf.mxu2  ;;  %v1617_v6 = vpop.f32.mrf.mxu0  ;;  %v3822_v5 = vand.u32 4294901760, %v3821_v0 }
  0xea   : > { %v1559_v20 = vadd.f32 %v1558_v25, %v1532_v16  ;;  %3327 = vmatmul.f32.vlgmr.msra.gmra.mxu1 %v9956_v10 }
  0xeb   : > { %3424 = vmatpush.xpose.msrb.mxu1 %v9927_v44  ;;  %3515 = vmatpush.xpose.msra.mxu0 %v9959_v38  ;;  %v3772_v44 = vsel %vm575_vm0, %v469_v62, 0  ;;  %v10068_v38 = vsub.f32 %v3604_v61, %v10050_v17 }
  0xec   : > { %v10070_v27 = vand.u32 4294901760, %v3772_v44  ;;  %3405 = vmatmul.f32.vlgmr.msrb.gmra.mxu0 %v9956_v10  ;;  %3495 = vmatmul.f32.vlgmr.msrb.gmra.mxu3 %v10001_v29  ;;  %v10082_v11 = vadd.f32 %v1581_v47, %v1559_v20 }
  0xed   : > { %3567 = vmatpush.xpose.msra.mxu2 %v3484_v14  ;;  %3592 = vmatpush.xpose.msra.mxu3 %v9936_v59  ;;  %v3652_v14 = vand.u32 4294901760, %v10048_v63 }
  0xee   : > { %3464 = vmatmul.f32.vlgmr.msrb.gmra.mxu2 %v3463_v26  ;;  %v10090_v42 = vsub.f32 %v3772_v44, %v10070_v27 }
  0xef   : > { %3426 = vmatpush.xpose.msrb.mxu1 %v9946_v22  ;;  %v10079_v22 = vsub.f32 %v3601_v46, %v10060_v21  ;;  %v3653_v40 = vsub.f32 %v10048_v63, %v3652_v14  ;;  %3518 = vmatpush.xpose.msra.mxu0 %v9986_v19  ;;  %v1699_v45 = vpop.f32.mrf.mxu3  ;;  %v1648_v49 = vpop.f32.mrf.mxu1 }
  0xf0   : > { %v1649_v56 = vadd.f32 %v1648_v49, %v1617_v6  ;;  %v3826_v58 = vand.u32 4294901760, %v10090_v42  ;;  %v3797_v6 = vand.u32 4294901760, %v10118_v15 }
  0xf1   : > { %3571 = vmatpush.xpose.msra.mxu2 %v3490_v33  ;;  %v3658_v33 = vand.u32 4294901760, %v10068_v38  ;;  %3594 = vmatpush.xpose.msra.mxu3 %v9966_v13  ;;  %v1674_v1 = vpop.f32.mrf.mxu2  ;;  %v3629_v19 = vand.u32 4294901760, %v10079_v22  ;;  %v1726_v50 = vpop.f32.mrf.mxu0  ;;  %v3654_v53 = vand.u32 4294901760, %v3653_v40 }
  0xf2   : > { %v1675_v4 = vadd.f32 %v1674_v1, %v1649_v56  ;;  %3428 = vmatmul.f32.vlgmr.msrb.gmra.mxu1 %v9956_v10  ;;  %v474_v10 = vadd.f32 %v378_v60, %v9880_v39  ;;  %v3827_v62 = vsub.f32 %v10090_v42, %v3826_v58  ;;  %v548_v60 = vld [vmem:[%s9263_s17 + $0xa8] sm:$0xff] }
  0xf3   : > { %3540 = vmatpush.xpose.msra.mxu1 %v9936_v59  ;;  %3624 = vmatpush.xpose.msrb.mxu0 %v10031_v9  ;;  %v376_v59 = vld [vmem:[%s9253_s12 + $0x148] sm:$0xff]  ;;  %v3659_v18 = vsub.f32 %v10068_v38, %v3658_v33 }
  0xf4   : > { %v472_v30 = vadd.f32 %v376_v59, %v9880_v39  ;;  %3521 = vmatmul.f32.vlgmr.msra.gmra.mxu0 %v10014_v35  ;;  %3596 = vmatmul.f32.vlgmr.msra.gmra.mxu3 %v10001_v29  ;;  %v1700_v8 = vadd.f32 %v1699_v45, %v1675_v4  ;;  %v4111_v20 = vsel %vm575_vm0, %v474_v10, 0  ;;  %v3828_v34 = vand.u32 4294901760, %v3827_v62 }
  0xf5   : > { %3683 = vmatpush.xpose.msrb.mxu2 %v10048_v63  ;;  %3708 = vmatpush.xpose.msrb.mxu3 %v10031_v9  ;;  %v3660_v61 = vand.u32 4294901760, %v3659_v18  ;;  %v10144_v45 = vand.u32 4294901760, %v4111_v20  ;;  %v3798_v59 = vsub.f32 %v10118_v15, %v3797_v6 }
  0xf6   : > { %3573 = vmatmul.f32.vlgmr.msra.gmra.mxu2 %v10001_v29  ;;  %v3943_v12 = vsel %vm575_vm0, %v472_v30, 0  ;;  %v471_v29 = vadd.f32 %v375_v36, %v9902_v52  ;;  %v10128_v63 = vadd.f32 %v1726_v50, %v1700_v8  ;;  %v4105_v8 = vsel %vm575_vm0, %v548_v60, 0 }
  0xf7   : > { %3542 = vmatpush.xpose.msra.mxu1 %v9966_v13  ;;  %v3630_v13 = vsub.f32 %v10079_v22, %v3629_v19  ;;  %3626 = vmatpush.xpose.msrb.mxu0 %v10050_v17  ;;  %v1816_v46 = vpop.f32.mrf.mxu3  ;;  %v10131_v24 = vpop.f32.mrf.mxu1  ;;  %v10135_v26 = vand.u32 4294901760, %v3943_v12 }
  0xf8   : > { %v3940_v40 = vsel %vm575_vm0, %v471_v29, 0 }
  0xf9   : > { %3686 = vmatpush.xpose.msrb.mxu2 %v10068_v38  ;;  %3710 = vmatpush.xpose.msrb.mxu3 %v10050_v17  ;;  %v1785_v47 = vpop.f32.mrf.mxu2  ;;  %v3631_v44 = vand.u32 4294901760, %v3630_v13  ;;  %v1842_v16 = vpop.f32.mrf.mxu0  ;;  %v10152_v49 = vsub.f32 %v3943_v12, %v10135_v26  ;;  %v10154_v35 = vand.u32 4294901760, %v3940_v40  ;;  %v10167_v38 = vsub.f32 %v4111_v20, %v10144_v45  ;;  %v382_v20 = vld [vmem:[%s9253_s12 + $0x178] sm:$0xff] }
  0xfa   : > { %v1817_v25 = vadd.f32 %v1816_v46, %v1785_v47  ;;  %3546 = vmatmul.f32.vlgmr.msra.gmra.mxu1 %v3461_v48  ;;  %v3937_v48 = vsel %vm575_vm0, %v547_v43, 0 }
  0xfb   : > { %3655 = vmatpush.xpose.msrb.mxu1 %v3654_v53  ;;  %3735 = vmatpush.xpose.msra.mxu0 %v3652_v14  ;;  %v473_v14 = vadd.f32 %v377_v32, %v9902_v52  ;;  %v10164_v56 = vand.u32 4294901760, %v3937_v48  ;;  %v3799_v53 = vand.u32 4294901760, %v3798_v59  ;;  %v4156_v4 = vand.u32 4294901760, %v10167_v38 }
  0xfc   : > { %3632 = vmatmul.f32.vlgmr.msrb.gmra.mxu0 %v3631_v44  ;;  %3714 = vmatmul.f32.vlgmr.msrb.gmra.mxu3 %v3629_v19  ;;  %v1843_v1 = vadd.f32 %v1842_v16, %v1817_v25  ;;  %v10209_v32 = vand.u32 4294901760, %v4105_v8 }
  0xfd   : > { %3792 = vmatpush.xpose.msra.mxu2 %v10040_v3  ;;  %3823 = vmatpush.xpose.msra.mxu3 %v3822_v5  ;;  %v4157_v12 = vsub.f32 %v10167_v38, %v4156_v4 }
  0xfe   : > { %3689 = vmatmul.f32.vlgmr.msrb.gmra.mxu2 %v10079_v22 }
  0xff   : > { %3661 = vmatpush.xpose.msrb.mxu1 %v3660_v61  ;;  %3739 = vmatpush.xpose.msra.mxu0 %v3658_v33  ;;  %v1917_v19 = vpop.f32.mrf.mxu3  ;;  %v1867_v22 = vpop.f32.mrf.mxu1  ;;  %v4158_v43 = vand.u32 4294901760, %v4157_v12 }
 0x100   : > { %v1868_v33 = vadd.f32 %v1867_v22, %v1843_v1 }
 0x101   : > { %3794 = vmatpush.xpose.msra.mxu2 %v10070_v27  ;;  %3829 = vmatpush.xpose.msra.mxu3 %v3828_v34  ;;  %v1894_v0 = vpop.f32.mrf.mxu2  ;;  %v1953_v50 = vpop.f32.mrf.mxu0 }
 0x102   : > { %v1895_v30 = vadd.f32 %v1894_v0, %v1868_v33  ;;  %3663 = vmatmul.f32.vlgmr.msrb.gmra.mxu1 %v10060_v21 }
 0x103   : > { %3760 = vmatpush.xpose.msra.mxu1 %v10031_v9  ;;  %3851 = vmatpush.xpose.msrb.mxu0 %v10063_v51  ;;  %v4108_v9 = vsel %vm575_vm0, %v473_v14, 0  ;;  %v10172_v51 = vsub.f32 %v3940_v40, %v10154_v35  ;;  %v379_v40 = vld [vmem:[%s9253_s12 + $0x160] sm:$0xff] }
 0x104   : > { %v10174_v18 = vand.u32 4294901760, %v4108_v9  ;;  %3741 = vmatmul.f32.vlgmr.msra.gmra.mxu0 %v10060_v21  ;;  %3831 = vmatmul.f32.vlgmr.msra.gmra.mxu3 %v10105_v54  ;;  %v10186_v36 = vadd.f32 %v1917_v19, %v1895_v30 }
 0x105   : > { %3903 = vmatpush.xpose.msrb.mxu2 %v3820_v31  ;;  %3928 = vmatpush.xpose.msrb.mxu3 %v10040_v3  ;;  %v3988_v31 = vand.u32 4294901760, %v10152_v49 }
 0x106   : > { %3800 = vmatmul.f32.vlgmr.msra.gmra.mxu2 %v3799_v53  ;;  %v10194_v5 = vsub.f32 %v4108_v9, %v10174_v18 }
 0x107   : > { %3762 = vmatpush.xpose.msra.mxu1 %v10050_v17  ;;  %v10183_v17 = vsub.f32 %v3937_v48, %v10164_v56  ;;  %v3989_v13 = vsub.f32 %v10152_v49, %v3988_v31  ;;  %3854 = vmatpush.xpose.msrb.mxu0 %v10090_v42  ;;  %v2035_v61 = vpop.f32.mrf.mxu3  ;;  %v1984_v10 = vpop.f32.mrf.mxu1 }
 0x108   : > { %v1985_v29 = vadd.f32 %v1984_v10, %v1953_v50  ;;  %v4162_v25 = vand.u32 4294901760, %v10194_v5  ;;  %v381_v50 = vld [vmem:[%s9253_s12 + $0x170] sm:$0xff] }
 0x109   : > { %3907 = vmatpush.xpose.msrb.mxu2 %v3826_v58  ;;  %v3994_v58 = vand.u32 4294901760, %v10172_v51  ;;  %3930 = vmatpush.xpose.msrb.mxu3 %v10070_v27  ;;  %v2010_v62 = vpop.f32.mrf.mxu2  ;;  %v3965_v42 = vand.u32 4294901760, %v10183_v17  ;;  %v2062_v46 = vpop.f32.mrf.mxu0  ;;  %v3990_v47 = vand.u32 4294901760, %v3989_v13  ;;  %v549_v10 = vld [vmem:[%s9263_s17 + $0xb0] sm:$0xff] }
 0x10a   : > { %v2011_v34 = vadd.f32 %v2010_v62, %v1985_v29  ;;  %3764 = vmatmul.f32.vlgmr.msra.gmra.mxu1 %v10060_v21  ;;  %v478_v21 = vadd.f32 %v382_v20, %v9880_v39  ;;  %v4163_v48 = vsub.f32 %v10194_v5, %v4162_v25 }
 0x10b   : > { %3876 = vmatpush.xpose.msrb.mxu1 %v10040_v3  ;;  %3960 = vmatpush.xpose.msra.mxu0 %v10135_v26  ;;  %v380_v3 = vld [vmem:[%s9253_s12 + $0x168] sm:$0xff]  ;;  %v3995_v44 = vsub.f32 %v10172_v51, %v3994_v58 }
 0x10c   : > { %v476_v16 = vadd.f32 %v380_v3, %v9880_v39  ;;  %3857 = vmatmul.f32.vlgmr.msrb.gmra.mxu0 %v10118_v15  ;;  %3932 = vmatmul.f32.vlgmr.msrb.gmra.mxu3 %v10105_v54  ;;  %v2036_v14 = vadd.f32 %v2035_v61, %v2011_v34  ;;  %v4164_v61 = vand.u32 4294901760, %v4163_v48 }
 0x10d   : > { %4019 = vmatpush.xpose.msra.mxu2 %v10152_v49  ;;  %4044 = vmatpush.xpose.msra.mxu3 %v10135_v26  ;;  %v3996_v59 = vand.u32 4294901760, %v3995_v44  ;;  %v10222_v49 = vsub.f32 %v4105_v8, %v10209_v32  ;;  %v4447_v8 = vsel %vm575_vm0, %v478_v21, 0 }
 0x10e   : > { %3909 = vmatmul.f32.vlgmr.msrb.gmra.mxu2 %v10105_v54  ;;  %v4279_v1 = vsel %vm575_vm0, %v476_v16, 0  ;;  %v475_v54 = vadd.f32 %v379_v40, %v9902_v52  ;;  %v10232_v19 = vadd.f32 %v2062_v46, %v2036_v14  ;;  %v10248_v62 = vand.u32 4294901760, %v4447_v8 }
 0x10f   : > { %3878 = vmatpush.xpose.msrb.mxu1 %v10070_v27  ;;  %v3966_v27 = vsub.f32 %v10183_v17, %v3965_v42  ;;  %3962 = vmatpush.xpose.msra.mxu0 %v10154_v35  ;;  %v2152_v9 = vpop.f32.mrf.mxu3  ;;  %v10235_v22 = vpop.f32.mrf.mxu1  ;;  %v4133_v60 = vand.u32 4294901760, %v10222_v49  ;;  %v10239_v13 = vand.u32 4294901760, %v4279_v1 }
 0x110   : > { %v4276_v3 = vsel %vm575_vm0, %v475_v54, 0 }
 0x111   : > { %4022 = vmatpush.xpose.msra.mxu2 %v10172_v51  ;;  %4046 = vmatpush.xpose.msra.mxu3 %v10154_v35  ;;  %v2121_v0 = vpop.f32.mrf.mxu2  ;;  %v3967_v33 = vand.u32 4294901760, %v3966_v27  ;;  %v2178_v30 = vpop.f32.mrf.mxu0  ;;  %v4134_v12 = vsub.f32 %v10222_v49, %v4133_v60  ;;  %v10256_v29 = vsub.f32 %v4279_v1, %v10239_v13  ;;  %v10258_v15 = vand.u32 4294901760, %v4276_v3  ;;  %v550_v27 = vld [vmem:[%s9263_s17 + $0xb8] sm:$0xff] }
 0x112   : > { %v2153_v53 = vadd.f32 %v2152_v9, %v2121_v0  ;;  %3882 = vmatmul.f32.vlgmr.msrb.gmra.mxu1 %v3797_v6  ;;  %v4273_v6 = vsel %vm575_vm0, %v549_v10, 0  ;;  %v10271_v51 = vsub.f32 %v4447_v8, %v10248_v62  ;;  %v4441_v48 = vsel %vm575_vm0, %v550_v27, 0  ;;  %v386_v10 = vld [vmem:[%s9253_s12 + $0x198] sm:$0xff] }
 0x113   : > { %3991 = vmatpush.xpose.msra.mxu1 %v3990_v47  ;;  %4071 = vmatpush.xpose.msrb.mxu0 %v3988_v31  ;;  %v477_v31 = vadd.f32 %v381_v50, %v9902_v52  ;;  %v10268_v44 = vand.u32 4294901760, %v4273_v6  ;;  %v4135_v20 = vand.u32 4294901760, %v4134_v12  ;;  %v10313_v8 = vand.u32 4294901760, %v4441_v48  ;;  %v383_v12 = vld [vmem:[%s9253_s12 + $0x180] sm:$0xff] }
 0x114   : > { %3968 = vmatmul.f32.vlgmr.msra.gmra.mxu0 %v3967_v33  ;;  %4050 = vmatmul.f32.vlgmr.msra.gmra.mxu3 %v3965_v42  ;;  %v2179_v42 = vadd.f32 %v2178_v30, %v2153_v53 }
 0x115   : > { %4128 = vmatpush.xpose.msrb.mxu2 %v10144_v45  ;;  %4159 = vmatpush.xpose.msrb.mxu3 %v4158_v43  ;;  %v4492_v43 = vand.u32 4294901760, %v10271_v51 }
 0x116   : > { %4025 = vmatmul.f32.vlgmr.msra.gmra.mxu2 %v10183_v17 }
 0x117   : > { %3997 = vmatpush.xpose.msra.mxu1 %v3996_v59  ;;  %4075 = vmatpush.xpose.msrb.mxu0 %v3994_v58  ;;  %v2253_v46 = vpop.f32.mrf.mxu3  ;;  %v2203_v17 = vpop.f32.mrf.mxu1  ;;  %v4493_v0 = vsub.f32 %v10271_v51, %v4492_v43 }
 0x118   : > { %v2204_v58 = vadd.f32 %v2203_v17, %v2179_v42 }
 0x119   : > { %4130 = vmatpush.xpose.msrb.mxu2 %v10174_v18  ;;  %4165 = vmatpush.xpose.msrb.mxu3 %v4164_v61  ;;  %v2230_v47 = vpop.f32.mrf.mxu2  ;;  %v2289_v16 = vpop.f32.mrf.mxu0 }
 0x11a   : > { %v2231_v40 = vadd.f32 %v2230_v47, %v2204_v58  ;;  %3999 = vmatmul.f32.vlgmr.msra.gmra.mxu1 %v10164_v56 }
 0x11b   : > { %4096 = vmatpush.xpose.msrb.mxu1 %v10135_v26  ;;  %4187 = vmatpush.xpose.msra.mxu0 %v10167_v38  ;;  %v4444_v26 = vsel %vm575_vm0, %v477_v31, 0  ;;  %v10276_v38 = vsub.f32 %v4276_v3, %v10258_v15 }
 0x11c   : > { %v10278_v34 = vand.u32 4294901760, %v4444_v26  ;;  %4077 = vmatmul.f32.vlgmr.msrb.gmra.mxu0 %v10164_v56  ;;  %4167 = vmatmul.f32.vlgmr.msrb.gmra.mxu3 %v10209_v32  ;;  %v10290_v14 = vadd.f32 %v2253_v46, %v2231_v40  ;;  %v10326_v46 = vsub.f32 %v4441_v48, %v10313_v8  ;;  %v385_v40 = vld [vmem:[%s9253_s12 + $0x190] sm:$0xff] }
 0x11d   : > { %4239 = vmatpush.xpose.msra.mxu2 %v4156_v4  ;;  %4264 = vmatpush.xpose.msra.mxu3 %v10144_v45  ;;  %v4324_v4 = vand.u32 4294901760, %v10256_v29 }
 0x11e   : > { %4136 = vmatmul.f32.vlgmr.msrb.gmra.mxu2 %v4135_v20  ;;  %v10298_v21 = vsub.f32 %v4444_v26, %v10278_v34  ;;  %v4469_v48 = vand.u32 4294901760, %v10326_v46 }
 0x11f   : > { %4098 = vmatpush.xpose.msrb.mxu1 %v10154_v35  ;;  %v10287_v35 = vsub.f32 %v4273_v6, %v10268_v44  ;;  %v4325_v59 = vsub.f32 %v10256_v29, %v4324_v4  ;;  %4190 = vmatpush.xpose.msra.mxu0 %v10194_v5  ;;  %v2371_v1 = vpop.f32.mrf.mxu3  ;;  %v2320_v54 = vpop.f32.mrf.mxu1 }
 0x120   : > { %v2321_v33 = vadd.f32 %v2320_v54, %v2289_v16  ;;  %v4498_v61 = vand.u32 4294901760, %v10298_v21 }
 0x121   : > { %4243 = vmatpush.xpose.msra.mxu2 %v4162_v25  ;;  %v4330_v25 = vand.u32 4294901760, %v10276_v38  ;;  %4266 = vmatpush.xpose.msra.mxu3 %v10174_v18  ;;  %v2346_v9 = vpop.f32.mrf.mxu2  ;;  %v4301_v5 = vand.u32 4294901760, %v10287_v35  ;;  %v2398_v50 = vpop.f32.mrf.mxu0  ;;  %v4326_v53 = vand.u32 4294901760, %v4325_v59 }
 0x122   : > { %v2347_v31 = vadd.f32 %v2346_v9, %v2321_v33  ;;  %4100 = vmatmul.f32.vlgmr.msrb.gmra.mxu1 %v10164_v56  ;;  %v482_v56 = vadd.f32 %v386_v10, %v9880_v39  ;;  %v4499_v26 = vsub.f32 %v10298_v21, %v4498_v61 }
 0x123   : > { %4212 = vmatpush.xpose.msra.mxu1 %v10144_v45  ;;  %4296 = vmatpush.xpose.msrb.mxu0 %v10239_v13  ;;  %v384_v45 = vld [vmem:[%s9253_s12 + $0x188] sm:$0xff]  ;;  %v4331_v30 = vsub.f32 %v10276_v38, %v4330_v25 }
 0x124   : > { %v480_v3 = vadd.f32 %v384_v45, %v9880_v39  ;;  %4193 = vmatmul.f32.vlgmr.msra.gmra.mxu0 %v10222_v49  ;;  %4268 = vmatmul.f32.vlgmr.msra.gmra.mxu3 %v10209_v32  ;;  %v2372_v6 = vadd.f32 %v2371_v1, %v2347_v31  ;;  %v4783_v45 = vsel %vm575_vm0, %v482_v56, 0  ;;  %v4500_v54 = vand.u32 4294901760, %v4499_v26 }
 0x125   : > { %4355 = vmatpush.xpose.msrb.mxu2 %v10256_v29  ;;  %4380 = vmatpush.xpose.msrb.mxu3 %v10239_v13  ;;  %v4494_v29 = vand.u32 4294901760, %v4493_v0  ;;  %v4332_v42 = vand.u32 4294901760, %v4331_v30  ;;  %v551_v0 = vld [vmem:[%s9263_s17 + $0xc0] sm:$0xff]  ;;  %v10352_v33 = vand.u32 4294901760, %v4783_v45 }
 0x126   : > { %4245 = vmatmul.f32.vlgmr.msra.gmra.mxu2 %v10209_v32  ;;  %v4615_v17 = vsel %vm575_vm0, %v480_v3, 0  ;;  %v479_v32 = vadd.f32 %v383_v12, %v9902_v52  ;;  %v10336_v47 = vadd.f32 %v2398_v50, %v2372_v6  ;;  %v4470_v50 = vsub.f32 %v10326_v46, %v4469_v48 }
 0x127   : > { %4214 = vmatpush.xpose.msra.mxu1 %v10174_v18  ;;  %v4302_v18 = vsub.f32 %v10287_v35, %v4301_v5  ;;  %4298 = vmatpush.xpose.msrb.mxu0 %v10258_v15  ;;  %v2488_v58 = vpop.f32.mrf.mxu3  ;;  %v10339_v39 = vpop.f32.mrf.mxu1  ;;  %v10343_v1 = vand.u32 4294901760, %v4615_v17 }
 0x128   : > { %v4612_v9 = vsel %vm575_vm0, %v479_v32, 0  ;;  %v4471_v31 = vand.u32 4294901760, %v4470_v50  ;;  %v390_v50 = vld [vmem:[%s9253_s12 + $0x1b8] sm:$0xff] }
 0x129   : > { %4358 = vmatpush.xpose.msrb.mxu2 %v10276_v38  ;;  %4382 = vmatpush.xpose.msrb.mxu3 %v10258_v15  ;;  %v2457_v16 = vpop.f32.mrf.mxu2  ;;  %v4303_v20 = vand.u32 4294901760, %v4302_v18  ;;  %v2514_v59 = vpop.f32.mrf.mxu0  ;;  %v10362_v49 = vand.u32 4294901760, %v4612_v9  ;;  %v10375_v38 = vsub.f32 %v4783_v45, %v10352_v33 }
 0x12a   : > { %v2489_v27 = vadd.f32 %v2488_v58, %v2457_v16  ;;  %4218 = vmatmul.f32.vlgmr.msra.gmra.mxu1 %v4133_v60  ;;  %v4609_v60 = vsel %vm575_vm0, %v551_v0, 0  ;;  %v10423_v0 = vld [vmem:[%s11841_s0 + $0x18] sm:$0xff] }
 0x12b   : > { %4327 = vmatpush.xpose.msrb.mxu1 %v4326_v53  ;;  %4407 = vmatpush.xpose.msra.mxu0 %v4324_v4  ;;  %v481_v4 = vadd.f32 %v385_v40, %v9902_v52  ;;  %v10360_v53 = vsub.f32 %v4615_v17, %v10343_v1  ;;  %v10372_v3 = vand.u32 4294901760, %v4609_v60  ;;  %v4828_v6 = vand.u32 4294901760, %v10375_v38 }
 0x12c   : > { %4304 = vmatmul.f32.vlgmr.msrb.gmra.mxu0 %v4303_v20  ;;  %4386 = vmatmul.f32.vlgmr.msrb.gmra.mxu3 %v4301_v5  ;;  %v2515_v52 = vadd.f32 %v2514_v59, %v2489_v27 }
 0x12d   : > { %4464 = vmatpush.xpose.msra.mxu2 %v10248_v62  ;;  %4495 = vmatpush.xpose.msra.mxu3 %v4494_v29  ;;  %v552_v29 = vld [vmem:[%s9263_s17 + $0xc8] sm:$0xff]  ;;  %v4829_v20 = vsub.f32 %v10375_v38, %v4828_v6 }
 0x12e   : > { %4361 = vmatmul.f32.vlgmr.msrb.gmra.mxu2 %v10287_v35  ;;  %v4777_v17 = vsel %vm575_vm0, %v552_v29, 0 }
 0x12f   : > { %4333 = vmatpush.xpose.msrb.mxu1 %v4332_v42  ;;  %4411 = vmatpush.xpose.msra.mxu0 %v4330_v25  ;;  %v2589_v5 = vpop.f32.mrf.mxu3  ;;  %v2539_v35 = vpop.f32.mrf.mxu1 }
 0x130   : > { %v2540_v25 = vadd.f32 %v2539_v35, %v2515_v52  ;;  %v4830_v52 = vand.u32 4294901760, %v4829_v20 }
 0x131   : > { %4466 = vmatpush.xpose.msra.mxu2 %v10278_v34  ;;  %4501 = vmatpush.xpose.msra.mxu3 %v4500_v54  ;;  %v2566_v30 = vpop.f32.mrf.mxu2  ;;  %v2625_v10 = vpop.f32.mrf.mxu0  ;;  %v10417_v54 = vand.u32 4294901760, %v4777_v17 }
 0x132   : > { %v2567_v18 = vadd.f32 %v2566_v30, %v2540_v25  ;;  %4335 = vmatmul.f32.vlgmr.msrb.gmra.mxu1 %v10268_v44 }
 0x133   : > { %4432 = vmatpush.xpose.msra.mxu1 %v10239_v13  ;;  %4523 = vmatpush.xpose.msrb.mxu0 %v10271_v51  ;;  %v4780_v13 = vsel %vm575_vm0, %v481_v4, 0  ;;  %v10380_v51 = vsub.f32 %v4612_v9, %v10362_v49  ;;  %v10435_v35 = vsub.f32 %v4777_v17, %v10417_v54 }
 0x134   : > { %v10382_v12 = vand.u32 4294901760, %v4780_v13  ;;  %4413 = vmatmul.f32.vlgmr.msra.gmra.mxu0 %v10268_v44  ;;  %4503 = vmatmul.f32.vlgmr.msra.gmra.mxu3 %v10313_v8  ;;  %v10394_v42 = vadd.f32 %v2589_v5, %v2567_v18 }
 0x135   : > { %4575 = vmatpush.xpose.msrb.mxu2 %v4492_v43  ;;  %4600 = vmatpush.xpose.msrb.mxu3 %v10248_v62  ;;  %v4660_v43 = vand.u32 4294901760, %v10360_v53 }
 0x136   : > { %4472 = vmatmul.f32.vlgmr.msra.gmra.mxu2 %v4471_v31  ;;  %v10402_v26 = vsub.f32 %v4780_v13, %v10382_v12 }
 0x137   : > { %4434 = vmatpush.xpose.msra.mxu1 %v10258_v15  ;;  %v10391_v15 = vsub.f32 %v4609_v60, %v10372_v3  ;;  %v4661_v56 = vsub.f32 %v10360_v53, %v4660_v43  ;;  %4526 = vmatpush.xpose.msrb.mxu0 %v10298_v21  ;;  %v2707_v32 = vpop.f32.mrf.mxu3  ;;  %v2656_v58 = vpop.f32.mrf.mxu1 }
 0x138   : > { %v2657_v40 = vadd.f32 %v2656_v58, %v2625_v10  ;;  %v4834_v9 = vand.u32 4294901760, %v10402_v26 }
 0x139   : > { %4579 = vmatpush.xpose.msrb.mxu2 %v4498_v61  ;;  %v4666_v61 = vand.u32 4294901760, %v10380_v51  ;;  %4602 = vmatpush.xpose.msrb.mxu3 %v10278_v34  ;;  %v2682_v16 = vpop.f32.mrf.mxu2  ;;  %v4637_v21 = vand.u32 4294901760, %v10391_v15  ;;  %v2734_v27 = vpop.f32.mrf.mxu0  ;;  %v4662_v59 = vand.u32 4294901760, %v4661_v56 }
 0x13a   : > { %4436 = vmatmul.f32.vlgmr.msra.gmra.mxu1 %v10268_v44  ;;  %v486_v44 = vadd.f32 %v10423_v0, %v390_v50  ;;  %v4835_v30 = vsub.f32 %v10402_v26, %v4834_v9 }
 0x13b   : > { %4548 = vmatpush.xpose.msrb.mxu1 %v10248_v62  ;;  %4632 = vmatpush.xpose.msra.mxu0 %v10343_v1  ;;  %v388_v62 = vld [vmem:[%s9253_s12 + $0x1a8] sm:$0xff]  ;;  %v4667_v45 = vsub.f32 %v10380_v51, %v4666_v61  ;;  %v4638_v60 = vsub.f32 %v10391_v15, %v4637_v21 }
 0x13c   : > { %v484_v4 = vadd.f32 %v10423_v0, %v388_v62  ;;  %4529 = vmatmul.f32.vlgmr.msrb.gmra.mxu0 %v10326_v46  ;;  %4604 = vmatmul.f32.vlgmr.msrb.gmra.mxu3 %v10313_v8 }
 0x13d   : > { %4691 = vmatpush.xpose.msra.mxu2 %v10360_v53  ;;  %4716 = vmatpush.xpose.msra.mxu3 %v10343_v1  ;;  %v2683_v53 = vadd.f32 %v2682_v16, %v2657_v40  ;;  %v4668_v13 = vand.u32 4294901760, %v4667_v45  ;;  %v4639_v17 = vand.u32 4294901760, %v4638_v60  ;;  %v4805_v16 = vand.u32 4294901760, %v10435_v35  ;;  %v553_v45 = vld [vmem:[%s9263_s17 + $0xd0] sm:$0xff] }
 0x13e   : > { %4581 = vmatmul.f32.vlgmr.msrb.gmra.mxu2 %v10313_v8  ;;  %v4951_v25 = vsel %vm575_vm0, %v484_v4, 0  ;;  %v10447_v8 = vld [vmem:[%s11841_s0 + $0x10] sm:$0xff]  ;;  %v5119_v40 = vsel %vm575_vm0, %v486_v44, 0 }
 0x13f   : > { %4550 = vmatpush.xpose.msrb.mxu1 %v10278_v34  ;;  %v387_v34 = vld [vmem:[%s9253_s12 + $0x1a0] sm:$0xff]  ;;  %v2708_v5 = vadd.f32 %v2707_v32, %v2683_v53  ;;  %4634 = vmatpush.xpose.msra.mxu0 %v10362_v49  ;;  %v2824_v18 = vpop.f32.mrf.mxu3  ;;  %v10453_v29 = vpop.f32.mrf.mxu1  ;;  %v389_v32 = vld [vmem:[%s9253_s12 + $0x1b0] sm:$0xff]  ;;  %v10457_v20 = vand.u32 4294901760, %v4951_v25  ;;  %v10466_v4 = vand.u32 4294901760, %v5119_v40  ;;  %v4806_v50 = vsub.f32 %v10435_v35, %v4805_v16 }
 0x140   : > { %v483_v10 = vadd.f32 %v10447_v8, %v387_v34 }
 0x141   : > { %4694 = vmatpush.xpose.msra.mxu2 %v10380_v51  ;;  %4718 = vmatpush.xpose.msra.mxu3 %v10362_v49  ;;  %v10450_v31 = vadd.f32 %v2734_v27, %v2708_v5  ;;  %v2793_v56 = vpop.f32.mrf.mxu2  ;;  %v2850_v58 = vpop.f32.mrf.mxu0  ;;  %v4836_v27 = vand.u32 4294901760, %v4835_v30  ;;  %v10474_v53 = vsub.f32 %v4951_v25, %v10457_v20  ;;  %v10489_v51 = vsub.f32 %v5119_v40, %v10466_v4  ;;  %v554_v25 = vld [vmem:[%s9263_s17 + $0xd8] sm:$0xff] }
 0x142   : > { %v2825_v62 = vadd.f32 %v2824_v18, %v2793_v56  ;;  %4554 = vmatmul.f32.vlgmr.msrb.gmra.mxu1 %v4469_v48  ;;  %v4945_v48 = vsel %vm575_vm0, %v553_v45, 0 }
 0x143   : > { %4663 = vmatpush.xpose.msra.mxu1 %v4662_v59  ;;  %4743 = vmatpush.xpose.msrb.mxu0 %v4660_v43  ;;  %v4948_v59 = vsel %vm575_vm0, %v483_v10, 0  ;;  %v485_v43 = vadd.f32 %v10447_v8, %v389_v32  ;;  %v5164_v10 = vand.u32 4294901760, %v10489_v51  ;;  %v5113_v32 = vsel %vm575_vm0, %v554_v25, 0 }
 0x144   : > { %4640 = vmatmul.f32.vlgmr.msra.gmra.mxu0 %v4639_v17  ;;  %4722 = vmatmul.f32.vlgmr.msra.gmra.mxu3 %v4637_v21  ;;  %v10476_v46 = vand.u32 4294901760, %v4948_v59  ;;  %v2851_v21 = vadd.f32 %v2850_v58, %v2825_v62 }
 0x145   : > { %4800 = vmatpush.xpose.msrb.mxu2 %v10352_v33  ;;  %4831 = vmatpush.xpose.msrb.mxu3 %v4830_v52  ;;  %v10486_v52 = vand.u32 4294901760, %v4945_v48 }
 0x146   : > { %4697 = vmatmul.f32.vlgmr.msra.gmra.mxu2 %v10391_v15 }
 0x147   : > { %4669 = vmatpush.xpose.msra.mxu1 %v4668_v13  ;;  %4747 = vmatpush.xpose.msrb.mxu0 %v4666_v61  ;;  %v2925_v34 = vpop.f32.mrf.mxu3  ;;  %v2875_v15 = vpop.f32.mrf.mxu1  ;;  %v4807_v13 = vand.u32 4294901760, %v4806_v50 }
 0x148   : > { %v2876_v61 = vadd.f32 %v2875_v15, %v2851_v21  ;;  %v391_v15 = vld [vmem:[%s9253_s12 + $0x1c0] sm:$0xff] }
 0x149   : > { %4802 = vmatpush.xpose.msrb.mxu2 %v10382_v12  ;;  %4837 = vmatpush.xpose.msrb.mxu3 %v4836_v27  ;;  %v2902_v60 = vpop.f32.mrf.mxu2  ;;  %v2961_v5 = vpop.f32.mrf.mxu0  ;;  %v5165_v27 = vsub.f32 %v10489_v51, %v5164_v10 }
 0x14a   : > { %v2903_v30 = vadd.f32 %v2902_v60, %v2876_v61  ;;  %4671 = vmatmul.f32.vlgmr.msra.gmra.mxu1 %v10372_v3 }
 0x14b   : > { %4768 = vmatpush.xpose.msrb.mxu1 %v10343_v1  ;;  %4859 = vmatpush.xpose.msra.mxu0 %v10375_v38  ;;  %v5116_v1 = vsel %vm575_vm0, %v485_v43, 0  ;;  %v10494_v38 = vsub.f32 %v4948_v59, %v10476_v46  ;;  %v5166_v60 = vand.u32 4294901760, %v5165_v27 }
 0x14c   : > { %v10496_v44 = vand.u32 4294901760, %v5116_v1  ;;  %4749 = vmatmul.f32.vlgmr.msrb.gmra.mxu0 %v10372_v3  ;;  %4839 = vmatmul.f32.vlgmr.msrb.gmra.mxu3 %v10417_v54  ;;  %v10508_v18 = vadd.f32 %v2925_v34, %v2903_v30  ;;  %v394_v34 = vld [vmem:[%s9253_s12 + $0x1d8] sm:$0xff] }
 0x14d   : > { %4911 = vmatpush.xpose.msra.mxu2 %v4828_v6  ;;  %4936 = vmatpush.xpose.msra.mxu3 %v10352_v33  ;;  %v4996_v6 = vand.u32 4294901760, %v10474_v53 }
 0x14e   : > { %4808 = vmatmul.f32.vlgmr.msrb.gmra.mxu2 %v4807_v13  ;;  %v10516_v17 = vsub.f32 %v5116_v1, %v10496_v44 }
 0x14f   : > { %4770 = vmatpush.xpose.msrb.mxu1 %v10362_v49  ;;  %v10505_v49 = vsub.f32 %v4945_v48, %v10486_v52  ;;  %v4997_v56 = vsub.f32 %v10474_v53, %v4996_v6  ;;  %4862 = vmatpush.xpose.msra.mxu0 %v10402_v26  ;;  %v3043_v62 = vpop.f32.mrf.mxu3  ;;  %v2992_v58 = vpop.f32.mrf.mxu1 }
 0x150   : > { %v2993_v59 = vadd.f32 %v2992_v58, %v2961_v5  ;;  %v5170_v48 = vand.u32 4294901760, %v10516_v17 }
 0x151   : > { %4915 = vmatpush.xpose.msra.mxu2 %v4834_v9  ;;  %v5002_v9 = vand.u32 4294901760, %v10494_v38  ;;  %4938 = vmatpush.xpose.msra.mxu3 %v10382_v12  ;;  %v3018_v40 = vpop.f32.mrf.mxu2  ;;  %v4973_v26 = vand.u32 4294901760, %v10505_v49  ;;  %v3070_v45 = vpop.f32.mrf.mxu0  ;;  %v4998_v43 = vand.u32 4294901760, %v4997_v56 }
 0x152   : > { %v3019_v1 = vadd.f32 %v3018_v40, %v2993_v59  ;;  %4772 = vmatmul.f32.vlgmr.msrb.gmra.mxu1 %v10372_v3  ;;  %v490_v3 = vadd.f32 %v10423_v0, %v394_v34  ;;  %v5171_v30 = vsub.f32 %v10516_v17, %v5170_v48  ;;  %v393_v40 = vld [vmem:[%s9253_s12 + $0x1d0] sm:$0xff] }
 0x153   : > { %4884 = vmatpush.xpose.msra.mxu1 %v10352_v33  ;;  %4968 = vmatpush.xpose.msrb.mxu0 %v10457_v20  ;;  %v392_v33 = vld [vmem:[%s9253_s12 + $0x1c8] sm:$0xff]  ;;  %v5003_v50 = vsub.f32 %v10494_v38, %v5002_v9 }
 0x154   : > { %v488_v21 = vadd.f32 %v10423_v0, %v392_v33  ;;  %4865 = vmatmul.f32.vlgmr.msra.gmra.mxu0 %v10435_v35  ;;  %4940 = vmatmul.f32.vlgmr.msra.gmra.mxu3 %v10417_v54  ;;  %v3044_v61 = vadd.f32 %v3043_v62, %v3019_v1  ;;  %v555_v1 = vld [vmem:[%s9263_s17 + $0xe0] sm:$0xff] }
 0x155   : > { %5027 = vmatpush.xpose.msrb.mxu2 %v10474_v53  ;;  %5052 = vmatpush.xpose.msrb.mxu3 %v10457_v20  ;;  %v10531_v53 = vand.u32 4294901760, %v5113_v32  ;;  %v5004_v5 = vand.u32 4294901760, %v5003_v50 }
 0x156   : > { %4917 = vmatmul.f32.vlgmr.msra.gmra.mxu2 %v10417_v54  ;;  %v5287_v25 = vsel %vm575_vm0, %v488_v21, 0  ;;  %v487_v54 = vadd.f32 %v10447_v8, %v391_v15  ;;  %v10554_v56 = vadd.f32 %v3070_v45, %v3044_v61  ;;  %v5455_v45 = vsel %vm575_vm0, %v490_v3, 0 }
 0x157   : > { %4886 = vmatpush.xpose.msra.mxu1 %v10382_v12  ;;  %v4974_v12 = vsub.f32 %v10505_v49, %v4973_v26  ;;  %v10544_v13 = vsub.f32 %v5113_v32, %v10531_v53  ;;  %4970 = vmatpush.xpose.msrb.mxu0 %v10476_v46  ;;  %v3160_v62 = vpop.f32.mrf.mxu3  ;;  %v10557_v32 = vpop.f32.mrf.mxu1  ;;  %v10561_v50 = vand.u32 4294901760, %v5287_v25  ;;  %v5172_v21 = vand.u32 4294901760, %v5171_v30 }
 0x158   : > { %v5284_v34 = vsel %vm575_vm0, %v487_v54, 0  ;;  %v10570_v15 = vand.u32 4294901760, %v5455_v45 }
 0x159   : > { %5030 = vmatpush.xpose.msrb.mxu2 %v10494_v38  ;;  %5054 = vmatpush.xpose.msrb.mxu3 %v10476_v46  ;;  %v3129_v33 = vpop.f32.mrf.mxu2  ;;  %v4975_v58 = vand.u32 4294901760, %v4974_v12  ;;  %v3186_v59 = vpop.f32.mrf.mxu0  ;;  %v10580_v35 = vand.u32 4294901760, %v5284_v34 }
 0x15a   : > { %v3161_v27 = vadd.f32 %v3160_v62, %v3129_v33  ;;  %4890 = vmatmul.f32.vlgmr.msra.gmra.mxu1 %v4805_v16  ;;  %v5281_v16 = vsel %vm575_vm0, %v555_v1, 0  ;;  %v10593_v38 = vsub.f32 %v5455_v45, %v10570_v15  ;;  %v556_v62 = vld [vmem:[%s9263_s17 + $0xe8] sm:$0xff] }
 0x15b   : > { %4999 = vmatpush.xpose.msrb.mxu1 %v4998_v43  ;;  %5079 = vmatpush.xpose.msra.mxu0 %v4996_v6  ;;  %v5141_v43 = vand.u32 4294901760, %v10544_v13  ;;  %v489_v6 = vadd.f32 %v10447_v8, %v393_v40  ;;  %v10590_v3 = vand.u32 4294901760, %v5281_v16 }
 0x15c   : > { %4976 = vmatmul.f32.vlgmr.msrb.gmra.mxu0 %v4975_v58  ;;  %5058 = vmatmul.f32.vlgmr.msrb.gmra.mxu3 %v4973_v26  ;;  %v3187_v26 = vadd.f32 %v3186_v59, %v3161_v27  ;;  %v5500_v58 = vand.u32 4294901760, %v10593_v38 }
 0x15d   : > { %5136 = vmatpush.xpose.msra.mxu2 %v10466_v4  ;;  %5167 = vmatpush.xpose.msra.mxu3 %v5166_v60  ;;  %v5142_v12 = vsub.f32 %v10544_v13, %v5141_v43  ;;  %v10578_v60 = vsub.f32 %v5287_v25, %v10561_v50 }
 0x15e   : > { %5033 = vmatmul.f32.vlgmr.msrb.gmra.mxu2 %v10505_v49 }
 0x15f   : > { %5005 = vmatpush.xpose.msrb.mxu1 %v5004_v5  ;;  %5083 = vmatpush.xpose.msra.mxu0 %v5002_v9  ;;  %v3261_v61 = vpop.f32.mrf.mxu3  ;;  %v3211_v49 = vpop.f32.mrf.mxu1  ;;  %v5143_v25 = vand.u32 4294901760, %v5142_v12 }
 0x160   : > { %v3212_v9 = vadd.f32 %v3211_v49, %v3187_v26 }
 0x161   : > { %5138 = vmatpush.xpose.msra.mxu2 %v10496_v44  ;;  %5173 = vmatpush.xpose.msra.mxu3 %v5172_v21  ;;  %v3238_v5 = vpop.f32.mrf.mxu2  ;;  %v3297_v30 = vpop.f32.mrf.mxu0 }
 0x162   : > { %v3239_v33 = vadd.f32 %v3238_v5, %v3212_v9  ;;  %5007 = vmatmul.f32.vlgmr.msrb.gmra.mxu1 %v10486_v52  ;;  %v398_v5 = vld [vmem:[%s9253_s12 + $0x1f8] sm:$0xff] }
 0x163   : > { %5104 = vmatpush.xpose.msra.mxu1 %v10457_v20  ;;  %5195 = vmatpush.xpose.msrb.mxu0 %v10489_v51  ;;  %v5452_v20 = vsel %vm575_vm0, %v489_v6, 0  ;;  %v10598_v51 = vsub.f32 %v5284_v34, %v10580_v35 }
 0x164   : > { %v10600_v54 = vand.u32 4294901760, %v5452_v20  ;;  %5085 = vmatmul.f32.vlgmr.msra.gmra.mxu0 %v10486_v52  ;;  %5175 = vmatmul.f32.vlgmr.msra.gmra.mxu3 %v10531_v53  ;;  %v10612_v40 = vadd.f32 %v3261_v61, %v3239_v33 }
 0x165   : > { %5247 = vmatpush.xpose.msrb.mxu2 %v5164_v10  ;;  %5272 = vmatpush.xpose.msrb.mxu3 %v10466_v4  ;;  %v5332_v10 = vand.u32 4294901760, %v10578_v60  ;;  %v5338_v59 = vand.u32 4294901760, %v10598_v51 }
 0x166   : > { %5144 = vmatmul.f32.vlgmr.msra.gmra.mxu2 %v5143_v25  ;;  %v10621_v45 = vsub.f32 %v5452_v20, %v10600_v54  ;;  %v395_v25 = vld [vmem:[%s9253_s12 + $0x1e0] sm:$0xff] }
 0x167   : > { %5106 = vmatpush.xpose.msra.mxu1 %v10476_v46  ;;  %v10609_v46 = vsub.f32 %v5281_v16, %v10590_v3  ;;  %v5333_v27 = vsub.f32 %v10578_v60, %v5332_v10  ;;  %5198 = vmatpush.xpose.msrb.mxu0 %v10516_v17  ;;  %v3379_v21 = vpop.f32.mrf.mxu3  ;;  %v3328_v34 = vpop.f32.mrf.mxu1  ;;  %v5501_v17 = vsub.f32 %v10593_v38, %v5500_v58 }
 0x168   : > { %v3329_v16 = vadd.f32 %v3328_v34, %v3297_v30  ;;  %v5339_v61 = vsub.f32 %v10598_v51, %v5338_v59  ;;  %v5506_v20 = vand.u32 4294901760, %v10621_v45 }
 0x169   : > { %5251 = vmatpush.xpose.msrb.mxu2 %v5170_v48  ;;  %v5449_v48 = vsel %vm575_vm0, %v556_v62, 0  ;;  %5274 = vmatpush.xpose.msrb.mxu3 %v10496_v44  ;;  %v3354_v1 = vpop.f32.mrf.mxu2  ;;  %v5309_v6 = vand.u32 4294901760, %v10609_v46  ;;  %v3406_v26 = vpop.f32.mrf.mxu0  ;;  %v5502_v30 = vand.u32 4294901760, %v5501_v17 }
 0x16a   : > { %v10631_v12 = vand.u32 4294901760, %v5449_v48  ;;  %v3355_v9 = vadd.f32 %v3354_v1, %v3329_v16  ;;  %5108 = vmatmul.f32.vlgmr.msra.gmra.mxu1 %v10486_v52  ;;  %v494_v52 = vadd.f32 %v10423_v0, %v398_v5 }
 0x16b   : > { %5220 = vmatpush.xpose.msrb.mxu1 %v10466_v4  ;;  %5304 = vmatpush.xpose.msra.mxu0 %v10561_v50  ;;  %v396_v4 = vld [vmem:[%s9253_s12 + $0x1e8] sm:$0xff] }
 0x16c   : > { %v492_v49 = vadd.f32 %v10423_v0, %v396_v4  ;;  %5201 = vmatmul.f32.vlgmr.msrb.gmra.mxu0 %v10544_v13  ;;  %5276 = vmatmul.f32.vlgmr.msrb.gmra.mxu3 %v10531_v53  ;;  %v10647_v62 = vsub.f32 %v5449_v48, %v10631_v12  ;;  %v3380_v33 = vadd.f32 %v3379_v21, %v3355_v9 }
 0x16d   : > { %5363 = vmatpush.xpose.msra.mxu2 %v10578_v60  ;;  %5388 = vmatpush.xpose.msra.mxu3 %v10561_v50  ;;  %v5334_v60 = vand.u32 4294901760, %v5333_v27  ;;  %v5340_v27 = vand.u32 4294901760, %v5339_v61  ;;  %v5507_v4 = vsub.f32 %v10621_v45, %v5506_v20  ;;  %v491_v48 = vadd.f32 %v10447_v8, %v395_v25  ;;  %v397_v61 = vld [vmem:[%s9253_s12 + $0x1f0] sm:$0xff] }
 0x16e   : > { %5253 = vmatmul.f32.vlgmr.msrb.gmra.mxu2 %v10531_v53  ;;  %v5623_v34 = vsel %vm575_vm0, %v492_v49, 0  ;;  %v742_v53 = vadd.f32 %v9810_v28, %v9807_v23  ;;  %v3407_v21 = vadd.f32 %v3406_v26, %v3380_v33  ;;  %v5791_v23 = vsel %vm575_vm0, %v494_v52, 0  ;;  %v557_v33 = vld [vmem:[%s9263_s17 + $0xf0] sm:$0xff] }
 0x16f   : > { %5222 = vmatpush.xpose.msrb.mxu1 %v10496_v44  ;;  %v5310_v44 = vsub.f32 %v10609_v46, %v5309_v6  ;;  %5306 = vmatpush.xpose.msra.mxu0 %v10580_v35  ;;  %v3496_v1 = vpop.f32.mrf.mxu3  ;;  %v3429_v0 = vpop.f32.mrf.mxu1  ;;  %v10663_v25 = vand.u32 4294901760, %v5623_v34  ;;  %v5508_v28 = vand.u32 4294901760, %v5507_v4  ;;  %v5620_v26 = vsel %vm575_vm0, %v491_v48, 0 }
 0x170   : > { %v3430_v5 = vadd.f32 %v3429_v0, %v3407_v21  ;;  %v10676_v52 = vand.u32 4294901760, %v5791_v23 }
 0x171   : > { %5366 = vmatpush.xpose.msra.mxu2 %v10598_v51  ;;  %5390 = vmatpush.xpose.msra.mxu3 %v10580_v35  ;;  %v3465_v17 = vpop.f32.mrf.mxu2  ;;  %v5311_v16 = vand.u32 4294901760, %v5310_v44  ;;  %v3522_v9 = vpop.f32.mrf.mxu0  ;;  %v10684_v13 = vsub.f32 %v5623_v34, %v10663_v25 }
 0x172   : > { %v3497_v49 = vadd.f32 %v3496_v1, %v3465_v17  ;;  %v8641_v44 = vsel %vm575_vm0, %v3430_v5, 0.0  ;;  %5226 = vmatmul.f32.vlgmr.msrb.gmra.mxu1 %v5141_v43  ;;  %v10686_v43 = vand.u32 4294901760, %v5620_v26  ;;  %v10699_v51 = vsub.f32 %v5791_v23, %v10676_v52  ;;  %v558_v17 = vld [vmem:[%s9263_s17 + $0xf8] sm:$0xff] }
 0x173   : > { %5335 = vmatpush.xpose.msra.mxu1 %v5334_v60  ;;  %5415 = vmatpush.xpose.msrb.mxu0 %v5332_v10  ;;  %v5477_v60 = vand.u32 4294901760, %v10647_v62  ;;  %v8640_v10 = vsel %vm575_vm0, %v742_v53, 0.0 }
 0x174   : > { %5312 = vmatmul.f32.vlgmr.msra.gmra.mxu0 %v5311_v16  ;;  %5394 = vmatmul.f32.vlgmr.msra.gmra.mxu3 %v5309_v6  ;;  %v3523_v6 = vadd.f32 %v3522_v9, %v3497_v49  ;;  %v5785_v9 = vsel %vm575_vm0, %v558_v17, 0 }
 0x175   : > { %5472 = vmatpush.xpose.msrb.mxu2 %v10570_v15  ;;  %5503 = vmatpush.xpose.msrb.mxu3 %v5502_v30  ;;  %v493_v30 = vadd.f32 %v10447_v8, %v397_v61  ;;  %v5478_v4 = vsub.f32 %v10647_v62, %v5477_v60  ;;  %v5617_v8 = vsel %vm575_vm0, %v557_v33, 0  ;;  %v5836_v61 = vand.u32 4294901760, %v10699_v51  ;;  %v10737_v33 = vld [vmem:[%s11841_s0 + $0x28] sm:$0xff] }
 0x176   : > { %5369 = vmatmul.f32.vlgmr.msra.gmra.mxu2 %v10609_v46  ;;  %v10696_v53 = vand.u32 4294901760, %v5617_v8 }
 0x177   : > { %5341 = vmatpush.xpose.msra.mxu1 %v5340_v27  ;;  %v10674_v27 = vadd.f32 %v8641_v44, %v8640_v10  ;;  %5419 = vmatpush.xpose.msrb.mxu0 %v5338_v59  ;;  %v3597_v48 = vpop.f32.mrf.mxu3  ;;  %v3547_v46 = vpop.f32.mrf.mxu1  ;;  %v5479_v1 = vand.u32 4294901760, %v5478_v4  ;;  %v5837_v4 = vsub.f32 %v10699_v51, %v5836_v61 }
 0x178   : > { %v3548_v59 = vadd.f32 %v3547_v46, %v3523_v6 }
 0x179   : > { %5474 = vmatpush.xpose.msrb.mxu2 %v10600_v54  ;;  %5509 = vmatpush.xpose.msrb.mxu3 %v5508_v28  ;;  %v3574_v34 = vpop.f32.mrf.mxu2  ;;  %v3633_v21 = vpop.f32.mrf.mxu0  ;;  %v8645_v28 = vsel %vm575_vm0, %v9864_v2, 0.0 }
 0x17a   : > { %v3575_v16 = vadd.f32 %v3574_v34, %v3548_v59  ;;  %5343 = vmatmul.f32.vlgmr.msra.gmra.mxu1 %v10590_v3 }
 0x17b   : > { %5440 = vmatpush.xpose.msrb.mxu1 %v10561_v50  ;;  %5531 = vmatpush.xpose.msra.mxu0 %v10593_v38  ;;  %v5788_v50 = vsel %vm575_vm0, %v493_v30, 0  ;;  %v10704_v38 = vsub.f32 %v5620_v26, %v10686_v43 }
 0x17c   : > { %v10706_v0 = vand.u32 4294901760, %v5788_v50  ;;  %5421 = vmatmul.f32.vlgmr.msrb.gmra.mxu0 %v10590_v3  ;;  %5511 = vmatmul.f32.vlgmr.msrb.gmra.mxu3 %v10631_v12  ;;  %v3598_v5 = vadd.f32 %v3597_v48, %v3575_v16 }
 0x17d   : > { %5583 = vmatpush.xpose.msra.mxu2 %v5500_v58  ;;  %5608 = vmatpush.xpose.msra.mxu3 %v10570_v15  ;;  %v5668_v58 = vand.u32 4294901760, %v10684_v13 }
 0x17e   : > { %5480 = vmatmul.f32.vlgmr.msrb.gmra.mxu2 %v5479_v1  ;;  %v10727_v23 = vsub.f32 %v5788_v50, %v10706_v0  ;;  %v402_v1 = vld [vmem:[%s9253_s12 + $0x218] sm:$0xff] }
 0x17f   : > { %5442 = vmatpush.xpose.msrb.mxu1 %v10580_v35  ;;  %v10715_v35 = vsub.f32 %v5617_v8, %v10696_v53  ;;  %v5669_v49 = vsub.f32 %v10684_v13, %v5668_v58  ;;  %5534 = vmatpush.xpose.msra.mxu0 %v10621_v45  ;;  %v3715_v26 = vpop.f32.mrf.mxu3  ;;  %v400_v45 = vld [vmem:[%s9253_s12 + $0x208] sm:$0xff]  ;;  %v3664_v44 = vpop.f32.mrf.mxu1  ;;  %v10747_v8 = vand.u32 4294901760, %v5785_v9 }
 0x180   : > { %v3665_v6 = vadd.f32 %v3664_v44, %v3633_v21  ;;  %v5842_v34 = vand.u32 4294901760, %v10727_v23  ;;  %v496_v59 = vadd.f32 %v400_v45, %v10737_v33  ;;  %v10761_v21 = vld [vmem:[%s11841_s0 + $0x20] sm:$0xff] }
 0x181   : > { %5587 = vmatpush.xpose.msra.mxu2 %v5506_v20  ;;  %v5674_v20 = vand.u32 4294901760, %v10704_v38  ;;  %5610 = vmatpush.xpose.msra.mxu3 %v10600_v54  ;;  %v3690_v30 = vpop.f32.mrf.mxu2  ;;  %v5645_v2 = vand.u32 4294901760, %v10715_v35  ;;  %v3742_v48 = vpop.f32.mrf.mxu0  ;;  %v5670_v50 = vand.u32 4294901760, %v5669_v49  ;;  %v10768_v49 = vsub.f32 %v5785_v9, %v10747_v8 }
 0x182   : > { %v3691_v17 = vadd.f32 %v3690_v30, %v3665_v6  ;;  %5444 = vmatmul.f32.vlgmr.msrb.gmra.mxu1 %v10590_v3  ;;  %v5843_v45 = vsub.f32 %v10727_v23, %v5842_v34  ;;  %v5959_v44 = vsel %vm575_vm0, %v496_v59, 0  ;;  %v401_v59 = vld [vmem:[%s9253_s12 + $0x210] sm:$0xff] }
 0x183   : > { %5556 = vmatpush.xpose.msra.mxu1 %v10570_v15  ;;  %v8646_v15 = vsel %vm575_vm0, %v3598_v5, 0.0  ;;  %5640 = vmatpush.xpose.msrb.mxu0 %v10663_v25  ;;  %v5675_v46 = vsub.f32 %v10704_v38, %v5674_v20  ;;  %v5646_v16 = vsub.f32 %v10715_v35, %v5645_v2  ;;  %v5838_v5 = vand.u32 4294901760, %v5837_v4 }
 0x184   : > { %v10740_v10 = vadd.f32 %v8646_v15, %v8645_v28  ;;  %5537 = vmatmul.f32.vlgmr.msra.gmra.mxu0 %v10647_v62  ;;  %5612 = vmatmul.f32.vlgmr.msra.gmra.mxu3 %v10631_v12  ;;  %v3716_v28 = vadd.f32 %v3715_v26, %v3691_v17  ;;  %v498_v15 = vadd.f32 %v402_v1, %v10737_v33 }
 0x185   : > { %5699 = vmatpush.xpose.msrb.mxu2 %v10684_v13  ;;  %5724 = vmatpush.xpose.msrb.mxu3 %v10663_v25  ;;  %v5676_v3 = vand.u32 4294901760, %v5675_v46  ;;  %v5813_v46 = vand.u32 4294901760, %v10768_v49 }
 0x186   : > { %5589 = vmatmul.f32.vlgmr.msra.gmra.mxu2 %v10631_v12  ;;  %v1078_v12 = vadd.f32 %v9923_v41, %v9920_v37  ;;  %v3743_v26 = vadd.f32 %v3742_v48, %v3716_v28  ;;  %v10786_v37 = vand.u32 4294901760, %v5959_v44  ;;  %v6127_v41 = vsel %vm575_vm0, %v498_v15, 0  ;;  %v559_v28 = vld [vmem:[%s9263_s17 + $0x100] sm:$0xff] }
 0x187   : > { %5558 = vmatpush.xpose.msra.mxu1 %v10600_v54  ;;  %v399_v54 = vld [vmem:[%s9253_s12 + $0x200] sm:$0xff]  ;;  %5642 = vmatpush.xpose.msrb.mxu0 %v10686_v43  ;;  %v3832_v30 = vpop.f32.mrf.mxu3  ;;  %v3765_v4 = vpop.f32.mrf.mxu1  ;;  %v5844_v48 = vand.u32 4294901760, %v5843_v45  ;;  %v10799_v15 = vand.u32 4294901760, %v6127_v41  ;;  %v5814_v45 = vsub.f32 %v10768_v49, %v5813_v46 }
 0x188   : > { %v495_v9 = vadd.f32 %v399_v54, %v10761_v21  ;;  %v3766_v1 = vadd.f32 %v3765_v4, %v3743_v26  ;;  %v10807_v62 = vsub.f32 %v5959_v44, %v10786_v37 }
 0x189   : > { %5702 = vmatpush.xpose.msrb.mxu2 %v10704_v38  ;;  %5726 = vmatpush.xpose.msrb.mxu3 %v10686_v43  ;;  %v3801_v6 = vpop.f32.mrf.mxu2  ;;  %v3858_v54 = vpop.f32.mrf.mxu0  ;;  %v10822_v38 = vsub.f32 %v6127_v41, %v10799_v15  ;;  %v5815_v4 = vand.u32 4294901760, %v5814_v45 }
 0x18a   : > { %v3833_v17 = vadd.f32 %v3832_v30, %v3801_v6  ;;  %v5956_v13 = vsel %vm575_vm0, %v495_v9, 0  ;;  %5562 = vmatmul.f32.vlgmr.msra.gmra.mxu1 %v5477_v60  ;;  %v5953_v9 = vsel %vm575_vm0, %v559_v28, 0  ;;  %v8655_v28 = vsel %vm575_vm0, %v9978_v7, 0.0 }
 0x18b   : > { %5671 = vmatpush.xpose.msrb.mxu1 %v5670_v50  ;;  %5751 = vmatpush.xpose.msra.mxu0 %v5668_v58  ;;  %v5647_v50 = vand.u32 4294901760, %v5646_v16  ;;  %v8650_v58 = vsel %vm575_vm0, %v1078_v12, 0.0  ;;  %v8651_v16 = vsel %vm575_vm0, %v3766_v1, 0.0  ;;  %v10809_v60 = vand.u32 4294901760, %v5956_v13 }
 0x18c   : > { %5730 = vmatmul.f32.vlgmr.msrb.gmra.mxu3 %v5645_v2  ;;  %v3859_v2 = vadd.f32 %v3858_v54, %v3833_v17  ;;  %v10819_v26 = vand.u32 4294901760, %v5953_v9  ;;  %v6172_v1 = vand.u32 4294901760, %v10822_v38 }
 0x18d   : > { %5808 = vmatpush.xpose.msra.mxu2 %v10676_v52  ;;  %5839 = vmatpush.xpose.msra.mxu3 %v5838_v5  ;;  %v497_v5 = vadd.f32 %v401_v59, %v10761_v21 }
 0x18e   : > { %5648 = vmatmul.f32.vlgmr.msrb.gmra.mxu0 %v5647_v50  ;;  %5705 = vmatmul.f32.vlgmr.msrb.gmra.mxu2 %v10715_v35  ;;  %v560_v50 = vld [vmem:[%s9263_s17 + $0x108] sm:$0xff]  ;;  %v6173_v7 = vsub.f32 %v10822_v38, %v6172_v1 }
 0x18f   : > { %5677 = vmatpush.xpose.msrb.mxu1 %v5676_v3  ;;  %v10797_v3 = vadd.f32 %v8651_v16, %v8650_v58  ;;  %5755 = vmatpush.xpose.msra.mxu0 %v5674_v20  ;;  %v3933_v12 = vpop.f32.mrf.mxu3  ;;  %v3883_v35 = vpop.f32.mrf.mxu1 }
 0x190   : > { %v3884_v20 = vadd.f32 %v3883_v35, %v3859_v2 }
 0x191   : > { %5810 = vmatpush.xpose.msra.mxu2 %v10706_v0  ;;  %5845 = vmatpush.xpose.msra.mxu3 %v5844_v48  ;;  %v3910_v44 = vpop.f32.mrf.mxu2  ;;  %v3969_v30 = vpop.f32.mrf.mxu0 }
 0x192   : > { %v3911_v59 = vadd.f32 %v3910_v44, %v3884_v20  ;;  %5679 = vmatmul.f32.vlgmr.msrb.gmra.mxu1 %v10696_v53 }
 0x193   : > { %5776 = vmatpush.xpose.msra.mxu1 %v10663_v25  ;;  %5867 = vmatpush.xpose.msrb.mxu0 %v10699_v51  ;;  %v6124_v25 = vsel %vm575_vm0, %v497_v5, 0  ;;  %v10827_v51 = vsub.f32 %v5956_v13, %v10809_v60  ;;  %v404_v13 = vld [vmem:[%s9253_s12 + $0x228] sm:$0xff] }
 0x194   : > { %v10829_v6 = vand.u32 4294901760, %v6124_v25  ;;  %5847 = vmatmul.f32.vlgmr.msra.gmra.mxu3 %v10747_v8  ;;  %v3934_v17 = vadd.f32 %v3933_v12, %v3911_v59  ;;  %v500_v44 = vadd.f32 %v404_v13, %v10737_v33  ;;  %v403_v59 = vld [vmem:[%s9253_s12 + $0x220] sm:$0xff] }
 0x195   : > { %5919 = vmatpush.xpose.msrb.mxu2 %v5836_v61  ;;  %5944 = vmatpush.xpose.msrb.mxu3 %v10676_v52  ;;  %v6004_v61 = vand.u32 4294901760, %v10807_v62  ;;  %v6010_v41 = vand.u32 4294901760, %v10827_v51 }
 0x196   : > { %5757 = vmatmul.f32.vlgmr.msra.gmra.mxu0 %v10696_v53  ;;  %5816 = vmatmul.f32.vlgmr.msra.gmra.mxu2 %v5815_v4  ;;  %v10850_v48 = vsub.f32 %v6124_v25, %v10829_v6  ;;  %v406_v4 = vld [vmem:[%s9253_s12 + $0x238] sm:$0xff]  ;;  %v6295_v13 = vsel %vm575_vm0, %v500_v44, 0 }
 0x197   : > { %5778 = vmatpush.xpose.msra.mxu1 %v10686_v43  ;;  %v10838_v43 = vsub.f32 %v5953_v9, %v10819_v26  ;;  %v6005_v54 = vsub.f32 %v10807_v62, %v6004_v61  ;;  %5870 = vmatpush.xpose.msrb.mxu0 %v10727_v23  ;;  %v4051_v58 = vpop.f32.mrf.mxu3  ;;  %v4000_v23 = vpop.f32.mrf.mxu1  ;;  %v6011_v35 = vsub.f32 %v10827_v51, %v6010_v41 }
 0x198   : > { %v4001_v2 = vadd.f32 %v4000_v23, %v3969_v30  ;;  %v6178_v20 = vand.u32 4294901760, %v10850_v48  ;;  %v6174_v30 = vand.u32 4294901760, %v6173_v7  ;;  %v405_v7 = vld [vmem:[%s9253_s12 + $0x230] sm:$0xff] }
 0x199   : > { %5923 = vmatpush.xpose.msrb.mxu2 %v5842_v34  ;;  %v6121_v34 = vsel %vm575_vm0, %v560_v50, 0  ;;  %5946 = vmatpush.xpose.msrb.mxu3 %v10706_v0  ;;  %v4026_v5 = vpop.f32.mrf.mxu2  ;;  %v5981_v45 = vand.u32 4294901760, %v10838_v43  ;;  %v4078_v12 = vpop.f32.mrf.mxu0  ;;  %v6006_v25 = vand.u32 4294901760, %v6005_v54 }
 0x19a   : > { %v10865_v9 = vand.u32 4294901760, %v6121_v34  ;;  %v4027_v50 = vadd.f32 %v4026_v5, %v4001_v2  ;;  %5780 = vmatmul.f32.vlgmr.msra.gmra.mxu1 %v10696_v53  ;;  %v6012_v53 = vand.u32 4294901760, %v6011_v35  ;;  %v561_v5 = vld [vmem:[%s9263_s17 + $0x110] sm:$0xff] }
 0x19b   : > { %5892 = vmatpush.xpose.msrb.mxu1 %v10676_v52  ;;  %v8656_v52 = vsel %vm575_vm0, %v3934_v17, 0.0  ;;  %5976 = vmatpush.xpose.msra.mxu0 %v10786_v37 }
 0x19c   : > { %v10858_v16 = vadd.f32 %v8656_v52, %v8655_v28  ;;  %5948 = vmatmul.f32.vlgmr.msrb.gmra.mxu3 %v10747_v8  ;;  %v10881_v17 = vsub.f32 %v6121_v34, %v10865_v9  ;;  %v4052_v54 = vadd.f32 %v4051_v58, %v4027_v50  ;;  %v502_v28 = vadd.f32 %v406_v4, %v10737_v33 }
 0x19d   : > { %6035 = vmatpush.xpose.msra.mxu2 %v10807_v62  ;;  %6060 = vmatpush.xpose.msra.mxu3 %v10786_v37  ;;  %v6179_v34 = vsub.f32 %v10850_v48, %v6178_v20  ;;  %v499_v52 = vadd.f32 %v403_v59, %v10761_v21  ;;  %v1414_v58 = vadd.f32 %v10027_v57, %v10024_v55  ;;  %v10900_v4 = vand.u32 4294901760, %v6295_v13 }
 0x19e   : > { %5873 = vmatmul.f32.vlgmr.msrb.gmra.mxu0 %v10768_v49  ;;  %5925 = vmatmul.f32.vlgmr.msrb.gmra.mxu2 %v10747_v8  ;;  %v4079_v8 = vadd.f32 %v4078_v12, %v4052_v54  ;;  %v6149_v44 = vand.u32 4294901760, %v10881_v17  ;;  %v6463_v57 = vsel %vm575_vm0, %v502_v28, 0  ;;  %v501_v54 = vadd.f32 %v405_v7, %v10761_v21 }
 0x19f   : > { %5894 = vmatpush.xpose.msrb.mxu1 %v10706_v0  ;;  %v5982_v0 = vsub.f32 %v10838_v43, %v5981_v45  ;;  %5978 = vmatpush.xpose.msra.mxu0 %v10809_v60  ;;  %v4168_v23 = vpop.f32.mrf.mxu3  ;;  %v4101_v2 = vpop.f32.mrf.mxu1  ;;  %v6180_v12 = vand.u32 4294901760, %v6179_v34  ;;  %v6292_v62 = vsel %vm575_vm0, %v499_v52, 0  ;;  %v10917_v28 = vsub.f32 %v6295_v13, %v10900_v4 }
 0x1a0   : > { %v4102_v50 = vadd.f32 %v4101_v2, %v4079_v8  ;;  %v10919_v34 = vand.u32 4294901760, %v6463_v57  ;;  %v10923_v49 = vand.u32 4294901760, %v6292_v62 }
 0x1a1   : > { %6038 = vmatpush.xpose.msra.mxu2 %v10827_v51  ;;  %6062 = vmatpush.xpose.msra.mxu3 %v10809_v60  ;;  %v5983_v35 = vand.u32 4294901760, %v5982_v0  ;;  %v4194_v55 = vpop.f32.mrf.mxu0  ;;  %v8660_v0 = vsel %vm575_vm0, %v1414_v58, 0.0 }
 0x1a2   : > { %5898 = vmatmul.f32.vlgmr.msrb.gmra.mxu1 %v5813_v46  ;;  %v10936_v51 = vsub.f32 %v6463_v57, %v10919_v34  ;;  %v10941_v2 = vsub.f32 %v6292_v62, %v10923_v49  ;;  %v8665_v62 = vsel %vm575_vm0, %v10082_v11, 0.0 }
 0x1a3   : > { %6007 = vmatpush.xpose.msra.mxu1 %v6006_v25  ;;  %6087 = vmatpush.xpose.msrb.mxu0 %v6004_v61  ;;  %v4137_v25 = vpop.f32.mrf.mxu2  ;;  %v6289_v61 = vsel %vm575_vm0, %v561_v5, 0 }
 0x1a4   : > { %v4169_v59 = vadd.f32 %v4168_v23, %v4137_v25  ;;  %6066 = vmatmul.f32.vlgmr.msra.gmra.mxu3 %v5981_v45  ;;  %v10925_v46 = vand.u32 4294901760, %v6289_v61  ;;  %v6460_v45 = vsel %vm575_vm0, %v501_v54, 0  ;;  %v6340_v23 = vand.u32 4294901760, %v10917_v28 }
 0x1a5   : > { %6144 = vmatpush.xpose.msrb.mxu2 %v10799_v15  ;;  %6175 = vmatpush.xpose.msrb.mxu3 %v6174_v30  ;;  %v8661_v30 = vsel %vm575_vm0, %v4102_v50, 0.0  ;;  %v6508_v50 = vand.u32 4294901760, %v10936_v51 }
 0x1a6   : > { %v10911_v8 = vadd.f32 %v8661_v30, %v8660_v0  ;;  %5984 = vmatmul.f32.vlgmr.msra.gmra.mxu0 %v5983_v35  ;;  %6041 = vmatmul.f32.vlgmr.msra.gmra.mxu2 %v10838_v43  ;;  %v4195_v52 = vadd.f32 %v4194_v55, %v4169_v59  ;;  %v6346_v55 = vand.u32 4294901760, %v10941_v2  ;;  %v410_v0 = vld [vmem:[%s9253_s12 + $0x258] sm:$0xff] }
 0x1a7   : > { %6013 = vmatpush.xpose.msra.mxu1 %v6012_v53  ;;  %v6150_v53 = vsub.f32 %v10881_v17, %v6149_v44  ;;  %6091 = vmatpush.xpose.msrb.mxu0 %v6010_v41  ;;  %v4269_v13 = vpop.f32.mrf.mxu3  ;;  %v4219_v43 = vpop.f32.mrf.mxu1  ;;  %v562_v41 = vld [vmem:[%s9263_s17 + $0x118] sm:$0xff] }
 0x1a8   : > { %v4220_v5 = vadd.f32 %v4219_v43, %v4195_v52  ;;  %v6457_v35 = vsel %vm575_vm0, %v562_v41, 0  ;;  %v6509_v52 = vsub.f32 %v10936_v51, %v6508_v50  ;;  %v6347_v43 = vsub.f32 %v10941_v2, %v6346_v55 }
 0x1a9   : > { %6146 = vmatpush.xpose.msrb.mxu2 %v10829_v6  ;;  %6181 = vmatpush.xpose.msrb.mxu3 %v6180_v12  ;;  %v6151_v58 = vand.u32 4294901760, %v6150_v53  ;;  %v4305_v7 = vpop.f32.mrf.mxu0  ;;  %v10966_v12 = vand.u32 4294901760, %v6457_v35 }
 0x1aa   : > { %6015 = vmatmul.f32.vlgmr.msra.gmra.mxu1 %v10819_v26 }
 0x1ab   : > { %6112 = vmatpush.xpose.msrb.mxu1 %v10786_v37  ;;  %6203 = vmatpush.xpose.msra.mxu0 %v10822_v38  ;;  %v4246_v37 = vpop.f32.mrf.mxu2  ;;  %v10944_v38 = vsub.f32 %v6289_v61, %v10925_v46 }
 0x1ac   : > { %v4247_v25 = vadd.f32 %v4246_v37, %v4220_v5  ;;  %6183 = vmatmul.f32.vlgmr.msrb.gmra.mxu3 %v10865_v9  ;;  %v506_v5 = vadd.f32 %v410_v0, %v10737_v33 }
 0x1ad   : > { %6255 = vmatpush.xpose.msra.mxu2 %v6172_v1  ;;  %6280 = vmatpush.xpose.msra.mxu3 %v10799_v15  ;;  %v10946_v1 = vand.u32 4294901760, %v6460_v45 }
 0x1ae   : > { %6093 = vmatmul.f32.vlgmr.msrb.gmra.mxu0 %v10819_v26  ;;  %v4270_v59 = vadd.f32 %v4269_v13, %v4247_v25  ;;  %6152 = vmatmul.f32.vlgmr.msrb.gmra.mxu2 %v6151_v58  ;;  %v11007_v58 = vsub.f32 %v6457_v35, %v10966_v12 }
 0x1af   : > { %6114 = vmatpush.xpose.msrb.mxu1 %v10809_v60  ;;  %v6341_v60 = vsub.f32 %v10917_v28, %v6340_v23  ;;  %v10962_v57 = vsub.f32 %v6460_v45, %v10946_v1  ;;  %6206 = vmatpush.xpose.msra.mxu0 %v10850_v48  ;;  %v4387_v54 = vpop.f32.mrf.mxu3  ;;  %v1750_v48 = vadd.f32 %v10131_v24, %v10128_v63  ;;  %v4336_v53 = vpop.f32.mrf.mxu1 }
 0x1b0   : > { %v8666_v61 = vsel %vm575_vm0, %v4270_v59, 0.0  ;;  %v4337_v63 = vadd.f32 %v4336_v53, %v4305_v7 }
 0x1b1   : > { %6259 = vmatpush.xpose.msra.mxu2 %v6178_v20  ;;  %v6317_v20 = vand.u32 4294901760, %v10944_v38  ;;  %6282 = vmatpush.xpose.msra.mxu3 %v10829_v6  ;;  %v10980_v30 = vadd.f32 %v8666_v61, %v8665_v62  ;;  %v6342_v45 = vand.u32 4294901760, %v6341_v60  ;;  %v4414_v24 = vpop.f32.mrf.mxu0  ;;  %v6514_v37 = vand.u32 4294901760, %v10962_v57 }
 0x1b2   : > { %6116 = vmatmul.f32.vlgmr.msrb.gmra.mxu1 %v10819_v26  ;;  %v8670_v25 = vsel %vm575_vm0, %v1750_v48, 0.0  ;;  %v6510_v60 = vand.u32 4294901760, %v6509_v52  ;;  %v6348_v62 = vand.u32 4294901760, %v6347_v43  ;;  %v6485_v61 = vand.u32 4294901760, %v11007_v58 }
 0x1b3   : > { %6228 = vmatpush.xpose.msra.mxu1 %v10799_v15  ;;  %6312 = vmatpush.xpose.msrb.mxu0 %v10900_v4  ;;  %v408_v15 = vld [vmem:[%s9253_s12 + $0x248] sm:$0xff]  ;;  %v4362_v11 = vpop.f32.mrf.mxu2  ;;  %v6318_v13 = vsub.f32 %v10944_v38, %v6317_v20  ;;  %v6515_v26 = vsub.f32 %v10962_v57, %v6514_v37 }
 0x1b4   : > { %v504_v41 = vadd.f32 %v408_v15, %v10737_v33  ;;  %v4363_v7 = vadd.f32 %v4362_v11, %v4337_v63  ;;  %6284 = vmatmul.f32.vlgmr.msra.gmra.mxu3 %v10865_v9 }
 0x1b5   : > { %6371 = vmatpush.xpose.msrb.mxu2 %v10917_v28  ;;  %6396 = vmatpush.xpose.msrb.mxu3 %v10900_v4  ;;  %v6319_v59 = vand.u32 4294901760, %v6318_v13  ;;  %v6516_v43 = vand.u32 4294901760, %v6515_v26 }
 0x1b6   : > { %6209 = vmatmul.f32.vlgmr.msra.gmra.mxu0 %v10881_v17  ;;  %v4388_v35 = vadd.f32 %v4387_v54, %v4363_v7  ;;  %6261 = vmatmul.f32.vlgmr.msra.gmra.mxu2 %v10865_v9  ;;  %v6631_v15 = vsel %vm575_vm0, %v504_v41, 0  ;;  %v6799_v54 = vsel %vm575_vm0, %v506_v5, 0  ;;  %v409_v9 = vld [vmem:[%s9253_s12 + $0x250] sm:$0xff]  ;;  %v563_v7 = vld [vmem:[%s9263_s17 + $0x120] sm:$0xff] }
 0x1b7   : > { %6230 = vmatpush.xpose.msra.mxu1 %v10829_v6  ;;  %v407_v6 = vld [vmem:[%s9253_s12 + $0x240] sm:$0xff]  ;;  %6314 = vmatpush.xpose.msrb.mxu0 %v10923_v49  ;;  %v4504_v53 = vpop.f32.mrf.mxu3  ;;  %v4437_v11 = vpop.f32.mrf.mxu1  ;;  %v11031_v41 = vand.u32 4294901760, %v6631_v15  ;;  %v11040_v28 = vand.u32 4294901760, %v6799_v54 }
 0x1b8   : > { %v503_v0 = vadd.f32 %v407_v6, %v10761_v21  ;;  %v4415_v48 = vadd.f32 %v4414_v24, %v4388_v35  ;;  %v505_v24 = vadd.f32 %v409_v9, %v10761_v21  ;;  %v564_v9 = vld [vmem:[%s9263_s17 + $0x128] sm:$0xff] }
 0x1b9   : > { %6374 = vmatpush.xpose.msrb.mxu2 %v10941_v2  ;;  %6398 = vmatpush.xpose.msrb.mxu3 %v10923_v49  ;;  %v4530_v13 = vpop.f32.mrf.mxu0  ;;  %v11052_v17 = vsub.f32 %v6631_v15, %v11031_v41  ;;  %v11067_v2 = vsub.f32 %v6799_v54, %v11040_v28 }
 0x1ba   : > { %v4438_v52 = vadd.f32 %v4437_v11, %v4415_v48  ;;  %v6628_v5 = vsel %vm575_vm0, %v503_v0, 0  ;;  %6234 = vmatmul.f32.vlgmr.msra.gmra.mxu1 %v6149_v44 }
 0x1bb   : > { %6343 = vmatpush.xpose.msrb.mxu1 %v6342_v45  ;;  %6423 = vmatpush.xpose.msra.mxu0 %v6340_v23  ;;  %v4473_v45 = vpop.f32.mrf.mxu2  ;;  %v11054_v44 = vand.u32 4294901760, %v6628_v5  ;;  %v6676_v0 = vand.u32 4294901760, %v11052_v17  ;;  %v6844_v54 = vand.u32 4294901760, %v11067_v2 }
 0x1bc   : > { %v4505_v63 = vadd.f32 %v4504_v53, %v4473_v45  ;;  %v8671_v6 = vsel %vm575_vm0, %v4438_v52, 0.0  ;;  %6402 = vmatmul.f32.vlgmr.msrb.gmra.mxu3 %v6317_v20  ;;  %v6796_v20 = vsel %vm575_vm0, %v505_v24, 0  ;;  %v6793_v45 = vsel %vm575_vm0, %v564_v9, 0 }
 0x1bd   : > { %6480 = vmatpush.xpose.msra.mxu2 %v10919_v34  ;;  %6511 = vmatpush.xpose.msra.mxu3 %v6510_v60  ;;  %v11042_v23 = vadd.f32 %v8671_v6, %v8670_v25  ;;  %v6486_v60 = vsub.f32 %v11007_v58, %v6485_v61  ;;  %v6625_v25 = vsel %vm575_vm0, %v563_v7, 0  ;;  %v6677_v11 = vsub.f32 %v11052_v17, %v6676_v0 }
 0x1be   : > { %6320 = vmatmul.f32.vlgmr.msrb.gmra.mxu0 %v6319_v59  ;;  %6377 = vmatmul.f32.vlgmr.msrb.gmra.mxu2 %v10944_v38  ;;  %v4531_v38 = vadd.f32 %v4530_v13, %v4505_v63  ;;  %v8675_v63 = vsel %vm575_vm0, %v10186_v36, 0.0  ;;  %v6845_v36 = vsub.f32 %v11067_v2, %v6844_v54  ;;  %v11110_v6 = vand.u32 4294901760, %v6793_v45 }
 0x1bf   : > { %6349 = vmatpush.xpose.msrb.mxu1 %v6348_v62  ;;  %6427 = vmatpush.xpose.msra.mxu0 %v6346_v55  ;;  %v4555_v35 = vpop.f32.mrf.mxu1  ;;  %v11064_v62 = vand.u32 4294901760, %v6625_v25  ;;  %v6487_v15 = vand.u32 4294901760, %v6486_v60 }
 0x1c0   : > { %v4556_v55 = vadd.f32 %v4555_v35, %v4531_v38  ;;  %v11126_v9 = vsub.f32 %v6793_v45, %v11110_v6 }
 0x1c1   : > { %6482 = vmatpush.xpose.msra.mxu2 %v10946_v1  ;;  %6517 = vmatpush.xpose.msra.mxu3 %v6516_v43  ;;  %v4641_v26 = vpop.f32.mrf.mxu0  ;;  %v412_v43 = vld [vmem:[%s9253_s12 + $0x268] sm:$0xff] }
 0x1c2   : > { %6351 = vmatmul.f32.vlgmr.msrb.gmra.mxu1 %v10925_v46  ;;  %v508_v35 = vadd.f32 %v412_v43, %v10737_v33 }
 0x1c3   : > { %6448 = vmatpush.xpose.msra.mxu1 %v10900_v4  ;;  %v4605_v4 = vpop.f32.mrf.mxu3  ;;  %6539 = vmatpush.xpose.msrb.mxu0 %v10936_v51  ;;  %v4582_v59 = vpop.f32.mrf.mxu2  ;;  %v11074_v51 = vand.u32 4294901760, %v6796_v20 }
 0x1c4   : > { %v4583_v48 = vadd.f32 %v4582_v59, %v4556_v55  ;;  %6519 = vmatmul.f32.vlgmr.msra.gmra.mxu3 %v10966_v12  ;;  %v414_v59 = vld [vmem:[%s9253_s12 + $0x278] sm:$0xff] }
 0x1c5   : > { %6591 = vmatpush.xpose.msrb.mxu2 %v6508_v50  ;;  %6616 = vmatpush.xpose.msrb.mxu3 %v10919_v34  ;;  %v11072_v50 = vsub.f32 %v6628_v5, %v11054_v44  ;;  %v11095_v52 = vsub.f32 %v6796_v20, %v11074_v51  ;;  %v6678_v20 = vand.u32 4294901760, %v6677_v11 }
 0x1c6   : > { %6429 = vmatmul.f32.vlgmr.msra.gmra.mxu0 %v10925_v46  ;;  %v4606_v53 = vadd.f32 %v4605_v4, %v4583_v48  ;;  %6488 = vmatmul.f32.vlgmr.msra.gmra.mxu2 %v6487_v15  ;;  %v411_v15 = vld [vmem:[%s9253_s12 + $0x260] sm:$0xff] }
 0x1c7   : > { %6450 = vmatpush.xpose.msra.mxu1 %v10923_v49  ;;  %v11083_v49 = vsub.f32 %v6625_v25, %v11064_v62  ;;  %6542 = vmatpush.xpose.msrb.mxu0 %v10962_v57  ;;  %v4672_v57 = vpop.f32.mrf.mxu1  ;;  %v6850_v4 = vand.u32 4294901760, %v11095_v52  ;;  %v507_v45 = vadd.f32 %v411_v15, %v10761_v21 }
 0x1c8   : > { %v4673_v60 = vadd.f32 %v4672_v57, %v4641_v26  ;;  %v6846_v26 = vand.u32 4294901760, %v6845_v36  ;;  %v6821_v36 = vand.u32 4294901760, %v11126_v9 }
 0x1c9   : > { %6595 = vmatpush.xpose.msrb.mxu2 %v6514_v37  ;;  %v6682_v37 = vand.u32 4294901760, %v11072_v50  ;;  %6618 = vmatpush.xpose.msrb.mxu3 %v10946_v1  ;;  %v6653_v24 = vand.u32 4294901760, %v11083_v49  ;;  %v4750_v25 = vpop.f32.mrf.mxu0  ;;  %v6851_v11 = vsub.f32 %v11095_v52, %v6850_v4 }
 0x1ca   : > { %6452 = vmatmul.f32.vlgmr.msra.gmra.mxu1 %v10925_v46  ;;  %v510_v46 = vadd.f32 %v414_v59, %v10737_v33  ;;  %v565_v59 = vld [vmem:[%s9263_s17 + $0x130] sm:$0xff] }
 0x1cb   : > { %6564 = vmatpush.xpose.msrb.mxu1 %v10919_v34  ;;  %v8676_v34 = vsel %vm575_vm0, %v4606_v53, 0.0  ;;  %v4723_v13 = vpop.f32.mrf.mxu3  ;;  %6648 = vmatpush.xpose.msra.mxu0 %v11031_v41  ;;  %v4698_v7 = vpop.f32.mrf.mxu2  ;;  %v6683_v38 = vsub.f32 %v11072_v50, %v6682_v37 }
 0x1cc   : > { %v11103_v5 = vadd.f32 %v8676_v34, %v8675_v63  ;;  %v4699_v55 = vadd.f32 %v4698_v7, %v4673_v60  ;;  %6620 = vmatmul.f32.vlgmr.msrb.gmra.mxu3 %v10966_v12  ;;  %v6967_v63 = vsel %vm575_vm0, %v508_v35, 0  ;;  %v413_v60 = vld [vmem:[%s9253_s12 + $0x270] sm:$0xff] }
 0x1cd   : > { %6707 = vmatpush.xpose.msra.mxu2 %v11052_v17  ;;  %6732 = vmatpush.xpose.msra.mxu3 %v11031_v41  ;;  %v6684_v53 = vand.u32 4294901760, %v6683_v38  ;;  %v6964_v17 = vsel %vm575_vm0, %v507_v45, 0  ;;  %v509_v15 = vadd.f32 %v413_v60, %v10761_v21 }
 0x1ce   : > { %6545 = vmatmul.f32.vlgmr.msrb.gmra.mxu0 %v11007_v58  ;;  %v4724_v48 = vadd.f32 %v4723_v13, %v4699_v55  ;;  %6597 = vmatmul.f32.vlgmr.msrb.gmra.mxu2 %v10966_v12  ;;  %v2086_v12 = vadd.f32 %v10235_v22, %v10232_v19  ;;  %v11144_v19 = vand.u32 4294901760, %v6967_v63  ;;  %v7135_v22 = vsel %vm575_vm0, %v510_v46, 0 }
 0x1cf   : > { %6566 = vmatpush.xpose.msrb.mxu1 %v10946_v1  ;;  %v6654_v1 = vsub.f32 %v11083_v49, %v6653_v24  ;;  %6650 = vmatpush.xpose.msra.mxu0 %v11054_v44  ;;  %v4773_v43 = vpop.f32.mrf.mxu1 }
 0x1d0   : > { %v4751_v34 = vadd.f32 %v4750_v25, %v4724_v48  ;;  %v6852_v25 = vand.u32 4294901760, %v6851_v11  ;;  %v6822_v48 = vsub.f32 %v11126_v9, %v6821_v36  ;;  %v11165_v58 = vsub.f32 %v6967_v63, %v11144_v19 }
 0x1d1   : > { %6710 = vmatpush.xpose.msra.mxu2 %v11072_v50  ;;  %6734 = vmatpush.xpose.msra.mxu3 %v11054_v44  ;;  %v6655_v7 = vand.u32 4294901760, %v6654_v1  ;;  %v4866_v35 = vpop.f32.mrf.mxu0 }
 0x1d2   : > { %6570 = vmatmul.f32.vlgmr.msrb.gmra.mxu1 %v6485_v61  ;;  %v11167_v61 = vand.u32 4294901760, %v6964_v17 }
 0x1d3   : > { %6679 = vmatpush.xpose.msra.mxu1 %v6678_v20  ;;  %v4840_v13 = vpop.f32.mrf.mxu3  ;;  %6759 = vmatpush.xpose.msrb.mxu0 %v6676_v0  ;;  %v4809_v57 = vpop.f32.mrf.mxu2  ;;  %v4774_v20 = vadd.f32 %v4773_v43, %v4751_v34  ;;  %v8680_v0 = vsel %vm575_vm0, %v2086_v12, 0.0  ;;  %v6823_v12 = vand.u32 4294901760, %v6822_v48 }
 0x1d4   : > { %v4841_v38 = vadd.f32 %v4840_v13, %v4809_v57  ;;  %6738 = vmatmul.f32.vlgmr.msra.gmra.mxu3 %v6653_v24  ;;  %v566_v13 = vld [vmem:[%s9263_s17 + $0x138] sm:$0xff] }
 0x1d5   : > { %6816 = vmatpush.xpose.msrb.mxu2 %v11040_v28  ;;  %6847 = vmatpush.xpose.msrb.mxu3 %v6846_v26  ;;  %v8681_v55 = vsel %vm575_vm0, %v4774_v20, 0.0  ;;  %v11157_v26 = vand.u32 4294901760, %v7135_v22  ;;  %v7129_v20 = vsel %vm575_vm0, %v566_v13, 0 }
 0x1d6   : > { %v11155_v1 = vadd.f32 %v8681_v55, %v8680_v0  ;;  %6656 = vmatmul.f32.vlgmr.msra.gmra.mxu0 %v6655_v7  ;;  %6713 = vmatmul.f32.vlgmr.msra.gmra.mxu2 %v11083_v49  ;;  %v4867_v24 = vadd.f32 %v4866_v35, %v4841_v38  ;;  %v8685_v35 = vsel %vm575_vm0, %v10290_v14, 0.0  ;;  %v11223_v55 = vand.u32 4294901760, %v7129_v20 }
 0x1d7   : > { %6685 = vmatpush.xpose.msra.mxu1 %v6684_v53  ;;  %v6961_v53 = vsel %vm575_vm0, %v565_v59, 0  ;;  %6763 = vmatpush.xpose.msrb.mxu0 %v6682_v37  ;;  %v4891_v49 = vpop.f32.mrf.mxu1  ;;  %v11180_v50 = vsub.f32 %v7135_v22, %v11157_v26 }
 0x1d8   : > { %v11177_v63 = vand.u32 4294901760, %v6961_v53  ;;  %v4892_v37 = vadd.f32 %v4891_v49, %v4867_v24  ;;  %v418_v49 = vld [vmem:[%s9253_s12 + $0x298] sm:$0xff] }
 0x1d9   : > { %6818 = vmatpush.xpose.msrb.mxu2 %v11074_v51  ;;  %6853 = vmatpush.xpose.msrb.mxu3 %v6852_v25  ;;  %v4977_v45 = vpop.f32.mrf.mxu0  ;;  %v7180_v57 = vand.u32 4294901760, %v11180_v50  ;;  %v416_v25 = vld [vmem:[%s9253_s12 + $0x288] sm:$0xff] }
 0x1da   : > { %6687 = vmatmul.f32.vlgmr.msra.gmra.mxu1 %v11064_v62 }
 0x1db   : > { %6784 = vmatpush.xpose.msrb.mxu1 %v11031_v41  ;;  %v4941_v46 = vpop.f32.mrf.mxu3  ;;  %6875 = vmatpush.xpose.msra.mxu0 %v11067_v2  ;;  %v7132_v41 = vsel %vm575_vm0, %v509_v15, 0  ;;  %v4918_v11 = vpop.f32.mrf.mxu2  ;;  %v11185_v2 = vsub.f32 %v6964_v17, %v11167_v61  ;;  %v7181_v14 = vsub.f32 %v11180_v50, %v7180_v57 }
 0x1dc   : > { %v11187_v34 = vand.u32 4294901760, %v7132_v41  ;;  %v4919_v43 = vadd.f32 %v4918_v11, %v4892_v37  ;;  %6855 = vmatmul.f32.vlgmr.msrb.gmra.mxu3 %v11110_v6  ;;  %v415_v37 = vld [vmem:[%s9253_s12 + $0x280] sm:$0xff] }
 0x1dd   : > { %6927 = vmatpush.xpose.msra.mxu2 %v6844_v54  ;;  %6952 = vmatpush.xpose.msra.mxu3 %v11040_v28  ;;  %v7012_v54 = vand.u32 4294901760, %v11165_v58 }
 0x1de   : > { %6765 = vmatmul.f32.vlgmr.msrb.gmra.mxu0 %v11064_v62  ;;  %v4942_v7 = vadd.f32 %v4941_v46, %v4919_v43  ;;  %6824 = vmatmul.f32.vlgmr.msrb.gmra.mxu2 %v6823_v12  ;;  %v11208_v38 = vsub.f32 %v7132_v41, %v11187_v34  ;;  %v512_v41 = vadd.f32 %v416_v25, %v10737_v33 }
 0x1df   : > { %6786 = vmatpush.xpose.msrb.mxu1 %v11054_v44  ;;  %v11196_v44 = vsub.f32 %v6961_v53, %v11177_v63  ;;  %v7013_v60 = vsub.f32 %v11165_v58, %v7012_v54  ;;  %6878 = vmatpush.xpose.msra.mxu0 %v11095_v52  ;;  %v5008_v52 = vpop.f32.mrf.mxu1  ;;  %v11239_v12 = vsub.f32 %v7129_v20, %v11223_v55 }
 0x1e0   : > { %v5009_v15 = vadd.f32 %v5008_v52, %v4977_v45  ;;  %v7186_v46 = vand.u32 4294901760, %v11208_v38  ;;  %v7182_v45 = vand.u32 4294901760, %v7181_v14  ;;  %v511_v20 = vadd.f32 %v415_v37, %v10761_v21 }
 0x1e1   : > { %6931 = vmatpush.xpose.msra.mxu2 %v6850_v4  ;;  %v7018_v4 = vand.u32 4294901760, %v11185_v2  ;;  %6954 = vmatpush.xpose.msra.mxu3 %v11074_v51  ;;  %v6989_v0 = vand.u32 4294901760, %v11196_v44  ;;  %v5086_v48 = vpop.f32.mrf.mxu0  ;;  %v7014_v53 = vand.u32 4294901760, %v7013_v60  ;;  %v7303_v60 = vsel %vm575_vm0, %v512_v41, 0  ;;  %v11270_v41 = vld [vmem:[%s11841_s0 + $0x20] sm:$0xff] }
 0x1e2   : > { %6788 = vmatmul.f32.vlgmr.msrb.gmra.mxu1 %v11064_v62  ;;  %v514_v62 = vadd.f32 %v418_v49, %v10737_v33  ;;  %v7157_v52 = vand.u32 4294901760, %v11239_v12 }
 0x1e3   : > { %6900 = vmatpush.xpose.msra.mxu1 %v11040_v28  ;;  %v8686_v28 = vsel %vm575_vm0, %v4942_v7, 0.0  ;;  %v5059_v22 = vpop.f32.mrf.mxu3  ;;  %6984 = vmatpush.xpose.msrb.mxu0 %v11144_v19  ;;  %v5034_v59 = vpop.f32.mrf.mxu2  ;;  %v7019_v24 = vsub.f32 %v11185_v2, %v7018_v4  ;;  %v7187_v7 = vsub.f32 %v11208_v38, %v7186_v46 }
 0x1e4   : > { %v11216_v17 = vadd.f32 %v8686_v28, %v8685_v35  ;;  %v5035_v11 = vadd.f32 %v5034_v59, %v5009_v15  ;;  %6956 = vmatmul.f32.vlgmr.msra.gmra.mxu3 %v11110_v6  ;;  %v417_v59 = vld [vmem:[%s9253_s12 + $0x290] sm:$0xff] }
 0x1e5   : > { %7043 = vmatpush.xpose.msrb.mxu2 %v11165_v58  ;;  %7068 = vmatpush.xpose.msrb.mxu3 %v11144_v19  ;;  %v7020_v43 = vand.u32 4294901760, %v7019_v24  ;;  %v7300_v58 = vsel %vm575_vm0, %v511_v20, 0  ;;  %v513_v49 = vadd.f32 %v11270_v41, %v417_v59 }
 0x1e6   : > { %6881 = vmatmul.f32.vlgmr.msra.gmra.mxu0 %v11126_v9  ;;  %v5060_v13 = vadd.f32 %v5059_v22, %v5035_v11  ;;  %6933 = vmatmul.f32.vlgmr.msra.gmra.mxu2 %v11110_v6  ;;  %v2422_v6 = vadd.f32 %v10339_v39, %v10336_v47  ;;  %v11257_v47 = vand.u32 4294901760, %v7303_v60  ;;  %v7471_v39 = vsel %vm575_vm0, %v514_v62, 0 }
 0x1e7   : > { %6902 = vmatpush.xpose.msra.mxu1 %v11074_v51  ;;  %v6990_v51 = vsub.f32 %v11196_v44, %v6989_v0  ;;  %6986 = vmatpush.xpose.msrb.mxu0 %v11167_v61  ;;  %v5109_v33 = vpop.f32.mrf.mxu1  ;;  %v11275_v37 = vand.u32 4294901760, %v7471_v39  ;;  %v7158_v9 = vsub.f32 %v11239_v12, %v7157_v52 }
 0x1e8   : > { %v5087_v35 = vadd.f32 %v5086_v48, %v5060_v13  ;;  %v7188_v48 = vand.u32 4294901760, %v7187_v7 }
 0x1e9   : > { %7046 = vmatpush.xpose.msrb.mxu2 %v11185_v2  ;;  %7070 = vmatpush.xpose.msrb.mxu3 %v11167_v61  ;;  %v6991_v25 = vand.u32 4294901760, %v6990_v51  ;;  %v5202_v15 = vpop.f32.mrf.mxu0  ;;  %v11285_v51 = vand.u32 4294901760, %v7300_v58  ;;  %v11298_v2 = vsub.f32 %v7471_v39, %v11275_v37 }
 0x1ea   : > { %v5110_v14 = vadd.f32 %v5109_v33, %v5087_v35  ;;  %6906 = vmatmul.f32.vlgmr.msra.gmra.mxu1 %v6821_v36  ;;  %v11283_v36 = vsub.f32 %v7303_v60, %v11257_v47  ;;  %v7159_v60 = vand.u32 4294901760, %v7158_v9 }
 0x1eb   : > { %7015 = vmatpush.xpose.msrb.mxu1 %v7014_v53  ;;  %v5176_v28 = vpop.f32.mrf.mxu3  ;;  %7095 = vmatpush.xpose.msra.mxu0 %v7012_v54  ;;  %v5145_v22 = vpop.f32.mrf.mxu2  ;;  %v567_v53 = vld [vmem:[%s9263_s17 + $0x140] sm:$0xff]  ;;  %v8690_v54 = vsel %vm575_vm0, %v2422_v6, 0.0  ;;  %v568_v6 = vld [vmem:[%s9263_s17 + $0x148] sm:$0xff] }
 0x1ec   : > { %v5177_v21 = vadd.f32 %v5176_v28, %v5145_v22  ;;  %v8691_v24 = vsel %vm575_vm0, %v5110_v14, 0.0  ;;  %7074 = vmatmul.f32.vlgmr.msrb.gmra.mxu3 %v6989_v0  ;;  %v7516_v28 = vand.u32 4294901760, %v11298_v2  ;;  %v8695_v14 = vsel %vm575_vm0, %v10394_v42, 0.0 }
 0x1ed   : > { %7152 = vmatpush.xpose.msra.mxu2 %v11157_v26  ;;  %7183 = vmatpush.xpose.msra.mxu3 %v7182_v45  ;;  %v11273_v11 = vadd.f32 %v8691_v24, %v8690_v54  ;;  %v7297_v45 = vsel %vm575_vm0, %v567_v53, 0 }
 0x1ee   : > { %6992 = vmatmul.f32.vlgmr.msrb.gmra.mxu0 %v6991_v25  ;;  %7049 = vmatmul.f32.vlgmr.msrb.gmra.mxu2 %v11196_v44  ;;  %v5203_v0 = vadd.f32 %v5202_v15, %v5177_v21  ;;  %v11295_v62 = vand.u32 4294901760, %v7297_v45  ;;  %v7465_v25 = vsel %vm575_vm0, %v568_v6, 0  ;;  %v420_v15 = vld [vmem:[%s9253_s12 + $0x2a8] sm:$0xff]  ;;  %v7517_v42 = vsub.f32 %v11298_v2, %v7516_v28 }
 0x1ef   : > { %7021 = vmatpush.xpose.msrb.mxu1 %v7020_v43  ;;  %7099 = vmatpush.xpose.msra.mxu0 %v7018_v4  ;;  %v5227_v44 = vpop.f32.mrf.mxu1  ;;  %v11341_v53 = vand.u32 4294901760, %v7465_v25 }
 0x1f0   : > { %v5228_v4 = vadd.f32 %v5227_v44, %v5203_v0  ;;  %v11351_v0 = vld [vmem:[%s11841_s0 + $0x28] sm:$0xff] }
 0x1f1   : > { %7154 = vmatpush.xpose.msra.mxu2 %v11187_v34  ;;  %7189 = vmatpush.xpose.msra.mxu3 %v7188_v48  ;;  %v5313_v7 = vpop.f32.mrf.mxu0 }
 0x1f2   : > { %7023 = vmatmul.f32.vlgmr.msrb.gmra.mxu1 %v11177_v63 }
 0x1f3   : > { %7120 = vmatpush.xpose.msra.mxu1 %v11144_v19  ;;  %v5277_v13 = vpop.f32.mrf.mxu3  ;;  %7211 = vmatpush.xpose.msrb.mxu0 %v11180_v50  ;;  %v7468_v19 = vsel %vm575_vm0, %v513_v49, 0  ;;  %v5254_v43 = vpop.f32.mrf.mxu2  ;;  %v11303_v50 = vsub.f32 %v7300_v58, %v11285_v51 }
 0x1f4   : > { %v11305_v20 = vand.u32 4294901760, %v7468_v19  ;;  %v5255_v35 = vadd.f32 %v5254_v43, %v5228_v4  ;;  %7191 = vmatmul.f32.vlgmr.msra.gmra.mxu3 %v11223_v55  ;;  %v7518_v4 = vand.u32 4294901760, %v7517_v42 }
 0x1f5   : > { %7263 = vmatpush.xpose.msrb.mxu2 %v7180_v57  ;;  %7288 = vmatpush.xpose.msrb.mxu3 %v11157_v26  ;;  %v7348_v57 = vand.u32 4294901760, %v11283_v36 }
 0x1f6   : > { %7101 = vmatmul.f32.vlgmr.msra.gmra.mxu0 %v11177_v63  ;;  %v5278_v33 = vadd.f32 %v5277_v13, %v5255_v35  ;;  %7160 = vmatmul.f32.vlgmr.msra.gmra.mxu2 %v7159_v60  ;;  %v11326_v59 = vsub.f32 %v7468_v19, %v11305_v20  ;;  %v516_v13 = vadd.f32 %v11351_v0, %v420_v15  ;;  %v422_v19 = vld [vmem:[%s9253_s12 + $0x2b8] sm:$0xff] }
 0x1f7   : > { %7122 = vmatpush.xpose.msra.mxu1 %v11167_v61  ;;  %v11314_v61 = vsub.f32 %v7297_v45, %v11295_v62  ;;  %v7349_v22 = vsub.f32 %v11283_v36, %v7348_v57  ;;  %7214 = vmatpush.xpose.msrb.mxu0 %v11208_v38  ;;  %v5344_v38 = vpop.f32.mrf.mxu1 }
 0x1f8   : > { %v5345_v54 = vadd.f32 %v5344_v38, %v5313_v7  ;;  %v7522_v45 = vand.u32 4294901760, %v11326_v59  ;;  %v11362_v7 = vsub.f32 %v7465_v25, %v11341_v53 }
 0x1f9   : > { %7267 = vmatpush.xpose.msrb.mxu2 %v7186_v46  ;;  %v7354_v46 = vand.u32 4294901760, %v11303_v50  ;;  %7290 = vmatpush.xpose.msrb.mxu3 %v11187_v34  ;;  %v7325_v58 = vand.u32 4294901760, %v11314_v61  ;;  %v5422_v24 = vpop.f32.mrf.mxu0  ;;  %v7350_v49 = vand.u32 4294901760, %v7349_v22 }
 0x1fa   : > { %7124 = vmatmul.f32.vlgmr.msra.gmra.mxu1 %v11177_v63  ;;  %v518_v63 = vadd.f32 %v11351_v0, %v422_v19  ;;  %v7523_v35 = vsub.f32 %v11326_v59, %v7522_v45  ;;  %v7493_v38 = vand.u32 4294901760, %v11362_v7 }
 0x1fb   : > { %7236 = vmatpush.xpose.msrb.mxu1 %v11157_v26  ;;  %v8696_v26 = vsel %vm575_vm0, %v5278_v33, 0.0  ;;  %v5395_v21 = vpop.f32.mrf.mxu3  ;;  %7320 = vmatpush.xpose.msra.mxu0 %v11257_v47  ;;  %v5370_v48 = vpop.f32.mrf.mxu2  ;;  %v7355_v9 = vsub.f32 %v11303_v50, %v7354_v46  ;;  %v7326_v43 = vsub.f32 %v11314_v61, %v7325_v58  ;;  %v7639_v33 = vsel %vm575_vm0, %v516_v13, 0 }
 0x1fc   : > { %v11334_v39 = vadd.f32 %v8696_v26, %v8695_v14  ;;  %v5371_v44 = vadd.f32 %v5370_v48, %v5345_v54  ;;  %7292 = vmatmul.f32.vlgmr.msrb.gmra.mxu3 %v11223_v55  ;;  %v421_v48 = vld [vmem:[%s9253_s12 + $0x2b0] sm:$0xff] }
 0x1fd   : > { %7379 = vmatpush.xpose.msra.mxu2 %v11283_v36  ;;  %7404 = vmatpush.xpose.msra.mxu3 %v11257_v47  ;;  %v7356_v6 = vand.u32 4294901760, %v7355_v9  ;;  %v7327_v15 = vand.u32 4294901760, %v7326_v43  ;;  %v569_v9 = vld [vmem:[%s9263_s17 + $0x150] sm:$0xff]  ;;  %v517_v19 = vadd.f32 %v11270_v41, %v421_v48  ;;  %v7494_v43 = vsub.f32 %v11362_v7, %v7493_v38 }
 0x1fe   : > { %7217 = vmatmul.f32.vlgmr.msrb.gmra.mxu0 %v11239_v12  ;;  %v5396_v60 = vadd.f32 %v5395_v21, %v5371_v44  ;;  %7269 = vmatmul.f32.vlgmr.msrb.gmra.mxu2 %v11223_v55  ;;  %v2758_v55 = vadd.f32 %v10453_v29, %v10450_v31  ;;  %v11380_v31 = vand.u32 4294901760, %v7639_v33  ;;  %v7807_v29 = vsel %vm575_vm0, %v518_v63, 0 }
 0x1ff   : > { %7238 = vmatpush.xpose.msrb.mxu1 %v11187_v34  ;;  %v419_v34 = vld [vmem:[%s9253_s12 + $0x2a0] sm:$0xff]  ;;  %7322 = vmatpush.xpose.msra.mxu0 %v11285_v51  ;;  %v5445_v26 = vpop.f32.mrf.mxu1 }
 0x200   : > { %v515_v22 = vadd.f32 %v11270_v41, %v419_v34  ;;  %v5423_v25 = vadd.f32 %v5422_v24, %v5396_v60  ;;  %v7524_v24 = vand.u32 4294901760, %v7523_v35  ;;  %v11393_v34 = vand.u32 4294901760, %v7807_v29 }
 0x201   : > { %7382 = vmatpush.xpose.msra.mxu2 %v11303_v50  ;;  %7406 = vmatpush.xpose.msra.mxu3 %v11285_v51  ;;  %v11401_v12 = vsub.f32 %v7639_v33, %v11380_v31  ;;  %v7495_v33 = vand.u32 4294901760, %v7494_v43 }
 0x202   : > { %v5446_v42 = vadd.f32 %v5445_v26, %v5423_v25  ;;  %v7636_v36 = vsel %vm575_vm0, %v515_v22, 0  ;;  %7242 = vmatmul.f32.vlgmr.msrb.gmra.mxu1 %v7157_v52  ;;  %v11416_v50 = vsub.f32 %v7807_v29, %v11393_v34 }
 0x203   : > { %7351 = vmatpush.xpose.msra.mxu1 %v7350_v49  ;;  %v5512_v14 = vpop.f32.mrf.mxu3  ;;  %7431 = vmatpush.xpose.msrb.mxu0 %v7348_v57  ;;  %v5481_v21 = vpop.f32.mrf.mxu2  ;;  %v8700_v57 = vsel %vm575_vm0, %v2758_v55, 0.0  ;;  %v11403_v52 = vand.u32 4294901760, %v7636_v36  ;;  %v570_v55 = vld [vmem:[%s9263_s17 + $0x158] sm:$0xff] }
 0x204   : > { %v5513_v54 = vadd.f32 %v5512_v14, %v5481_v21  ;;  %v5538_v49 = vpop.f32.mrf.mxu0  ;;  %v8701_v13 = vsel %vm575_vm0, %v5446_v42, 0.0  ;;  %7410 = vmatmul.f32.vlgmr.msra.gmra.mxu3 %v7325_v58  ;;  %v7852_v14 = vand.u32 4294901760, %v11416_v50  ;;  %v8705_v42 = vsel %vm575_vm0, %v10508_v18, 0.0 }
 0x205   : > { %7488 = vmatpush.xpose.msrb.mxu2 %v11275_v37  ;;  %7519 = vmatpush.xpose.msrb.mxu3 %v7518_v4  ;;  %v11391_v44 = vadd.f32 %v8701_v13, %v8700_v57  ;;  %v7633_v4 = vsel %vm575_vm0, %v569_v9, 0 }
 0x206   : > { %7328 = vmatmul.f32.vlgmr.msra.gmra.mxu0 %v7327_v15  ;;  %7385 = vmatmul.f32.vlgmr.msra.gmra.mxu2 %v11314_v61  ;;  %v5539_v58 = vadd.f32 %v5538_v49, %v5513_v54  ;;  %v11413_v63 = vand.u32 4294901760, %v7633_v4  ;;  %v7801_v15 = vsel %vm575_vm0, %v570_v55, 0  ;;  %v424_v49 = vld [vmem:[%s9253_s12 + $0x2c8] sm:$0xff]  ;;  %v7853_v18 = vsub.f32 %v11416_v50, %v7852_v14 }
 0x207   : > { %7357 = vmatpush.xpose.msra.mxu1 %v7356_v6  ;;  %7435 = vmatpush.xpose.msrb.mxu0 %v7354_v46  ;;  %v5563_v61 = vpop.f32.mrf.mxu1  ;;  %v11459_v9 = vand.u32 4294901760, %v7801_v15 }
 0x208   : > { %v5564_v46 = vadd.f32 %v5563_v61, %v5539_v58  ;;  %v520_v58 = vadd.f32 %v11351_v0, %v424_v49  ;;  %v423_v61 = vld [vmem:[%s9253_s12 + $0x2c0] sm:$0xff] }
 0x209   : > { %7490 = vmatpush.xpose.msrb.mxu2 %v11305_v20  ;;  %7525 = vmatpush.xpose.msrb.mxu3 %v7524_v24 }
 0x20a   : > { %7359 = vmatmul.f32.vlgmr.msra.gmra.mxu1 %v11295_v62 }
 0x20b   : > { %7456 = vmatpush.xpose.msrb.mxu1 %v11257_v47  ;;  %v5613_v60 = vpop.f32.mrf.mxu3  ;;  %7547 = vmatpush.xpose.msra.mxu0 %v11298_v2  ;;  %v7804_v47 = vsel %vm575_vm0, %v517_v19, 0  ;;  %v5590_v6 = vpop.f32.mrf.mxu2  ;;  %v11421_v2 = vsub.f32 %v7636_v36, %v11403_v52 }
 0x20c   : > { %v5649_v35 = vpop.f32.mrf.mxu0  ;;  %v11423_v22 = vand.u32 4294901760, %v7804_v47  ;;  %v5591_v25 = vadd.f32 %v5590_v6, %v5564_v46  ;;  %7527 = vmatmul.f32.vlgmr.msrb.gmra.mxu3 %v11341_v53  ;;  %v7854_v6 = vand.u32 4294901760, %v7853_v18  ;;  %v11475_v46 = vsub.f32 %v7801_v15, %v11459_v9 }
 0x20d   : > { %7599 = vmatpush.xpose.msra.mxu2 %v7516_v28  ;;  %7624 = vmatpush.xpose.msra.mxu3 %v11275_v37  ;;  %v7684_v28 = vand.u32 4294901760, %v11401_v12 }
 0x20e   : > { %7437 = vmatmul.f32.vlgmr.msrb.gmra.mxu0 %v11295_v62  ;;  %v5614_v26 = vadd.f32 %v5613_v60, %v5591_v25  ;;  %7496 = vmatmul.f32.vlgmr.msrb.gmra.mxu2 %v7495_v33  ;;  %v11444_v48 = vsub.f32 %v7804_v47, %v11423_v22  ;;  %v426_v60 = vld [vmem:[%s9253_s12 + $0x2d8] sm:$0xff]  ;;  %v7975_v25 = vsel %vm575_vm0, %v520_v58, 0  ;;  %v7829_v49 = vand.u32 4294901760, %v11475_v46 }
 0x20f   : > { %7458 = vmatpush.xpose.msrb.mxu1 %v11285_v51  ;;  %v11432_v51 = vsub.f32 %v7633_v4, %v11413_v63  ;;  %v7685_v21 = vsub.f32 %v11401_v12, %v7684_v28  ;;  %7550 = vmatpush.xpose.msra.mxu0 %v11326_v59  ;;  %v5680_v59 = vpop.f32.mrf.mxu1 }
 0x210   : > { %v5681_v57 = vadd.f32 %v5680_v59, %v5649_v35  ;;  %v7858_v4 = vand.u32 4294901760, %v11444_v48  ;;  %v425_v59 = vld [vmem:[%s9253_s12 + $0x2d0] sm:$0xff] }
 0x211   : > { %7603 = vmatpush.xpose.msra.mxu2 %v7522_v45  ;;  %v7690_v45 = vand.u32 4294901760, %v11421_v2  ;;  %7626 = vmatpush.xpose.msra.mxu3 %v11305_v20  ;;  %v7661_v36 = vand.u32 4294901760, %v11432_v51  ;;  %v7686_v19 = vand.u32 4294901760, %v7685_v21  ;;  %v521_v58 = vadd.f32 %v11270_v41, %v425_v59 }
 0x212   : > { %7460 = vmatmul.f32.vlgmr.msrb.gmra.mxu1 %v11295_v62  ;;  %v522_v62 = vadd.f32 %v11351_v0, %v426_v60  ;;  %v7859_v55 = vsub.f32 %v11444_v48, %v7858_v4  ;;  %v8715_v59 = vsel %vm575_vm0, %v10612_v40, 0.0 }
 0x213   : > { %7572 = vmatpush.xpose.msra.mxu1 %v11275_v37  ;;  %v8706_v37 = vsel %vm575_vm0, %v5614_v26, 0.0  ;;  %v5731_v54 = vpop.f32.mrf.mxu3  ;;  %7656 = vmatpush.xpose.msrb.mxu0 %v11380_v31  ;;  %v5706_v24 = vpop.f32.mrf.mxu2  ;;  %v7691_v43 = vsub.f32 %v11421_v2, %v7690_v45  ;;  %v519_v26 = vadd.f32 %v11270_v41, %v423_v61  ;;  %v7830_v61 = vsub.f32 %v11475_v46, %v7829_v49 }
 0x214   : > { %v11452_v29 = vadd.f32 %v8706_v37, %v8705_v42  ;;  %v5758_v13 = vpop.f32.mrf.mxu0  ;;  %v5707_v47 = vadd.f32 %v5706_v24, %v5681_v57  ;;  %7628 = vmatmul.f32.vlgmr.msra.gmra.mxu3 %v11341_v53 }
 0x215   : > { %7715 = vmatpush.xpose.msrb.mxu2 %v11401_v12  ;;  %7740 = vmatpush.xpose.msrb.mxu3 %v11380_v31  ;;  %v7692_v33 = vand.u32 4294901760, %v7691_v43  ;;  %v7972_v12 = vsel %vm575_vm0, %v519_v26, 0 }
 0x216   : > { %7553 = vmatmul.f32.vlgmr.msra.gmra.mxu0 %v11362_v7  ;;  %v5732_v35 = vadd.f32 %v5731_v54, %v5707_v47  ;;  %7605 = vmatmul.f32.vlgmr.msra.gmra.mxu2 %v11341_v53  ;;  %v3094_v53 = vadd.f32 %v10557_v32, %v10554_v56  ;;  %v11493_v56 = vand.u32 4294901760, %v7975_v25  ;;  %v8143_v32 = vsel %vm575_vm0, %v522_v62, 0 }
 0x217   : > { %7574 = vmatpush.xpose.msra.mxu1 %v11305_v20  ;;  %v7662_v20 = vsub.f32 %v11432_v51, %v7661_v36  ;;  %7658 = vmatpush.xpose.msrb.mxu0 %v11403_v52  ;;  %v5781_v42 = vpop.f32.mrf.mxu1  ;;  %v11506_v47 = vand.u32 4294901760, %v8143_v32 }
 0x218   : > { %v5759_v21 = vadd.f32 %v5758_v13, %v5732_v35  ;;  %v7860_v13 = vand.u32 4294901760, %v7859_v55  ;;  %v11514_v7 = vsub.f32 %v7975_v25, %v11493_v56  ;;  %v7831_v55 = vand.u32 4294901760, %v7830_v61 }
 0x219   : > { %7718 = vmatpush.xpose.msrb.mxu2 %v11421_v2  ;;  %7742 = vmatpush.xpose.msrb.mxu3 %v11403_v52  ;;  %v7663_v54 = vand.u32 4294901760, %v7662_v20  ;;  %v11529_v2 = vsub.f32 %v8143_v32, %v11506_v47 }
 0x21a   : > { %v5782_v24 = vadd.f32 %v5781_v42, %v5759_v21  ;;  %7578 = vmatmul.f32.vlgmr.msra.gmra.mxu1 %v7493_v38  ;;  %v11516_v38 = vand.u32 4294901760, %v7972_v12 }
 0x21b   : > { %7687 = vmatpush.xpose.msrb.mxu1 %v7686_v19  ;;  %v5848_v15 = vpop.f32.mrf.mxu3  ;;  %7767 = vmatpush.xpose.msra.mxu0 %v7684_v28  ;;  %v5817_v37 = vpop.f32.mrf.mxu2  ;;  %v571_v19 = vld [vmem:[%s9263_s17 + $0x160] sm:$0xff]  ;;  %v8710_v28 = vsel %vm575_vm0, %v3094_v53, 0.0  ;;  %v572_v53 = vld [vmem:[%s9263_s17 + $0x168] sm:$0xff]  ;;  %v8188_v21 = vand.u32 4294901760, %v11529_v2 }
 0x21c   : > { %v5849_v18 = vadd.f32 %v5848_v15, %v5817_v37  ;;  %v5874_v57 = vpop.f32.mrf.mxu0  ;;  %v8711_v43 = vsel %vm575_vm0, %v5782_v24, 0.0  ;;  %7746 = vmatmul.f32.vlgmr.msrb.gmra.mxu3 %v7661_v36  ;;  %v7969_v20 = vsel %vm575_vm0, %v571_v19, 0 }
 0x21d   : > { %7824 = vmatpush.xpose.msra.mxu2 %v11393_v34  ;;  %7855 = vmatpush.xpose.msra.mxu3 %v7854_v6  ;;  %v11504_v60 = vadd.f32 %v8711_v43, %v8710_v28  ;;  %v8189_v40 = vsub.f32 %v11529_v2, %v8188_v21 }
 0x21e   : > { %7664 = vmatmul.f32.vlgmr.msrb.gmra.mxu0 %v7663_v54  ;;  %7721 = vmatmul.f32.vlgmr.msrb.gmra.mxu2 %v11432_v51  ;;  %v5875_v36 = vadd.f32 %v5874_v57, %v5849_v18  ;;  %v8137_v54 = vsel %vm575_vm0, %v572_v53, 0  ;;  %v428_v18 = vld [vmem:[%s9253_s12 + $0x2e8] sm:$0xff] }
 0x21f   : > { %7693 = vmatpush.xpose.msrb.mxu1 %v7692_v33  ;;  %7771 = vmatpush.xpose.msra.mxu0 %v7690_v45  ;;  %v5899_v51 = vpop.f32.mrf.mxu1  ;;  %v11526_v33 = vand.u32 4294901760, %v7969_v20 }
 0x220   : > { %v5900_v45 = vadd.f32 %v5899_v51, %v5875_v36  ;;  %v430_v36 = vld [vmem:[%s9253_s12 + $0x2f8] sm:$0xff]  ;;  %v8190_v51 = vand.u32 4294901760, %v8189_v40 }
 0x221   : > { %7826 = vmatpush.xpose.msra.mxu2 %v11423_v22  ;;  %7861 = vmatpush.xpose.msra.mxu3 %v7860_v13 }
 0x222   : > { %7695 = vmatmul.f32.vlgmr.msrb.gmra.mxu1 %v11413_v63 }
 0x223   : > { %7792 = vmatpush.xpose.msra.mxu1 %v11380_v31  ;;  %v5949_v6 = vpop.f32.mrf.mxu3  ;;  %7883 = vmatpush.xpose.msrb.mxu0 %v11416_v50  ;;  %v8140_v31 = vsel %vm575_vm0, %v521_v58, 0  ;;  %v5926_v35 = vpop.f32.mrf.mxu2  ;;  %v11534_v50 = vsub.f32 %v7972_v12, %v11516_v38  ;;  %v11576_v58 = vand.u32 4294901760, %v8137_v54 }
 0x224   : > { %v5985_v62 = vpop.f32.mrf.mxu0  ;;  %v11536_v25 = vand.u32 4294901760, %v8140_v31  ;;  %v5927_v26 = vadd.f32 %v5926_v35, %v5900_v45  ;;  %7863 = vmatmul.f32.vlgmr.msra.gmra.mxu3 %v11459_v9 }
 0x225   : > { %7935 = vmatpush.xpose.msrb.mxu2 %v7852_v14  ;;  %7960 = vmatpush.xpose.msrb.mxu3 %v11393_v34  ;;  %v8020_v14 = vand.u32 4294901760, %v11514_v7 }
 0x226   : > { %7773 = vmatmul.f32.vlgmr.msra.gmra.mxu0 %v11413_v63  ;;  %v5950_v15 = vadd.f32 %v5949_v6, %v5927_v26  ;;  %7832 = vmatmul.f32.vlgmr.msra.gmra.mxu2 %v7831_v55  ;;  %v11556_v37 = vsub.f32 %v8140_v31, %v11536_v25  ;;  %v427_v31 = vld [vmem:[%s9253_s12 + $0x2e0] sm:$0xff] }
 0x227   : > { %7794 = vmatpush.xpose.msra.mxu1 %v11403_v52  ;;  %v11545_v52 = vsub.f32 %v7969_v20, %v11526_v33  ;;  %v8021_v42 = vsub.f32 %v11514_v7, %v8020_v14  ;;  %7886 = vmatpush.xpose.msrb.mxu0 %v11444_v48  ;;  %v6016_v57 = vpop.f32.mrf.mxu1  ;;  %v524_v20 = vadd.f32 %v11351_v0, %v428_v18 }
 0x228   : > { %v6017_v12 = vadd.f32 %v6016_v57, %v5985_v62  ;;  %v8194_v61 = vand.u32 4294901760, %v11556_v37  ;;  %v11589_v62 = vsub.f32 %v8137_v54, %v11576_v58  ;;  %v523_v26 = vadd.f32 %v11270_v41, %v427_v31 }
 0x229   : > { %7939 = vmatpush.xpose.msrb.mxu2 %v7858_v4  ;;  %v8026_v4 = vand.u32 4294901760, %v11534_v50  ;;  %7962 = vmatpush.xpose.msrb.mxu3 %v11423_v22  ;;  %v7997_v13 = vand.u32 4294901760, %v11545_v52  ;;  %v8022_v28 = vand.u32 4294901760, %v8021_v42 }
 0x22a   : > { %7796 = vmatmul.f32.vlgmr.msra.gmra.mxu1 %v11413_v63  ;;  %v526_v63 = vadd.f32 %v11351_v0, %v430_v36  ;;  %v8195_v55 = vsub.f32 %v11556_v37, %v8194_v61  ;;  %v8165_v18 = vand.u32 4294901760, %v11589_v62  ;;  %v8308_v40 = vsel %vm575_vm0, %v523_v26, 0  ;;  %v9095_v36 = vld [vmem:[%s10996_s30] ss:$0 sm:$0xff] }
 0x22b   : > { %7908 = vmatpush.xpose.msrb.mxu1 %v11393_v34  ;;  %v8716_v34 = vsel %vm575_vm0, %v5950_v15, 0.0  ;;  %v6067_v24 = vpop.f32.mrf.mxu3  ;;  %7992 = vmatpush.xpose.msra.mxu0 %v11493_v56  ;;  %v6042_v32 = vpop.f32.mrf.mxu2  ;;  %v8027_v43 = vsub.f32 %v11534_v50, %v8026_v4 }
 0x22c   : > { %v11565_v48 = vadd.f32 %v8716_v34, %v8715_v59  ;;  %v6094_v19 = vpop.f32.mrf.mxu0  ;;  %v6043_v6 = vadd.f32 %v6042_v32, %v6017_v12  ;;  %7964 = vmatmul.f32.vlgmr.msrb.gmra.mxu3 %v11459_v9  ;;  %v429_v59 = vld [vmem:[%s9253_s12 + $0x2f0] sm:$0xff]  ;;  %v8196_v32 = vand.u32 4294901760, %v8195_v55  ;;  %s9047_s12 = sshll.u32 %s11605_s19, 3 }
 0x22d   : > { %8051 = vmatpush.xpose.msra.mxu2 %v11514_v7  ;;  %8076 = vmatpush.xpose.msra.mxu3 %v11493_v56  ;;  %v8028_v45 = vand.u32 4294901760, %v8027_v43  ;;  %v8479_v7 = vsel %vm575_vm0, %v526_v63, 0  ;;  %v573_v12 = vld [vmem:[%s9263_s17 + $0x170] sm:$0xff]  ;;  %v525_v43 = vadd.f32 %v11270_v41, %v429_v59  ;;  %v11632_v41 = vand.u32 4294901760, %v8308_v40  ;;  %s11640_s14 = scalar_lea.vmem %s11846_s5, %s9047_s12 }
 0x22e   : > { %7889 = vmatmul.f32.vlgmr.msrb.gmra.mxu0 %v11475_v46  ;;  %v6068_v35 = vadd.f32 %v6067_v24, %v6043_v6  ;;  %7941 = vmatmul.f32.vlgmr.msrb.gmra.mxu2 %v11459_v9  ;;  %v8311_v9 = vsel %vm575_vm0, %v524_v20, 0  ;;  %v11622_v6 = vand.u32 4294901760, %v8479_v7  ;;  %v8166_v46 = vsub.f32 %v11589_v62, %v8165_v18 }
 0x22f   : > { %7910 = vmatpush.xpose.msrb.mxu1 %v11423_v22  ;;  %v7998_v22 = vsub.f32 %v11545_v52, %v7997_v13  ;;  %7994 = vmatpush.xpose.msra.mxu0 %v11516_v38  ;;  %v6117_v0 = vpop.f32.mrf.mxu1  ;;  %v11608_v57 = vand.u32 4294901760, %v8311_v9  ;;  %v11655_v55 = vsub.f32 %v8308_v40, %v11632_v41 }
 0x230   : > { %v6095_v53 = vadd.f32 %v6094_v19, %v6068_v35  ;;  %v11650_v35 = vsub.f32 %v8479_v7, %v11622_v6 }
 0x231   : > { %8054 = vmatpush.xpose.msra.mxu2 %v11534_v50  ;;  %8078 = vmatpush.xpose.msra.mxu3 %v11516_v38  ;;  %v7999_v54 = vand.u32 4294901760, %v7998_v22 }
 0x232   : > { %v6118_v34 = vadd.f32 %v6117_v0, %v6095_v53  ;;  %7914 = vmatmul.f32.vlgmr.msrb.gmra.mxu1 %v7829_v49  ;;  %v11630_v49 = vsub.f32 %v8311_v9, %v11608_v57  ;;  %v574_v53 = vld [vmem:[%s9263_s17 + $0x178] sm:$0xff] }
 0x233   : > { %8023 = vmatpush.xpose.msra.mxu1 %v8022_v28  ;;  %v6184_v15 = vpop.f32.mrf.mxu3  ;;  %8103 = vmatpush.xpose.msrb.mxu0 %v8020_v14  ;;  %v6153_v42 = vpop.f32.mrf.mxu2  ;;  %v9094_v14 = vld [vmem:[%s10990_s27] ss:$0 sm:$0xff] }
 0x234   : > { %v6210_v24 = vpop.f32.mrf.mxu0  ;;  %v8643_v19 = vsel %vm575_vm0, %v6118_v34, 0.0  ;;  %v6185_v28 = vadd.f32 %v6184_v15, %v6153_v42  ;;  %8082 = vmatmul.f32.vlgmr.msra.gmra.mxu3 %v7997_v13  ;;  %v8476_v13 = vsel %vm575_vm0, %v525_v43, 0  ;;  %v8524_v15 = vand.u32 4294901760, %v11650_v35 }
 0x235   : > { %8160 = vmatpush.xpose.msrb.mxu2 %v11506_v47  ;;  %8191 = vmatpush.xpose.msrb.mxu3 %v8190_v51  ;;  %v8644_v20 = vadd.f32 %v8643_v19, %v10674_v27  ;;  %v8305_v27 = vsel %vm575_vm0, %v573_v12, 0  ;;  %v11659_v9 = vand.u32 4294901760, %v8476_v13  ;;  %v8473_v34 = vsel %vm575_vm0, %v574_v53, 0  ;;  %v9098_v53 = vld [vmem:[%s10990_s27 + $0x2] ss:$0 sm:$0xff] }
 0x236   : > { %8000 = vmatmul.f32.vlgmr.msra.gmra.mxu0 %v7999_v54  ;;  %8057 = vmatmul.f32.vlgmr.msra.gmra.mxu2 %v11545_v52  ;;  %v8362_v54 = vand.u32 4294901760, %v11655_v55  ;;  %v8525_v12 = vsub.f32 %v11650_v35, %v8524_v15 }
 0x237   : > { %8029 = vmatpush.xpose.msra.mxu1 %v8028_v45  ;;  %v8784_v31 = vmul.f32 %v9094_v14, %v8644_v20  ;;  %8107 = vmatpush.xpose.msrb.mxu0 %v8026_v4  ;;  %v6235_v51 = vpop.f32.mrf.mxu1  ;;  %v11647_v4 = vand.u32 4294901760, %v8305_v27  ;;  %v11678_v59 = vsub.f32 %v8476_v13, %v11659_v9  ;;  %v9097_v14 = vld [vmem:[%s10996_s30 + $0x1] ss:$0 sm:$0xff]  ;;  %v11695_v20 = vand.u32 4294901760, %v8473_v34 }
 0x239   : > { %8162 = vmatpush.xpose.msrb.mxu2 %v11536_v25  ;;  %8197 = vmatpush.xpose.msrb.mxu3 %v8196_v32  ;;  %v8864_v22 = vadd.f32 %v9095_v36, %v8784_v31  ;;  %v8526_v31 = vand.u32 4294901760, %v8525_v12  ;;  %v11705_v13 = vsub.f32 %v8473_v34, %v11695_v20  ;;  %v9099_v34 = vld [vmem:[%s10996_s30 + $0x2] ss:$0 sm:$0xff] }
 0x23a   : > { %8031 = vmatmul.f32.vlgmr.msra.gmra.mxu1 %v11526_v33 }
 0x23b   : > { %8128 = vmatpush.xpose.msrb.mxu1 %v11493_v56  ;;  %v6211_v56 = vadd.f32 %v6210_v24, %v6185_v28  ;;  %v6285_v52 = vpop.f32.mrf.mxu3  ;;  %8219 = vmatpush.xpose.msra.mxu0 %v11529_v2  ;;  %v6262_v50 = vpop.f32.mrf.mxu2  ;;  %v8356_v2 = vand.u32 4294901760, %v11630_v49  ;;  %8880 = vst.msk [vmem:[%s11640_s14] sm:$0xff] %vm575_vm0, %v8864_v22 }
 0x23c   : > { %v6321_v63 = vpop.f32.mrf.mxu0  ;;  %8199 = vmatmul.f32.vlgmr.msrb.gmra.mxu3 %v11576_v58 }
 0x23d   : > { %8271 = vmatpush.xpose.msra.mxu2 %v8188_v21  ;;  %8296 = vmatpush.xpose.msra.mxu3 %v11506_v47  ;;  %v6236_v45 = vadd.f32 %v6235_v51, %v6211_v56  ;;  %v8167_v21 = vand.u32 4294901760, %v8166_v46  ;;  %v8357_v42 = vsub.f32 %v11630_v49, %v8356_v2  ;;  %v8530_v46 = vand.u32 4294901760, %v11678_v59 }
 0x23e   : > { %8109 = vmatmul.f32.vlgmr.msrb.gmra.mxu0 %v11526_v33 }
 0x23f   : > { %8130 = vmatpush.xpose.msrb.mxu1 %v11516_v38  ;;  %v6263_v26 = vadd.f32 %v6262_v50, %v6236_v45  ;;  %v11668_v38 = vsub.f32 %v8305_v27, %v11647_v4  ;;  %8168 = vmatmul.f32.vlgmr.msrb.gmra.mxu2 %v8167_v21  ;;  %v6352_v32 = vpop.f32.mrf.mxu1  ;;  %v8358_v43 = vand.u32 4294901760, %v8357_v42 }
 0x240   : > { %8222 = vmatpush.xpose.msra.mxu0 %v11556_v37  ;;  %v6353_v19 = vadd.f32 %v6352_v32, %v6321_v63 }
 0x241   : > { %8275 = vmatpush.xpose.msra.mxu2 %v8194_v61  ;;  %v6286_v0 = vadd.f32 %v6285_v52, %v6263_v26  ;;  %v9096_v61 = vld [vmem:[%s10990_s27 + $0x1] ss:$0 sm:$0xff]  ;;  %8298 = vmatpush.xpose.msra.mxu3 %v11536_v25  ;;  %v8333_v37 = vand.u32 4294901760, %v11668_v38  ;;  %v8501_v26 = vand.u32 4294901760, %v11705_v13 }
 0x242   : > { %8132 = vmatmul.f32.vlgmr.msrb.gmra.mxu1 %v11526_v33  ;;  %v8531_v33 = vsub.f32 %v11678_v59, %v8530_v46 }
 0x243   : > { %8244 = vmatpush.xpose.msra.mxu1 %v11506_v47  ;;  %v8648_v24 = vsel %vm575_vm0, %v6286_v0, 0.0  ;;  %v6403_v7 = vpop.f32.mrf.mxu3  ;;  %v6378_v40 = vpop.f32.mrf.mxu2 }
 0x244   : > { %8328 = vmatpush.xpose.msrb.mxu0 %v11608_v57  ;;  %v8649_v47 = vadd.f32 %v8648_v24, %v10740_v10  ;;  %v6430_v28 = vpop.f32.mrf.mxu0  ;;  %v8363_v10 = vsub.f32 %v11655_v55, %v8362_v54  ;;  %8300 = vmatmul.f32.vlgmr.msra.gmra.mxu3 %v11576_v58  ;;  %v8532_v0 = vand.u32 4294901760, %v8531_v33  ;;  %v8502_v24 = vsub.f32 %v11705_v13, %v8501_v26 }
 0x245   : > { %8387 = vmatpush.xpose.msrb.mxu2 %v11630_v49  ;;  %8412 = vmatpush.xpose.msrb.mxu3 %v11608_v57  ;;  %v6379_v49 = vadd.f32 %v6378_v40, %v6353_v19 }
 0x246   : > { %v8785_v36 = vmul.f32 %v9096_v61, %v8649_v47  ;;  %8225 = vmatmul.f32.vlgmr.msra.gmra.mxu0 %v11589_v62  ;;  %v8364_v52 = vand.u32 4294901760, %v8363_v10 }
 0x247   : > { %8246 = vmatpush.xpose.msra.mxu1 %v11536_v25  ;;  %v8334_v25 = vsub.f32 %v11668_v38, %v8333_v37  ;;  %v6404_v56 = vadd.f32 %v6403_v7, %v6379_v49  ;;  %8277 = vmatmul.f32.vlgmr.msra.gmra.mxu2 %v11576_v58  ;;  %v6453_v58 = vpop.f32.mrf.mxu1 }
 0x248   : > { %v8865_v27 = vadd.f32 %v9097_v14, %v8785_v36  ;;  %8330 = vmatpush.xpose.msrb.mxu0 %v11632_v41 }
 0x249   : > { %8390 = vmatpush.xpose.msrb.mxu2 %v11655_v55  ;;  %8414 = vmatpush.xpose.msrb.mxu3 %v11632_v41  ;;  %v6431_v22 = vadd.f32 %v6430_v28, %v6404_v56  ;;  %v8335_v45 = vand.u32 4294901760, %v8334_v25  ;;  %v8503_v55 = vand.u32 4294901760, %v8502_v24 }
 0x24a   : > { %8881 = vst.msk [vmem:[%s11640_s14 + $0x8] sm:$0xff] %vm575_vm0, %v8865_v27  ;;  %8250 = vmatmul.f32.vlgmr.msra.gmra.mxu1 %v8165_v18 }
 0x24b   : > { %8359 = vmatpush.xpose.msrb.mxu1 %v8358_v43  ;;  %v6520_v51 = vpop.f32.mrf.mxu3  ;;  %v6489_v50 = vpop.f32.mrf.mxu2  ;;  %v6454_v63 = vadd.f32 %v6453_v58, %v6431_v22 }
 0x24c   : > { %8439 = vmatpush.xpose.msra.mxu0 %v8356_v2  ;;  %v6546_v21 = vpop.f32.mrf.mxu0  ;;  %v6521_v61 = vadd.f32 %v6520_v51, %v6489_v50  ;;  %8418 = vmatmul.f32.vlgmr.msrb.gmra.mxu3 %v8333_v37  ;;  %v9101_v37 = vld [vmem:[%s10996_s30 + $0x3] ss:$0 sm:$0xff] }
 0x24d   : > { %8496 = vmatpush.xpose.msra.mxu2 %v11622_v6  ;;  %8527 = vmatpush.xpose.msra.mxu3 %v8526_v31  ;;  %v8653_v42 = vsel %vm575_vm0, %v6454_v63, 0.0  ;;  %v9102_v31 = vld [vmem:[%s10990_s27 + $0x4] ss:$0 sm:$0xff] }
 0x24e   : > { %v8654_v2 = vadd.f32 %v8653_v42, %v10797_v3  ;;  %8336 = vmatmul.f32.vlgmr.msrb.gmra.mxu0 %v8335_v45  ;;  %v6547_v62 = vadd.f32 %v6546_v21, %v6521_v61  ;;  %v9104_v42 = vld [vmem:[%s10990_s27 + $0x5] ss:$0 sm:$0xff] }
 0x24f   : > { %8365 = vmatpush.xpose.msrb.mxu1 %v8364_v52  ;;  %8393 = vmatmul.f32.vlgmr.msrb.gmra.mxu2 %v11668_v38  ;;  %v6571_v38 = vpop.f32.mrf.mxu1  ;;  %v9105_v61 = vld [vmem:[%s10996_s30 + $0x5] ss:$0 sm:$0xff] }
 0x250   : > { %v8786_v7 = vmul.f32 %v9098_v53, %v8654_v2  ;;  %8443 = vmatpush.xpose.msra.mxu0 %v8362_v54  ;;  %v6572_v47 = vadd.f32 %v6571_v38, %v6547_v62 }
 0x251   : > { %8498 = vmatpush.xpose.msra.mxu2 %v11659_v9  ;;  %8533 = vmatpush.xpose.msra.mxu3 %v8532_v0 }
 0x252   : > { %v8866_v3 = vadd.f32 %v9099_v34, %v8786_v7  ;;  %8367 = vmatmul.f32.vlgmr.msrb.gmra.mxu1 %v11647_v4 }
 0x253   : > { %8464 = vmatpush.xpose.msra.mxu1 %v11608_v57  ;;  %v6621_v18 = vpop.f32.mrf.mxu3  ;;  %v6598_v57 = vpop.f32.mrf.mxu2 }
 0x254   : > { %8555 = vmatpush.xpose.msrb.mxu0 %v11650_v35  ;;  %v6657_v14 = vpop.f32.mrf.mxu0  ;;  %8882 = vst.msk [vmem:[%s11640_s14 + $0x10] sm:$0xff] %vm575_vm0, %v8866_v3  ;;  %v6599_v54 = vadd.f32 %v6598_v57, %v6572_v47  ;;  %8535 = vmatmul.f32.vlgmr.msra.gmra.mxu3 %v11695_v20 }
 0x255   : > { %8607 = vmatpush.xpose.msrb.mxu2 %v8524_v15  ;;  %8632 = vmatpush.xpose.msrb.mxu3 %v11622_v6  ;;  %v9100_v15 = vld [vmem:[%s10990_s27 + $0x3] ss:$0 sm:$0xff] }
 0x256   : > { %8445 = vmatmul.f32.vlgmr.msra.gmra.mxu0 %v11647_v4  ;;  %v6622_v35 = vadd.f32 %v6621_v18, %v6599_v54 }
 0x257   : > { %8466 = vmatpush.xpose.msra.mxu1 %v11632_v41  ;;  %8504 = vmatmul.f32.vlgmr.msra.gmra.mxu2 %v8503_v55  ;;  %v6688_v12 = vpop.f32.mrf.mxu1 }
 0x258   : > { %8558 = vmatpush.xpose.msrb.mxu0 %v11678_v59  ;;  %v8658_v41 = vsel %vm575_vm0, %v6622_v35, 0.0  ;;  %v6689_v28 = vadd.f32 %v6688_v12, %v6657_v14  ;;  %v9106_v35 = vld [vmem:[%s10990_s27 + $0x6] ss:$0 sm:$0xff] }
 0x259   : > { %8611 = vmatpush.xpose.msrb.mxu2 %v8530_v46  ;;  %8634 = vmatpush.xpose.msrb.mxu3 %v11659_v9  ;;  %v8659_v40 = vadd.f32 %v8658_v41, %v10858_v16 }
 0x25a   : > { %8468 = vmatmul.f32.vlgmr.msra.gmra.mxu1 %v11647_v4 }
 0x25b   : > { %8580 = vmatpush.xpose.msrb.mxu1 %v11622_v6  ;;  %v6739_v32 = vpop.f32.mrf.mxu3  ;;  %v6714_v19 = vpop.f32.mrf.mxu2  ;;  %v8787_v6 = vmul.f32 %v9100_v15, %v8659_v40  ;;  %v9107_v40 = vld [vmem:[%s10996_s30 + $0x6] ss:$0 sm:$0xff] }
 0x25c   : > { %v6766_v43 = vpop.f32.mrf.mxu0  ;;  %v6715_v10 = vadd.f32 %v6714_v19, %v6689_v28  ;;  %8636 = vmatmul.f32.vlgmr.msrb.gmra.mxu3 %v11695_v20 }
 0x25d   : > { %v8867_v59 = vadd.f32 %v9101_v37, %v8787_v6 }
 0x25e   : > { %8561 = vmatmul.f32.vlgmr.msrb.gmra.mxu0 %v11705_v13  ;;  %v6740_v36 = vadd.f32 %v6739_v32, %v6715_v10 }
 0x25f   : > { %8582 = vmatpush.xpose.msrb.mxu1 %v11659_v9  ;;  %8613 = vmatmul.f32.vlgmr.msrb.gmra.mxu2 %v11695_v20  ;;  %8883 = vst.msk [vmem:[%s11640_s14 + $0x18] sm:$0xff] %vm575_vm0, %v8867_v59  ;;  %v6789_v49 = vpop.f32.mrf.mxu1  ;;  %v9103_v20 = vld [vmem:[%s10996_s30 + $0x4] ss:$0 sm:$0xff] }
 0x260   : > { %v6767_v16 = vadd.f32 %v6766_v43, %v6740_v36 }
 0x262   : > { %v6790_v27 = vadd.f32 %v6789_v49, %v6767_v16  ;;  %8586 = vmatmul.f32.vlgmr.msrb.gmra.mxu1 %v8501_v26 }
 0x263   : > { %v6856_v46 = vpop.f32.mrf.mxu3  ;;  %v6825_v9 = vpop.f32.mrf.mxu2 }
 0x264   : > { %v6882_v25 = vpop.f32.mrf.mxu0  ;;  %v8663_v4 = vsel %vm575_vm0, %v6790_v27, 0.0  ;;  %v6857_v56 = vadd.f32 %v6856_v46, %v6825_v9  ;;  %v9108_v46 = vld [vmem:[%s10990_s27 + $0x7] ss:$0 sm:$0xff] }
 0x265   : > { %v8664_v52 = vadd.f32 %v8663_v4, %v10911_v8  ;;  %v9109_v27 = vld [vmem:[%s10996_s30 + $0x7] ss:$0 sm:$0xff] }
 0x266   : > { %v6883_v22 = vadd.f32 %v6882_v25, %v6857_v56 }
 0x267   : > { %v8788_v33 = vmul.f32 %v9102_v31, %v8664_v52  ;;  %v6907_v50 = vpop.f32.mrf.mxu1 }
 0x268   : > { %v6908_v63 = vadd.f32 %v6907_v50, %v6883_v22 }
 0x269   : > { %v8868_v58 = vadd.f32 %v9103_v20, %v8788_v33 }
 0x26b   : > { %v6957_v51 = vpop.f32.mrf.mxu3  ;;  %v6934_v45 = vpop.f32.mrf.mxu2  ;;  %8884 = vst.msk [vmem:[%s11640_s14 + $0x20] sm:$0xff] %vm575_vm0, %v8868_v58 }
 0x26c   : > { %v6993_v21 = vpop.f32.mrf.mxu0  ;;  %v6935_v53 = vadd.f32 %v6934_v45, %v6908_v63 }
 0x26e   : > { %v6958_v0 = vadd.f32 %v6957_v51, %v6935_v53 }
 0x26f   : > { %v7024_v2 = vpop.f32.mrf.mxu1 }
 0x270   : > { %v8668_v13 = vsel %vm575_vm0, %v6958_v0, 0.0  ;;  %v7025_v24 = vadd.f32 %v7024_v2, %v6993_v21  ;;  %v9110_v21 = vld [vmem:[%s10990_s27 + $0x8] ss:$0 sm:$0xff] }
 0x271   : > { %v8669_v8 = vadd.f32 %v8668_v13, %v10980_v30  ;;  %v9111_v13 = vld [vmem:[%s10996_s30 + $0x8] ss:$0 sm:$0xff] }
 0x273   : > { %v7075_v26 = vpop.f32.mrf.mxu3  ;;  %v7050_v34 = vpop.f32.mrf.mxu2  ;;  %v8789_v62 = vmul.f32 %v9104_v42, %v8669_v8 }
 0x274   : > { %v7102_v7 = vpop.f32.mrf.mxu0  ;;  %v7051_v18 = vadd.f32 %v7050_v34, %v7025_v24 }
 0x275   : > { %v8869_v3 = vadd.f32 %v9105_v61, %v8789_v62 }
 0x276   : > { %v7076_v38 = vadd.f32 %v7075_v26, %v7051_v18 }
 0x277   : > { %8885 = vst.msk [vmem:[%s11640_s14 + $0x28] sm:$0xff] %vm575_vm0, %v8869_v3  ;;  %v7125_v14 = vpop.f32.mrf.mxu1 }
 0x278   : > { %v7103_v57 = vadd.f32 %v7102_v7, %v7076_v38  ;;  %v9112_v38 = vld [vmem:[%s10990_s27 + $0x9] ss:$0 sm:$0xff] }
 0x27a   : > { %v7126_v54 = vadd.f32 %v7125_v14, %v7103_v57  ;;  %v9113_v14 = vld [vmem:[%s10996_s30 + $0x9] ss:$0 sm:$0xff] }
 0x27b   : > { %v7192_v47 = vpop.f32.mrf.mxu3  ;;  %v7161_v55 = vpop.f32.mrf.mxu2 }
 0x27c   : > { %v7218_v30 = vpop.f32.mrf.mxu0  ;;  %v8673_v15 = vsel %vm575_vm0, %v7126_v54, 0.0  ;;  %v7193_v41 = vadd.f32 %v7192_v47, %v7161_v55 }
 0x27d   : > { %v8674_v32 = vadd.f32 %v8673_v15, %v11042_v23 }
 0x27e   : > { %v7219_v12 = vadd.f32 %v7218_v30, %v7193_v41 }
 0x27f   : > { %v8790_v37 = vmul.f32 %v9106_v35, %v8674_v32  ;;  %v7243_v43 = vpop.f32.mrf.mxu1 }
 0x280   : > { %v7244_v10 = vadd.f32 %v7243_v43, %v7219_v12 }
 0x281   : > { %v8870_v28 = vadd.f32 %v9107_v40, %v8790_v37 }
 0x283   : > { %v7293_v19 = vpop.f32.mrf.mxu3  ;;  %v7270_v6 = vpop.f32.mrf.mxu2  ;;  %8886 = vst.msk [vmem:[%s11640_s14 + $0x30] sm:$0xff] %vm575_vm0, %v8870_v28 }
 0x284   : > { %v7329_v59 = vpop.f32.mrf.mxu0  ;;  %v7271_v36 = vadd.f32 %v7270_v6, %v7244_v10  ;;  %v9114_v6 = vld [vmem:[%s10990_s27 + $0xa] ss:$0 sm:$0xff] }
 0x286   : > { %v7294_v16 = vadd.f32 %v7293_v19, %v7271_v36 }
 0x287   : > { %v7360_v25 = vpop.f32.mrf.mxu1 }
 0x288   : > { %v8678_v49 = vsel %vm575_vm0, %v7294_v16, 0.0  ;;  %v7361_v4 = vadd.f32 %v7360_v25, %v7329_v59  ;;  %v9115_v16 = vld [vmem:[%s10996_s30 + $0xa] ss:$0 sm:$0xff] }
 0x289   : > { %v8679_v23 = vadd.f32 %v8678_v49, %v11103_v5 }
 0x28b   : > { %v7411_v9 = vpop.f32.mrf.mxu3  ;;  %v7386_v31 = vpop.f32.mrf.mxu2  ;;  %v8791_v52 = vmul.f32 %v9108_v46, %v8679_v23 }
 0x28c   : > { %v7438_v56 = vpop.f32.mrf.mxu0  ;;  %v7387_v20 = vadd.f32 %v7386_v31, %v7361_v4 }
 0x28d   : > { %v8871_v33 = vadd.f32 %v9109_v27, %v8791_v52 }
 0x28e   : > { %v7412_v22 = vadd.f32 %v7411_v9, %v7387_v20  ;;  %v9116_v20 = vld [vmem:[%s10990_s27 + $0xb] ss:$0 sm:$0xff] }
 0x28f   : > { %8887 = vst.msk [vmem:[%s11640_s14 + $0x38] sm:$0xff] %vm575_vm0, %v8871_v33  ;;  %v7461_v50 = vpop.f32.mrf.mxu1 }
 0x290   : > { %v7439_v51 = vadd.f32 %v7438_v56, %v7412_v22 }
 0x292   : > { %v7462_v63 = vadd.f32 %v7461_v50, %v7439_v51  ;;  %v9117_v51 = vld [vmem:[%s10996_s30 + $0xb] ss:$0 sm:$0xff] }
 0x293   : > { %v7528_v58 = vpop.f32.mrf.mxu3  ;;  %v7497_v45 = vpop.f32.mrf.mxu2 }
 0x294   : > { %v7554_v5 = vpop.f32.mrf.mxu0  ;;  %v8683_v53 = vsel %vm575_vm0, %v7462_v63, 0.0  ;;  %v7529_v0 = vadd.f32 %v7528_v58, %v7497_v45 }
 0x295   : > { %v8684_v42 = vadd.f32 %v8683_v53, %v11155_v1 }
 0x296   : > { %v7555_v8 = vadd.f32 %v7554_v5, %v7529_v0 }
 0x297   : > { %v8792_v26 = vmul.f32 %v9110_v21, %v8684_v42  ;;  %v7579_v34 = vpop.f32.mrf.mxu1 }
 0x298   : > { %v7580_v7 = vadd.f32 %v7579_v34, %v7555_v8 }
 0x299   : > { %v8872_v2 = vadd.f32 %v9111_v13, %v8792_v26 }
 0x29b   : > { %v7629_v61 = vpop.f32.mrf.mxu3  ;;  %v7606_v24 = vpop.f32.mrf.mxu2  ;;  %8888 = vst.msk [vmem:[%s11640_s14 + $0x40] sm:$0xff] %vm575_vm0, %v8872_v2  ;;  %v9118_v2 = vld [vmem:[%s10990_s27 + $0xc] ss:$0 sm:$0xff] }
 0x29c   : > { %v7665_v62 = vpop.f32.mrf.mxu0  ;;  %v7607_v18 = vadd.f32 %v7606_v24, %v7580_v7 }
 0x29e   : > { %v7630_v3 = vadd.f32 %v7629_v61, %v7607_v18 }
 0x29f   : > { %v7696_v55 = vpop.f32.mrf.mxu1 }
 0x2a0   : > { %v8688_v57 = vsel %vm575_vm0, %v7630_v3, 0.0  ;;  %v7697_v30 = vadd.f32 %v7696_v55, %v7665_v62  ;;  %v9119_v62 = vld [vmem:[%s10996_s30 + $0xc] ss:$0 sm:$0xff] }
 0x2a1   : > { %v8689_v1 = vadd.f32 %v8688_v57, %v11216_v17 }
 0x2a3   : > { %v7747_v47 = vpop.f32.mrf.mxu3  ;;  %v7722_v54 = vpop.f32.mrf.mxu2  ;;  %v8793_v15 = vmul.f32 %v9112_v38, %v8689_v1 }
 0x2a4   : > { %v7774_v35 = vpop.f32.mrf.mxu0  ;;  %v7723_v41 = vadd.f32 %v7722_v54, %v7697_v30 }
 0x2a5   : > { %v8873_v32 = vadd.f32 %v9113_v14, %v8793_v15 }
 0x2a6   : > { %v7748_v40 = vadd.f32 %v7747_v47, %v7723_v41 }
 0x2a7   : > { %8889 = vst.msk [vmem:[%s11640_s14 + $0x48] sm:$0xff] %vm575_vm0, %v8873_v32  ;;  %v7797_v19 = vpop.f32.mrf.mxu1  ;;  %v9121_v32 = vld [vmem:[%s10996_s30 + $0xd] ss:$0 sm:$0xff] }
 0x2a8   : > { %v7775_v37 = vadd.f32 %v7774_v35, %v7748_v40  ;;  %v9120_v35 = vld [vmem:[%s10990_s27 + $0xd] ss:$0 sm:$0xff] }
 0x2aa   : > { %v7798_v43 = vadd.f32 %v7797_v19, %v7775_v37 }
 0x2ab   : > { %v7864_v12 = vpop.f32.mrf.mxu3  ;;  %v7833_v28 = vpop.f32.mrf.mxu2 }
 0x2ac   : > { %v7890_v17 = vpop.f32.mrf.mxu0  ;;  %v8693_v10 = vsel %vm575_vm0, %v7798_v43, 0.0  ;;  %v7865_v59 = vadd.f32 %v7864_v12, %v7833_v28 }
 0x2ad   : > { %v8694_v36 = vadd.f32 %v8693_v10, %v11273_v11 }
 0x2ae   : > { %v7891_v49 = vadd.f32 %v7890_v17, %v7865_v59 }
 0x2af   : > { %v8794_v46 = vmul.f32 %v9114_v6, %v8694_v36  ;;  %v7915_v27 = vpop.f32.mrf.mxu1 }
 0x2b0   : > { %v7916_v31 = vadd.f32 %v7915_v27, %v7891_v49  ;;  %v9123_v27 = vld [vmem:[%s10996_s30 + $0xe] ss:$0 sm:$0xff] }
 0x2b1   : > { %v8874_v23 = vadd.f32 %v9115_v16, %v8794_v46 }
 0x2b3   : > { %v7965_v9 = vpop.f32.mrf.mxu3  ;;  %v7942_v25 = vpop.f32.mrf.mxu2  ;;  %8890 = vst.msk [vmem:[%s11640_s14 + $0x50] sm:$0xff] %vm575_vm0, %v8874_v23 }
 0x2b4   : > { %v8001_v4 = vpop.f32.mrf.mxu0  ;;  %v7943_v56 = vadd.f32 %v7942_v25, %v7916_v31 }
 0x2b6   : > { %v7966_v52 = vadd.f32 %v7965_v9, %v7943_v56 }
 0x2b7   : > { %v8032_v58 = vpop.f32.mrf.mxu1 }
 0x2b8   : > { %v8698_v33 = vsel %vm575_vm0, %v7966_v52, 0.0  ;;  %v8033_v45 = vadd.f32 %v8032_v58, %v8001_v4  ;;  %v9124_v58 = vld [vmem:[%s10990_s27 + $0xf] ss:$0 sm:$0xff] }
 0x2b9   : > { %v8699_v11 = vadd.f32 %v8698_v33, %v11334_v39 }
 0x2bb   : > { %v8083_v22 = vpop.f32.mrf.mxu3  ;;  %v8058_v50 = vpop.f32.mrf.mxu2  ;;  %v8795_v5 = vmul.f32 %v9116_v20, %v8699_v11 }
 0x2bc   : > { %v8110_v63 = vpop.f32.mrf.mxu0  ;;  %v8059_v21 = vadd.f32 %v8058_v50, %v8033_v45  ;;  %v9125_v45 = vld [vmem:[%s10996_s30 + $0xf] ss:$0 sm:$0xff] }
 0x2bd   : > { %v8875_v53 = vadd.f32 %v9117_v51, %v8795_v5 }
 0x2be   : > { %v8084_v0 = vadd.f32 %v8083_v22, %v8059_v21 }
 0x2bf   : > { %8891 = vst.msk [vmem:[%s11640_s14 + $0x58] sm:$0xff] %vm575_vm0, %v8875_v53  ;;  %v8133_v26 = vpop.f32.mrf.mxu1 }
 0x2c0   : > { %v8111_v42 = vadd.f32 %v8110_v63, %v8084_v0 }
 0x2c2   : > { %v8134_v61 = vadd.f32 %v8133_v26, %v8111_v42 }
 0x2c3   : > { %v8200_v13 = vpop.f32.mrf.mxu3  ;;  %v8169_v8 = vpop.f32.mrf.mxu2 }
 0x2c4   : > { %v8226_v39 = vpop.f32.mrf.mxu0  ;;  %v8703_v34 = vsel %vm575_vm0, %v8134_v61, 0.0  ;;  %v8201_v24 = vadd.f32 %v8200_v13, %v8169_v8 }
 0x2c5   : > { %v8704_v7 = vadd.f32 %v8703_v34, %v11391_v44 }
 0x2c6   : > { %v8227_v3 = vadd.f32 %v8226_v39, %v8201_v24 }
 0x2c7   : > { %v8796_v18 = vmul.f32 %v9118_v2, %v8704_v7  ;;  %v8251_v47 = vpop.f32.mrf.mxu1 }
 0x2c8   : > { %v8252_v14 = vadd.f32 %v8251_v47, %v8227_v3 }
 0x2c9   : > { %v8876_v57 = vadd.f32 %v9119_v62, %v8796_v18 }
 0x2cb   : > { %v8301_v38 = vpop.f32.mrf.mxu3  ;;  %v8278_v1 = vpop.f32.mrf.mxu2  ;;  %8892 = vst.msk [vmem:[%s11640_s14 + $0x60] sm:$0xff] %vm575_vm0, %v8876_v57 }
 0x2cc   : > { %v8337_v55 = vpop.f32.mrf.mxu0  ;;  %v8279_v54 = vadd.f32 %v8278_v1, %v8252_v14 }
 0x2ce   : > { %v8302_v30 = vadd.f32 %v8301_v38, %v8279_v54 }
 0x2cf   : > { %v8368_v40 = vpop.f32.mrf.mxu1 }
 0x2d0   : > { %v8708_v15 = vsel %vm575_vm0, %v8302_v30, 0.0  ;;  %v8369_v12 = vadd.f32 %v8368_v40, %v8337_v55 }
 0x2d1   : > { %v8709_v44 = vadd.f32 %v8708_v15, %v11452_v29  ;;  %v9122_v29 = vld [vmem:[%s10990_s27 + $0xe] ss:$0 sm:$0xff] }
 0x2d3   : > { %v8419_v41 = vpop.f32.mrf.mxu3  ;;  %v8394_v37 = vpop.f32.mrf.mxu2  ;;  %v8797_v19 = vmul.f32 %v9120_v35, %v8709_v44 }
 0x2d4   : > { %v8446_v28 = vpop.f32.mrf.mxu0  ;;  %v8395_v43 = vadd.f32 %v8394_v37, %v8369_v12 }
 0x2d5   : > { %v8877_v17 = vadd.f32 %v9121_v32, %v8797_v19 }
 0x2d6   : > { %v8420_v6 = vadd.f32 %v8419_v41, %v8395_v43 }
 0x2d7   : > { %8893 = vst.msk [vmem:[%s11640_s14 + $0x68] sm:$0xff] %vm575_vm0, %v8877_v17  ;;  %v8469_v36 = vpop.f32.mrf.mxu1 }
 0x2d8   : > { %v8447_v10 = vadd.f32 %v8446_v28, %v8420_v6 }
 0x2da   : > { %v8470_v46 = vadd.f32 %v8469_v36, %v8447_v10 }
 0x2db   : > { %v8536_v59 = vpop.f32.mrf.mxu3  ;;  %v8505_v16 = vpop.f32.mrf.mxu2 }
 0x2dc   : > { %v8713_v49 = vsel %vm575_vm0, %v8470_v46, 0.0  ;;  %v8537_v9 = vadd.f32 %v8536_v59, %v8505_v16  ;;  %v8562_v25 = vpop.f32.mrf.mxu0 }
 0x2dd   : > { %v8714_v23 = vadd.f32 %v8713_v49, %v11504_v60 }
 0x2de   : > { %v8563_v4 = vadd.f32 %v8562_v25, %v8537_v9 }
 0x2df   : > { %v8798_v31 = vmul.f32 %v9122_v29, %v8714_v23  ;;  %v8587_v52 = vpop.f32.mrf.mxu1 }
 0x2e0   : > { %v8588_v33 = vadd.f32 %v8587_v52, %v8563_v4 }
 0x2e1   : > { %v8878_v56 = vadd.f32 %v9123_v27, %v8798_v31 }
 0x2e3   : > { %v8614_v20 = vpop.f32.mrf.mxu2  ;;  %8894 = vst.msk [vmem:[%s11640_s14 + $0x70] sm:$0xff] %vm575_vm0, %v8878_v56  ;;  %v8637_v22 = vpop.f32.mrf.mxu3 }
 0x2e4   : > { %v8615_v11 = vadd.f32 %v8614_v20, %v8588_v33 }
 0x2e6   : > { %v8638_v51 = vadd.f32 %v8637_v22, %v8615_v11 }
 0x2e8   : > { %v8718_v50 = vsel %vm575_vm0, %v8638_v51, 0.0 }
 0x2e9   : > { %v8719_v60 = vadd.f32 %v8718_v50, %v11565_v48 }
 0x2eb   : > { %v8799_v63 = vmul.f32 %v9124_v58, %v8719_v60 }
 0x2ed   : > { %v8879_v5 = vadd.f32 %v9125_v45, %v8799_v63 }
 0x2ef   : > { %8895 = vst.msk [vmem:[%s11640_s14 + $0x78] sm:$0xff] %vm575_vm0, %v8879_v5 }
 0x2f0 PF: > { %s15_s22 = sadd.s32 1, %s9170_s22   ;;  %s11847_s18 = smov %s9162_s20 }
 0x2f1   : > { %p12_p7 = scmp.ge.s32.totalorder %s15_s22, 10   ;;  %s11848_s19 = smov %s9166_s21 }
 0x2f2   : > { %s11849_s20 = smov %s11852_s23  ;;  %s11850_s21 = smov %s11856_s24 }
 0x2f3   :  { %14 = sbr.rel (!%p12_p7) target bundleno = 3 (0x3), region = 79 }

</bundles_post_ra>
